<compile_context>
chip_gen: v6e
topology: v6e:2x2x1
jax: 0.10.0
libtpu: 0.0.40
codegen_flags: <defaults>
</compile_context>

<pallas_src>
import math

import jax
import jax.numpy as jnp
from jax.experimental import pallas as pl
from jax.experimental.pallas import tpu as pltpu


# ----------------------------------------------------------------------------
# Kernel
# ----------------------------------------------------------------------------
def _make_model_kernel(TB, S, D, H, nhid, nlayers):
    """Forward pass for a block of TB batch elements (grid axis = batch blocks)."""
    hd = D // H
    N = TB * S                           # flattened rows per grid step
    eps = 1e-5
    emb_scale = math.sqrt(D)
    bf16 = jnp.bfloat16
    f32 = jnp.float32

    def layer_norm(x, g, b):
        mu = jnp.mean(x, axis=-1, keepdims=True)
        var = jnp.mean((x - mu) ** 2, axis=-1, keepdims=True)
        return (x - mu) * jax.lax.rsqrt(var + eps) * g + b

    def mm(a, w_bf16):
        # bf16 MXU operands, f32 accumulation; epilogues stay f32.
        return jnp.dot(a.astype(bf16), w_bf16, preferred_element_type=f32)

    def kernel(emb_ref, pe_ref, win_ref, bin_ref, wout_ref, bout_ref,
               w1_ref, b1_ref, w2_ref, b2_ref,
               g1_ref, be1_ref, g2_ref, be2_ref,
               dw_ref, db_ref, o_ref):
        # ---- fused prelude: x = emb*sqrt(D) + pe, flattened to (TB*S, D) ----
        x = (emb_ref[...] * emb_scale + pe_ref[...]).reshape(N, D)

        def layer_body(l, x):
            # Per-layer weights: dynamic leading-axis reads of the VMEM-resident
            # stacks (cheap); fori_loop bounds live ranges vs a static unroll.
            win_l, bin_l = win_ref[l], bin_ref[l]
            wout_l, bout_l = wout_ref[l], bout_ref[l]
            w1_l, b1_l = w1_ref[l], b1_ref[l]
            w2_l, b2_l = w2_ref[l], b2_ref[l]
            g1_l, be1_l = g1_ref[l], be1_ref[l]
            g2_l, be2_l = g2_ref[l], be2_ref[l]

            # ---- fused QKV projection on the flat slab (qk scale pre-folded) ----
            qkv = mm(x, win_l) + bin_l                           # (N, 3D) f32
            qkv3 = qkv.astype(bf16).reshape(TB, S, 3 * D)        # single bf16 cast

            # ---- attention: heads = static lane slices (no stack/concat);
            #      per-head matmuls batched over TB; the head re-concat is folded
            #      into W_out as a sum of per-head (hd, D) contractions. ----
            attn = jnp.zeros((N, D), f32)
            for h in range(H):
                lo = h * hd
                q_h = qkv3[:, :, lo:lo + hd]                     # (TB, S, hd) bf16
                k_h = qkv3[:, :, D + lo:D + lo + hd]
                v_h = qkv3[:, :, 2 * D + lo:2 * D + lo + hd]
                s = jnp.einsum('bsd,btd->bst', q_h, k_h,
                               preferred_element_type=f32)       # (TB, S, S)
                s = s - jnp.max(s, axis=-1, keepdims=True)
                p = jnp.exp(s)
                p = p * pl.reciprocal(jnp.sum(p, axis=-1, keepdims=True),
                                      approx=True)
                ctx = jnp.einsum('bst,btd->bsd', p.astype(bf16), v_h,
                                 preferred_element_type=f32)     # (TB, S, hd)
                attn = attn + mm(ctx.reshape(N, hd), wout_l[lo:lo + hd, :])
            attn = attn + bout_l

            # ---- residual + LayerNorm 1 (post-norm) ----
            y = layer_norm(x + attn, g1_l, be1_l)

            # ---- feed-forward (relu) ----
            h1 = jnp.maximum(mm(y, w1_l) + b1_l, 0.0)
            h2 = mm(h1, w2_l) + b2_l

            # ---- residual + LayerNorm 2 ----
            return layer_norm(y + h2, g2_l, be2_l)

        x = jax.lax.fori_loop(0, nlayers, layer_body, x)

        # ---- decoder Linear(D -> 1): dec_w(1,D) x x^T keeps the N rows on the
        #      lane axis -> lane-dense (1, 1, N) store (no width-1 masked column).
        dec = jax.lax.dot_general(dw_ref[...], x.astype(bf16),
                                  (((1,), (1,)), ((), ())),
                                  preferred_element_type=f32)    # (1, N)
        o_ref[0] = dec + db_ref[...]

    return kernel


# ----------------------------------------------------------------------------
# Parameters (PyTorch-like layout) + positional encoding
# ----------------------------------------------------------------------------
def make_positional_encoding(max_len, d_model):
    position = jnp.arange(max_len, dtype=jnp.float32)[:, None]
    div_term = jnp.exp(jnp.arange(0, d_model, 2, dtype=jnp.float32)
                       * (-math.log(10000.0) / d_model))
    pe = jnp.zeros((max_len, d_model), jnp.float32)
    pe = pe.at[:, 0::2].set(jnp.sin(position * div_term))
    pe = pe.at[:, 1::2].set(jnp.cos(position * div_term))
    return pe                                              # (max_len, D)


def init_params(key, ntoken, ninp, nhid, nlayers, max_len=256):
    # TODO(synk): encoder-layer init is uniform(+-0.1) (benchmark setup), not
    #             nn.TransformerEncoderLayer's default init.
    initrange = 0.1
    keys = jax.random.split(key, 2 + nlayers)
    params = {
        "embedding": jax.random.uniform(keys[0], (ntoken, ninp), jnp.float32,
                                        -initrange, initrange),
        "pe": make_positional_encoding(max_len, ninp),
        "dec_w": jax.random.uniform(keys[1], (1, ninp), jnp.float32,
                                    -initrange, initrange),
        "dec_b": jnp.zeros((1, 1), jnp.float32),
        "layers": [],
    }
    for i in range(nlayers):
        ks = jax.random.split(keys[2 + i], 6)
        params["layers"].append(dict(
            win=jax.random.uniform(ks[0], (3 * ninp, ninp), jnp.float32, -0.1, 0.1),
            bin=jnp.zeros((3 * ninp,), jnp.float32),
            wout=jax.random.uniform(ks[1], (ninp, ninp), jnp.float32, -0.1, 0.1),
            bout=jnp.zeros((ninp,), jnp.float32),
            w1=jax.random.uniform(ks[2], (nhid, ninp), jnp.float32, -0.1, 0.1),
            b1=jax.random.uniform(ks[3], (nhid,), jnp.float32, -0.1, 0.1),
            w2=jax.random.uniform(ks[4], (ninp, nhid), jnp.float32, -0.1, 0.1),
            b2=jax.random.uniform(ks[5], (ninp,), jnp.float32, -0.1, 0.1),
            g1=jnp.ones((ninp,), jnp.float32),
            be1=jnp.zeros((ninp,), jnp.float32),
            g2=jnp.ones((ninp,), jnp.float32),
            be2=jnp.zeros((ninp,), jnp.float32),
        ))
    return params


# ----------------------------------------------------------------------------
# Forward wrapper
# ----------------------------------------------------------------------------
def _pick_batch_block(B, S):
    """Batch elements per grid step: aim for >=128 flattened rows per step (fills
    the MXU M dim and makes the output store lane-dense), cap at 16, but keep at
    least 2 grid steps when the batch allows it so both v7x TensorCores get work."""
    tb = max(1, min(B, 16, max(1, 128 // max(S, 1))))
    if tb > 1 and pl.cdiv(B, tb) < 2:
        tb = max(1, pl.cdiv(B, 2))
    return tb


def transformer_forward(src, params, *, nhead):
    """src: (S, B) int32 token ids (PyTorch seq-first). Returns (S, B) float32."""
    S, B = src.shape
    D = params["embedding"].shape[1]
    L = len(params["layers"])
    nhid = params["layers"][0]["w1"].shape[0]
    assert D % nhead == 0
    hd = D // nhead
    qk_scale = 1.0 / math.sqrt(hd)
    bf16 = jnp.bfloat16

    # ---- batch blocking ----
    TB = _pick_batch_block(B, S)
    nb = pl.cdiv(B, TB)
    B_pad = nb * TB
    N = TB * S

    # ---- glue: embedding gather -> batch-first (B, S, D); PE table (S, D) ----
    emb = jnp.take(params["embedding"], src.T, axis=0)           # (B, S, D) f32
    if B_pad != B:
        emb = jnp.pad(emb, ((0, B_pad - B), (0, 0), (0, 0)))
    pe = params["pe"][:S]                                        # (S, D)

    # ---- parameter prep (once): stack layers, pre-transpose to (in, out),
    #      fold 1/sqrt(hd) into the Q projection, cast MXU operands to bf16 ----
    def stack(name):
        return jnp.stack([lp[name] for lp in params["layers"]])

    win = jnp.swapaxes(stack("win"), 1, 2)                       # (L, D, 3D)
    win = win.at[:, :, :D].multiply(qk_scale)
    bin_ = stack("bin").at[:, :D].multiply(qk_scale)[:, None, :]   # (L, 1, 3D)
    wout = jnp.swapaxes(stack("wout"), 1, 2)                     # (L, D, D)
    bout = stack("bout")[:, None, :]                             # (L, 1, D)
    w1 = jnp.swapaxes(stack("w1"), 1, 2)                         # (L, D, nhid)
    b1 = stack("b1")[:, None, :]                                 # (L, 1, nhid)
    w2 = jnp.swapaxes(stack("w2"), 1, 2)                         # (L, nhid, D)
    b2 = stack("b2")[:, None, :]                                 # (L, 1, D)
    g1, be1 = stack("g1")[:, None, :], stack("be1")[:, None, :]
    g2, be2 = stack("g2")[:, None, :], stack("be2")[:, None, :]

    win, wout, w1, w2 = (w.astype(bf16) for w in (win, wout, w1, w2))
    dec_w = params["dec_w"].astype(bf16)                         # (1, D) bf16
    dec_b = params["dec_b"]                                      # (1, 1) f32

    weights = (win, bin_, wout, bout, w1, b1, w2, b2,
               g1, be1, g2, be2, dec_w, dec_b)

    kernel = _make_model_kernel(TB, S, D, nhead, nhid, L)

    # ---- VMEM budget: per-generation cap + buffering factor + score buffers ----
    try:
        phys_vmem = int(pltpu.get_tpu_info().vmem_capacity_bytes)
    except Exception:
        phys_vmem = 64 << 20                         # conservative (v7x per-core)
    vmem_cap = max(16 << 20, (phys_vmem * 3) // 4)   # ~48 MiB v7x, ~96 MiB v5e/v6e

    def vmem_budget(weight_buf_factor):
        wbytes = sum(int(w.size) * w.dtype.itemsize for w in weights)
        wbytes = (wbytes + int(pe.size) * pe.dtype.itemsize) * weight_buf_factor
        io_bytes = 2 * (TB * S * D * 4) + 2 * (N * 4)            # pipelined emb + out
        act = 4 * N * (2 * D + 3 * D + nhid + 2 * D) + 2 * N * 3 * D  # x/qkv/h1/attn
        act += 3 * 4 * TB * S * S                                 # per-head s/p buffers
        return wbytes + io_bytes + act + (4 << 20)                # + headroom

    # ---- BlockSpecs: activations tiled per batch block, weights VMEM-resident ----
    def build_call(weight_mode):
        def resident(a):
            zeros = (0,) * a.ndim
            imap = lambda i, _z=zeros: _z
            if weight_mode is None:
                return pl.BlockSpec(a.shape, imap)
            return pl.BlockSpec(a.shape, imap, pipeline_mode=weight_mode)

        in_specs = ([pl.BlockSpec((TB, S, D), lambda i: (i, 0, 0))]   # embeddings
                    + [resident(pe)]                                   # shared PE
                    + [resident(w) for w in weights])
        out_specs = pl.BlockSpec((1, 1, N), lambda i: (i, 0, 0))       # lane-dense row

        buf_factor = 1 if weight_mode is not None else 2
        vmem_limit = int(min(max(vmem_budget(buf_factor), 16 << 20), vmem_cap))

        return pl.pallas_call(
            kernel,
            out_shape=jax.ShapeDtypeStruct((nb, 1, N), jnp.float32),
            grid_spec=pltpu.PrefetchScalarGridSpec(
                num_scalar_prefetch=0,
                grid=(nb,),
                in_specs=in_specs,
                out_specs=out_specs,
            ),
            compiler_params=pltpu.CompilerParams(
                dimension_semantics=("parallel",),
                vmem_limit_bytes=vmem_limit,
            ),
        )

    # Prefer single-buffered resident weights (pl.Buffered(1)); fall back to the
    # default double buffering if this jax version rejects that pipeline_mode.
    buffered = getattr(pl, "Buffered", None)
    modes = ([buffered(1)] if buffered is not None else []) + [None]
    out = None
    last_err = None
    for mode in modes:
        try:
            out = build_call(mode)(emb, pe, *weights)
            break
        except Exception as e:            # retry once with default pipelining
            last_err = e
    if out is None:
        raise last_err

    # (nb, 1, TB*S) -> (B, S) -> (S, B); metadata-only reshapes in the wrapper.
    return out.reshape(B_pad, S)[:B].T


# ----------------------------------------------------------------------------
if __name__ == "__main__":
    ntoken, ninp, nhead, nhid, nlayers = 32, 32, 4, 64, 2
    S, B = 8, 16

    key = jax.random.PRNGKey(0)
    pkey, dkey = jax.random.split(key)
    params = init_params(pkey, ntoken, ninp, nhid, nlayers)
    src = jax.random.randint(dkey, (S, B), 0, ntoken, dtype=jnp.int32)

    out = transformer_forward(src, params, nhead=nhead)
    out = jax.block_until_ready(out)
    assert out.shape == (S, B) and out.dtype == jnp.float32
    print("KERNEL_OK")
</pallas_src>

<mosaic_0001>
module attributes {stable_mosaic.version = 11 : i64} {
  func.func @kernel(%arg0: i32, %arg1: memref<8x8x32xf32, #tpu.memory_space<vmem>>, %arg2: memref<8x32xf32, #tpu.memory_space<vmem>>, %arg3: memref<2x32x96xbf16, #tpu.memory_space<vmem>>, %arg4: memref<2x1x96xf32, #tpu.memory_space<vmem>>, %arg5: memref<2x32x32xbf16, #tpu.memory_space<vmem>>, %arg6: memref<2x1x32xf32, #tpu.memory_space<vmem>>, %arg7: memref<2x32x64xbf16, #tpu.memory_space<vmem>>, %arg8: memref<2x1x64xf32, #tpu.memory_space<vmem>>, %arg9: memref<2x64x32xbf16, #tpu.memory_space<vmem>>, %arg10: memref<2x1x32xf32, #tpu.memory_space<vmem>>, %arg11: memref<2x1x32xf32, #tpu.memory_space<vmem>>, %arg12: memref<2x1x32xf32, #tpu.memory_space<vmem>>, %arg13: memref<2x1x32xf32, #tpu.memory_space<vmem>>, %arg14: memref<2x1x32xf32, #tpu.memory_space<vmem>>, %arg15: memref<1x32xbf16, #tpu.memory_space<vmem>>, %arg16: memref<1x1xf32, #tpu.memory_space<vmem>>, %arg17: memref<1x1x64xf32, #tpu.memory_space<vmem>>) attributes {dimension_semantics = [#tpu.dimension_semantics<parallel>], iteration_bounds = array<i64: 2>, scalar_prefetch = 0 : i64, scratch_operands = 0 : i64, tpu.core_type = #tpu.core_type<tc>, window_params = [{transform_indices = @transform_0, window_bounds = array<i64: 8, 8, 32>}, {pipeline_mode = #tpu.pipeline_mode<synchronous>, transform_indices = @transform_1, window_bounds = array<i64: 8, 32>}, {pipeline_mode = #tpu.pipeline_mode<synchronous>, transform_indices = @transform_2, window_bounds = array<i64: 2, 32, 96>}, {pipeline_mode = #tpu.pipeline_mode<synchronous>, transform_indices = @transform_3, window_bounds = array<i64: 2, 1, 96>}, {pipeline_mode = #tpu.pipeline_mode<synchronous>, transform_indices = @transform_4, window_bounds = array<i64: 2, 32, 32>}, {pipeline_mode = #tpu.pipeline_mode<synchronous>, transform_indices = @transform_5, window_bounds = array<i64: 2, 1, 32>}, {pipeline_mode = #tpu.pipeline_mode<synchronous>, transform_indices = @transform_6, window_bounds = array<i64: 2, 32, 64>}, {pipeline_mode = #tpu.pipeline_mode<synchronous>, transform_indices = @transform_7, window_bounds = array<i64: 2, 1, 64>}, {pipeline_mode = #tpu.pipeline_mode<synchronous>, transform_indices = @transform_8, window_bounds = array<i64: 2, 64, 32>}, {pipeline_mode = #tpu.pipeline_mode<synchronous>, transform_indices = @transform_9, window_bounds = array<i64: 2, 1, 32>}, {pipeline_mode = #tpu.pipeline_mode<synchronous>, transform_indices = @transform_10, window_bounds = array<i64: 2, 1, 32>}, {pipeline_mode = #tpu.pipeline_mode<synchronous>, transform_indices = @transform_11, window_bounds = array<i64: 2, 1, 32>}, {pipeline_mode = #tpu.pipeline_mode<synchronous>, transform_indices = @transform_12, window_bounds = array<i64: 2, 1, 32>}, {pipeline_mode = #tpu.pipeline_mode<synchronous>, transform_indices = @transform_13, window_bounds = array<i64: 2, 1, 32>}, {pipeline_mode = #tpu.pipeline_mode<synchronous>, transform_indices = @transform_14, window_bounds = array<i64: 1, 32>}, {pipeline_mode = #tpu.pipeline_mode<synchronous>, transform_indices = @transform_15, window_bounds = array<i64: 1, 1>}, {transform_indices = @transform_16, window_bounds = array<i64: 1, 1, 64>}]} {
    %c0 = arith.constant 0 : index
    %c0_0 = arith.constant 0 : index
    %c0_1 = arith.constant 0 : index
    %0 = vector.load %arg1[%c0, %c0_0, %c0_1] : memref<8x8x32xf32, #tpu.memory_space<vmem>>, vector<8x8x32xf32>
    %cst = arith.constant 5.65685415 : f32
    %1 = vector.broadcast %cst : f32 to vector<8x8x32xf32>
    %2 = arith.mulf %0, %1 : vector<8x8x32xf32>
    %c0_2 = arith.constant 0 : index
    %c0_3 = arith.constant 0 : index
    %3 = vector.load %arg2[%c0_2, %c0_3] : memref<8x32xf32, #tpu.memory_space<vmem>>, vector<8x32xf32>
    %4 = vector.shape_cast %3 : vector<8x32xf32> to vector<1x8x32xf32>
    %5 = vector.broadcast %4 : vector<1x8x32xf32> to vector<8x8x32xf32>
    %6 = arith.addf %2, %5 : vector<8x8x32xf32>
    %7 = vector.shape_cast %6 : vector<8x8x32xf32> to vector<64x32xf32>
    %c0_i32 = arith.constant 0 : i32
    %c2_i32 = arith.constant 2 : i32
    %8 = arith.addi %c0_i32, %c2_i32 : i32
    %c1_i32 = arith.constant 1 : i32
    %9 = scf.for %arg18 = %c0_i32 to %8 step %c1_i32 iter_args(%arg19 = %7) -> (vector<64x32xf32>)  : i32 {
      %19 = arith.index_cast %arg18 : i32 to index
      %c0_13 = arith.constant 0 : index
      %c0_14 = arith.constant 0 : index
      %20 = vector.load %arg3[%19, %c0_13, %c0_14] : memref<2x32x96xbf16, #tpu.memory_space<vmem>>, vector<1x32x96xbf16>
      %21 = vector.shape_cast %20 : vector<1x32x96xbf16> to vector<32x96xbf16>
      %22 = arith.index_cast %arg18 : i32 to index
      %c0_15 = arith.constant 0 : index
      %c0_16 = arith.constant 0 : index
      %23 = vector.load %arg4[%22, %c0_15, %c0_16] : memref<2x1x96xf32, #tpu.memory_space<vmem>>, vector<1x1x96xf32>
      %24 = vector.shape_cast %23 : vector<1x1x96xf32> to vector<1x96xf32>
      %25 = arith.index_cast %arg18 : i32 to index
      %c0_17 = arith.constant 0 : index
      %c0_18 = arith.constant 0 : index
      %26 = vector.load %arg5[%25, %c0_17, %c0_18] : memref<2x32x32xbf16, #tpu.memory_space<vmem>>, vector<1x32x32xbf16>
      %27 = vector.shape_cast %26 : vector<1x32x32xbf16> to vector<32x32xbf16>
      %28 = arith.index_cast %arg18 : i32 to index
      %c0_19 = arith.constant 0 : index
      %c0_20 = arith.constant 0 : index
      %29 = vector.load %arg6[%28, %c0_19, %c0_20] : memref<2x1x32xf32, #tpu.memory_space<vmem>>, vector<1x1x32xf32>
      %30 = vector.shape_cast %29 : vector<1x1x32xf32> to vector<1x32xf32>
      %31 = arith.index_cast %arg18 : i32 to index
      %c0_21 = arith.constant 0 : index
      %c0_22 = arith.constant 0 : index
      %32 = vector.load %arg7[%31, %c0_21, %c0_22] : memref<2x32x64xbf16, #tpu.memory_space<vmem>>, vector<1x32x64xbf16>
      %33 = vector.shape_cast %32 : vector<1x32x64xbf16> to vector<32x64xbf16>
      %34 = arith.index_cast %arg18 : i32 to index
      %c0_23 = arith.constant 0 : index
      %c0_24 = arith.constant 0 : index
      %35 = vector.load %arg8[%34, %c0_23, %c0_24] : memref<2x1x64xf32, #tpu.memory_space<vmem>>, vector<1x1x64xf32>
      %36 = vector.shape_cast %35 : vector<1x1x64xf32> to vector<1x64xf32>
      %37 = arith.index_cast %arg18 : i32 to index
      %c0_25 = arith.constant 0 : index
      %c0_26 = arith.constant 0 : index
      %38 = vector.load %arg9[%37, %c0_25, %c0_26] : memref<2x64x32xbf16, #tpu.memory_space<vmem>>, vector<1x64x32xbf16>
      %39 = vector.shape_cast %38 : vector<1x64x32xbf16> to vector<64x32xbf16>
      %40 = arith.index_cast %arg18 : i32 to index
      %c0_27 = arith.constant 0 : index
      %c0_28 = arith.constant 0 : index
      %41 = vector.load %arg10[%40, %c0_27, %c0_28] : memref<2x1x32xf32, #tpu.memory_space<vmem>>, vector<1x1x32xf32>
      %42 = vector.shape_cast %41 : vector<1x1x32xf32> to vector<1x32xf32>
      %43 = arith.index_cast %arg18 : i32 to index
      %c0_29 = arith.constant 0 : index
      %c0_30 = arith.constant 0 : index
      %44 = vector.load %arg11[%43, %c0_29, %c0_30] : memref<2x1x32xf32, #tpu.memory_space<vmem>>, vector<1x1x32xf32>
      %45 = vector.shape_cast %44 : vector<1x1x32xf32> to vector<1x32xf32>
      %46 = arith.index_cast %arg18 : i32 to index
      %c0_31 = arith.constant 0 : index
      %c0_32 = arith.constant 0 : index
      %47 = vector.load %arg12[%46, %c0_31, %c0_32] : memref<2x1x32xf32, #tpu.memory_space<vmem>>, vector<1x1x32xf32>
      %48 = vector.shape_cast %47 : vector<1x1x32xf32> to vector<1x32xf32>
      %49 = arith.index_cast %arg18 : i32 to index
      %c0_33 = arith.constant 0 : index
      %c0_34 = arith.constant 0 : index
      %50 = vector.load %arg13[%49, %c0_33, %c0_34] : memref<2x1x32xf32, #tpu.memory_space<vmem>>, vector<1x1x32xf32>
      %51 = vector.shape_cast %50 : vector<1x1x32xf32> to vector<1x32xf32>
      %52 = arith.index_cast %arg18 : i32 to index
      %c0_35 = arith.constant 0 : index
      %c0_36 = arith.constant 0 : index
      %53 = vector.load %arg14[%52, %c0_35, %c0_36] : memref<2x1x32xf32, #tpu.memory_space<vmem>>, vector<1x1x32xf32>
      %54 = vector.shape_cast %53 : vector<1x1x32xf32> to vector<1x32xf32>
      %55 = arith.truncf %arg19 : vector<64x32xf32> to vector<64x32xbf16>
      %cst_37 = arith.constant dense<0.000000e+00> : vector<64x96xf32>
      %56 = tpu.matmul %55, %21, %cst_37 {dimension_numbers = #tpu.dot_dimension_numbers<[1], [0], [0], [1], [0, 0, 1, 1], [], []>} : vector<64x32xbf16>, vector<32x96xbf16>, vector<64x96xf32> -> vector<64x96xf32>
      %57 = vector.broadcast %24 : vector<1x96xf32> to vector<64x96xf32>
      %58 = arith.addf %56, %57 : vector<64x96xf32>
      %59 = arith.truncf %58 : vector<64x96xf32> to vector<64x96xbf16>
      %60 = vector.shape_cast %59 : vector<64x96xbf16> to vector<8x8x96xbf16>
      %cst_38 = arith.constant 0.000000e+00 : f32
      %61 = vector.broadcast %cst_38 : f32 to vector<64x32xf32>
      %62 = vector.extract_strided_slice %60 {offsets = [0, 0, 0], sizes = [8, 8, 8], strides = [1, 1, 1]} : vector<8x8x96xbf16> to vector<8x8x8xbf16>
      %63 = vector.extract_strided_slice %60 {offsets = [0, 0, 32], sizes = [8, 8, 8], strides = [1, 1, 1]} : vector<8x8x96xbf16> to vector<8x8x8xbf16>
      %64 = vector.extract_strided_slice %60 {offsets = [0, 0, 64], sizes = [8, 8, 8], strides = [1, 1, 1]} : vector<8x8x96xbf16> to vector<8x8x8xbf16>
      "tpu.trace_start"() <{level = 10 : i32, message = "bsd,btd->bst"}> : () -> ()
      %cst_39 = arith.constant dense<0.000000e+00> : vector<8x8x8xf32>
      %65 = tpu.matmul %62, %63, %cst_39 {dimension_numbers = #tpu.dot_dimension_numbers<[2], [2], [1], [1], [0, 0, 0, 1, 1, 1], [0], [0]>} : vector<8x8x8xbf16>, vector<8x8x8xbf16>, vector<8x8x8xf32> -> vector<8x8x8xf32>
      "tpu.trace_stop"() : () -> ()
      %cst_40 = arith.constant dense<0xFF800000> : vector<8x8xf32>
      %66 = vector.multi_reduction <maximumf>, %65, %cst_40 [2] : vector<8x8x8xf32> to vector<8x8xf32>
      %67 = vector.shape_cast %66 : vector<8x8xf32> to vector<8x8x1xf32>
      %68 = vector.broadcast %67 : vector<8x8x1xf32> to vector<8x8x8xf32>
      %69 = arith.subf %65, %68 : vector<8x8x8xf32>
      %70 = math.exp %69 : vector<8x8x8xf32>
      %cst_41 = arith.constant dense<0.000000e+00> : vector<8x8xf32>
      %71 = vector.multi_reduction <add>, %70, %cst_41 [2] : vector<8x8x8xf32> to vector<8x8xf32>
      %72 = vector.shape_cast %71 : vector<8x8xf32> to vector<8x8x1xf32>
      %73 = tpu.reciprocal %72 {approx = true} : vector<8x8x1xf32> -> vector<8x8x1xf32>
      %74 = vector.broadcast %73 : vector<8x8x1xf32> to vector<8x8x8xf32>
      %75 = arith.mulf %70, %74 : vector<8x8x8xf32>
      %76 = arith.truncf %75 : vector<8x8x8xf32> to vector<8x8x8xbf16>
      "tpu.trace_start"() <{level = 10 : i32, message = "bst,btd->bsd"}> : () -> ()
      %cst_42 = arith.constant dense<0.000000e+00> : vector<8x8x8xf32>
      %77 = tpu.matmul %76, %64, %cst_42 {dimension_numbers = #tpu.dot_dimension_numbers<[2], [1], [1], [2], [0, 0, 0, 1, 1, 2], [0], [0]>} : vector<8x8x8xbf16>, vector<8x8x8xbf16>, vector<8x8x8xf32> -> vector<8x8x8xf32>
      "tpu.trace_stop"() : () -> ()
      %78 = vector.shape_cast %77 : vector<8x8x8xf32> to vector<64x8xf32>
      %79 = vector.extract_strided_slice %27 {offsets = [0, 0], sizes = [8, 32], strides = [1, 1]} : vector<32x32xbf16> to vector<8x32xbf16>
      %80 = arith.truncf %78 : vector<64x8xf32> to vector<64x8xbf16>
      %cst_43 = arith.constant dense<0.000000e+00> : vector<64x32xf32>
      %81 = tpu.matmul %80, %79, %cst_43 {dimension_numbers = #tpu.dot_dimension_numbers<[1], [0], [0], [1], [0, 0, 1, 1], [], []>} : vector<64x8xbf16>, vector<8x32xbf16>, vector<64x32xf32> -> vector<64x32xf32>
      %82 = arith.addf %61, %81 : vector<64x32xf32>
      %83 = vector.extract_strided_slice %60 {offsets = [0, 0, 8], sizes = [8, 8, 8], strides = [1, 1, 1]} : vector<8x8x96xbf16> to vector<8x8x8xbf16>
      %84 = vector.extract_strided_slice %60 {offsets = [0, 0, 40], sizes = [8, 8, 8], strides = [1, 1, 1]} : vector<8x8x96xbf16> to vector<8x8x8xbf16>
      %85 = vector.extract_strided_slice %60 {offsets = [0, 0, 72], sizes = [8, 8, 8], strides = [1, 1, 1]} : vector<8x8x96xbf16> to vector<8x8x8xbf16>
      "tpu.trace_start"() <{level = 10 : i32, message = "bsd,btd->bst"}> : () -> ()
      %cst_44 = arith.constant dense<0.000000e+00> : vector<8x8x8xf32>
      %86 = tpu.matmul %83, %84, %cst_44 {dimension_numbers = #tpu.dot_dimension_numbers<[2], [2], [1], [1], [0, 0, 0, 1, 1, 1], [0], [0]>} : vector<8x8x8xbf16>, vector<8x8x8xbf16>, vector<8x8x8xf32> -> vector<8x8x8xf32>
      "tpu.trace_stop"() : () -> ()
      %cst_45 = arith.constant dense<0xFF800000> : vector<8x8xf32>
      %87 = vector.multi_reduction <maximumf>, %86, %cst_45 [2] : vector<8x8x8xf32> to vector<8x8xf32>
      %88 = vector.shape_cast %87 : vector<8x8xf32> to vector<8x8x1xf32>
      %89 = vector.broadcast %88 : vector<8x8x1xf32> to vector<8x8x8xf32>
      %90 = arith.subf %86, %89 : vector<8x8x8xf32>
      %91 = math.exp %90 : vector<8x8x8xf32>
      %cst_46 = arith.constant dense<0.000000e+00> : vector<8x8xf32>
      %92 = vector.multi_reduction <add>, %91, %cst_46 [2] : vector<8x8x8xf32> to vector<8x8xf32>
      %93 = vector.shape_cast %92 : vector<8x8xf32> to vector<8x8x1xf32>
      %94 = tpu.reciprocal %93 {approx = true} : vector<8x8x1xf32> -> vector<8x8x1xf32>
      %95 = vector.broadcast %94 : vector<8x8x1xf32> to vector<8x8x8xf32>
      %96 = arith.mulf %91, %95 : vector<8x8x8xf32>
      %97 = arith.truncf %96 : vector<8x8x8xf32> to vector<8x8x8xbf16>
      "tpu.trace_start"() <{level = 10 : i32, message = "bst,btd->bsd"}> : () -> ()
      %cst_47 = arith.constant dense<0.000000e+00> : vector<8x8x8xf32>
      %98 = tpu.matmul %97, %85, %cst_47 {dimension_numbers = #tpu.dot_dimension_numbers<[2], [1], [1], [2], [0, 0, 0, 1, 1, 2], [0], [0]>} : vector<8x8x8xbf16>, vector<8x8x8xbf16>, vector<8x8x8xf32> -> vector<8x8x8xf32>
      "tpu.trace_stop"() : () -> ()
      %99 = vector.shape_cast %98 : vector<8x8x8xf32> to vector<64x8xf32>
      %100 = vector.extract_strided_slice %27 {offsets = [8, 0], sizes = [8, 32], strides = [1, 1]} : vector<32x32xbf16> to vector<8x32xbf16>
      %101 = arith.truncf %99 : vector<64x8xf32> to vector<64x8xbf16>
      %cst_48 = arith.constant dense<0.000000e+00> : vector<64x32xf32>
      %102 = tpu.matmul %101, %100, %cst_48 {dimension_numbers = #tpu.dot_dimension_numbers<[1], [0], [0], [1], [0, 0, 1, 1], [], []>} : vector<64x8xbf16>, vector<8x32xbf16>, vector<64x32xf32> -> vector<64x32xf32>
      %103 = arith.addf %82, %102 : vector<64x32xf32>
      %104 = vector.extract_strided_slice %60 {offsets = [0, 0, 16], sizes = [8, 8, 8], strides = [1, 1, 1]} : vector<8x8x96xbf16> to vector<8x8x8xbf16>
      %105 = vector.extract_strided_slice %60 {offsets = [0, 0, 48], sizes = [8, 8, 8], strides = [1, 1, 1]} : vector<8x8x96xbf16> to vector<8x8x8xbf16>
      %106 = vector.extract_strided_slice %60 {offsets = [0, 0, 80], sizes = [8, 8, 8], strides = [1, 1, 1]} : vector<8x8x96xbf16> to vector<8x8x8xbf16>
      "tpu.trace_start"() <{level = 10 : i32, message = "bsd,btd->bst"}> : () -> ()
      %cst_49 = arith.constant dense<0.000000e+00> : vector<8x8x8xf32>
      %107 = tpu.matmul %104, %105, %cst_49 {dimension_numbers = #tpu.dot_dimension_numbers<[2], [2], [1], [1], [0, 0, 0, 1, 1, 1], [0], [0]>} : vector<8x8x8xbf16>, vector<8x8x8xbf16>, vector<8x8x8xf32> -> vector<8x8x8xf32>
      "tpu.trace_stop"() : () -> ()
      %cst_50 = arith.constant dense<0xFF800000> : vector<8x8xf32>
      %108 = vector.multi_reduction <maximumf>, %107, %cst_50 [2] : vector<8x8x8xf32> to vector<8x8xf32>
      %109 = vector.shape_cast %108 : vector<8x8xf32> to vector<8x8x1xf32>
      %110 = vector.broadcast %109 : vector<8x8x1xf32> to vector<8x8x8xf32>
      %111 = arith.subf %107, %110 : vector<8x8x8xf32>
      %112 = math.exp %111 : vector<8x8x8xf32>
      %cst_51 = arith.constant dense<0.000000e+00> : vector<8x8xf32>
      %113 = vector.multi_reduction <add>, %112, %cst_51 [2] : vector<8x8x8xf32> to vector<8x8xf32>
      %114 = vector.shape_cast %113 : vector<8x8xf32> to vector<8x8x1xf32>
      %115 = tpu.reciprocal %114 {approx = true} : vector<8x8x1xf32> -> vector<8x8x1xf32>
      %116 = vector.broadcast %115 : vector<8x8x1xf32> to vector<8x8x8xf32>
      %117 = arith.mulf %112, %116 : vector<8x8x8xf32>
      %118 = arith.truncf %117 : vector<8x8x8xf32> to vector<8x8x8xbf16>
      "tpu.trace_start"() <{level = 10 : i32, message = "bst,btd->bsd"}> : () -> ()
      %cst_52 = arith.constant dense<0.000000e+00> : vector<8x8x8xf32>
      %119 = tpu.matmul %118, %106, %cst_52 {dimension_numbers = #tpu.dot_dimension_numbers<[2], [1], [1], [2], [0, 0, 0, 1, 1, 2], [0], [0]>} : vector<8x8x8xbf16>, vector<8x8x8xbf16>, vector<8x8x8xf32> -> vector<8x8x8xf32>
      "tpu.trace_stop"() : () -> ()
      %120 = vector.shape_cast %119 : vector<8x8x8xf32> to vector<64x8xf32>
      %121 = vector.extract_strided_slice %27 {offsets = [16, 0], sizes = [8, 32], strides = [1, 1]} : vector<32x32xbf16> to vector<8x32xbf16>
      %122 = arith.truncf %120 : vector<64x8xf32> to vector<64x8xbf16>
      %cst_53 = arith.constant dense<0.000000e+00> : vector<64x32xf32>
      %123 = tpu.matmul %122, %121, %cst_53 {dimension_numbers = #tpu.dot_dimension_numbers<[1], [0], [0], [1], [0, 0, 1, 1], [], []>} : vector<64x8xbf16>, vector<8x32xbf16>, vector<64x32xf32> -> vector<64x32xf32>
      %124 = arith.addf %103, %123 : vector<64x32xf32>
      %125 = vector.extract_strided_slice %60 {offsets = [0, 0, 24], sizes = [8, 8, 8], strides = [1, 1, 1]} : vector<8x8x96xbf16> to vector<8x8x8xbf16>
      %126 = vector.extract_strided_slice %60 {offsets = [0, 0, 56], sizes = [8, 8, 8], strides = [1, 1, 1]} : vector<8x8x96xbf16> to vector<8x8x8xbf16>
      %127 = vector.extract_strided_slice %60 {offsets = [0, 0, 88], sizes = [8, 8, 8], strides = [1, 1, 1]} : vector<8x8x96xbf16> to vector<8x8x8xbf16>
      "tpu.trace_start"() <{level = 10 : i32, message = "bsd,btd->bst"}> : () -> ()
      %cst_54 = arith.constant dense<0.000000e+00> : vector<8x8x8xf32>
      %128 = tpu.matmul %125, %126, %cst_54 {dimension_numbers = #tpu.dot_dimension_numbers<[2], [2], [1], [1], [0, 0, 0, 1, 1, 1], [0], [0]>} : vector<8x8x8xbf16>, vector<8x8x8xbf16>, vector<8x8x8xf32> -> vector<8x8x8xf32>
      "tpu.trace_stop"() : () -> ()
      %cst_55 = arith.constant dense<0xFF800000> : vector<8x8xf32>
      %129 = vector.multi_reduction <maximumf>, %128, %cst_55 [2] : vector<8x8x8xf32> to vector<8x8xf32>
      %130 = vector.shape_cast %129 : vector<8x8xf32> to vector<8x8x1xf32>
      %131 = vector.broadcast %130 : vector<8x8x1xf32> to vector<8x8x8xf32>
      %132 = arith.subf %128, %131 : vector<8x8x8xf32>
      %133 = math.exp %132 : vector<8x8x8xf32>
      %cst_56 = arith.constant dense<0.000000e+00> : vector<8x8xf32>
      %134 = vector.multi_reduction <add>, %133, %cst_56 [2] : vector<8x8x8xf32> to vector<8x8xf32>
      %135 = vector.shape_cast %134 : vector<8x8xf32> to vector<8x8x1xf32>
      %136 = tpu.reciprocal %135 {approx = true} : vector<8x8x1xf32> -> vector<8x8x1xf32>
      %137 = vector.broadcast %136 : vector<8x8x1xf32> to vector<8x8x8xf32>
      %138 = arith.mulf %133, %137 : vector<8x8x8xf32>
      %139 = arith.truncf %138 : vector<8x8x8xf32> to vector<8x8x8xbf16>
      "tpu.trace_start"() <{level = 10 : i32, message = "bst,btd->bsd"}> : () -> ()
      %cst_57 = arith.constant dense<0.000000e+00> : vector<8x8x8xf32>
      %140 = tpu.matmul %139, %127, %cst_57 {dimension_numbers = #tpu.dot_dimension_numbers<[2], [1], [1], [2], [0, 0, 0, 1, 1, 2], [0], [0]>} : vector<8x8x8xbf16>, vector<8x8x8xbf16>, vector<8x8x8xf32> -> vector<8x8x8xf32>
      "tpu.trace_stop"() : () -> ()
      %141 = vector.shape_cast %140 : vector<8x8x8xf32> to vector<64x8xf32>
      %142 = vector.extract_strided_slice %27 {offsets = [24, 0], sizes = [8, 32], strides = [1, 1]} : vector<32x32xbf16> to vector<8x32xbf16>
      %143 = arith.truncf %141 : vector<64x8xf32> to vector<64x8xbf16>
      %cst_58 = arith.constant dense<0.000000e+00> : vector<64x32xf32>
      %144 = tpu.matmul %143, %142, %cst_58 {dimension_numbers = #tpu.dot_dimension_numbers<[1], [0], [0], [1], [0, 0, 1, 1], [], []>} : vector<64x8xbf16>, vector<8x32xbf16>, vector<64x32xf32> -> vector<64x32xf32>
      %145 = arith.addf %124, %144 : vector<64x32xf32>
      %146 = vector.broadcast %30 : vector<1x32xf32> to vector<64x32xf32>
      %147 = arith.addf %145, %146 : vector<64x32xf32>
      %148 = arith.addf %arg19, %147 : vector<64x32xf32>
      %cst_59 = arith.constant dense<0.000000e+00> : vector<64xf32>
      %149 = vector.multi_reduction <add>, %148, %cst_59 [1] : vector<64x32xf32> to vector<64xf32>
      %150 = vector.shape_cast %149 : vector<64xf32> to vector<64x1xf32>
      %cst_60 = arith.constant 3.200000e+01 : f32
      %151 = vector.broadcast %cst_60 : f32 to vector<64x1xf32>
      %152 = arith.divf %150, %151 : vector<64x1xf32>
      %153 = vector.broadcast %152 : vector<64x1xf32> to vector<64x32xf32>
      %154 = arith.subf %148, %153 : vector<64x32xf32>
      %155 = arith.mulf %154, %154 : vector<64x32xf32>
      %cst_61 = arith.constant dense<0.000000e+00> : vector<64xf32>
      %156 = vector.multi_reduction <add>, %155, %cst_61 [1] : vector<64x32xf32> to vector<64xf32>
      %157 = vector.shape_cast %156 : vector<64xf32> to vector<64x1xf32>
      %cst_62 = arith.constant 3.200000e+01 : f32
      %158 = vector.broadcast %cst_62 : f32 to vector<64x1xf32>
      %159 = arith.divf %157, %158 : vector<64x1xf32>
      %160 = vector.broadcast %152 : vector<64x1xf32> to vector<64x32xf32>
      %161 = arith.subf %148, %160 : vector<64x32xf32>
      %cst_63 = arith.constant 9.99999974E-6 : f32
      %162 = vector.broadcast %cst_63 : f32 to vector<64x1xf32>
      %163 = arith.addf %159, %162 : vector<64x1xf32>
      %164 = math.rsqrt %163 : vector<64x1xf32>
      %165 = vector.broadcast %164 : vector<64x1xf32> to vector<64x32xf32>
      %166 = arith.mulf %161, %165 : vector<64x32xf32>
      %167 = vector.broadcast %45 : vector<1x32xf32> to vector<64x32xf32>
      %168 = arith.mulf %166, %167 : vector<64x32xf32>
      %169 = vector.broadcast %48 : vector<1x32xf32> to vector<64x32xf32>
      %170 = arith.addf %168, %169 : vector<64x32xf32>
      %171 = arith.truncf %170 : vector<64x32xf32> to vector<64x32xbf16>
      %cst_64 = arith.constant dense<0.000000e+00> : vector<64x64xf32>
      %172 = tpu.matmul %171, %33, %cst_64 {dimension_numbers = #tpu.dot_dimension_numbers<[1], [0], [0], [1], [0, 0, 1, 1], [], []>} : vector<64x32xbf16>, vector<32x64xbf16>, vector<64x64xf32> -> vector<64x64xf32>
      %173 = vector.broadcast %36 : vector<1x64xf32> to vector<64x64xf32>
      %174 = arith.addf %172, %173 : vector<64x64xf32>
      %cst_65 = arith.constant 0.000000e+00 : f32
      %175 = vector.broadcast %cst_65 : f32 to vector<64x64xf32>
      %176 = arith.maximumf %174, %175 : vector<64x64xf32>
      %177 = arith.truncf %176 : vector<64x64xf32> to vector<64x64xbf16>
      %cst_66 = arith.constant dense<0.000000e+00> : vector<64x32xf32>
      %178 = tpu.matmul %177, %39, %cst_66 {dimension_numbers = #tpu.dot_dimension_numbers<[1], [0], [0], [1], [0, 0, 1, 1], [], []>} : vector<64x64xbf16>, vector<64x32xbf16>, vector<64x32xf32> -> vector<64x32xf32>
      %179 = vector.broadcast %42 : vector<1x32xf32> to vector<64x32xf32>
      %180 = arith.addf %178, %179 : vector<64x32xf32>
      %181 = arith.addf %170, %180 : vector<64x32xf32>
      %cst_67 = arith.constant dense<0.000000e+00> : vector<64xf32>
      %182 = vector.multi_reduction <add>, %181, %cst_67 [1] : vector<64x32xf32> to vector<64xf32>
      %183 = vector.shape_cast %182 : vector<64xf32> to vector<64x1xf32>
      %cst_68 = arith.constant 3.200000e+01 : f32
      %184 = vector.broadcast %cst_68 : f32 to vector<64x1xf32>
      %185 = arith.divf %183, %184 : vector<64x1xf32>
      %186 = vector.broadcast %185 : vector<64x1xf32> to vector<64x32xf32>
      %187 = arith.subf %181, %186 : vector<64x32xf32>
      %188 = arith.mulf %187, %187 : vector<64x32xf32>
      %cst_69 = arith.constant dense<0.000000e+00> : vector<64xf32>
      %189 = vector.multi_reduction <add>, %188, %cst_69 [1] : vector<64x32xf32> to vector<64xf32>
      %190 = vector.shape_cast %189 : vector<64xf32> to vector<64x1xf32>
      %cst_70 = arith.constant 3.200000e+01 : f32
      %191 = vector.broadcast %cst_70 : f32 to vector<64x1xf32>
      %192 = arith.divf %190, %191 : vector<64x1xf32>
      %193 = vector.broadcast %185 : vector<64x1xf32> to vector<64x32xf32>
      %194 = arith.subf %181, %193 : vector<64x32xf32>
      %cst_71 = arith.constant 9.99999974E-6 : f32
      %195 = vector.broadcast %cst_71 : f32 to vector<64x1xf32>
      %196 = arith.addf %192, %195 : vector<64x1xf32>
      %197 = math.rsqrt %196 : vector<64x1xf32>
      %198 = vector.broadcast %197 : vector<64x1xf32> to vector<64x32xf32>
      %199 = arith.mulf %194, %198 : vector<64x32xf32>
      %200 = vector.broadcast %51 : vector<1x32xf32> to vector<64x32xf32>
      %201 = arith.mulf %199, %200 : vector<64x32xf32>
      %202 = vector.broadcast %54 : vector<1x32xf32> to vector<64x32xf32>
      %203 = arith.addf %201, %202 : vector<64x32xf32>
      scf.yield %203 : vector<64x32xf32>
    }
    %c2_i32_4 = arith.constant 2 : i32
    %c0_5 = arith.constant 0 : index
    %c0_6 = arith.constant 0 : index
    %10 = vector.load %arg15[%c0_5, %c0_6] : memref<1x32xbf16, #tpu.memory_space<vmem>>, vector<1x32xbf16>
    %11 = arith.truncf %9 : vector<64x32xf32> to vector<64x32xbf16>
    %cst_7 = arith.constant dense<0.000000e+00> : vector<1x64xf32>
    %12 = tpu.matmul %10, %11, %cst_7 {dimension_numbers = #tpu.dot_dimension_numbers<[1], [1], [0], [0], [0, 0, 1, 0], [], []>} : vector<1x32xbf16>, vector<64x32xbf16>, vector<1x64xf32> -> vector<1x64xf32>
    %c0_8 = arith.constant 0 : index
    %c0_9 = arith.constant 0 : index
    %13 = vector.load %arg16[%c0_8, %c0_9] : memref<1x1xf32, #tpu.memory_space<vmem>>, vector<1x1xf32>
    %14 = vector.broadcast %13 : vector<1x1xf32> to vector<1x64xf32>
    %15 = arith.addf %12, %14 : vector<1x64xf32>
    %c0_10 = arith.constant 0 : index
    %c0_11 = arith.constant 0 : index
    %c0_12 = arith.constant 0 : index
    %16 = vector.load %arg17[%c0_10, %c0_11, %c0_12] : memref<1x1x64xf32, #tpu.memory_space<vmem>>, vector<1x1x64xf32>
    %17 = vector.shape_cast %16 : vector<1x1x64xf32> to vector<1x64xf32>
    %18 = vector.shape_cast %15 : vector<1x64xf32> to vector<1x1x64xf32>
    tpu.vector_store %arg17[%c0_10, %c0_11, %c0_12], %18 {strides = array<i32>} : memref<1x1x64xf32, #tpu.memory_space<vmem>>, vector<1x1x64xf32>,
    return
  }
  func.func @transform_0(%arg0: i32) -> (i32, i32, i32) {
    %c0_i32 = arith.constant 0 : i32
    %c0_i32_0 = arith.constant 0 : i32
    %c0_i32_1 = arith.constant 0 : i32
    return %arg0, %c0_i32, %c0_i32_0 : i32, i32, i32
  }
  func.func @transform_1(%arg0: i32) -> (i32, i32) {
    %c0_i32 = arith.constant 0 : i32
    %c0_i32_0 = arith.constant 0 : i32
    %c0_i32_1 = arith.constant 0 : i32
    return %c0_i32, %c0_i32_0 : i32, i32
  }
  func.func @transform_2(%arg0: i32) -> (i32, i32, i32) {
    %c0_i32 = arith.constant 0 : i32
    %c0_i32_0 = arith.constant 0 : i32
    %c0_i32_1 = arith.constant 0 : i32
    %c0_i32_2 = arith.constant 0 : i32
    return %c0_i32, %c0_i32_0, %c0_i32_1 : i32, i32, i32
  }
  func.func @transform_3(%arg0: i32) -> (i32, i32, i32) {
    %c0_i32 = arith.constant 0 : i32
    %c0_i32_0 = arith.constant 0 : i32
    %c0_i32_1 = arith.constant 0 : i32
    %c0_i32_2 = arith.constant 0 : i32
    return %c0_i32, %c0_i32_0, %c0_i32_1 : i32, i32, i32
  }
  func.func @transform_4(%arg0: i32) -> (i32, i32, i32) {
    %c0_i32 = arith.constant 0 : i32
    %c0_i32_0 = arith.constant 0 : i32
    %c0_i32_1 = arith.constant 0 : i32
    %c0_i32_2 = arith.constant 0 : i32
    return %c0_i32, %c0_i32_0, %c0_i32_1 : i32, i32, i32
  }
  func.func @transform_5(%arg0: i32) -> (i32, i32, i32) {
    %c0_i32 = arith.constant 0 : i32
    %c0_i32_0 = arith.constant 0 : i32
    %c0_i32_1 = arith.constant 0 : i32
    %c0_i32_2 = arith.constant 0 : i32
    return %c0_i32, %c0_i32_0, %c0_i32_1 : i32, i32, i32
  }
  func.func @transform_6(%arg0: i32) -> (i32, i32, i32) {
    %c0_i32 = arith.constant 0 : i32
    %c0_i32_0 = arith.constant 0 : i32
    %c0_i32_1 = arith.constant 0 : i32
    %c0_i32_2 = arith.constant 0 : i32
    return %c0_i32, %c0_i32_0, %c0_i32_1 : i32, i32, i32
  }
  func.func @transform_7(%arg0: i32) -> (i32, i32, i32) {
    %c0_i32 = arith.constant 0 : i32
    %c0_i32_0 = arith.constant 0 : i32
    %c0_i32_1 = arith.constant 0 : i32
    %c0_i32_2 = arith.constant 0 : i32
    return %c0_i32, %c0_i32_0, %c0_i32_1 : i32, i32, i32
  }
  func.func @transform_8(%arg0: i32) -> (i32, i32, i32) {
    %c0_i32 = arith.constant 0 : i32
    %c0_i32_0 = arith.constant 0 : i32
    %c0_i32_1 = arith.constant 0 : i32
    %c0_i32_2 = arith.constant 0 : i32
    return %c0_i32, %c0_i32_0, %c0_i32_1 : i32, i32, i32
  }
  func.func @transform_9(%arg0: i32) -> (i32, i32, i32) {
    %c0_i32 = arith.constant 0 : i32
    %c0_i32_0 = arith.constant 0 : i32
    %c0_i32_1 = arith.constant 0 : i32
    %c0_i32_2 = arith.constant 0 : i32
    return %c0_i32, %c0_i32_0, %c0_i32_1 : i32, i32, i32
  }
  func.func @transform_10(%arg0: i32) -> (i32, i32, i32) {
    %c0_i32 = arith.constant 0 : i32
    %c0_i32_0 = arith.constant 0 : i32
    %c0_i32_1 = arith.constant 0 : i32
    %c0_i32_2 = arith.constant 0 : i32
    return %c0_i32, %c0_i32_0, %c0_i32_1 : i32, i32, i32
  }
  func.func @transform_11(%arg0: i32) -> (i32, i32, i32) {
    %c0_i32 = arith.constant 0 : i32
    %c0_i32_0 = arith.constant 0 : i32
    %c0_i32_1 = arith.constant 0 : i32
    %c0_i32_2 = arith.constant 0 : i32
    return %c0_i32, %c0_i32_0, %c0_i32_1 : i32, i32, i32
  }
  func.func @transform_12(%arg0: i32) -> (i32, i32, i32) {
    %c0_i32 = arith.constant 0 : i32
    %c0_i32_0 = arith.constant 0 : i32
    %c0_i32_1 = arith.constant 0 : i32
    %c0_i32_2 = arith.constant 0 : i32
    return %c0_i32, %c0_i32_0, %c0_i32_1 : i32, i32, i32
  }
  func.func @transform_13(%arg0: i32) -> (i32, i32, i32) {
    %c0_i32 = arith.constant 0 : i32
    %c0_i32_0 = arith.constant 0 : i32
    %c0_i32_1 = arith.constant 0 : i32
    %c0_i32_2 = arith.constant 0 : i32
    return %c0_i32, %c0_i32_0, %c0_i32_1 : i32, i32, i32
  }
  func.func @transform_14(%arg0: i32) -> (i32, i32) {
    %c0_i32 = arith.constant 0 : i32
    %c0_i32_0 = arith.constant 0 : i32
    %c0_i32_1 = arith.constant 0 : i32
    return %c0_i32, %c0_i32_0 : i32, i32
  }
  func.func @transform_15(%arg0: i32) -> (i32, i32) {
    %c0_i32 = arith.constant 0 : i32
    %c0_i32_0 = arith.constant 0 : i32
    %c0_i32_1 = arith.constant 0 : i32
    return %c0_i32, %c0_i32_0 : i32, i32
  }
  func.func @transform_16(%arg0: i32) -> (i32, i32, i32) {
    %c0_i32 = arith.constant 0 : i32
    %c0_i32_0 = arith.constant 0 : i32
    %c0_i32_1 = arith.constant 0 : i32
    return %arg0, %c0_i32, %c0_i32_0 : i32, i32, i32
  }
}

module attributes {stable_mosaic.version = 11 : i64} {
  func.func @kernel(%arg0: i32, %arg1: memref<8x8x32xf32, #tpu.memory_space<vmem>>, %arg2: memref<8x32xf32, #tpu.memory_space<vmem>>, %arg3: memref<2x32x96xbf16, #tpu.memory_space<vmem>>, %arg4: memref<2x1x96xf32, #tpu.memory_space<vmem>>, %arg5: memref<2x32x32xbf16, #tpu.memory_space<vmem>>, %arg6: memref<2x1x32xf32, #tpu.memory_space<vmem>>, %arg7: memref<2x32x64xbf16, #tpu.memory_space<vmem>>, %arg8: memref<2x1x64xf32, #tpu.memory_space<vmem>>, %arg9: memref<2x64x32xbf16, #tpu.memory_space<vmem>>, %arg10: memref<2x1x32xf32, #tpu.memory_space<vmem>>, %arg11: memref<2x1x32xf32, #tpu.memory_space<vmem>>, %arg12: memref<2x1x32xf32, #tpu.memory_space<vmem>>, %arg13: memref<2x1x32xf32, #tpu.memory_space<vmem>>, %arg14: memref<2x1x32xf32, #tpu.memory_space<vmem>>, %arg15: memref<1x32xbf16, #tpu.memory_space<vmem>>, %arg16: memref<1x1xf32, #tpu.memory_space<vmem>>, %arg17: memref<1x1x64xf32, #tpu.memory_space<vmem>>) attributes {dimension_semantics = [#tpu.dimension_semantics<parallel>], iteration_bounds = array<i64: 2>, scalar_prefetch = 0 : i64, scratch_operands = 0 : i64, tpu.core_type = #tpu.core_type<tc>, window_params = [{transform_indices = @transform_0, window_bounds = array<i64: 8, 8, 32>}, {pipeline_mode = #tpu.pipeline_mode<synchronous>, transform_indices = @transform_1, window_bounds = array<i64: 8, 32>}, {pipeline_mode = #tpu.pipeline_mode<synchronous>, transform_indices = @transform_2, window_bounds = array<i64: 2, 32, 96>}, {pipeline_mode = #tpu.pipeline_mode<synchronous>, transform_indices = @transform_3, window_bounds = array<i64: 2, 1, 96>}, {pipeline_mode = #tpu.pipeline_mode<synchronous>, transform_indices = @transform_4, window_bounds = array<i64: 2, 32, 32>}, {pipeline_mode = #tpu.pipeline_mode<synchronous>, transform_indices = @transform_5, window_bounds = array<i64: 2, 1, 32>}, {pipeline_mode = #tpu.pipeline_mode<synchronous>, transform_indices = @transform_6, window_bounds = array<i64: 2, 32, 64>}, {pipeline_mode = #tpu.pipeline_mode<synchronous>, transform_indices = @transform_7, window_bounds = array<i64: 2, 1, 64>}, {pipeline_mode = #tpu.pipeline_mode<synchronous>, transform_indices = @transform_8, window_bounds = array<i64: 2, 64, 32>}, {pipeline_mode = #tpu.pipeline_mode<synchronous>, transform_indices = @transform_9, window_bounds = array<i64: 2, 1, 32>}, {pipeline_mode = #tpu.pipeline_mode<synchronous>, transform_indices = @transform_10, window_bounds = array<i64: 2, 1, 32>}, {pipeline_mode = #tpu.pipeline_mode<synchronous>, transform_indices = @transform_11, window_bounds = array<i64: 2, 1, 32>}, {pipeline_mode = #tpu.pipeline_mode<synchronous>, transform_indices = @transform_12, window_bounds = array<i64: 2, 1, 32>}, {pipeline_mode = #tpu.pipeline_mode<synchronous>, transform_indices = @transform_13, window_bounds = array<i64: 2, 1, 32>}, {pipeline_mode = #tpu.pipeline_mode<synchronous>, transform_indices = @transform_14, window_bounds = array<i64: 1, 32>}, {pipeline_mode = #tpu.pipeline_mode<synchronous>, transform_indices = @transform_15, window_bounds = array<i64: 1, 1>}, {transform_indices = @transform_16, window_bounds = array<i64: 1, 1, 64>}]} {
    %c0 = arith.constant 0 : index
    %c0_0 = arith.constant 0 : index
    %c0_1 = arith.constant 0 : index
    %0 = vector.load %arg1[%c0, %c0_0, %c0_1] : memref<8x8x32xf32, #tpu.memory_space<vmem>>, vector<8x8x32xf32>
    %cst = arith.constant 5.65685415 : f32
    %1 = vector.broadcast %cst : f32 to vector<8x8x32xf32>
    %2 = arith.mulf %0, %1 : vector<8x8x32xf32>
    %c0_2 = arith.constant 0 : index
    %c0_3 = arith.constant 0 : index
    %3 = vector.load %arg2[%c0_2, %c0_3] : memref<8x32xf32, #tpu.memory_space<vmem>>, vector<8x32xf32>
    %4 = vector.shape_cast %3 : vector<8x32xf32> to vector<1x8x32xf32>
    %5 = vector.broadcast %4 : vector<1x8x32xf32> to vector<8x8x32xf32>
    %6 = arith.addf %2, %5 : vector<8x8x32xf32>
    %7 = vector.shape_cast %6 : vector<8x8x32xf32> to vector<64x32xf32>
    %c0_i32 = arith.constant 0 : i32
    %c2_i32 = arith.constant 2 : i32
    %8 = arith.addi %c0_i32, %c2_i32 : i32
    %c1_i32 = arith.constant 1 : i32
    %9 = scf.for %arg18 = %c0_i32 to %8 step %c1_i32 iter_args(%arg19 = %7) -> (vector<64x32xf32>)  : i32 {
      %19 = arith.index_cast %arg18 : i32 to index
      %c0_13 = arith.constant 0 : index
      %c0_14 = arith.constant 0 : index
      %20 = vector.load %arg3[%19, %c0_13, %c0_14] : memref<2x32x96xbf16, #tpu.memory_space<vmem>>, vector<1x32x96xbf16>
      %21 = vector.shape_cast %20 : vector<1x32x96xbf16> to vector<32x96xbf16>
      %22 = arith.index_cast %arg18 : i32 to index
      %c0_15 = arith.constant 0 : index
      %c0_16 = arith.constant 0 : index
      %23 = vector.load %arg4[%22, %c0_15, %c0_16] : memref<2x1x96xf32, #tpu.memory_space<vmem>>, vector<1x1x96xf32>
      %24 = vector.shape_cast %23 : vector<1x1x96xf32> to vector<1x96xf32>
      %25 = arith.index_cast %arg18 : i32 to index
      %c0_17 = arith.constant 0 : index
      %c0_18 = arith.constant 0 : index
      %26 = vector.load %arg5[%25, %c0_17, %c0_18] : memref<2x32x32xbf16, #tpu.memory_space<vmem>>, vector<1x32x32xbf16>
      %27 = vector.shape_cast %26 : vector<1x32x32xbf16> to vector<32x32xbf16>
      %28 = arith.index_cast %arg18 : i32 to index
      %c0_19 = arith.constant 0 : index
      %c0_20 = arith.constant 0 : index
      %29 = vector.load %arg6[%28, %c0_19, %c0_20] : memref<2x1x32xf32, #tpu.memory_space<vmem>>, vector<1x1x32xf32>
      %30 = vector.shape_cast %29 : vector<1x1x32xf32> to vector<1x32xf32>
      %31 = arith.index_cast %arg18 : i32 to index
      %c0_21 = arith.constant 0 : index
      %c0_22 = arith.constant 0 : index
      %32 = vector.load %arg7[%31, %c0_21, %c0_22] : memref<2x32x64xbf16, #tpu.memory_space<vmem>>, vector<1x32x64xbf16>
      %33 = vector.shape_cast %32 : vector<1x32x64xbf16> to vector<32x64xbf16>
      %34 = arith.index_cast %arg18 : i32 to index
      %c0_23 = arith.constant 0 : index
      %c0_24 = arith.constant 0 : index
      %35 = vector.load %arg8[%34, %c0_23, %c0_24] : memref<2x1x64xf32, #tpu.memory_space<vmem>>, vector<1x1x64xf32>
      %36 = vector.shape_cast %35 : vector<1x1x64xf32> to vector<1x64xf32>
      %37 = arith.index_cast %arg18 : i32 to index
      %c0_25 = arith.constant 0 : index
      %c0_26 = arith.constant 0 : index
      %38 = vector.load %arg9[%37, %c0_25, %c0_26] : memref<2x64x32xbf16, #tpu.memory_space<vmem>>, vector<1x64x32xbf16>
      %39 = vector.shape_cast %38 : vector<1x64x32xbf16> to vector<64x32xbf16>
      %40 = arith.index_cast %arg18 : i32 to index
      %c0_27 = arith.constant 0 : index
      %c0_28 = arith.constant 0 : index
      %41 = vector.load %arg10[%40, %c0_27, %c0_28] : memref<2x1x32xf32, #tpu.memory_space<vmem>>, vector<1x1x32xf32>
      %42 = vector.shape_cast %41 : vector<1x1x32xf32> to vector<1x32xf32>
      %43 = arith.index_cast %arg18 : i32 to index
      %c0_29 = arith.constant 0 : index
      %c0_30 = arith.constant 0 : index
      %44 = vector.load %arg11[%43, %c0_29, %c0_30] : memref<2x1x32xf32, #tpu.memory_space<vmem>>, vector<1x1x32xf32>
      %45 = vector.shape_cast %44 : vector<1x1x32xf32> to vector<1x32xf32>
      %46 = arith.index_cast %arg18 : i32 to index
      %c0_31 = arith.constant 0 : index
      %c0_32 = arith.constant 0 : index
      %47 = vector.load %arg12[%46, %c0_31, %c0_32] : memref<2x1x32xf32, #tpu.memory_space<vmem>>, vector<1x1x32xf32>
      %48 = vector.shape_cast %47 : vector<1x1x32xf32> to vector<1x32xf32>
      %49 = arith.index_cast %arg18 : i32 to index
      %c0_33 = arith.constant 0 : index
      %c0_34 = arith.constant 0 : index
      %50 = vector.load %arg13[%49, %c0_33, %c0_34] : memref<2x1x32xf32, #tpu.memory_space<vmem>>, vector<1x1x32xf32>
      %51 = vector.shape_cast %50 : vector<1x1x32xf32> to vector<1x32xf32>
      %52 = arith.index_cast %arg18 : i32 to index
      %c0_35 = arith.constant 0 : index
      %c0_36 = arith.constant 0 : index
      %53 = vector.load %arg14[%52, %c0_35, %c0_36] : memref<2x1x32xf32, #tpu.memory_space<vmem>>, vector<1x1x32xf32>
      %54 = vector.shape_cast %53 : vector<1x1x32xf32> to vector<1x32xf32>
      %55 = arith.truncf %arg19 : vector<64x32xf32> to vector<64x32xbf16>
      %cst_37 = arith.constant dense<0.000000e+00> : vector<64x96xf32>
      %56 = tpu.matmul %55, %21, %cst_37 {dimension_numbers = #tpu.dot_dimension_numbers<[1], [0], [0], [1], [0, 0, 1, 1], [], []>} : vector<64x32xbf16>, vector<32x96xbf16>, vector<64x96xf32> -> vector<64x96xf32>
      %57 = vector.broadcast %24 : vector<1x96xf32> to vector<64x96xf32>
      %58 = arith.addf %56, %57 : vector<64x96xf32>
      %59 = arith.truncf %58 : vector<64x96xf32> to vector<64x96xbf16>
      %60 = vector.shape_cast %59 : vector<64x96xbf16> to vector<8x8x96xbf16>
      %cst_38 = arith.constant 0.000000e+00 : f32
      %61 = vector.broadcast %cst_38 : f32 to vector<64x32xf32>
      %62 = vector.extract_strided_slice %60 {offsets = [0, 0, 0], sizes = [8, 8, 8], strides = [1, 1, 1]} : vector<8x8x96xbf16> to vector<8x8x8xbf16>
      %63 = vector.extract_strided_slice %60 {offsets = [0, 0, 32], sizes = [8, 8, 8], strides = [1, 1, 1]} : vector<8x8x96xbf16> to vector<8x8x8xbf16>
      %64 = vector.extract_strided_slice %60 {offsets = [0, 0, 64], sizes = [8, 8, 8], strides = [1, 1, 1]} : vector<8x8x96xbf16> to vector<8x8x8xbf16>
      "tpu.trace_start"() <{level = 10 : i32, message = "bsd,btd->bst"}> : () -> ()
      %cst_39 = arith.constant dense<0.000000e+00> : vector<8x8x8xf32>
      %65 = tpu.matmul %62, %63, %cst_39 {dimension_numbers = #tpu.dot_dimension_numbers<[2], [2], [1], [1], [0, 0, 0, 1, 1, 1], [0], [0]>} : vector<8x8x8xbf16>, vector<8x8x8xbf16>, vector<8x8x8xf32> -> vector<8x8x8xf32>
      "tpu.trace_stop"() : () -> ()
      %cst_40 = arith.constant dense<0xFF800000> : vector<8x8xf32>
      %66 = vector.multi_reduction <maximumf>, %65, %cst_40 [2] : vector<8x8x8xf32> to vector<8x8xf32>
      %67 = vector.shape_cast %66 : vector<8x8xf32> to vector<8x8x1xf32>
      %68 = vector.broadcast %67 : vector<8x8x1xf32> to vector<8x8x8xf32>
      %69 = arith.subf %65, %68 : vector<8x8x8xf32>
      %70 = math.exp %69 : vector<8x8x8xf32>
      %cst_41 = arith.constant dense<0.000000e+00> : vector<8x8xf32>
      %71 = vector.multi_reduction <add>, %70, %cst_41 [2] : vector<8x8x8xf32> to vector<8x8xf32>
      %72 = vector.shape_cast %71 : vector<8x8xf32> to vector<8x8x1xf32>
      %73 = tpu.reciprocal %72 {approx = true} : vector<8x8x1xf32> -> vector<8x8x1xf32>
      %74 = vector.broadcast %73 : vector<8x8x1xf32> to vector<8x8x8xf32>
      %75 = arith.mulf %70, %74 : vector<8x8x8xf32>
      %76 = arith.truncf %75 : vector<8x8x8xf32> to vector<8x8x8xbf16>
      "tpu.trace_start"() <{level = 10 : i32, message = "bst,btd->bsd"}> : () -> ()
      %cst_42 = arith.constant dense<0.000000e+00> : vector<8x8x8xf32>
      %77 = tpu.matmul %76, %64, %cst_42 {dimension_numbers = #tpu.dot_dimension_numbers<[2], [1], [1], [2], [0, 0, 0, 1, 1, 2], [0], [0]>} : vector<8x8x8xbf16>, vector<8x8x8xbf16>, vector<8x8x8xf32> -> vector<8x8x8xf32>
      "tpu.trace_stop"() : () -> ()
      %78 = vector.shape_cast %77 : vector<8x8x8xf32> to vector<64x8xf32>
      %79 = vector.extract_strided_slice %27 {offsets = [0, 0], sizes = [8, 32], strides = [1, 1]} : vector<32x32xbf16> to vector<8x32xbf16>
      %80 = arith.truncf %78 : vector<64x8xf32> to vector<64x8xbf16>
      %cst_43 = arith.constant dense<0.000000e+00> : vector<64x32xf32>
      %81 = tpu.matmul %80, %79, %cst_43 {dimension_numbers = #tpu.dot_dimension_numbers<[1], [0], [0], [1], [0, 0, 1, 1], [], []>} : vector<64x8xbf16>, vector<8x32xbf16>, vector<64x32xf32> -> vector<64x32xf32>
      %82 = arith.addf %61, %81 : vector<64x32xf32>
      %83 = vector.extract_strided_slice %60 {offsets = [0, 0, 8], sizes = [8, 8, 8], strides = [1, 1, 1]} : vector<8x8x96xbf16> to vector<8x8x8xbf16>
      %84 = vector.extract_strided_slice %60 {offsets = [0, 0, 40], sizes = [8, 8, 8], strides = [1, 1, 1]} : vector<8x8x96xbf16> to vector<8x8x8xbf16>
      %85 = vector.extract_strided_slice %60 {offsets = [0, 0, 72], sizes = [8, 8, 8], strides = [1, 1, 1]} : vector<8x8x96xbf16> to vector<8x8x8xbf16>
      "tpu.trace_start"() <{level = 10 : i32, message = "bsd,btd->bst"}> : () -> ()
      %cst_44 = arith.constant dense<0.000000e+00> : vector<8x8x8xf32>
      %86 = tpu.matmul %83, %84, %cst_44 {dimension_numbers = #tpu.dot_dimension_numbers<[2], [2], [1], [1], [0, 0, 0, 1, 1, 1], [0], [0]>} : vector<8x8x8xbf16>, vector<8x8x8xbf16>, vector<8x8x8xf32> -> vector<8x8x8xf32>
      "tpu.trace_stop"() : () -> ()
      %cst_45 = arith.constant dense<0xFF800000> : vector<8x8xf32>
      %87 = vector.multi_reduction <maximumf>, %86, %cst_45 [2] : vector<8x8x8xf32> to vector<8x8xf32>
      %88 = vector.shape_cast %87 : vector<8x8xf32> to vector<8x8x1xf32>
      %89 = vector.broadcast %88 : vector<8x8x1xf32> to vector<8x8x8xf32>
      %90 = arith.subf %86, %89 : vector<8x8x8xf32>
      %91 = math.exp %90 : vector<8x8x8xf32>
      %cst_46 = arith.constant dense<0.000000e+00> : vector<8x8xf32>
      %92 = vector.multi_reduction <add>, %91, %cst_46 [2] : vector<8x8x8xf32> to vector<8x8xf32>
      %93 = vector.shape_cast %92 : vector<8x8xf32> to vector<8x8x1xf32>
      %94 = tpu.reciprocal %93 {approx = true} : vector<8x8x1xf32> -> vector<8x8x1xf32>
      %95 = vector.broadcast %94 : vector<8x8x1xf32> to vector<8x8x8xf32>
      %96 = arith.mulf %91, %95 : vector<8x8x8xf32>
      %97 = arith.truncf %96 : vector<8x8x8xf32> to vector<8x8x8xbf16>
      "tpu.trace_start"() <{level = 10 : i32, message = "bst,btd->bsd"}> : () -> ()
      %cst_47 = arith.constant dense<0.000000e+00> : vector<8x8x8xf32>
      %98 = tpu.matmul %97, %85, %cst_47 {dimension_numbers = #tpu.dot_dimension_numbers<[2], [1], [1], [2], [0, 0, 0, 1, 1, 2], [0], [0]>} : vector<8x8x8xbf16>, vector<8x8x8xbf16>, vector<8x8x8xf32> -> vector<8x8x8xf32>
      "tpu.trace_stop"() : () -> ()
      %99 = vector.shape_cast %98 : vector<8x8x8xf32> to vector<64x8xf32>
      %100 = vector.extract_strided_slice %27 {offsets = [8, 0], sizes = [8, 32], strides = [1, 1]} : vector<32x32xbf16> to vector<8x32xbf16>
      %101 = arith.truncf %99 : vector<64x8xf32> to vector<64x8xbf16>
      %cst_48 = arith.constant dense<0.000000e+00> : vector<64x32xf32>
      %102 = tpu.matmul %101, %100, %cst_48 {dimension_numbers = #tpu.dot_dimension_numbers<[1], [0], [0], [1], [0, 0, 1, 1], [], []>} : vector<64x8xbf16>, vector<8x32xbf16>, vector<64x32xf32> -> vector<64x32xf32>
      %103 = arith.addf %82, %102 : vector<64x32xf32>
      %104 = vector.extract_strided_slice %60 {offsets = [0, 0, 16], sizes = [8, 8, 8], strides = [1, 1, 1]} : vector<8x8x96xbf16> to vector<8x8x8xbf16>
      %105 = vector.extract_strided_slice %60 {offsets = [0, 0, 48], sizes = [8, 8, 8], strides = [1, 1, 1]} : vector<8x8x96xbf16> to vector<8x8x8xbf16>
      %106 = vector.extract_strided_slice %60 {offsets = [0, 0, 80], sizes = [8, 8, 8], strides = [1, 1, 1]} : vector<8x8x96xbf16> to vector<8x8x8xbf16>
      "tpu.trace_start"() <{level = 10 : i32, message = "bsd,btd->bst"}> : () -> ()
      %cst_49 = arith.constant dense<0.000000e+00> : vector<8x8x8xf32>
      %107 = tpu.matmul %104, %105, %cst_49 {dimension_numbers = #tpu.dot_dimension_numbers<[2], [2], [1], [1], [0, 0, 0, 1, 1, 1], [0], [0]>} : vector<8x8x8xbf16>, vector<8x8x8xbf16>, vector<8x8x8xf32> -> vector<8x8x8xf32>
      "tpu.trace_stop"() : () -> ()
      %cst_50 = arith.constant dense<0xFF800000> : vector<8x8xf32>
      %108 = vector.multi_reduction <maximumf>, %107, %cst_50 [2] : vector<8x8x8xf32> to vector<8x8xf32>
      %109 = vector.shape_cast %108 : vector<8x8xf32> to vector<8x8x1xf32>
      %110 = vector.broadcast %109 : vector<8x8x1xf32> to vector<8x8x8xf32>
      %111 = arith.subf %107, %110 : vector<8x8x8xf32>
      %112 = math.exp %111 : vector<8x8x8xf32>
      %cst_51 = arith.constant dense<0.000000e+00> : vector<8x8xf32>
      %113 = vector.multi_reduction <add>, %112, %cst_51 [2] : vector<8x8x8xf32> to vector<8x8xf32>
      %114 = vector.shape_cast %113 : vector<8x8xf32> to vector<8x8x1xf32>
      %115 = tpu.reciprocal %114 {approx = true} : vector<8x8x1xf32> -> vector<8x8x1xf32>
      %116 = vector.broadcast %115 : vector<8x8x1xf32> to vector<8x8x8xf32>
      %117 = arith.mulf %112, %116 : vector<8x8x8xf32>
      %118 = arith.truncf %117 : vector<8x8x8xf32> to vector<8x8x8xbf16>
      "tpu.trace_start"() <{level = 10 : i32, message = "bst,btd->bsd"}> : () -> ()
      %cst_52 = arith.constant dense<0.000000e+00> : vector<8x8x8xf32>
      %119 = tpu.matmul %118, %106, %cst_52 {dimension_numbers = #tpu.dot_dimension_numbers<[2], [1], [1], [2], [0, 0, 0, 1, 1, 2], [0], [0]>} : vector<8x8x8xbf16>, vector<8x8x8xbf16>, vector<8x8x8xf32> -> vector<8x8x8xf32>
      "tpu.trace_stop"() : () -> ()
      %120 = vector.shape_cast %119 : vector<8x8x8xf32> to vector<64x8xf32>
      %121 = vector.extract_strided_slice %27 {offsets = [16, 0], sizes = [8, 32], strides = [1, 1]} : vector<32x32xbf16> to vector<8x32xbf16>
      %122 = arith.truncf %120 : vector<64x8xf32> to vector<64x8xbf16>
      %cst_53 = arith.constant dense<0.000000e+00> : vector<64x32xf32>
      %123 = tpu.matmul %122, %121, %cst_53 {dimension_numbers = #tpu.dot_dimension_numbers<[1], [0], [0], [1], [0, 0, 1, 1], [], []>} : vector<64x8xbf16>, vector<8x32xbf16>, vector<64x32xf32> -> vector<64x32xf32>
      %124 = arith.addf %103, %123 : vector<64x32xf32>
      %125 = vector.extract_strided_slice %60 {offsets = [0, 0, 24], sizes = [8, 8, 8], strides = [1, 1, 1]} : vector<8x8x96xbf16> to vector<8x8x8xbf16>
      %126 = vector.extract_strided_slice %60 {offsets = [0, 0, 56], sizes = [8, 8, 8], strides = [1, 1, 1]} : vector<8x8x96xbf16> to vector<8x8x8xbf16>
      %127 = vector.extract_strided_slice %60 {offsets = [0, 0, 88], sizes = [8, 8, 8], strides = [1, 1, 1]} : vector<8x8x96xbf16> to vector<8x8x8xbf16>
      "tpu.trace_start"() <{level = 10 : i32, message = "bsd,btd->bst"}> : () -> ()
      %cst_54 = arith.constant dense<0.000000e+00> : vector<8x8x8xf32>
      %128 = tpu.matmul %125, %126, %cst_54 {dimension_numbers = #tpu.dot_dimension_numbers<[2], [2], [1], [1], [0, 0, 0, 1, 1, 1], [0], [0]>} : vector<8x8x8xbf16>, vector<8x8x8xbf16>, vector<8x8x8xf32> -> vector<8x8x8xf32>
      "tpu.trace_stop"() : () -> ()
      %cst_55 = arith.constant dense<0xFF800000> : vector<8x8xf32>
      %129 = vector.multi_reduction <maximumf>, %128, %cst_55 [2] : vector<8x8x8xf32> to vector<8x8xf32>
      %130 = vector.shape_cast %129 : vector<8x8xf32> to vector<8x8x1xf32>
      %131 = vector.broadcast %130 : vector<8x8x1xf32> to vector<8x8x8xf32>
      %132 = arith.subf %128, %131 : vector<8x8x8xf32>
      %133 = math.exp %132 : vector<8x8x8xf32>
      %cst_56 = arith.constant dense<0.000000e+00> : vector<8x8xf32>
      %134 = vector.multi_reduction <add>, %133, %cst_56 [2] : vector<8x8x8xf32> to vector<8x8xf32>
      %135 = vector.shape_cast %134 : vector<8x8xf32> to vector<8x8x1xf32>
      %136 = tpu.reciprocal %135 {approx = true} : vector<8x8x1xf32> -> vector<8x8x1xf32>
      %137 = vector.broadcast %136 : vector<8x8x1xf32> to vector<8x8x8xf32>
      %138 = arith.mulf %133, %137 : vector<8x8x8xf32>
      %139 = arith.truncf %138 : vector<8x8x8xf32> to vector<8x8x8xbf16>
      "tpu.trace_start"() <{level = 10 : i32, message = "bst,btd->bsd"}> : () -> ()
      %cst_57 = arith.constant dense<0.000000e+00> : vector<8x8x8xf32>
      %140 = tpu.matmul %139, %127, %cst_57 {dimension_numbers = #tpu.dot_dimension_numbers<[2], [1], [1], [2], [0, 0, 0, 1, 1, 2], [0], [0]>} : vector<8x8x8xbf16>, vector<8x8x8xbf16>, vector<8x8x8xf32> -> vector<8x8x8xf32>
      "tpu.trace_stop"() : () -> ()
      %141 = vector.shape_cast %140 : vector<8x8x8xf32> to vector<64x8xf32>
      %142 = vector.extract_strided_slice %27 {offsets = [24, 0], sizes = [8, 32], strides = [1, 1]} : vector<32x32xbf16> to vector<8x32xbf16>
      %143 = arith.truncf %141 : vector<64x8xf32> to vector<64x8xbf16>
      %cst_58 = arith.constant dense<0.000000e+00> : vector<64x32xf32>
      %144 = tpu.matmul %143, %142, %cst_58 {dimension_numbers = #tpu.dot_dimension_numbers<[1], [0], [0], [1], [0, 0, 1, 1], [], []>} : vector<64x8xbf16>, vector<8x32xbf16>, vector<64x32xf32> -> vector<64x32xf32>
      %145 = arith.addf %124, %144 : vector<64x32xf32>
      %146 = vector.broadcast %30 : vector<1x32xf32> to vector<64x32xf32>
      %147 = arith.addf %145, %146 : vector<64x32xf32>
      %148 = arith.addf %arg19, %147 : vector<64x32xf32>
      %cst_59 = arith.constant dense<0.000000e+00> : vector<64xf32>
      %149 = vector.multi_reduction <add>, %148, %cst_59 [1] : vector<64x32xf32> to vector<64xf32>
      %150 = vector.shape_cast %149 : vector<64xf32> to vector<64x1xf32>
      %cst_60 = arith.constant 3.200000e+01 : f32
      %151 = vector.broadcast %cst_60 : f32 to vector<64x1xf32>
      %152 = arith.divf %150, %151 : vector<64x1xf32>
      %153 = vector.broadcast %152 : vector<64x1xf32> to vector<64x32xf32>
      %154 = arith.subf %148, %153 : vector<64x32xf32>
      %155 = arith.mulf %154, %154 : vector<64x32xf32>
      %cst_61 = arith.constant dense<0.000000e+00> : vector<64xf32>
      %156 = vector.multi_reduction <add>, %155, %cst_61 [1] : vector<64x32xf32> to vector<64xf32>
      %157 = vector.shape_cast %156 : vector<64xf32> to vector<64x1xf32>
      %cst_62 = arith.constant 3.200000e+01 : f32
      %158 = vector.broadcast %cst_62 : f32 to vector<64x1xf32>
      %159 = arith.divf %157, %158 : vector<64x1xf32>
      %160 = vector.broadcast %152 : vector<64x1xf32> to vector<64x32xf32>
      %161 = arith.subf %148, %160 : vector<64x32xf32>
      %cst_63 = arith.constant 9.99999974E-6 : f32
      %162 = vector.broadcast %cst_63 : f32 to vector<64x1xf32>
      %163 = arith.addf %159, %162 : vector<64x1xf32>
      %164 = math.rsqrt %163 : vector<64x1xf32>
      %165 = vector.broadcast %164 : vector<64x1xf32> to vector<64x32xf32>
      %166 = arith.mulf %161, %165 : vector<64x32xf32>
      %167 = vector.broadcast %45 : vector<1x32xf32> to vector<64x32xf32>
      %168 = arith.mulf %166, %167 : vector<64x32xf32>
      %169 = vector.broadcast %48 : vector<1x32xf32> to vector<64x32xf32>
      %170 = arith.addf %168, %169 : vector<64x32xf32>
      %171 = arith.truncf %170 : vector<64x32xf32> to vector<64x32xbf16>
      %cst_64 = arith.constant dense<0.000000e+00> : vector<64x64xf32>
      %172 = tpu.matmul %171, %33, %cst_64 {dimension_numbers = #tpu.dot_dimension_numbers<[1], [0], [0], [1], [0, 0, 1, 1], [], []>} : vector<64x32xbf16>, vector<32x64xbf16>, vector<64x64xf32> -> vector<64x64xf32>
      %173 = vector.broadcast %36 : vector<1x64xf32> to vector<64x64xf32>
      %174 = arith.addf %172, %173 : vector<64x64xf32>
      %cst_65 = arith.constant 0.000000e+00 : f32
      %175 = vector.broadcast %cst_65 : f32 to vector<64x64xf32>
      %176 = arith.maximumf %174, %175 : vector<64x64xf32>
      %177 = arith.truncf %176 : vector<64x64xf32> to vector<64x64xbf16>
      %cst_66 = arith.constant dense<0.000000e+00> : vector<64x32xf32>
      %178 = tpu.matmul %177, %39, %cst_66 {dimension_numbers = #tpu.dot_dimension_numbers<[1], [0], [0], [1], [0, 0, 1, 1], [], []>} : vector<64x64xbf16>, vector<64x32xbf16>, vector<64x32xf32> -> vector<64x32xf32>
      %179 = vector.broadcast %42 : vector<1x32xf32> to vector<64x32xf32>
      %180 = arith.addf %178, %179 : vector<64x32xf32>
      %181 = arith.addf %170, %180 : vector<64x32xf32>
      %cst_67 = arith.constant dense<0.000000e+00> : vector<64xf32>
      %182 = vector.multi_reduction <add>, %181, %cst_67 [1] : vector<64x32xf32> to vector<64xf32>
      %183 = vector.shape_cast %182 : vector<64xf32> to vector<64x1xf32>
      %cst_68 = arith.constant 3.200000e+01 : f32
      %184 = vector.broadcast %cst_68 : f32 to vector<64x1xf32>
      %185 = arith.divf %183, %184 : vector<64x1xf32>
      %186 = vector.broadcast %185 : vector<64x1xf32> to vector<64x32xf32>
      %187 = arith.subf %181, %186 : vector<64x32xf32>
      %188 = arith.mulf %187, %187 : vector<64x32xf32>
      %cst_69 = arith.constant dense<0.000000e+00> : vector<64xf32>
      %189 = vector.multi_reduction <add>, %188, %cst_69 [1] : vector<64x32xf32> to vector<64xf32>
      %190 = vector.shape_cast %189 : vector<64xf32> to vector<64x1xf32>
      %cst_70 = arith.constant 3.200000e+01 : f32
      %191 = vector.broadcast %cst_70 : f32 to vector<64x1xf32>
      %192 = arith.divf %190, %191 : vector<64x1xf32>
      %193 = vector.broadcast %185 : vector<64x1xf32> to vector<64x32xf32>
      %194 = arith.subf %181, %193 : vector<64x32xf32>
      %cst_71 = arith.constant 9.99999974E-6 : f32
      %195 = vector.broadcast %cst_71 : f32 to vector<64x1xf32>
      %196 = arith.addf %192, %195 : vector<64x1xf32>
      %197 = math.rsqrt %196 : vector<64x1xf32>
      %198 = vector.broadcast %197 : vector<64x1xf32> to vector<64x32xf32>
      %199 = arith.mulf %194, %198 : vector<64x32xf32>
      %200 = vector.broadcast %51 : vector<1x32xf32> to vector<64x32xf32>
      %201 = arith.mulf %199, %200 : vector<64x32xf32>
      %202 = vector.broadcast %54 : vector<1x32xf32> to vector<64x32xf32>
      %203 = arith.addf %201, %202 : vector<64x32xf32>
      scf.yield %203 : vector<64x32xf32>
    }
    %c2_i32_4 = arith.constant 2 : i32
    %c0_5 = arith.constant 0 : index
    %c0_6 = arith.constant 0 : index
    %10 = vector.load %arg15[%c0_5, %c0_6] : memref<1x32xbf16, #tpu.memory_space<vmem>>, vector<1x32xbf16>
    %11 = arith.truncf %9 : vector<64x32xf32> to vector<64x32xbf16>
    %cst_7 = arith.constant dense<0.000000e+00> : vector<1x64xf32>
    %12 = tpu.matmul %10, %11, %cst_7 {dimension_numbers = #tpu.dot_dimension_numbers<[1], [1], [0], [0], [0, 0, 1, 0], [], []>} : vector<1x32xbf16>, vector<64x32xbf16>, vector<1x64xf32> -> vector<1x64xf32>
    %c0_8 = arith.constant 0 : index
    %c0_9 = arith.constant 0 : index
    %13 = vector.load %arg16[%c0_8, %c0_9] : memref<1x1xf32, #tpu.memory_space<vmem>>, vector<1x1xf32>
    %14 = vector.broadcast %13 : vector<1x1xf32> to vector<1x64xf32>
    %15 = arith.addf %12, %14 : vector<1x64xf32>
    %c0_10 = arith.constant 0 : index
    %c0_11 = arith.constant 0 : index
    %c0_12 = arith.constant 0 : index
    %16 = vector.load %arg17[%c0_10, %c0_11, %c0_12] : memref<1x1x64xf32, #tpu.memory_space<vmem>>, vector<1x1x64xf32>
    %17 = vector.shape_cast %16 : vector<1x1x64xf32> to vector<1x64xf32>
    %18 = vector.shape_cast %15 : vector<1x64xf32> to vector<1x1x64xf32>
    tpu.vector_store %arg17[%c0_10, %c0_11, %c0_12], %18 {strides = array<i32>} : memref<1x1x64xf32, #tpu.memory_space<vmem>>, vector<1x1x64xf32>,
    return
  }
  func.func @transform_0(%arg0: i32) -> (i32, i32, i32) {
    %c0_i32 = arith.constant 0 : i32
    %c0_i32_0 = arith.constant 0 : i32
    %c0_i32_1 = arith.constant 0 : i32
    return %arg0, %c0_i32, %c0_i32_0 : i32, i32, i32
  }
  func.func @transform_1(%arg0: i32) -> (i32, i32) {
    %c0_i32 = arith.constant 0 : i32
    %c0_i32_0 = arith.constant 0 : i32
    %c0_i32_1 = arith.constant 0 : i32
    return %c0_i32, %c0_i32_0 : i32, i32
  }
  func.func @transform_2(%arg0: i32) -> (i32, i32, i32) {
    %c0_i32 = arith.constant 0 : i32
    %c0_i32_0 = arith.constant 0 : i32
    %c0_i32_1 = arith.constant 0 : i32
    %c0_i32_2 = arith.constant 0 : i32
    return %c0_i32, %c0_i32_0, %c0_i32_1 : i32, i32, i32
  }
  func.func @transform_3(%arg0: i32) -> (i32, i32, i32) {
    %c0_i32 = arith.constant 0 : i32
    %c0_i32_0 = arith.constant 0 : i32
    %c0_i32_1 = arith.constant 0 : i32
    %c0_i32_2 = arith.constant 0 : i32
    return %c0_i32, %c0_i32_0, %c0_i32_1 : i32, i32, i32
  }
  func.func @transform_4(%arg0: i32) -> (i32, i32, i32) {
    %c0_i32 = arith.constant 0 : i32
    %c0_i32_0 = arith.constant 0 : i32
    %c0_i32_1 = arith.constant 0 : i32
    %c0_i32_2 = arith.constant 0 : i32
    return %c0_i32, %c0_i32_0, %c0_i32_1 : i32, i32, i32
  }
  func.func @transform_5(%arg0: i32) -> (i32, i32, i32) {
    %c0_i32 = arith.constant 0 : i32
    %c0_i32_0 = arith.constant 0 : i32
    %c0_i32_1 = arith.constant 0 : i32
    %c0_i32_2 = arith.constant 0 : i32
    return %c0_i32, %c0_i32_0, %c0_i32_1 : i32, i32, i32
  }
  func.func @transform_6(%arg0: i32) -> (i32, i32, i32) {
    %c0_i32 = arith.constant 0 : i32
    %c0_i32_0 = arith.constant 0 : i32
    %c0_i32_1 = arith.constant 0 : i32
    %c0_i32_2 = arith.constant 0 : i32
    return %c0_i32, %c0_i32_0, %c0_i32_1 : i32, i32, i32
  }
  func.func @transform_7(%arg0: i32) -> (i32, i32, i32) {
    %c0_i32 = arith.constant 0 : i32
    %c0_i32_0 = arith.constant 0 : i32
    %c0_i32_1 = arith.constant 0 : i32
    %c0_i32_2 = arith.constant 0 : i32
    return %c0_i32, %c0_i32_0, %c0_i32_1 : i32, i32, i32
  }
  func.func @transform_8(%arg0: i32) -> (i32, i32, i32) {
    %c0_i32 = arith.constant 0 : i32
    %c0_i32_0 = arith.constant 0 : i32
    %c0_i32_1 = arith.constant 0 : i32
    %c0_i32_2 = arith.constant 0 : i32
    return %c0_i32, %c0_i32_0, %c0_i32_1 : i32, i32, i32
  }
  func.func @transform_9(%arg0: i32) -> (i32, i32, i32) {
    %c0_i32 = arith.constant 0 : i32
    %c0_i32_0 = arith.constant 0 : i32
    %c0_i32_1 = arith.constant 0 : i32
    %c0_i32_2 = arith.constant 0 : i32
    return %c0_i32, %c0_i32_0, %c0_i32_1 : i32, i32, i32
  }
  func.func @transform_10(%arg0: i32) -> (i32, i32, i32) {
    %c0_i32 = arith.constant 0 : i32
    %c0_i32_0 = arith.constant 0 : i32
    %c0_i32_1 = arith.constant 0 : i32
    %c0_i32_2 = arith.constant 0 : i32
    return %c0_i32, %c0_i32_0, %c0_i32_1 : i32, i32, i32
  }
  func.func @transform_11(%arg0: i32) -> (i32, i32, i32) {
    %c0_i32 = arith.constant 0 : i32
    %c0_i32_0 = arith.constant 0 : i32
    %c0_i32_1 = arith.constant 0 : i32
    %c0_i32_2 = arith.constant 0 : i32
    return %c0_i32, %c0_i32_0, %c0_i32_1 : i32, i32, i32
  }
  func.func @transform_12(%arg0: i32) -> (i32, i32, i32) {
    %c0_i32 = arith.constant 0 : i32
    %c0_i32_0 = arith.constant 0 : i32
    %c0_i32_1 = arith.constant 0 : i32
    %c0_i32_2 = arith.constant 0 : i32
    return %c0_i32, %c0_i32_0, %c0_i32_1 : i32, i32, i32
  }
  func.func @transform_13(%arg0: i32) -> (i32, i32, i32) {
    %c0_i32 = arith.constant 0 : i32
    %c0_i32_0 = arith.constant 0 : i32
    %c0_i32_1 = arith.constant 0 : i32
    %c0_i32_2 = arith.constant 0 : i32
    return %c0_i32, %c0_i32_0, %c0_i32_1 : i32, i32, i32
  }
  func.func @transform_14(%arg0: i32) -> (i32, i32) {
    %c0_i32 = arith.constant 0 : i32
    %c0_i32_0 = arith.constant 0 : i32
    %c0_i32_1 = arith.constant 0 : i32
    return %c0_i32, %c0_i32_0 : i32, i32
  }
  func.func @transform_15(%arg0: i32) -> (i32, i32) {
    %c0_i32 = arith.constant 0 : i32
    %c0_i32_0 = arith.constant 0 : i32
    %c0_i32_1 = arith.constant 0 : i32
    return %c0_i32, %c0_i32_0 : i32, i32
  }
  func.func @transform_16(%arg0: i32) -> (i32, i32, i32) {
    %c0_i32 = arith.constant 0 : i32
    %c0_i32_0 = arith.constant 0 : i32
    %c0_i32_1 = arith.constant 0 : i32
    return %arg0, %c0_i32, %c0_i32_0 : i32, i32, i32
  }
}

</mosaic_0001>

<bundles_post_ra>
// kernel: tpu_custom_call.1
= control target key start
LH: loop header
LB: loop body
LE: loop exit
PB: predicated region body
PF: predicated region fallthrough
CT: control target
= control target key end

     0   :  { %s8093_s0 = inlined_call_operand.hbm [shape: f32[16,8,32], index: 0, kind: input, shape index: {}]   ;;  %s8094_s1 = inlined_call_operand.hbm [shape: f32[8,32], index: 1, kind: input, shape index: {}]   ;;  %s8095_s2 = inlined_call_operand.vmem [shape: bf16[2,32,96], index: 2, kind: input, shape index: {}]   ;;  %s8096_s3 = inlined_call_operand.vmem [shape: f32[2,1,96], index: 3, kind: input, shape index: {}]   ;;  %s8097_s4 = inlined_call_operand.vmem [shape: bf16[2,32,32], index: 4, kind: input, shape index: {}]   ;;  %s8098_s5 = inlined_call_operand.vmem [shape: f32[2,1,32], index: 5, kind: input, shape index: {}]   ;;  %s8099_s6 = inlined_call_operand.vmem [shape: bf16[2,32,64], index: 6, kind: input, shape index: {}]   ;;  %s8100_s7 = inlined_call_operand.vmem [shape: f32[2,1,64], index: 7, kind: input, shape index: {}]   ;;  %s8101_s8 = inlined_call_operand.vmem [shape: bf16[2,64,32], index: 8, kind: input, shape index: {}]   ;;  %s8102_s9 = inlined_call_operand.vmem [shape: f32[2,1,32], index: 9, kind: input, shape index: {}]   ;;  %s8103_s10 = inlined_call_operand.vmem [shape: f32[2,1,32], index: 10, kind: input, shape index: {}]   ;;  %s8104_s11 = inlined_call_operand.vmem [shape: f32[2,1,32], index: 11, kind: input, shape index: {}]   ;;  %s8105_s12 = inlined_call_operand.vmem [shape: f32[2,1,32], index: 12, kind: input, shape index: {}]   ;;  %s8106_s13 = inlined_call_operand.vmem [shape: f32[2,1,32], index: 13, kind: input, shape index: {}]   ;;  %s8107_s14 = inlined_call_operand.vmem [shape: bf16[1,32], index: 14, kind: input, shape index: {}]   ;;  %s8108_s15 = inlined_call_operand.<no memory space> [shape: f32[1,1], index: 15, kind: input, shape index: {}]   ;;  %s8109_s16 = inlined_call_operand.hbm [shape: f32[2,1,64], index: 16, kind: output, shape index: {}]  }
   0x1   :  { %8123 = sst [smem:[#allocation18_spill]] %s8093_s0  ;;  %v21_v0 = vstv %s8108_s15 }
   0x2   :  { %8124 = sst [smem:[#allocation19_spill]] %s8105_s12  ;;  %22 = vst [vmem:[#allocation2] sm:$0x1] %v21_v0 }
   0x3   :  { %8125 = sst [smem:[#allocation20_spill]] %s8106_s13 }
   0x4   :  { %8126 = sst [smem:[#allocation21_spill]] %s8107_s14 }
   0x5   :  { %8127 = sst [smem:[#allocation22_spill]] %s8109_s16 }
   0x6   :  { %23 = vsyncpa [#allocation4], 0 }
   0x7   :  { %25 = vsyncpa [#allocation4 + $0x1], 0 }
   0x8   :  { %26 = vsyncpa [#allocation7], 0 }
   0x9   :  { %27 = vsyncpa [#allocation5], 0 }
   0xa   :  { %29 = vsyncpa [#allocation5 + $0x1], 0  ;;  %s6771_s23 = smov 0   ;;  %s6773_s24 = smov 0  }
   0xb   :  { %s6775_s25 = smov 0   ;;  %s6777_s26 = smov 0  }
   0xc LB: > { %8128 = sst [smem:[#allocation12_spill]] %s6612_s23  ;;  %s6792_s15 = sadd.s32 4294967295, %s6624_s26   ;;  %s6624_s26 = sphi %s6777_s26, %s8166_s26   ;;  %s6620_s25 = sphi %s6775_s25, %s8168_s25   ;;  %s6616_s24 = sphi %s6773_s24, %s8170_s24   ;;  %s6612_s23 = sphi %s6771_s23, %s8169_s23  }
   0xd   : > { %8129 = sst [smem:[#allocation13_spill]] %s6620_s25  ;;  %s5344_s27 = sadd.s32 4294967294, %s6624_s26  }
   0xe   : > { %s6796_s28 = sadd.s32 1, %s6624_s26   ;;  %s42_s29 = sadd.s32 1, %s6620_s25 }
   0xf   : > { %8130 = sst [smem:[#allocation14_spill]] %s6796_s28  ;;  %s39_s30 = ssub.s32 %s6624_s26, %s6796_s28 }
  0x10   : > { %p49_p0 = scmp.ne.s32.totalorder %s6620_s25, %s6616_s24  ;;  %p40_p1 = scmp.eq.s32.totalorder %s39_s30, 0 }
  0x11   : > { %p50_p2 = scmp.eq.s32.totalorder %s6624_s26, 0  ;;  %p55_p3 = scmp.ne.s32.totalorder %s6616_s24, %s6612_s23 }
  0x12   : > { %p8111_p4 = scmp.eq.s32.totalorder %s6792_s15, 0  ;;  %p394_p7 = scmp.eq.s32.totalorder %s6792_s15, 1 }
  0x13   : > { %s6808_s0 = scalar_select %p40_p1, %s6620_s25, %s42_s29  }
  0x14   : > { %p6810_p5 = por %p50_p2, %p49_p0  ;;  %p6816_p6 = por %p8111_p4, %p55_p3 }
  0x15   : > { %8131 = sst [smem:[#allocation15_spill]] %s6808_s0  ;;  %p400_p8 = scmp.eq.s32.totalorder %s5344_s27, 1 }
  0x16   : > { %s8133_s18 = scalar_select %p6816_p6, 1, 0 }
  0x17   : > { %p5345_p9 = scmp.ge.s32.totalorder %s6624_s26, 1  ;;  %p407_p10 = scmp.lt.s32.totalorder %s6624_s26, 3 }
  0x18   : > { %p6823_p11 = por %p394_p7, %p49_p0  ;;  %p6827_p12 = por %p400_p8, %p55_p3 }
  0x19   : > { %p6831_p13 = pnand %p5345_p9, %p407_p10  ;;  %s6662_s22 = smov [#allocation6]  }
  0x1a   : > { %s8134_s19 = scalar_select %p6823_p11, 1, 0 }
  0x1b   : > { %s8136_s20 = scalar_select %p6827_p12, 1, 0 }
  0x1c   : > { %8135 = sst [smem:[#allocation16_spill]] %s8134_s19  ;;  %p6158_p2 = pneg %p6831_p13 }
  0x1d   : > { %8137 = sst [smem:[#allocation17_spill]] %s8136_s20  ;;  %s420_s27 = sshll.u32 %s6662_s22, 4  ;;  %s421_s27 = int_to_ptr.vmem [resolvable:$true] %s420_s27 }
  0x1e   : > { %s8138_s21 = scalar_select %p6831_p13, 1, 0 }
  0x1f   : > { %p6171_p4 = scmp.lt.s32.totalorder %s6624_s26, 2  ;;  %p8139_p0 = scmp.eq.s32.totalorder %s6792_s15, 0 }
  0x20   : > { %s473_s30 = sand.u32 1, %s6620_s25   ;;  %s6477_s20 = scalar_lea.vmem %s421_s27, 128 }
  0x21   : > { %p6841_p7 = pnand %p6158_p2, %p8139_p0  ;;  %p6848_p3 = pnand %p6171_p4, %p6810_p5 }
  0x22   : > { %s5348_s28 = sshll.u32 %s473_s30, 6  ;;  %p6478_p9 = scmp.ne.s32.totalorder %s421_s27, %s6477_s20 }
  0x23   : > { %p6468_p8 = pneg %p6841_p7  ;;  %p6485_p12 = scmp.lt.s32.totalorder %s421_s27, %s421_s27 }
  0x24   : > { %p6486_p11 = scmp.lt.s32.totalorder %s6477_s20, %s6477_s20 }
  0x25   : > { %p6480_p10 = pnand %p6478_p9, %p6468_p8 }
  0x26   : > { %p6487_p2 = por %p6486_p11, %p6485_p12 }
  0x27   : > { %p6481_p1 = pneg %p6480_p10 }
  0x29   : > { %p6488_p0 = pnand %p6487_p2, %p6481_p1 }
  0x2b   : > { %6491 = shalt.err (!%p6488_p0)
}
  0x2c   : > { %6161 = dma.hbm_to_vmem [thread:$0]  (!%p6841_p7), %s8094_s1, 128, %s421_s27, [#allocation7]  }
  0x2d   : > { %s5480_s25 = sshll.u32 %s6624_s26, 10  ;;  %s477_s23 = scalar_lea.vmem [#allocation3], %s5348_s28 }
  0x2e   : > { %s484_s16 = sshll.u32 %s477_s23, 4  ;;  %s8142_s13 = sld [smem:[#allocation18_spill]]  ;;  %s6865_s16 = int_to_ptr.vmem [resolvable:$true] %s484_s16 }
  0x2f   : > { %s6867_s20 = scalar_lea.sflag [#allocation4], %s473_s30  ;;  %p6494_p5 = pneg %p6848_p3 }
  0x34   : > { %s6863_s12 = scalar_lea.hbm %s8142_s13, %s5480_s25  ;;  %s6497_s27 = scalar_lea.hbm %s8142_s13, 2048 }
  0x35   : > { %s6492_s29 = scalar_lea.hbm %s6863_s12, 1024  ;;  %p6498_p1 = scmp.lt.s32.totalorder %s6863_s12, %s8142_s13 }
  0x36   : > { %p6493_p4 = scmp.ne.s32.totalorder %s6863_s12, %s6492_s29  ;;  %p6499_p7 = scmp.lt.s32.totalorder %s6497_s27, %s6492_s29 }
  0x38   : > { %p6495_p11 = pnand %p6494_p5, %p6493_p4  ;;  %p6500_p8 = por %p6499_p7, %p6498_p1 }
  0x3a   : > { %p6496_p12 = pneg %p6495_p11 }
  0x3c   : > { %p6501_p9 = pnand %p6500_p8, %p6496_p12 }
  0x3e   : > { %6504 = shalt.err (!%p6501_p9)
}
  0x3f   : > { %s6505_s19 = scalar_lea.vmem %s6865_s16, 1024  ;;  %s6663_s30 = smov [#allocation3]  }
  0x40   : > { %p6506_p10 = scmp.ne.s32.totalorder %s6865_s16, %s6505_s19  ;;  %s6510_s22 = sshll.u32 %s6663_s30, 4  ;;  %s6511_s22 = int_to_ptr.vmem [resolvable:$false] %s6510_s22 }
  0x41   : > { %s6512_s17 = scalar_lea.vmem %s6511_s22, 2048  ;;  %p6513_p4 = scmp.lt.s32.totalorder %s6865_s16, %s6511_s22 }
  0x42   : > { %p6508_p2 = pnand %p6506_p10, %p6494_p5  ;;  %p6514_p11 = scmp.lt.s32.totalorder %s6512_s17, %s6505_s19 }
  0x44   : > { %p6509_p0 = pneg %p6508_p2  ;;  %p6515_p6 = por %p6514_p11, %p6513_p4 }
  0x46   : > { %p6516_p13 = pnand %p6515_p6, %p6509_p0 }
  0x48   : > { %6519 = shalt.err (!%p6516_p13)
}
  0x49   : > { %s6664_s29 = smov 128   ;;  %s6665_s28 = smov 8  }
  0x4a   : > { %6165 = dma.hbm_to_vmem [thread:$0]  (!%p6848_p3), %s6863_s12, 1024, %s6865_s16, %s6867_s20, %s6664_s29, %s6664_s29, %s6665_s28  }
  0x4b   : > { %p8143_p5 = scmp.ne.s32.totalorder %s8138_s21, 0 }
  0x4c   : > { %s6891_s23 = sand.u32 (!%p8143_p5), 1, %s6616_s24   ;;  %p8144_p6 = scmp.ne.s32.totalorder (!%p8143_p5), %s8133_s18, 0 }
  0x4d   : > { %496 = sbr.rel (%p8143_p5) target bundleno = 4790 (0x12b6), region = 84  ;;  %s5352_s27 = sshll.u32 (!%p8143_p5), %s6891_s23, 6 }
  0x4e   : > { %s499_s14 = scalar_lea.sflag (!%p8143_p5), [#allocation4], %s6891_s23  ;;  %s502_s25 = scalar_lea.vmem (!%p8143_p5), [#allocation3], %s5352_s27 }
  0x52   : > { %6599 = dma.done.wait (%p8144_p6), %s499_s14, 1024  }
  0x53   : > { %6601 = vsyncadd (%p8144_p6), %s499_s14, 4294966272  ;;  %p8145_p13 = scmp.eq.s32.totalorder %s6792_s15, 0 }
  0x55   : > { %6603 = dma.done.wait (%p8145_p13), [#allocation7], 128   ;;  %p8146_p3 = pmov %p8145_p13 }
  0x56   : > { %v556_v1 = vld [vmem:[%s502_s25] sm:$0xff]  ;;  %v557_v2 = vld [vmem:[%s502_s25 + $0x8] sm:$0xff]  ;;  %v558_v3 = vld [vmem:[%s502_s25 + $0x10] sm:$0xff]  ;;  %s553_s12 = scalar_lea.vmem [#allocation8], %s6891_s23  ;;  %s6920_s16 = smov 0  }
  0x57   : > { %6605 = vsyncadd (%p8146_p3), [#allocation7], 4294967168  ;;  %v559_v4 = vld [vmem:[%s502_s25 + $0x18] sm:$0xff]  ;;  %v560_v5 = vld [vmem:[%s502_s25 + $0x20] sm:$0xff]  ;;  %v564_v7 = vmul.f32 5.656854, %v556_v1 }
  0x58   : > { %v561_v6 = vld [vmem:[%s502_s25 + $0x28] sm:$0xff]  ;;  %v562_v8 = vld [vmem:[%s502_s25 + $0x30] sm:$0xff]  ;;  %v563_v9 = vld [vmem:[%s502_s25 + $0x38] sm:$0xff]  ;;  %v565_v10 = vmul.f32 5.656854, %v557_v2 }
  0x59   : > { %v566_v11 = vmul.f32 5.656854, %v558_v3  ;;  %v567_v12 = vmul.f32 5.656854, %v559_v4  ;;  %v568_v13 = vmul.f32 5.656854, %v560_v5 }
  0x5a   : > { %v569_v14 = vmul.f32 5.656854, %v561_v6  ;;  %v570_v15 = vmul.f32 5.656854, %v562_v8  ;;  %v571_v16 = vmul.f32 5.656854, %v563_v9 }
  0x5b   : > { %v572_v17 = vld [vmem:[#allocation6] sm:$0xff] }
  0x5c   : > { %v573_v18 = vadd.f32 %v572_v17, %v564_v7   ;;  %v574_v19 = vadd.f32 %v572_v17, %v565_v10   ;;  %v575_v20 = vadd.f32 %v572_v17, %v566_v11   ;;  %v576_v21 = vadd.f32 %v572_v17, %v567_v12  }
  0x5d   : > { %v577_v22 = vadd.f32 %v572_v17, %v568_v13   ;;  %v578_v23 = vadd.f32 %v572_v17, %v569_v14   ;;  %v579_v24 = vadd.f32 %v572_v17, %v570_v15   ;;  %v580_v25 = vadd.f32 %v572_v17, %v571_v16  }
  0x5e LB: >> { %vm663_vm0 = vcmask 261120   ;;  %s6950_s0 = sshll.u32 %s6660_s16, 4  ;;  %v641_v26 = vpack.c.bf16 %v6652_v19, %v6656_v18  ;;  %v643_v29 = vpack.c.bf16 %v6636_v23, %v6640_v22  ;;  %v642_v30 = vpack.c.bf16 %v6644_v21, %v6648_v20  ;;  %s602_s22 = scalar_lea.vmem %s8096_s3, %s6660_s16  ;;  %s6660_s16 = sphi %s6920_s16, %s586_s16   ;;  %v6656_v18 = vphi %v573_v18, %v8157_v18   ;;  %v6652_v19 = vphi %v574_v19, %v8156_v19   ;;  %v6648_v20 = vphi %v575_v20, %v8155_v20   ;;  %v6644_v21 = vphi %v576_v21, %v8154_v21   ;;  %v6640_v22 = vphi %v577_v22, %v8153_v22   ;;  %v6636_v23 = vphi %v578_v23, %v8152_v23   ;;  %v6632_v24 = vphi %v579_v24, %v8151_v24   ;;  %v6628_v25 = vphi %v580_v25, %v8150_v25  }
  0x5f   : >> { %s597_s20 = scalar_lea.vmem %s8095_s2, %s6950_s0  ;;  %v644_v31 = vpack.c.bf16 %v6628_v25, %v6632_v24  ;;  %v6666_v32 = vmov 0.0   ;;  %v5360_v33 = vld [vmem:[%s602_s22] ss:$0 sm:$0xff]  ;;  %vm6667_vm1 = vmmov 0   ;;  %s6668_s17 = smov 96   ;;  %vm767_vm2 = vcmask 64512  }
  0x60   : >> { %v6297_v27 = vld [vmem:[%s597_s20 + $0x8] sm:$0xff]   ;;  %5670 = vmatprep.mubr.msk.bf16.mxu0 %vm663_vm0, %v641_v26  ;;  %v6298_v28 = vld [vmem:[%s597_s20] sm:$0xff]   ;;  %5674 = vmatprep.mubr.msk.bf16.mxu1 %vm663_vm0, %v643_v29  ;;  %s6669_s29 = smov 64   ;;  %vm1251_vm3 = vcmask 1043456   ;;  %s6670_s28 = smov 88   ;;  %vm4919_vm4 = vcmask 523264  }
  0x61   : >> { %5666 = vmatprep.subr.bf16.mxu0 %v6297_v27  ;;  %6142 = vmatprep.subr.bf16.mxu1 %v6297_v27  ;;  %s6671_s27 = smov 120   ;;  %s6672_s14 = smov 56  }
  0x62   : >> { %5667 = vmatpush3.bf16.msra.mxu0 %v6297_v27  ;;  %6144 = vmatpush3.bf16.msra.mxu1 %v6297_v27  ;;  %s6673_s25 = smov 80   ;;  %s6674_s18 = smov 112  }
  0x63   : >> { %5668 = vmatprep.subr.bf16.mxu0 %v6298_v28  ;;  %6143 = vmatprep.subr.bf16.mxu1 %v6298_v28  ;;  %s7365_s19 = scalar_lea.vmem %s8097_s4, %s6950_s0  ;;  %s6675_s30 = smov 48  }
  0x64   : >> { %s6676_s22 = smov 72   ;;  %s613_s21 = scalar_lea.vmem %s8099_s6, %s6950_s0 }
  0x65   : >> { %s5484_s20 = sshll.u32 %s6660_s16, 5 }
  0x66   : >> { %5669 = vmatpush3.bf16.msra.mxu0 %v6298_v28  ;;  %6145 = vmatpush3.bf16.msra.mxu1 %v6298_v28 }
  0x67   : >> { %5690 = vmatprep.subr.bf16.mxu0 %v6666_v32  ;;  %5678 = vmatprep.subr.bf16.mxu1 %v6666_v32 }
  0x69   : >> { %5671 = vmatmul.mubr.msk.bf16.vlgmr.msra.gmra.mxu0 %vm663_vm0, %v642_v30  ;;  %5675 = vmatmul.mubr.msk.bf16.vlgmr.msra.gmra.mxu1 %vm663_vm0, %v644_v31 }
  0x6a   : >> { %5692 = vmatprep.mubr.msk.bf16.mxu0 %vm6667_vm1, %v6666_v32  ;;  %5680 = vmatprep.mubr.msk.bf16.mxu1 %vm6667_vm1, %v6666_v32 }
 0x129   : >> { %v5672_v34 = vpop.f32.mrf.mxu0  ;;  %v5676_v35 = vpop.f32.mrf.mxu1 }
 0x12a   : >> { %v719_v36 = vadd.f32 %v5672_v34, %v5360_v33  ;;  %v735_v55 = vadd.f32 %v5676_v35, %v5360_v33 }
 0x12b   : >> { %v710_v37 = vpop.f32.mrf.mxu0  ;;  %v726_v38 = vpop.f32.mrf.mxu1 }
 0x12c   : >> { %v6978_v39 = vpack.c.bf16 %v719_v36, %v719_v36  ;;  %v711_v40 = vadd.f32 %v5360_v33, %v710_v37  ;;  %v727_v48 = vadd.f32 %v5360_v33, %v726_v38  ;;  %v6998_v57 = vpack.c.bf16 %v735_v55, %v735_v55 }
 0x12d   : >> { %v5673_v41 = vpop.f32.mrf.mxu0  ;;  %v5677_v42 = vpop.f32.mrf.mxu1 }
 0x12e   : >> { %v6980_v43 = vpack.c.bf16 %v711_v40, %v711_v40  ;;  %v722_v44 = vadd.f32 %v5673_v41, %v5360_v33  ;;  %862 = vrot.lane.b32.xlu1 %v6978_v39, %s6668_s17  ;;  %v738_v52 = vadd.f32 %v5677_v42, %v5360_v33  ;;  %v6991_v54 = vpack.c.bf16 %v727_v48, %v727_v48 }
 0x12f   : >> { %v713_v45 = vpop.f32.mrf.mxu0  ;;  %v729_v46 = vpop.f32.mrf.mxu1 }
 0x130   : >> { %v6983_v47 = vpack.c.bf16 %v722_v44, %v722_v44  ;;  %v714_v49 = vadd.f32 %v5360_v33, %v713_v45  ;;  %765 = vrot.lane.b32.xlu0 %v6980_v43, %s6668_s17  ;;  %v730_v50 = vadd.f32 %v5360_v33, %v729_v46  ;;  %v6994_v56 = vpack.c.bf16 %v738_v52, %v738_v52 }
 0x132   : >> { %v6986_v51 = vpack.c.bf16 %v714_v49, %v714_v49  ;;  %v6988_v53 = vpack.c.bf16 %v730_v50, %v730_v50  ;;  %910 = vrot.lane.b32.xlu1 %v6983_v47, %s6668_s17 }
 0x134   : >> { %814 = vrot.lane.b32.xlu0 %v6986_v51, %s6668_s17 }
 0x136   : >> { %1006 = vrot.lane.b32.xlu1 %v6988_v53, %s6668_s17 }
 0x138   : >> { %958 = vrot.lane.b32.xlu0 %v6991_v54, %s6668_s17 }
 0x13a   : >> { %1102 = vrot.lane.b32.xlu1 %v6994_v56, %s6668_s17 }
 0x13c   : >> { %1054 = vrot.lane.b32.xlu0 %v6998_v57, %s6668_s17  ;;  %s6677_s17 = smov 104  }
 0x13e   : >> { %1246 = vrot.lane.b32.xlu1 %v6980_v43, %s6669_s29 }
 0x140   : >> { %1295 = vrot.lane.b32.xlu0 %v6986_v51, %s6669_s29 }
 0x142   : >> { %1343 = vrot.lane.b32.xlu1 %v6978_v39, %s6669_s29 }
 0x1a0   : >> { %v863_v58 = vpop.permute.xlu1 %862 }
 0x1a1   : >> { %v868_v59 = vsel %vm767_vm2, %v863_v58, 0 }
 0x1a2   : >> { %5691 = vmatpush3.bf16.xpose.msra.mxu0 %v868_v59  ;;  %v766_v60 = vpop.permute.xlu0 %765 }
 0x1a3   : >> { %v772_v61 = vsel %vm767_vm2, %v766_v60, 0  ;;  %5702 = vmatprep.subr.bf16.mxu0 %v6666_v32 }
 0x1a4   : >> { %5679 = vmatpush3.bf16.xpose.msra.mxu1 %v772_v61  ;;  %v911_v62 = vpop.permute.xlu1 %910 }
 0x1a5   : >> { %5684 = vmatprep.subr.bf16.mxu1 %v6666_v32  ;;  %v916_v6 = vsel %vm767_vm2, %v911_v62, 0 }
 0x1a6   : >> { %v815_v63 = vpop.permute.xlu0 %814 }
 0x1a7   : >> { %v820_v1 = vsel %vm767_vm2, %v815_v63, 0 }
 0x1a8   : >> { %v1007_v3 = vpop.permute.xlu1 %1006 }
 0x1a9   : >> { %5693 = vmatmul.mubr.msk.bf16.vlgmr.msra.gmra.mxu0 %vm767_vm2, %v6978_v39  ;;  %v1012_v9 = vsel %vm767_vm2, %v1007_v3, 0 }
 0x1aa   : >> { %v959_v0 = vpop.permute.xlu0 %958  ;;  %5704 = vmatprep.mubr.msk.bf16.mxu0 %vm6667_vm1, %v6666_v32 }
 0x1ab   : >> { %v964_v2 = vsel %vm767_vm2, %v959_v0, 0  ;;  %5681 = vmatmul.mubr.msk.bf16.vlgmr.msra.gmra.mxu1 %vm767_vm2, %v6980_v43 }
 0x1ac   : >> { %5685 = vmatpush3.bf16.xpose.msra.mxu1 %v820_v1  ;;  %5703 = vmatpush3.bf16.xpose.msra.mxu0 %v964_v2  ;;  %v1103_v5 = vpop.permute.xlu1 %1102 }
 0x1ad   : >> { %5686 = vmatprep.mubr.msk.bf16.mxu1 %vm6667_vm1, %v6666_v32  ;;  %5696 = vmatprep.subr.bf16.mxu1 %v6666_v32  ;;  %v1108_v11 = vsel %vm767_vm2, %v1103_v5, 0 }
 0x1ae   : >> { %5714 = vmatprep.subr.bf16.mxu0 %v6666_v32  ;;  %v1055_v4 = vpop.permute.xlu0 %1054 }
 0x1af   : >> { %v1060_v7 = vsel %vm767_vm2, %v1055_v4, 0 }
 0x1b0   : >> { %v1247_v8 = vpop.permute.xlu1 %1246 }
 0x1b1   : >> { %v1253_v10 = vsel %vm1251_vm3, %v1247_v8, 0 }
 0x1b2   : >> { %v1296_v12 = vpop.permute.xlu0 %1295 }
 0x1b3   : >> { %5687 = vmatmul.mubr.msk.bf16.vlgmr.msra.gmra.mxu1 %vm767_vm2, %v6986_v51  ;;  %5705 = vmatmul.mubr.msk.bf16.vlgmr.msra.gmra.mxu0 %vm767_vm2, %v6991_v54  ;;  %v1301_v13 = vsel %vm1251_vm3, %v1296_v12, 0 }
 0x1b4   : >> { %5697 = vmatpush3.bf16.xpose.msra.mxu1 %v916_v6  ;;  %5715 = vmatpush3.bf16.xpose.msra.mxu0 %v1060_v7  ;;  %v7078_v12 = vpop.permute.xlu1 %1343 }
 0x1b5   : >> { %5698 = vmatprep.mubr.msk.bf16.mxu1 %vm6667_vm1, %v6666_v32  ;;  %5716 = vmatprep.mubr.msk.bf16.mxu0 %vm6667_vm1, %v6666_v32 }
 0x1b6   : >> { %5708 = vmatprep.subr.bf16.mxu1 %v6666_v32  ;;  %5726 = vmatprep.subr.bf16.mxu0 %v6666_v32 }
 0x1bb   : >> { %5699 = vmatmul.mubr.msk.bf16.vlgmr.msra.gmra.mxu1 %vm767_vm2, %v6983_v47  ;;  %5717 = vmatmul.mubr.msk.bf16.vlgmr.msra.gmra.mxu0 %vm767_vm2, %v6998_v57 }
 0x1bc   : >> { %5709 = vmatpush3.bf16.xpose.msra.mxu1 %v1012_v9  ;;  %5727 = vmatpush3.bf16.msra.mxu0 %v1253_v10 }
 0x1bd   : >> { %5710 = vmatprep.mubr.msk.bf16.mxu1 %vm6667_vm1, %v6666_v32  ;;  %5720 = vmatprep.subr.bf16.mxu1 %v6666_v32 }
 0x1be   : >> { %5728 = vmatprep.mubr.msk.bf16.mxu0 %vm6667_vm1, %v6666_v32  ;;  %5738 = vmatprep.subr.bf16.mxu0 %v6666_v32 }
 0x1c3   : >> { %5711 = vmatmul.mubr.msk.bf16.vlgmr.msra.gmra.mxu1 %vm767_vm2, %v6988_v53 }
 0x1c4   : >> { %5721 = vmatpush3.bf16.xpose.msra.mxu1 %v1108_v11  ;;  %5722 = vmatprep.mubr.msk.bf16.mxu1 %vm6667_vm1, %v6666_v32 }
 0x1c5   : >> { %5732 = vmatprep.subr.bf16.mxu1 %v6666_v32 }
 0x1cb   : >> { %5723 = vmatmul.mubr.msk.bf16.vlgmr.msra.gmra.mxu1 %vm767_vm2, %v6994_v56 }
 0x1cc   : >> { %5733 = vmatpush3.bf16.msra.mxu1 %v1301_v13  ;;  %5734 = vmatprep.mubr.msk.bf16.mxu1 %vm6667_vm1, %v6666_v32 }
 0x1cd   : >> { %5744 = vmatprep.subr.bf16.mxu1 %v6666_v32 }
 0x269   : >> { %v904_v14 = vpop.f32.mrf.mxu0 }
 0x26a   : >> { %v1156_v15 = vsel %vm767_vm2, %v904_v14, -inf }
 0x26b   : >> { %v808_v16 = vpop.f32.mrf.mxu1  ;;  %v5694_v17 = vpop.f32.mrf.mxu0  ;;  %1157 = vmax.xlane.f32.xlu0 %v1156_v15 }
 0x26c   : >> { %v1150_v28 = vsel %vm767_vm2, %v808_v16, -inf }
 0x26d   : >> { %v5682_v26 = vpop.f32.mrf.mxu1  ;;  %v907_v27 = vpop.f32.mrf.mxu0 }
 0x26f   : >> { %v811_v29 = vpop.f32.mrf.mxu1  ;;  %v5695_v30 = vpop.f32.mrf.mxu0  ;;  %1151 = vmax.xlane.f32.xlu0 %v1150_v28 }
 0x271   : >> { %v5683_v31 = vpop.f32.mrf.mxu1 }
 0x273   : >> { %v856_v33 = vpop.f32.mrf.mxu1  ;;  %v7062_v34 = vpop.f32.mrf.mxu0 }
 0x274   : >> { %v1162_v35 = vsel %vm767_vm2, %v7062_v34, -inf  ;;  %v1153_v41 = vsel %vm767_vm2, %v856_v33, -inf }
 0x275   : >> { %v5688_v36 = vpop.f32.mrf.mxu1  ;;  %1163 = vmax.xlane.f32.xlu1 %v1162_v35  ;;  %v5706_v37 = vpop.f32.mrf.mxu0 }
 0x277   : >> { %v859_v38 = vpop.f32.mrf.mxu1  ;;  %v1003_v40 = vpop.f32.mrf.mxu0 }
 0x279   : >> { %v5689_v42 = vpop.f32.mrf.mxu1  ;;  %1154 = vmax.xlane.f32.xlu1 %v1153_v41  ;;  %v5707_v44 = vpop.f32.mrf.mxu0 }
 0x27b   : >> { %v952_v45 = vpop.f32.mrf.mxu1  ;;  %v7067_v46 = vpop.f32.mrf.mxu0 }
 0x27c   : >> { %v1159_v48 = vsel %vm767_vm2, %v952_v45, -inf  ;;  %v1168_v49 = vsel %vm767_vm2, %v7067_v46, -inf }
 0x27d   : >> { %v5700_v50 = vpop.f32.mrf.mxu1  ;;  %1160 = vmax.xlane.f32.xlu0 %v1159_v48  ;;  %1169 = vmax.xlane.f32.xlu1 %v1168_v49  ;;  %v5718_v52 = vpop.f32.mrf.mxu0 }
 0x27f   : >> { %v955_v55 = vpop.f32.mrf.mxu1  ;;  %v1099_v58 = vpop.f32.mrf.mxu0 }
 0x281   : >> { %v5701_v59 = vpop.f32.mrf.mxu1  ;;  %v5719_v60 = vpop.f32.mrf.mxu0 }
 0x283   : >> { %v1048_v61 = vpop.f32.mrf.mxu1 }
 0x284   : >> { %v1165_v62 = vsel %vm767_vm2, %v1048_v61, -inf }
 0x285   : >> { %v5712_v63 = vpop.f32.mrf.mxu1  ;;  %1166 = vmax.xlane.f32.xlu0 %v1165_v62 }
 0x287   : >> { %v1051_v0 = vpop.f32.mrf.mxu1 }
 0x289   : >> { %v5713_v1 = vpop.f32.mrf.mxu1 }
 0x28b   : >> { %v1144_v2 = vpop.f32.mrf.mxu1 }
 0x28c   : >> { %v1171_v3 = vsel %vm767_vm2, %v1144_v2, -inf }
 0x28d   : >> { %v5724_v4 = vpop.f32.mrf.mxu1  ;;  %1172 = vmax.xlane.f32.xlu0 %v1171_v3 }
 0x28e   : >> { %1391 = vrot.lane.b32.xlu1 %v6983_v47, %s6669_s29 }
 0x28f   : >> { %v1147_v5 = vpop.f32.mrf.mxu1 }
 0x291   : >> { %v5725_v6 = vpop.f32.mrf.mxu1 }
 0x2a3   : >> { %1439 = vrot.lane.b32.xlu0 %v6991_v54, %s6669_s29 }
 0x2f4   : >> { %v1158_v7 = vpop.xlane.xlu0 %1157 }
 0x2f5   : >> { %v1176_v8 = vsub.f32 %v904_v14, %v1158_v7 }
 0x2f7   : >> { %v1186_v9 = vmul.f32 1.442695, %v1176_v8 }
 0x2f8   : >> { %v1152_v10 = vpop.xlane.xlu0 %1151 }
 0x2f9   : >> { %6305 = vpow2.f32 %v1186_v9  ;;  %v1174_v11 = vsub.f32 %v808_v16, %v1152_v10 }
 0x2fb   : >> { %v1182_v13 = vmul.f32 1.442695, %v1174_v11  ;;  %v1349_v11 = vsel %vm1251_vm3, %v7078_v12, 0 }
 0x2fd   : >> { %6307 = vpow2.f32 %v1182_v13 }
 0x2fe   : >> { %v1164_v15 = vpop.xlane.xlu1 %1163 }
 0x2ff   : >> { %v1178_v48 = vsub.f32 %v7062_v34, %v1164_v15 }
 0x301   : >> { %v1190_v50 = vmul.f32 1.442695, %v1178_v48 }
 0x302   : >> { %v1155_v17 = vpop.xlane.xlu1 %1154 }
 0x303   : >> { %v1175_v26 = vsub.f32 %v856_v33, %v1155_v17 }
 0x305   : >> { %v1184_v27 = vmul.f32 1.442695, %v1175_v26 }
 0x306   : >> { %v7080_v28 = vpop.eup %6305  ;;  %v1161_v29 = vpop.xlane.xlu0 %1160 }
 0x307   : >> { %6309 = vpow2.f32 %v1184_v27  ;;  %v1177_v30 = vsub.f32 %v952_v45, %v1161_v29  ;;  %v1204_v14 = vsel %vm767_vm2, %v7080_v28, 0.0  ;;  %v1170_v49 = vpop.xlane.xlu1 %1169 }
 0x308   : >> { %1205 = vadd.xlane.f32.xlu1 %v1204_v14  ;;  %v1180_v52 = vsub.f32 %v7067_v46, %v1170_v49 }
 0x309   : >> { %v1188_v31 = vmul.f32 1.442695, %v1177_v30 }
 0x30a   : >> { %v7084_v35 = vpop.eup %6307  ;;  %v1194_v55 = vmul.f32 1.442695, %v1180_v52 }
 0x30b   : >> { %v1198_v16 = vsel %vm767_vm2, %v7084_v35, 0.0  ;;  %6311 = vpow2.f32 %v1188_v31  ;;  %v1392_v1 = vpop.permute.xlu1 %1391 }
 0x30c   : >> { %1199 = vadd.xlane.f32.xlu1 %v1198_v16  ;;  %v1397_v14 = vsel %vm1251_vm3, %v1392_v1, 0 }
 0x30e   : >> { %v1167_v36 = vpop.xlane.xlu0 %1166 }
 0x30f   : >> { %v1179_v33 = vsub.f32 %v1048_v61, %v1167_v36 }
 0x311   : >> { %v1192_v37 = vmul.f32 1.442695, %v1179_v33 }
 0x313   : >> { %6313 = vpow2.f32 %v1192_v37 }
 0x314   : >> { %v7088_v38 = vpop.eup %6309  ;;  %6315 = vpow2.f32 %v1190_v50 }
 0x315   : >> { %v1201_v40 = vsel %vm767_vm2, %v7088_v38, 0.0  ;;  %6317 = vpow2.f32 %v1194_v55 }
 0x316   : >> { %1202 = vadd.xlane.f32.xlu0 %v1201_v40  ;;  %v1173_v58 = vpop.xlane.xlu0 %1172 }
 0x317   : >> { %v1181_v60 = vsub.f32 %v1144_v2, %v1173_v58 }
 0x318   : >> { %v7092_v41 = vpop.eup %6311 }
 0x319   : >> { %v1207_v42 = vsel %vm767_vm2, %v7092_v41, 0.0  ;;  %v1196_v34 = vmul.f32 1.442695, %v1181_v60 }
 0x31a   : >> { %1208 = vadd.xlane.f32.xlu0 %v1207_v42  ;;  %v1440_v4 = vpop.permute.xlu0 %1439 }
 0x31b   : >> { %6319 = vpow2.f32 %v1196_v34  ;;  %v1445_v29 = vsel %vm1251_vm3, %v1440_v4, 0 }
 0x31d   : >> { %1487 = vrot.lane.b32.xlu1 %v6988_v53, %s6669_s29 }
 0x320   : >> { %v7098_v44 = vpop.eup %6313 }
 0x321   : >> { %v1213_v45 = vsel %vm767_vm2, %v7098_v44, 0.0  ;;  %v7106_v59 = vpop.eup %6315 }
 0x322   : >> { %1214 = vadd.xlane.f32.xlu0 %v1213_v45  ;;  %v1210_v61 = vsel %vm767_vm2, %v7106_v59, 0.0  ;;  %v7110_v62 = vpop.eup %6317 }
 0x323   : >> { %v1216_v46 = vsel %vm767_vm2, %v7110_v62, 0.0 }
 0x328   : >> { %v7114_v63 = vpop.eup %6319 }
 0x329   : >> { %v1219_v0 = vsel %vm767_vm2, %v7114_v63, 0.0 }
 0x338   : >> { %1535 = vrot.lane.b32.xlu0 %v6998_v57, %s6669_s29 }
 0x341   : >> { %1211 = vadd.xlane.f32.xlu1 %v1210_v61 }
 0x345   : >> { %1217 = vadd.xlane.f32.xlu1 %v1216_v46 }
 0x356   : >> { %1583 = vrot.lane.b32.xlu1 %v6994_v56, %s6669_s29  ;;  %s6678_s29 = smov 40  }
 0x357   : >> { %1220 = vadd.xlane.f32.xlu0 %v1219_v0 }
 0x35a   : >> { %1687 = vrot.lane.b32.xlu1 %v6986_v51, %s6670_s28 }
 0x35e   : >> { %1685 = vrot.lane.b32.xlu1 %v6986_v51, %s6671_s27 }
 0x362   : >> { %1787 = vrot.lane.b32.xlu1 %v6983_v47, %s6670_s28 }
 0x366   : >> { %1785 = vrot.lane.b32.xlu1 %v6983_v47, %s6671_s27 }
 0x36a   : >> { %1887 = vrot.lane.b32.xlu1 %v6988_v53, %s6670_s28 }
 0x36d   : >> { %1637 = vrot.lane.b32.xlu0 %v6980_v43, %s6670_s28 }
 0x36e   : >> { %1885 = vrot.lane.b32.xlu1 %v6988_v53, %s6671_s27 }
 0x371   : >> { %1635 = vrot.lane.b32.xlu0 %v6980_v43, %s6671_s27 }
 0x372   : >> { %1987 = vrot.lane.b32.xlu1 %v6994_v56, %s6670_s28 }
 0x375   : >> { %1737 = vrot.lane.b32.xlu0 %v6978_v39, %s6670_s28 }
 0x376   : >> { %1985 = vrot.lane.b32.xlu1 %v6994_v56, %s6671_s27 }
 0x379   : >> { %1735 = vrot.lane.b32.xlu0 %v6978_v39, %s6671_s27 }
 0x37a   : >> { %2131 = vrot.lane.b32.xlu1 %v6980_v43, %s6672_s14 }
 0x37d   : >> { %1837 = vrot.lane.b32.xlu0 %v6991_v54, %s6670_s28 }
 0x381   : >> { %1835 = vrot.lane.b32.xlu0 %v6991_v54, %s6671_s27 }
 0x385   : >> { %1937 = vrot.lane.b32.xlu0 %v6998_v57, %s6670_s28 }
 0x389   : >> { %1935 = vrot.lane.b32.xlu0 %v6998_v57, %s6671_s27 }
 0x391   : >> { %v1206_v2 = vpop.xlane.xlu1 %1205 }
 0x395   : >> { %v1200_v3 = vpop.xlane.xlu1 %1199 }
 0x396   : >> { %6321 = vrcp.f32 %v1200_v3 }
 0x397   : >> { %6323 = vrcp.f32 %v1206_v2 }
 0x399   : >> { %v1488_v31 = vpop.permute.xlu1 %1487 }
 0x39a   : >> { %v1493_v36 = vsel %vm1251_vm3, %v1488_v31, 0 }
 0x39f   : >> { %v1203_v5 = vpop.xlane.xlu0 %1202 }
 0x3a0   : >> { %6325 = vrcp.f32 %v1203_v5 }
 0x3a3   : >> { %v6322_v6 = vpop.eup %6321  ;;  %v1209_v7 = vpop.xlane.xlu0 %1208 }
 0x3a4   : >> { %v1230_v8 = vmul.f32 %v6322_v6, %v7084_v35  ;;  %6327 = vrcp.f32 %v1209_v7  ;;  %v6324_v10 = vpop.eup %6323 }
 0x3a5   : >> { %v1232_v13 = vmul.f32 %v6324_v10, %v7080_v28 }
 0x3a6   : >> { %v1238_v9 = vpack.c.bf16 %v1230_v8, %v1230_v8 }
 0x3a7   : >> { %v1240_v26 = vpack.c.bf16 %v1232_v13, %v1232_v13 }
 0x3a8   : >> { %5729 = vmatmul.mubr.msk.bf16.vlgmr.msra.gmra.mxu0 %vm767_vm2, %v1238_v9 }
 0x3a9   : >> { %5739 = vmatpush3.bf16.msra.mxu0 %v1349_v11  ;;  %5740 = vmatprep.mubr.msk.bf16.mxu0 %vm6667_vm1, %v6666_v32 }
 0x3aa   : >> { %5750 = vmatprep.subr.bf16.mxu0 %v6666_v32 }
 0x3ab   : >> { %v1215_v15 = vpop.xlane.xlu0 %1214 }
 0x3ac   : >> { %6329 = vrcp.f32 %v1215_v15 }
 0x3ad   : >> { %v6326_v17 = vpop.eup %6325 }
 0x3ae   : >> { %v1231_v27 = vmul.f32 %v6326_v17, %v7088_v38 }
 0x3af   : >> { %v1536_v49 = vpop.permute.xlu0 %1535 }
 0x3b0   : >> { %5741 = vmatmul.mubr.msk.bf16.vlgmr.msra.gmra.mxu0 %vm767_vm2, %v1240_v26  ;;  %v1239_v12 = vpack.c.bf16 %v1231_v27, %v1231_v27  ;;  %v1541_v58 = vsel %vm1251_vm3, %v1536_v49, 0 }
 0x3b1   : >> { %5751 = vmatpush3.bf16.msra.mxu0 %v1445_v29  ;;  %5752 = vmatprep.mubr.msk.bf16.mxu0 %vm6667_vm1, %v6666_v32  ;;  %v6328_v30 = vpop.eup %6327 }
 0x3b2   : >> { %5735 = vmatmul.mubr.msk.bf16.vlgmr.msra.gmra.mxu1 %vm767_vm2, %v1239_v12  ;;  %5762 = vmatprep.subr.bf16.mxu0 %v6666_v32  ;;  %v1233_v28 = vmul.f32 %v6328_v30, %v7092_v41 }
 0x3b3   : >> { %5745 = vmatpush3.bf16.msra.mxu1 %v1397_v14  ;;  %5746 = vmatprep.mubr.msk.bf16.mxu1 %vm6667_vm1, %v6666_v32 }
 0x3b4   : >> { %5756 = vmatprep.subr.bf16.mxu1 %v6666_v32  ;;  %v1241_v35 = vpack.c.bf16 %v1233_v28, %v1233_v28 }
 0x3b9   : >> { %v6330_v16 = vpop.eup %6329 }
 0x3ba   : >> { %5747 = vmatmul.mubr.msk.bf16.vlgmr.msra.gmra.mxu1 %vm767_vm2, %v1241_v35  ;;  %v1235_v33 = vmul.f32 %v6330_v16, %v7098_v44 }
 0x3bb   : >> { %5757 = vmatpush3.bf16.msra.mxu1 %v1493_v36  ;;  %5758 = vmatprep.mubr.msk.bf16.mxu1 %vm6667_vm1, %v6666_v32 }
 0x3bc   : >> { %5768 = vmatprep.subr.bf16.mxu1 %v6666_v32  ;;  %v1243_v37 = vpack.c.bf16 %v1235_v33, %v1235_v33 }
 0x3c2   : >> { %5759 = vmatmul.mubr.msk.bf16.vlgmr.msra.gmra.mxu1 %vm767_vm2, %v1243_v37 }
 0x3c3   : >> { %5770 = vmatprep.mubr.msk.bf16.mxu1 %vm6667_vm1, %v6666_v32 }
 0x3ca   : >> { %v1212_v38 = vpop.xlane.xlu1 %1211 }
 0x3cb   : >> { %6331 = vrcp.f32 %v1212_v38 }
 0x3ce   : >> { %v1218_v40 = vpop.xlane.xlu1 %1217 }
 0x3cf   : >> { %6333 = vrcp.f32 %v1218_v40 }
 0x3d2   : >> { %v1584_v41 = vpop.permute.xlu1 %1583 }
 0x3d3   : >> { %v1589_v42 = vsel %vm1251_vm3, %v1584_v41, 0 }
 0x3d4   : >> { %5769 = vmatpush3.bf16.msra.mxu1 %v1589_v42 }
 0x3d5   : >> { %5780 = vmatprep.subr.bf16.mxu1 %v6666_v32 }
 0x3d6   : >> { %v1688_v45 = vpop.permute.xlu1 %1687 }
 0x3d7   : >> { %v1693_v10 = vsel %vm767_vm2, %v1688_v45, 0 }
 0x3d8   : >> { %v6332_v44 = vpop.eup %6331 }
 0x3d9   : >> { %v1234_v48 = vmul.f32 %v6332_v44, %v7106_v59 }
 0x3da   : >> { %v1686_v50 = vpop.permute.xlu1 %1685 }
 0x3db   : >> { %v1242_v52 = vpack.c.bf16 %v1234_v48, %v1234_v48 }
 0x3dc   : >> { %v6334_v55 = vpop.eup %6333 }
 0x3dd   : >> { %5753 = vmatmul.mubr.msk.bf16.vlgmr.msra.gmra.mxu0 %vm767_vm2, %v1242_v52  ;;  %v1236_v61 = vmul.f32 %v6334_v55, %v7110_v62 }
 0x3de   : >> { %5763 = vmatpush3.bf16.msra.mxu0 %v1541_v58  ;;  %v1788_v60 = vpop.permute.xlu1 %1787  ;;  %5764 = vmatprep.mubr.msk.bf16.mxu0 %vm6667_vm1, %v6666_v32 }
 0x3df   : >> { %5774 = vmatprep.subr.bf16.mxu0 %v6666_v32  ;;  %v1244_v59 = vpack.c.bf16 %v1236_v61, %v1236_v61  ;;  %v1793_v17 = vsel %vm767_vm2, %v1788_v60, 0 }
 0x3e0   : >> { %v1221_v34 = vpop.xlane.xlu0 %1220 }
 0x3e1   : >> { %6335 = vrcp.f32 %v1221_v34 }
 0x3e2   : >> { %v1786_v46 = vpop.permute.xlu1 %1785 }
 0x3e4   : >> { %v1638_v0 = vpop.permute.xlu0 %1637 }
 0x3e5   : >> { %v1643_v1 = vsel %vm767_vm2, %v1638_v0, 0  ;;  %5765 = vmatmul.mubr.msk.bf16.vlgmr.msra.gmra.mxu0 %vm767_vm2, %v1244_v59 }
 0x3e6   : >> { %5775 = vmatpush3.bf16.xpose.msra.mxu0 %v1643_v1  ;;  %5776 = vmatprep.mubr.msk.bf16.mxu0 %vm6667_vm1, %v6666_v32  ;;  %v1888_v3 = vpop.permute.xlu1 %1887 }
 0x3e7   : >> { %5786 = vmatprep.subr.bf16.mxu0 %v6666_v32  ;;  %v1893_v30 = vsel %vm767_vm2, %v1888_v3, 0 }
 0x3e8   : >> { %v1636_v2 = vpop.permute.xlu0 %1635 }
 0x3ea   : >> { %v1886_v7 = vpop.permute.xlu1 %1885 }
 0x3ec   : >> { %v1738_v62 = vpop.permute.xlu0 %1737 }
 0x3ed   : >> { %v1743_v4 = vsel %vm767_vm2, %v1738_v62, 0  ;;  %5777 = vmatmul.mubr.msk.bf16.vlgmr.msra.gmra.mxu0 %vm767_vm2, %v1636_v2 }
 0x3ee   : >> { %v6336_v5 = vpop.eup %6335  ;;  %5787 = vmatpush3.bf16.xpose.msra.mxu0 %v1743_v4  ;;  %5788 = vmatprep.mubr.msk.bf16.mxu0 %vm6667_vm1, %v6666_v32 }
 0x3ef   : >> { %v1237_v6 = vmul.f32 %v6336_v5, %v7114_v63  ;;  %5798 = vmatprep.subr.bf16.mxu0 %v6666_v32  ;;  %v1988_v63 = vpop.permute.xlu1 %1987 }
 0x3f0   : >> { %v1736_v8 = vpop.permute.xlu0 %1735  ;;  %v1993_v31 = vsel %vm767_vm2, %v1988_v63, 0 }
 0x3f1   : >> { %v1245_v9 = vpack.c.bf16 %v1237_v6, %v1237_v6 }
 0x3f3   : >> { %5771 = vmatmul.mubr.msk.bf16.vlgmr.msra.gmra.mxu1 %vm767_vm2, %v1245_v9  ;;  %v1986_v26 = vpop.permute.xlu1 %1985 }
 0x3f4   : >> { %5781 = vmatpush3.bf16.xpose.msra.mxu1 %v1693_v10  ;;  %v1838_v11 = vpop.permute.xlu0 %1837  ;;  %5782 = vmatprep.mubr.msk.bf16.mxu1 %vm6667_vm1, %v6666_v32 }
 0x3f5   : >> { %v1843_v13 = vsel %vm767_vm2, %v1838_v11, 0  ;;  %5789 = vmatmul.mubr.msk.bf16.vlgmr.msra.gmra.mxu0 %vm767_vm2, %v1736_v8  ;;  %5792 = vmatprep.subr.bf16.mxu1 %v6666_v32 }
 0x3f6   : >> { %5799 = vmatpush3.bf16.xpose.msra.mxu0 %v1843_v13  ;;  %5800 = vmatprep.mubr.msk.bf16.mxu0 %vm6667_vm1, %v6666_v32 }
 0x3f7   : >> { %5810 = vmatprep.subr.bf16.mxu0 %v6666_v32  ;;  %v2132_v12 = vpop.permute.xlu1 %2131 }
 0x3f8   : >> { %v1836_v15 = vpop.permute.xlu0 %1835  ;;  %v2137_v28 = vsel %vm1251_vm3, %v2132_v12, 0 }
 0x3fb   : >> { %5783 = vmatmul.mubr.msk.bf16.vlgmr.msra.gmra.mxu1 %vm767_vm2, %v1686_v50 }
 0x3fc   : >> { %5793 = vmatpush3.bf16.xpose.msra.mxu1 %v1793_v17  ;;  %v1938_v27 = vpop.permute.xlu0 %1937  ;;  %5794 = vmatprep.mubr.msk.bf16.mxu1 %vm6667_vm1, %v6666_v32 }
 0x3fd   : >> { %v1943_v29 = vsel %vm767_vm2, %v1938_v27, 0  ;;  %5801 = vmatmul.mubr.msk.bf16.vlgmr.msra.gmra.mxu0 %vm767_vm2, %v1836_v15  ;;  %5804 = vmatprep.subr.bf16.mxu1 %v6666_v32 }
 0x3fe   : >> { %5811 = vmatpush3.bf16.xpose.msra.mxu0 %v1943_v29  ;;  %5812 = vmatprep.mubr.msk.bf16.mxu0 %vm6667_vm1, %v6666_v32 }
 0x3ff   : >> { %5822 = vmatprep.subr.bf16.mxu0 %v6666_v32 }
 0x400   : >> { %v1936_v14 = vpop.permute.xlu0 %1935 }
 0x403   : >> { %5795 = vmatmul.mubr.msk.bf16.vlgmr.msra.gmra.mxu1 %vm767_vm2, %v1786_v46 }
 0x404   : >> { %5805 = vmatpush3.bf16.xpose.msra.mxu1 %v1893_v30  ;;  %5806 = vmatprep.mubr.msk.bf16.mxu1 %vm6667_vm1, %v6666_v32 }
 0x405   : >> { %5813 = vmatmul.mubr.msk.bf16.vlgmr.msra.gmra.mxu0 %vm767_vm2, %v1936_v14  ;;  %5816 = vmatprep.subr.bf16.mxu1 %v6666_v32 }
 0x406   : >> { %5823 = vmatpush3.bf16.msra.mxu0 %v2137_v28  ;;  %5824 = vmatprep.mubr.msk.bf16.mxu0 %vm6667_vm1, %v6666_v32 }
 0x407   : >> { %5834 = vmatprep.subr.bf16.mxu0 %v6666_v32 }
 0x40b   : >> { %5807 = vmatmul.mubr.msk.bf16.vlgmr.msra.gmra.mxu1 %vm767_vm2, %v1886_v7 }
 0x40c   : >> { %5817 = vmatpush3.bf16.xpose.msra.mxu1 %v1993_v31  ;;  %5818 = vmatprep.mubr.msk.bf16.mxu1 %vm6667_vm1, %v6666_v32 }
 0x40d   : >> { %5828 = vmatprep.subr.bf16.mxu1 %v6666_v32 }
 0x413   : >> { %5819 = vmatmul.mubr.msk.bf16.vlgmr.msra.gmra.mxu1 %vm767_vm2, %v1986_v26 }
 0x414   : >> { %5830 = vmatprep.mubr.msk.bf16.mxu1 %vm6667_vm1, %v6666_v32 }
 0x468   : >> { %v7225_v35 = vpop.f32.mrf.mxu0 }
 0x46a   : >> { %v5730_v16 = vpop.f32.mrf.mxu0 }
 0x46c   : >> { %v1292_v36 = vpop.f32.mrf.mxu0 }
 0x46e   : >> { %v5731_v33 = vpop.f32.mrf.mxu0 }
 0x470   : >> { %v7227_v37 = vpop.f32.mrf.mxu0 }
 0x472   : >> { %v7229_v38 = vpop.f32.mrf.mxu1  ;;  %v5742_v40 = vpop.f32.mrf.mxu0 }
 0x473   : >> { %v1631_v41 = vpack.c.bf16 %v7229_v38, %v7225_v35 }
 0x474   : >> { %v5736_v42 = vpop.f32.mrf.mxu1  ;;  %v1388_v45 = vpop.f32.mrf.mxu0 }
 0x476   : >> { %v1340_v44 = vpop.f32.mrf.mxu1  ;;  %v5743_v48 = vpop.f32.mrf.mxu0 }
 0x478   : >> { %v5737_v49 = vpop.f32.mrf.mxu1 }
 0x47a   : >> { %v7233_v50 = vpop.f32.mrf.mxu1 }
 0x47b   : >> { %v1632_v52 = vpack.c.bf16 %v7233_v50, %v7227_v37 }
 0x47c   : >> { %v5748_v55 = vpop.f32.mrf.mxu1 }
 0x47e   : >> { %v1436_v58 = vpop.f32.mrf.mxu1 }
 0x480   : >> { %v5749_v60 = vpop.f32.mrf.mxu1 }
 0x482   : >> { %v7237_v61 = vpop.f32.mrf.mxu1 }
 0x484   : >> { %v5760_v34 = vpop.f32.mrf.mxu1 }
 0x486   : >> { %v1532_v59 = vpop.f32.mrf.mxu1 }
 0x488   : >> { %v5761_v46 = vpop.f32.mrf.mxu1 }
 0x49d   : >> { %v7239_v0 = vpop.f32.mrf.mxu0 }
 0x49e   : >> { %v1633_v1 = vpack.c.bf16 %v7237_v61, %v7239_v0 }
 0x49f   : >> { %v5754_v2 = vpop.f32.mrf.mxu0 }
 0x4a1   : >> { %v1484_v3 = vpop.f32.mrf.mxu0 }
 0x4a3   : >> { %v5755_v62 = vpop.f32.mrf.mxu0 }
 0x4a5   : >> { %v7243_v4 = vpop.f32.mrf.mxu0 }
 0x4a7   : >> { %v5766_v5 = vpop.f32.mrf.mxu0 }
 0x4a9   : >> { %v1580_v6 = vpop.f32.mrf.mxu0 }
 0x4ab   : >> { %v5767_v7 = vpop.f32.mrf.mxu0 }
 0x4ad   : >> { %v1679_v8 = vpop.f32.mrf.mxu0 }
 0x4ae   : >> { %v2035_v9 = vsel %vm767_vm2, %v1679_v8, -inf }
 0x4af   : >> { %2036 = vmax.xlane.f32.xlu0 %v2035_v9  ;;  %v5778_v10 = vpop.f32.mrf.mxu0 }
 0x4b1   : >> { %v1682_v11 = vpop.f32.mrf.mxu0 }
 0x4b3   : >> { %v7246_v13 = vpop.f32.mrf.mxu1  ;;  %v5779_v63 = vpop.f32.mrf.mxu0 }
 0x4b4   : >> { %v1634_v15 = vpack.c.bf16 %v7246_v13, %v7243_v4 }
 0x4b5   : >> { %v5772_v17 = vpop.f32.mrf.mxu1  ;;  %v1779_v26 = vpop.f32.mrf.mxu0 }
 0x4b6   : >> { %v2041_v27 = vsel %vm767_vm2, %v1779_v26, -inf }
 0x4b7   : >> { %v1628_v29 = vpop.f32.mrf.mxu1  ;;  %2042 = vmax.xlane.f32.xlu0 %v2041_v27  ;;  %v5790_v12 = vpop.f32.mrf.mxu0 }
 0x4b9   : >> { %v5773_v30 = vpop.f32.mrf.mxu1  ;;  %v1782_v14 = vpop.f32.mrf.mxu0 }
 0x4bb   : >> { %v1729_v28 = vpop.f32.mrf.mxu1  ;;  %v5791_v31 = vpop.f32.mrf.mxu0 }
 0x4bc   : >> { %v2038_v16 = vsel %vm767_vm2, %v1729_v28, -inf }
 0x4bd   : >> { %2039 = vmax.xlane.f32.xlu1 %v2038_v16  ;;  %v5784_v36 = vpop.f32.mrf.mxu1  ;;  %v7252_v33 = vpop.f32.mrf.mxu0 }
 0x4be   : >> { %v2047_v45 = vsel %vm767_vm2, %v7252_v33, -inf }
 0x4bf   : >> { %v1732_v40 = vpop.f32.mrf.mxu1  ;;  %v5802_v42 = vpop.f32.mrf.mxu0 }
 0x4c1   : >> { %v5785_v44 = vpop.f32.mrf.mxu1  ;;  %2048 = vmax.xlane.f32.xlu1 %v2047_v45  ;;  %v1882_v48 = vpop.f32.mrf.mxu0 }
 0x4c3   : >> { %v1829_v49 = vpop.f32.mrf.mxu1  ;;  %v5803_v55 = vpop.f32.mrf.mxu0 }
 0x4c4   : >> { %v2044_v58 = vsel %vm767_vm2, %v1829_v49, -inf }
 0x4c5   : >> { %v5796_v60 = vpop.f32.mrf.mxu1  ;;  %2045 = vmax.xlane.f32.xlu0 %v2044_v58  ;;  %v7257_v34 = vpop.f32.mrf.mxu0 }
 0x4c6   : >> { %v2053_v59 = vsel %vm767_vm2, %v7257_v34, -inf }
 0x4c7   : >> { %v1832_v46 = vpop.f32.mrf.mxu1  ;;  %2054 = vmax.xlane.f32.xlu1 %v2053_v59  ;;  %v5814_v2 = vpop.f32.mrf.mxu0 }
 0x4c9   : >> { %v5797_v3 = vpop.f32.mrf.mxu1  ;;  %v1982_v62 = vpop.f32.mrf.mxu0 }
 0x4cb   : >> { %v1929_v5 = vpop.f32.mrf.mxu1  ;;  %v5815_v6 = vpop.f32.mrf.mxu0 }
 0x4cc   : >> { %v2050_v7 = vsel %vm767_vm2, %v1929_v5, -inf }
 0x4cd   : >> { %v5808_v9 = vpop.f32.mrf.mxu1  ;;  %2051 = vmax.xlane.f32.xlu0 %v2050_v7 }
 0x4cf   : >> { %v1932_v10 = vpop.f32.mrf.mxu1 }
 0x4d1   : >> { %v5809_v11 = vpop.f32.mrf.mxu1 }
 0x4d3   : >> { %v2029_v63 = vpop.f32.mrf.mxu1 }
 0x4d4   : >> { %v2056_v17 = vsel %vm767_vm2, %v2029_v63, -inf }
 0x4d5   : >> { %v5820_v27 = vpop.f32.mrf.mxu1  ;;  %2057 = vmax.xlane.f32.xlu0 %v2056_v17 }
 0x4d7   : >> { %v2032_v29 = vpop.f32.mrf.mxu1 }
 0x4d8   : >> { %2227 = vrot.lane.b32.xlu1 %v6978_v39, %s6672_s14 }
 0x4d9   : >> { %v5821_v12 = vpop.f32.mrf.mxu1 }
 0x4dc   : >> { %2275 = vrot.lane.b32.xlu1 %v6983_v47, %s6672_s14 }
 0x4eb   : >> { %2179 = vrot.lane.b32.xlu0 %v6986_v51, %s6672_s14 }
 0x538   : >> { %v2037_v30 = vpop.xlane.xlu0 %2036 }
 0x539   : >> { %v2059_v14 = vsub.f32 %v1679_v8, %v2037_v30 }
 0x53b   : >> { %v2067_v31 = vmul.f32 1.442695, %v2059_v14 }
 0x53d   : >> { %6337 = vpow2.f32 %v2067_v31 }
 0x540   : >> { %v2043_v16 = vpop.xlane.xlu0 %2042 }
 0x541   : >> { %v2061_v36 = vsub.f32 %v1779_v26, %v2043_v16 }
 0x543   : >> { %v2071_v40 = vmul.f32 1.442695, %v2061_v36 }
 0x545   : >> { %6339 = vpow2.f32 %v2071_v40 }
 0x546   : >> { %v2040_v42 = vpop.xlane.xlu1 %2039 }
 0x547   : >> { %v2060_v45 = vsub.f32 %v1729_v28, %v2040_v42 }
 0x549   : >> { %v2069_v44 = vmul.f32 1.442695, %v2060_v45 }
 0x54a   : >> { %v7269_v48 = vpop.eup %6337  ;;  %v2049_v9 = vpop.xlane.xlu1 %2048 }
 0x54b   : >> { %6341 = vpow2.f32 %v2069_v44  ;;  %v2083_v55 = vsel %vm767_vm2, %v7269_v48, 0.0  ;;  %v2063_v10 = vsub.f32 %v7252_v33, %v2049_v9 }
 0x54c   : >> { %2084 = vadd.xlane.f32.xlu1 %v2083_v55 }
 0x54d   : >> { %v2075_v17 = vmul.f32 1.442695, %v2063_v10 }
 0x54e   : >> { %v2046_v58 = vpop.xlane.xlu0 %2045 }
 0x54f   : >> { %v2062_v60 = vsub.f32 %v1829_v49, %v2046_v58 }
 0x550   : >> { %v2055_v11 = vpop.xlane.xlu1 %2054 }
 0x551   : >> { %v2073_v59 = vmul.f32 1.442695, %v2062_v60  ;;  %v2065_v27 = vsub.f32 %v7257_v34, %v2055_v11 }
 0x552   : >> { %v7273_v8 = vpop.eup %6339 }
 0x553   : >> { %6343 = vpow2.f32 %v2073_v59  ;;  %v2089_v26 = vsel %vm767_vm2, %v7273_v8, 0.0  ;;  %v2079_v29 = vmul.f32 1.442695, %v2065_v27 }
 0x554   : >> { %2090 = vadd.xlane.f32.xlu1 %v2089_v26  ;;  %6345 = vpow2.f32 %v2075_v17  ;;  %v2228_v45 = vpop.permute.xlu1 %2227 }
 0x555   : >> { %6347 = vpow2.f32 %v2079_v29 }
 0x556   : >> { %v2052_v2 = vpop.xlane.xlu0 %2051 }
 0x557   : >> { %v2064_v12 = vsub.f32 %v1929_v5, %v2052_v2  ;;  %v2233_v2 = vsel %vm1251_vm3, %v2228_v45, 0 }
 0x558   : >> { %v7277_v46 = vpop.eup %6341  ;;  %v2276_v44 = vpop.permute.xlu1 %2275 }
 0x559   : >> { %v2086_v28 = vsel %vm767_vm2, %v7277_v46, 0.0  ;;  %v2077_v30 = vmul.f32 1.442695, %v2064_v12  ;;  %v2281_v27 = vsel %vm1251_vm3, %v2276_v44, 0 }
 0x55a   : >> { %2087 = vadd.xlane.f32.xlu0 %v2086_v28 }
 0x55b   : >> { %6349 = vpow2.f32 %v2077_v30 }
 0x55e   : >> { %v2058_v3 = vpop.xlane.xlu0 %2057 }
 0x55f   : >> { %v2066_v14 = vsub.f32 %v2029_v63, %v2058_v3 }
 0x560   : >> { %v7281_v62 = vpop.eup %6343 }
 0x561   : >> { %v2092_v49 = vsel %vm767_vm2, %v7281_v62, 0.0  ;;  %v7293_v31 = vpop.eup %6345  ;;  %v2081_v16 = vmul.f32 1.442695, %v2066_v14 }
 0x562   : >> { %2093 = vadd.xlane.f32.xlu0 %v2092_v49  ;;  %v2180_v6 = vpop.permute.xlu0 %2179  ;;  %v2095_v33 = vsel %vm767_vm2, %v7293_v31, 0.0  ;;  %v7297_v36 = vpop.eup %6347 }
 0x563   : >> { %v2185_v7 = vsel %vm1251_vm3, %v2180_v6, 0  ;;  %6351 = vpow2.f32 %v2081_v16  ;;  %v2101_v34 = vsel %vm767_vm2, %v7297_v36, 0.0 }
 0x564   : >> { %5829 = vmatpush3.bf16.msra.mxu1 %v2185_v7 }
 0x565   : >> { %2371 = vrot.lane.b32.xlu1 %v6988_v53, %s6672_s14  ;;  %5840 = vmatprep.subr.bf16.mxu1 %v6666_v32 }
 0x568   : >> { %v7301_v40 = vpop.eup %6349 }
 0x569   : >> { %v2098_v5 = vsel %vm767_vm2, %v7301_v40, 0.0 }
 0x570   : >> { %v7305_v63 = vpop.eup %6351 }
 0x571   : >> { %v2104_v42 = vsel %vm767_vm2, %v7305_v63, 0.0 }
 0x578   : >> { %2323 = vrot.lane.b32.xlu0 %v6991_v54, %s6672_s14 }
 0x589   : >> { %2096 = vadd.xlane.f32.xlu1 %v2095_v33 }
 0x58d   : >> { %2102 = vadd.xlane.f32.xlu1 %v2101_v34 }
 0x597   : >> { %2099 = vadd.xlane.f32.xlu0 %v2098_v5 }
 0x59b   : >> { %2105 = vadd.xlane.f32.xlu0 %v2104_v42 }
 0x59e   : >> { %2467 = vrot.lane.b32.xlu1 %v6994_v56, %s6672_s14 }
 0x5a2   : >> { %2731 = vrot.lane.b32.xlu1 %v6986_v51, %s6673_s25 }
 0x5a6   : >> { %2729 = vrot.lane.b32.xlu1 %v6986_v51, %s6674_s18 }
 0x5aa   : >> { %2831 = vrot.lane.b32.xlu1 %v6983_v47, %s6673_s25 }
 0x5ae   : >> { %2829 = vrot.lane.b32.xlu1 %v6983_v47, %s6674_s18 }
 0x5b1   : >> { %2419 = vrot.lane.b32.xlu0 %v6998_v57, %s6672_s14  ;;  %s610_s14 = scalar_lea.vmem %s8098_s5, %s6660_s16 }
 0x5b2   : >> { %2931 = vrot.lane.b32.xlu1 %v6988_v53, %s6673_s25 }
 0x5b5   : >> { %2681 = vrot.lane.b32.xlu0 %v6980_v43, %s6673_s25 }
 0x5b6   : >> { %2929 = vrot.lane.b32.xlu1 %v6988_v53, %s6674_s18 }
 0x5b9   : >> { %2679 = vrot.lane.b32.xlu0 %v6980_v43, %s6674_s18 }
 0x5ba   : >> { %3031 = vrot.lane.b32.xlu1 %v6994_v56, %s6673_s25 }
 0x5bd   : >> { %2781 = vrot.lane.b32.xlu0 %v6978_v39, %s6673_s25 }
 0x5be   : >> { %3029 = vrot.lane.b32.xlu1 %v6994_v56, %s6674_s18 }
 0x5c1   : >> { %2779 = vrot.lane.b32.xlu0 %v6978_v39, %s6674_s18 }
 0x5c5   : >> { %2881 = vrot.lane.b32.xlu0 %v6991_v54, %s6673_s25 }
 0x5c9   : >> { %2879 = vrot.lane.b32.xlu0 %v6991_v54, %s6674_s18 }
 0x5cd   : >> { %2981 = vrot.lane.b32.xlu0 %v6998_v57, %s6673_s25 }
 0x5d1   : >> { %2979 = vrot.lane.b32.xlu0 %v6998_v57, %s6674_s18 }
 0x5d5   : >> { %v2085_v55 = vpop.xlane.xlu1 %2084 }
 0x5d6   : >> { %6353 = vrcp.f32 %v2085_v55 }
 0x5dd   : >> { %v2091_v58 = vpop.xlane.xlu1 %2090 }
 0x5de   : >> { %6355 = vrcp.f32 %v2091_v58 }
 0x5e1   : >> { %v2372_v12 = vpop.permute.xlu1 %2371 }
 0x5e3   : >> { %v6354_v60 = vpop.eup %6353  ;;  %v2088_v59 = vpop.xlane.xlu0 %2087 }
 0x5e4   : >> { %6357 = vrcp.f32 %v2088_v59  ;;  %v2115_v26 = vmul.f32 %v6354_v60, %v7269_v48 }
 0x5e6   : >> { %v2123_v28 = vpack.c.bf16 %v2115_v26, %v2115_v26 }
 0x5e8   : >> { %5825 = vmatmul.mubr.msk.bf16.vlgmr.msra.gmra.mxu0 %vm767_vm2, %v2123_v28 }
 0x5e9   : >> { %5835 = vmatpush3.bf16.msra.mxu0 %v2233_v2  ;;  %5836 = vmatprep.mubr.msk.bf16.mxu0 %vm6667_vm1, %v6666_v32  ;;  %v606_v2 = vld [vmem:[%s7365_s19] sm:$0xf] }
 0x5ea   : >> { %5846 = vmatprep.subr.bf16.mxu0 %v6666_v32 }
 0x5eb   : >> { %v6356_v3 = vpop.eup %6355  ;;  %v2094_v49 = vpop.xlane.xlu0 %2093 }
 0x5ec   : >> { %6359 = vrcp.f32 %v2094_v49  ;;  %v2117_v6 = vmul.f32 %v6356_v3, %v7273_v8 }
 0x5ee   : >> { %v2125_v7 = vpack.c.bf16 %v2117_v6, %v2117_v6  ;;  %v2612_v6 = vsel %vm1251_vm3, %v606_v2, 0 }
 0x5ef   : >> { %v2324_v9 = vpop.permute.xlu0 %2323 }
 0x5f0   : >> { %v2329_v48 = vsel %vm1251_vm3, %v2324_v9, 0  ;;  %5837 = vmatmul.mubr.msk.bf16.vlgmr.msra.gmra.mxu0 %vm767_vm2, %v2125_v7  ;;  %v607_v9 = vld [vmem:[%s7365_s19 + $0x4] sm:$0xf] }
 0x5f1   : >> { %v6358_v10 = vpop.eup %6357  ;;  %5847 = vmatpush3.bf16.msra.mxu0 %v2329_v48  ;;  %5848 = vmatprep.mubr.msk.bf16.mxu0 %vm6667_vm1, %v6666_v32 }
 0x5f2   : >> { %v2116_v11 = vmul.f32 %v6358_v10, %v7277_v46  ;;  %5858 = vmatprep.subr.bf16.mxu0 %v6666_v32  ;;  %v2377_v46 = vsel %vm1251_vm3, %v2372_v12, 0 }
 0x5f4   : >> { %v2124_v17 = vpack.c.bf16 %v2116_v11, %v2116_v11 }
 0x5f6   : >> { %5831 = vmatmul.mubr.msk.bf16.vlgmr.msra.gmra.mxu1 %vm767_vm2, %v2124_v17 }
 0x5f7   : >> { %5841 = vmatpush3.bf16.msra.mxu1 %v2281_v27  ;;  %5842 = vmatprep.mubr.msk.bf16.mxu1 %vm6667_vm1, %v6666_v32 }
 0x5f8   : >> { %5852 = vmatprep.subr.bf16.mxu1 %v6666_v32 }
 0x5f9   : >> { %v6360_v8 = vpop.eup %6359 }
 0x5fa   : >> { %v2118_v29 = vmul.f32 %v6360_v8, %v7281_v62 }
 0x5fc   : >> { %v2126_v30 = vpack.c.bf16 %v2118_v29, %v2118_v29 }
 0x5fe   : >> { %5843 = vmatmul.mubr.msk.bf16.vlgmr.msra.gmra.mxu1 %vm767_vm2, %v2126_v30 }
 0x5ff   : >> { %5853 = vmatpush3.bf16.msra.mxu1 %v2377_v46  ;;  %5854 = vmatprep.mubr.msk.bf16.mxu1 %vm6667_vm1, %v6666_v32 }
 0x600   : >> { %5864 = vmatprep.subr.bf16.mxu1 %v6666_v32 }
 0x612   : >> { %v2097_v14 = vpop.xlane.xlu1 %2096 }
 0x613   : >> { %6361 = vrcp.f32 %v2097_v14 }
 0x616   : >> { %v2103_v16 = vpop.xlane.xlu1 %2102 }
 0x617   : >> { %6363 = vrcp.f32 %v2103_v16 }
 0x61a   : >> { %v2468_v26 = vpop.permute.xlu1 %2467 }
 0x61b   : >> { %v2473_v3 = vsel %vm1251_vm3, %v2468_v26, 0 }
 0x61e   : >> { %v2732_v7 = vpop.permute.xlu1 %2731 }
 0x61f   : >> { %v2737_v10 = vsel %vm767_vm2, %v2732_v7, 0 }
 0x620   : >> { %v6362_v33 = vpop.eup %6361  ;;  %v2100_v34 = vpop.xlane.xlu0 %2099 }
 0x621   : >> { %6365 = vrcp.f32 %v2100_v34  ;;  %v2119_v62 = vmul.f32 %v6362_v33, %v7293_v31 }
 0x622   : >> { %v2730_v48 = vpop.permute.xlu1 %2729 }
 0x623   : >> { %v2127_v5 = vpack.c.bf16 %v2119_v62, %v2119_v62 }
 0x624   : >> { %v6364_v42 = vpop.eup %6363  ;;  %v2106_v45 = vpop.xlane.xlu0 %2105 }
 0x625   : >> { %6367 = vrcp.f32 %v2106_v45  ;;  %5849 = vmatmul.mubr.msk.bf16.vlgmr.msra.gmra.mxu0 %vm767_vm2, %v2127_v5  ;;  %v2121_v44 = vmul.f32 %v6364_v42, %v7297_v36 }
 0x626   : >> { %5860 = vmatprep.mubr.msk.bf16.mxu0 %vm6667_vm1, %v6666_v32  ;;  %v2832_v35 = vpop.permute.xlu1 %2831 }
 0x627   : >> { %v2129_v60 = vpack.c.bf16 %v2121_v44, %v2121_v44  ;;  %v2837_v38 = vsel %vm767_vm2, %v2832_v35, 0 }
 0x628   : >> { %v2420_v55 = vpop.permute.xlu0 %2419 }
 0x629   : >> { %v2425_v58 = vsel %vm1251_vm3, %v2420_v55, 0 }
 0x62a   : >> { %5859 = vmatpush3.bf16.msra.mxu0 %v2425_v58  ;;  %v2830_v37 = vpop.permute.xlu1 %2829 }
 0x62b   : >> { %6146 = vmatprep.subr.msk.bf16.mxu0 %vm1251_vm3, %v607_v9 }
 0x62c   : >> { %v2682_v33 = vpop.permute.xlu0 %2681 }
 0x62d   : >> { %5861 = vmatmul.mubr.msk.bf16.vlgmr.msra.gmra.mxu0 %vm767_vm2, %v2129_v60  ;;  %v2687_v42 = vsel %vm767_vm2, %v2682_v33, 0 }
 0x62e   : >> { %v6366_v59 = vpop.eup %6365 }
 0x62f   : >> { %v2120_v31 = vmul.f32 %v6366_v59, %v7301_v40 }
 0x631   : >> { %v2128_v28 = vpack.c.bf16 %v2120_v31, %v2120_v31 }
 0x632   : >> { %v6368_v36 = vpop.eup %6367 }
 0x633   : >> { %5855 = vmatmul.mubr.msk.bf16.vlgmr.msra.gmra.mxu1 %vm767_vm2, %v2128_v28  ;;  %v2122_v40 = vmul.f32 %v6368_v36, %v7305_v63  ;;  %v2532_v63 = vsel %vm1251_vm3, %v607_v9, 0 }
 0x634   : >> { %5865 = vmatpush3.bf16.msra.mxu1 %v2473_v3  ;;  %5866 = vmatprep.mubr.msk.bf16.mxu1 %vm6667_vm1, %v6666_v32 }
 0x635   : >> { %6147 = vmatprep.subr.msk.bf16.mxu1 %vm1251_vm3, %v606_v2  ;;  %v2130_v49 = vpack.c.bf16 %v2122_v40, %v2122_v40  ;;  %5871 = vmatpush3.bf16.msra.mxu0 %v2532_v63  ;;  %v2680_v40 = vpop.permute.xlu0 %2679 }
 0x636   : >> { %5890 = vmatprep.subr.bf16.mxu0 %v6666_v32 }
 0x639   : >> { %v2782_v9 = vpop.permute.xlu0 %2781 }
 0x63b   : >> { %5867 = vmatmul.mubr.msk.bf16.vlgmr.msra.gmra.mxu1 %vm767_vm2, %v2130_v49 }
 0x63c   : >> { %5882 = vmatprep.mubr.msk.bf16.mxu1 %vm767_vm2, %v1631_v41  ;;  %5881 = vmatpush3.bf16.msra.mxu1 %v2612_v6  ;;  %v2932_v41 = vpop.permute.xlu1 %2931 }
 0x63d   : >> { %5896 = vmatprep.subr.bf16.mxu1 %v6666_v32 }
 0x640   : >> { %v2930_v50 = vpop.permute.xlu1 %2929 }
 0x643   : >> { %5883 = vmatmul.mubr.msk.bf16.vlgmr.msra.gmra.mxu1 %vm767_vm2, %v1632_v52  ;;  %v2937_v52 = vsel %vm767_vm2, %v2932_v41, 0 }
 0x644   : >> { %5897 = vmatpush3.bf16.xpose.msra.mxu1 %v2737_v10  ;;  %5886 = vmatprep.mubr.msk.bf16.mxu1 %vm767_vm2, %v1633_v1  ;;  %v3032_v61 = vpop.permute.xlu1 %3031 }
 0x645   : >> { %5908 = vmatprep.subr.bf16.mxu1 %v6666_v32  ;;  %v3037_v0 = vsel %vm767_vm2, %v3032_v61, 0 }
 0x648   : >> { %v3030_v1 = vpop.permute.xlu1 %3029 }
 0x64b   : >> { %5887 = vmatmul.mubr.msk.bf16.gmra.mxu1 %vm767_vm2, %v1634_v15 }
 0x64c   : >> { %5898 = vmatprep.mubr.msk.bf16.mxu1 %vm6667_vm1, %v6666_v32 }
 0x653   : >> { %5899 = vmatmul.mubr.msk.bf16.vlgmr.msra.gmra.mxu1 %vm767_vm2, %v2730_v48 }
 0x654   : >> { %5909 = vmatpush3.bf16.xpose.msra.mxu1 %v2837_v38  ;;  %5910 = vmatprep.mubr.msk.bf16.mxu1 %vm6667_vm1, %v6666_v32 }
 0x655   : >> { %5920 = vmatprep.subr.bf16.mxu1 %v6666_v32 }
 0x65b   : >> { %5911 = vmatmul.mubr.msk.bf16.vlgmr.msra.gmra.mxu1 %vm767_vm2, %v2830_v37  ;;  %v2780_v37 = vpop.permute.xlu0 %2779 }
 0x65c   : >> { %5921 = vmatpush3.bf16.xpose.msra.mxu1 %v2937_v52  ;;  %5922 = vmatprep.mubr.msk.bf16.mxu1 %vm6667_vm1, %v6666_v32  ;;  %v2787_v52 = vsel %vm767_vm2, %v2782_v9, 0 }
 0x65d   : >> { %5932 = vmatprep.subr.bf16.mxu1 %v6666_v32 }
 0x65f   : >> { %v2882_v61 = vpop.permute.xlu0 %2881 }
 0x663   : >> { %5923 = vmatmul.mubr.msk.bf16.vlgmr.msra.gmra.mxu1 %vm767_vm2, %v2930_v50 }
 0x664   : >> { %5933 = vmatpush3.bf16.xpose.msra.mxu1 %v3037_v0  ;;  %5934 = vmatprep.mubr.msk.bf16.mxu1 %vm6667_vm1, %v6666_v32 }
 0x665   : >> { %5944 = vmatprep.subr.bf16.mxu1 %v6666_v32 }
 0x66b   : >> { %5935 = vmatmul.mubr.msk.bf16.vlgmr.msra.gmra.mxu1 %vm767_vm2, %v3030_v1 }
 0x66c   : >> { %5946 = vmatprep.mubr.msk.bf16.mxu1 %vm6667_vm1, %v6666_v32 }
 0x6a8   : >> { %v2173_v4 = vpop.f32.mrf.mxu0 }
 0x6aa   : >> { %v5826_v13 = vpop.f32.mrf.mxu0 }
 0x6ab   : >> { %v2880_v13 = vpop.permute.xlu0 %2879 }
 0x6ac   : >> { %v2176_v15 = vpop.f32.mrf.mxu0 }
 0x6ae   : >> { %v5827_v11 = vpop.f32.mrf.mxu0 }
 0x6af   : >> { %v2887_v11 = vsel %vm767_vm2, %v2882_v61, 0 }
 0x6b0   : >> { %v2269_v17 = vpop.f32.mrf.mxu0 }
 0x6b2   : >> { %v5838_v27 = vpop.f32.mrf.mxu0 }
 0x6b4   : >> { %v2272_v8 = vpop.f32.mrf.mxu0 }
 0x6b5   : >> { %v2982_v8 = vpop.permute.xlu0 %2981 }
 0x6b6   : >> { %v2221_v29 = vpop.f32.mrf.mxu1  ;;  %v5839_v12 = vpop.f32.mrf.mxu0 }
 0x6b7   : >> { %v2515_v30 = vpack.c.bf16 %v2221_v29, %v2173_v4 }
 0x6b8   : >> { %v5832_v46 = vpop.f32.mrf.mxu1 }
 0x6b9   : >> { %5872 = vmatprep.mubr.msk.bf16.mxu0 %vm767_vm2, %v2515_v30  ;;  %v2987_v46 = vsel %vm767_vm2, %v2982_v8, 0 }
 0x6ba   : >> { %v2224_v14 = vpop.f32.mrf.mxu1 }
 0x6bc   : >> { %v5833_v16 = vpop.f32.mrf.mxu1 }
 0x6be   : >> { %v2317_v34 = vpop.f32.mrf.mxu1 }
 0x6bf   : >> { %v2516_v62 = vpack.c.bf16 %v2317_v34, %v2269_v17  ;;  %v2980_v34 = vpop.permute.xlu0 %2979 }
 0x6c0   : >> { %v5844_v5 = vpop.f32.mrf.mxu1 }
 0x6c1   : >> { %5873 = vmatmul.mubr.msk.bf16.vlgmr.msra.gmra.mxu0 %vm767_vm2, %v2516_v62 }
 0x6c2   : >> { %5891 = vmatpush3.bf16.xpose.msra.mxu0 %v2687_v42  ;;  %v2320_v45 = vpop.f32.mrf.mxu1 }
 0x6c3   : >> { %5902 = vmatprep.subr.bf16.mxu0 %v6666_v32 }
 0x6c4   : >> { %v5845_v44 = vpop.f32.mrf.mxu1 }
 0x6e5   : >> { %v2365_v55 = vpop.f32.mrf.mxu0 }
 0x6e7   : >> { %v5850_v58 = vpop.f32.mrf.mxu0 }
 0x6e9   : >> { %v2368_v60 = vpop.f32.mrf.mxu0 }
 0x6eb   : >> { %v5851_v59 = vpop.f32.mrf.mxu0 }
 0x6ed   : >> { %v2461_v31 = vpop.f32.mrf.mxu0 }
 0x6ef   : >> { %v5862_v26 = vpop.f32.mrf.mxu0 }
 0x6f1   : >> { %v2464_v28 = vpop.f32.mrf.mxu0 }
 0x6f3   : >> { %v2413_v36 = vpop.f32.mrf.mxu1  ;;  %v5863_v2 = vpop.f32.mrf.mxu0 }
 0x6f4   : >> { %v2517_v3 = vpack.c.bf16 %v2413_v36, %v2365_v55 }
 0x6f5   : >> { %v5856_v49 = vpop.f32.mrf.mxu1 }
 0x6f6   : >> { %5876 = vmatprep.mubr.msk.bf16.mxu0 %vm767_vm2, %v2517_v3 }
 0x6f7   : >> { %v2416_v6 = vpop.f32.mrf.mxu1 }
 0x6f9   : >> { %v5857_v7 = vpop.f32.mrf.mxu1 }
 0x6fb   : >> { %v2509_v63 = vpop.f32.mrf.mxu1 }
 0x6fc   : >> { %v2518_v48 = vpack.c.bf16 %v2509_v63, %v2461_v31 }
 0x6fd   : >> { %v5868_v10 = vpop.f32.mrf.mxu1 }
 0x6fe   : >> { %5877 = vmatmul.mubr.msk.bf16.gmra.mxu0 %vm767_vm2, %v2518_v48 }
 0x6ff   : >> { %v2512_v35 = vpop.f32.mrf.mxu1  ;;  %5892 = vmatprep.mubr.msk.bf16.mxu0 %vm6667_vm1, %v6666_v32 }
 0x701   : >> { %v5869_v38 = vpop.f32.mrf.mxu1 }
 0x703   : >> { %v7427_v41 = vpop.f32.mrf.mxu1 }
 0x705   : >> { %v7429_v50 = vpop.f32.mrf.mxu1 }
 0x706   : >> { %5893 = vmatmul.mubr.msk.bf16.vlgmr.msra.gmra.mxu0 %vm767_vm2, %v2680_v40 }
 0x707   : >> { %5903 = vmatpush3.bf16.xpose.msra.mxu0 %v2787_v52  ;;  %v7433_v0 = vpop.f32.mrf.mxu1  ;;  %5904 = vmatprep.mubr.msk.bf16.mxu0 %vm6667_vm1, %v6666_v32 }
 0x708   : >> { %5914 = vmatprep.subr.bf16.mxu0 %v6666_v32 }
 0x709   : >> { %v7438_v1 = vpop.f32.mrf.mxu1 }
 0x70b   : >> { %v7440_v4 = vpop.f32.mrf.mxu1 }
 0x70d   : >> { %v7442_v15 = vpop.f32.mrf.mxu1 }
 0x70e   : >> { %5905 = vmatmul.mubr.msk.bf16.vlgmr.msra.gmra.mxu0 %vm767_vm2, %v2780_v37 }
 0x70f   : >> { %5915 = vmatpush3.bf16.xpose.msra.mxu0 %v2887_v11  ;;  %v7446_v17 = vpop.f32.mrf.mxu1  ;;  %5916 = vmatprep.mubr.msk.bf16.mxu0 %vm6667_vm1, %v6666_v32 }
 0x710   : >> { %5926 = vmatprep.subr.bf16.mxu0 %v6666_v32 }
 0x711   : >> { %v7451_v27 = vpop.f32.mrf.mxu1 }
 0x713   : >> { %v2773_v29 = vpop.f32.mrf.mxu1 }
 0x714   : >> { %v3082_v12 = vsel %vm767_vm2, %v2773_v29, -inf }
 0x715   : >> { %3083 = vmax.xlane.f32.xlu1 %v3082_v12  ;;  %v5900_v30 = vpop.f32.mrf.mxu1 }
 0x716   : >> { %5917 = vmatmul.mubr.msk.bf16.vlgmr.msra.gmra.mxu0 %vm767_vm2, %v2880_v13 }
 0x717   : >> { %5927 = vmatpush3.bf16.xpose.msra.mxu0 %v2987_v46  ;;  %v2776_v14 = vpop.f32.mrf.mxu1  ;;  %5928 = vmatprep.mubr.msk.bf16.mxu0 %vm6667_vm1, %v6666_v32 }
 0x718   : >> { %5938 = vmatprep.subr.bf16.mxu0 %v6666_v32 }
 0x719   : >> { %v5901_v16 = vpop.f32.mrf.mxu1 }
 0x71b   : >> { %v7459_v33 = vpop.f32.mrf.mxu1 }
 0x71c   : >> { %v3088_v46 = vsel %vm767_vm2, %v7459_v33, -inf }
 0x71d   : >> { %v5912_v62 = vpop.f32.mrf.mxu1 }
 0x71e   : >> { %5929 = vmatmul.mubr.msk.bf16.vlgmr.msra.gmra.mxu0 %vm767_vm2, %v2980_v34 }
 0x71f   : >> { %v2876_v5 = vpop.f32.mrf.mxu1  ;;  %5940 = vmatprep.mubr.msk.bf16.mxu0 %vm6667_vm1, %v6666_v32 }
 0x721   : >> { %v5913_v42 = vpop.f32.mrf.mxu1 }
 0x723   : >> { %v7464_v45 = vpop.f32.mrf.mxu1 }
 0x724   : >> { %v3094_v16 = vsel %vm767_vm2, %v7464_v45, -inf }
 0x725   : >> { %v5924_v44 = vpop.f32.mrf.mxu1 }
 0x726   : >> { %3175 = vrot.lane.b32.xlu1 %v6980_v43, %s6675_s30 }
 0x727   : >> { %v2976_v55 = vpop.f32.mrf.mxu1 }
 0x729   : >> { %v5925_v58 = vpop.f32.mrf.mxu1 }
 0x72a   : >> { %3271 = vrot.lane.b32.xlu1 %v6978_v39, %s6675_s30 }
 0x72b   : >> { %v7470_v60 = vpop.f32.mrf.mxu1 }
 0x72c   : >> { %v3100_v42 = vsel %vm767_vm2, %v7470_v60, -inf }
 0x72d   : >> { %v5936_v59 = vpop.f32.mrf.mxu1 }
 0x72f   : >> { %v3076_v31 = vpop.f32.mrf.mxu1 }
 0x731   : >> { %v5937_v26 = vpop.f32.mrf.mxu1 }
 0x781   : >> { %v7474_v3 = vpop.f32.mrf.mxu0 }
 0x783   : >> { %v7476_v40 = vpop.f32.mrf.mxu0 }
 0x785   : >> { %v7478_v49 = vpop.f32.mrf.mxu0 }
 0x787   : >> { %v7480_v6 = vpop.f32.mrf.mxu0 }
 0x79e   : >> { %v3084_v28 = vpop.xlane.xlu1 %3083 }
 0x79f   : >> { %v3104_v35 = vsub.f32 %v2773_v29, %v3084_v28 }
 0x7a1   : >> { %v3113_v61 = vmul.f32 1.442695, %v3104_v35 }
 0x7a2   : >> { %v3176_v36 = vpop.permute.xlu1 %3175 }
 0x7a3   : >> { %v3181_v2 = vsel %vm1251_vm3, %v3176_v36, 0  ;;  %6369 = vpow2.f32 %v3113_v61 }
 0x7a4   : >> { %5939 = vmatpush3.bf16.msra.mxu0 %v3181_v2 }
 0x7a5   : >> { %5950 = vmatprep.subr.bf16.mxu0 %v6666_v32 }
 0x7b0   : >> { %v7499_v44 = vpop.eup %6369 }
 0x7b1   : >> { %v3130_v59 = vsel %vm767_vm2, %v7499_v44, 0.0 }
 0x7be   : >> { %v7482_v7 = vpop.f32.mrf.mxu0 }
 0x7c0   : >> { %v7484_v9 = vpop.f32.mrf.mxu0 }
 0x7c2   : >> { %v7486_v63 = vpop.f32.mrf.mxu0 }
 0x7c4   : >> { %v7488_v48 = vpop.f32.mrf.mxu0 }
 0x7c6   : >> { %v2723_v10 = vpop.f32.mrf.mxu0 }
 0x7c7   : >> { %v3079_v37 = vsel %vm767_vm2, %v2723_v10, -inf }
 0x7c8   : >> { %3080 = vmax.xlane.f32.xlu0 %v3079_v37  ;;  %v5894_v38 = vpop.f32.mrf.mxu0 }
 0x7ca   : >> { %v2726_v52 = vpop.f32.mrf.mxu0 }
 0x7cc   : >> { %v5895_v13 = vpop.f32.mrf.mxu0 }
 0x7ce   : >> { %v2823_v11 = vpop.f32.mrf.mxu0 }
 0x7cf   : >> { %v3085_v8 = vsel %vm767_vm2, %v2823_v11, -inf }
 0x7d0   : >> { %3086 = vmax.xlane.f32.xlu0 %v3085_v8  ;;  %v5906_v12 = vpop.f32.mrf.mxu0 }
 0x7d2   : >> { %v2826_v30 = vpop.f32.mrf.mxu0 }
 0x7d4   : >> { %3089 = vmax.xlane.f32.xlu0 %v3088_v46  ;;  %v5907_v14 = vpop.f32.mrf.mxu0 }
 0x7d6   : >> { %v2923_v29 = vpop.f32.mrf.mxu0 }
 0x7d7   : >> { %v3091_v34 = vsel %vm767_vm2, %v2923_v29, -inf }
 0x7d8   : >> { %3095 = vmax.xlane.f32.xlu0 %v3094_v16  ;;  %3092 = vmax.xlane.f32.xlu1 %v3091_v34  ;;  %v5918_v62 = vpop.f32.mrf.mxu0 }
 0x7da   : >> { %v2926_v5 = vpop.f32.mrf.mxu0 }
 0x7dc   : >> { %3101 = vmax.xlane.f32.xlu0 %v3100_v42  ;;  %v5919_v55 = vpop.f32.mrf.mxu0 }
 0x7dd   : >> { %v3272_v55 = vpop.permute.xlu1 %3271 }
 0x7de   : >> { %v3023_v58 = vpop.f32.mrf.mxu0 }
 0x7df   : >> { %v3097_v31 = vsel %vm767_vm2, %v3023_v58, -inf }
 0x7e0   : >> { %3131 = vadd.xlane.f32.xlu0 %v3130_v59  ;;  %3098 = vmax.xlane.f32.xlu1 %v3097_v31  ;;  %v5930_v26 = vpop.f32.mrf.mxu0 }
 0x7e2   : >> { %v3026_v28 = vpop.f32.mrf.mxu0 }
 0x7e4   : >> { %v5931_v36 = vpop.f32.mrf.mxu0 }
 0x7f1   : >> { %3319 = vrot.lane.b32.xlu1 %v6983_v47, %s6675_s30 }
 0x851   : >> { %v3081_v2 = vpop.xlane.xlu0 %3080 }
 0x852   : >> { %v3103_v35 = vsub.f32 %v2723_v10, %v3081_v2 }
 0x854   : >> { %v3111_v37 = vmul.f32 1.442695, %v3103_v35 }
 0x856   : >> { %6371 = vpow2.f32 %v3111_v37 }
 0x859   : >> { %v3087_v38 = vpop.xlane.xlu0 %3086 }
 0x85a   : >> { %v3105_v59 = vsub.f32 %v2823_v11, %v3087_v38 }
 0x85c   : >> { %v3115_v26 = vmul.f32 1.442695, %v3105_v59 }
 0x85d   : >> { %v3090_v52 = vpop.xlane.xlu0 %3089 }
 0x85e   : >> { %v3106_v61 = vsub.f32 %v7459_v33, %v3090_v52 }
 0x860   : >> { %v3117_v13 = vmul.f32 1.442695, %v3106_v61 }
 0x861   : >> { %v3096_v8 = vpop.xlane.xlu0 %3095  ;;  %v3093_v31 = vpop.xlane.xlu1 %3092 }
 0x862   : >> { %6373 = vpow2.f32 %v3117_v13  ;;  %v3108_v12 = vsub.f32 %v7464_v45, %v3096_v8  ;;  %v3107_v28 = vsub.f32 %v2923_v29, %v3093_v31 }
 0x863   : >> { %v7508_v30 = vpop.eup %6371 }
 0x864   : >> { %v3121_v46 = vmul.f32 1.442695, %v3108_v12  ;;  %v3127_v14 = vsel %vm767_vm2, %v7508_v30, 0.0  ;;  %v3119_v2 = vmul.f32 1.442695, %v3107_v28 }
 0x865   : >> { %3128 = vadd.xlane.f32.xlu1 %v3127_v14  ;;  %v3102_v16 = vpop.xlane.xlu0 %3101 }
 0x866   : >> { %v3110_v10 = vsub.f32 %v7470_v60, %v3102_v16  ;;  %6375 = vpow2.f32 %v3121_v46 }
 0x868   : >> { %v3125_v34 = vmul.f32 1.442695, %v3110_v10 }
 0x869   : >> { %v3099_v36 = vpop.xlane.xlu1 %3098  ;;  %v3132_v12 = vpop.xlane.xlu0 %3131 }
 0x86a   : >> { %6377 = vpow2.f32 %v3125_v34  ;;  %v3109_v35 = vsub.f32 %v3023_v58, %v3099_v36 }
 0x86b   : >> { %6379 = vpow2.f32 %v3115_v26 }
 0x86c   : >> { %6381 = vpow2.f32 %v3119_v2  ;;  %v3123_v37 = vmul.f32 1.442695, %v3109_v35 }
 0x86d   : >> { %v3320_v13 = vpop.permute.xlu1 %3319 }
 0x86e   : >> { %6383 = vpow2.f32 %v3123_v37  ;;  %v3325_v28 = vsel %vm1251_vm3, %v3320_v13, 0 }
 0x86f   : >> { %v7513_v62 = vpop.eup %6373 }
 0x870   : >> { %v3136_v33 = vsel %vm767_vm2, %v7513_v62, 0.0 }
 0x871   : >> { %3137 = vadd.xlane.f32.xlu0 %v3136_v33  ;;  %v3277_v33 = vsel %vm1251_vm3, %v3272_v55, 0 }
 0x873   : >> { %v7517_v45 = vpop.eup %6375 }
 0x874   : >> { %v3142_v5 = vsel %vm767_vm2, %v7517_v45, 0.0 }
 0x875   : >> { %3143 = vadd.xlane.f32.xlu0 %v3142_v5 }
 0x876   : >> { %3415 = vrot.lane.b32.xlu1 %v6988_v53, %s6675_s30 }
 0x877   : >> { %v7523_v42 = vpop.eup %6377 }
 0x878   : >> { %v3148_v60 = vsel %vm767_vm2, %v7523_v42, 0.0  ;;  %v7531_v52 = vpop.eup %6379 }
 0x879   : >> { %3149 = vadd.xlane.f32.xlu0 %v3148_v60  ;;  %v3133_v11 = vsel %vm767_vm2, %v7531_v52, 0.0  ;;  %v7537_v29 = vpop.eup %6381 }
 0x87a   : >> { %v3139_v58 = vsel %vm767_vm2, %v7537_v29, 0.0 }
 0x87b   : >> { %v7542_v38 = vpop.eup %6383 }
 0x87c   : >> { %v3145_v61 = vsel %vm767_vm2, %v7542_v38, 0.0 }
 0x88f   : >> { %3223 = vrot.lane.b32.xlu0 %v6986_v51, %s6675_s30 }
 0x893   : >> { %3367 = vrot.lane.b32.xlu0 %v6991_v54, %s6675_s30 }
 0x897   : >> { %3463 = vrot.lane.b32.xlu0 %v6998_v57, %s6675_s30 }
 0x89a   : >> { %3134 = vadd.xlane.f32.xlu1 %v3133_v11 }
 0x89b   : >> { %3653 = vrot.lane.b32.xlu0 %v6980_v43, %s6676_s22 }
 0x89e   : >> { %3140 = vadd.xlane.f32.xlu1 %v3139_v58 }
 0x89f   : >> { %3703 = vrot.lane.b32.xlu0 %v6986_v51, %s6676_s22 }
 0x8a2   : >> { %3146 = vadd.xlane.f32.xlu1 %v3145_v61 }
 0x8a3   : >> { %3753 = vrot.lane.b32.xlu0 %v6978_v39, %s6676_s22 }
 0x8a7   : >> { %3751 = vrot.lane.b32.xlu0 %v6978_v39, %s6677_s17 }
 0x8ab   : >> { %3853 = vrot.lane.b32.xlu0 %v6991_v54, %s6676_s22 }
 0x8af   : >> { %3851 = vrot.lane.b32.xlu0 %v6991_v54, %s6677_s17 }
 0x8b3   : >> { %3511 = vrot.lane.b32.xlu1 %v6994_v56, %s6675_s30  ;;  %3953 = vrot.lane.b32.xlu0 %v6998_v57, %s6676_s22  ;;  %s631_s30 = scalar_lea.vmem %s8102_s9, %s6660_s16 }
 0x8b7   : >> { %3651 = vrot.lane.b32.xlu1 %v6980_v43, %s6677_s17  ;;  %3951 = vrot.lane.b32.xlu0 %v6998_v57, %s6677_s17 }
 0x8bb   : >> { %3701 = vrot.lane.b32.xlu1 %v6986_v51, %s6677_s17 }
 0x8bf   : >> { %3803 = vrot.lane.b32.xlu1 %v6983_v47, %s6676_s22 }
 0x8c3   : >> { %3801 = vrot.lane.b32.xlu1 %v6983_v47, %s6677_s17 }
 0x8c7   : >> { %3903 = vrot.lane.b32.xlu1 %v6988_v53, %s6676_s22 }
 0x8cb   : >> { %3901 = vrot.lane.b32.xlu1 %v6988_v53, %s6677_s17 }
 0x8cf   : >> { %4003 = vrot.lane.b32.xlu1 %v6994_v56, %s6676_s22  ;;  %s7877_s22 = scalar_lea.vmem %s8101_s8, %s5484_s20 }
 0x8d3   : >> { %4001 = vrot.lane.b32.xlu1 %v6994_v56, %s6677_s17  ;;  %s8147_s17 = sld [smem:[#allocation19_spill]] }
 0x8ee   : >> { %v3129_v8 = vpop.xlane.xlu1 %3128 }
 0x8ef   : >> { %6385 = vrcp.f32 %v3129_v8 }
 0x8f0   : >> { %6387 = vrcp.f32 %v3132_v12 }
 0x8f2   : >> { %v3416_v36 = vpop.permute.xlu1 %3415 }
 0x8f3   : >> { %v3421_v37 = vsel %vm1251_vm3, %v3416_v36, 0 }
 0x8fa   : >> { %v3138_v46 = vpop.xlane.xlu0 %3137 }
 0x8fb   : >> { %6389 = vrcp.f32 %v3138_v46 }
 0x8fc   : >> { %v6386_v14 = vpop.eup %6385 }
 0x8fd   : >> { %v3159_v16 = vmul.f32 %v6386_v14, %v7508_v30  ;;  %v6388_v5 = vpop.eup %6387 }
 0x8fe   : >> { %v3144_v10 = vpop.xlane.xlu0 %3143  ;;  %v3160_v59 = vmul.f32 %v6388_v5, %v7499_v44 }
 0x8ff   : >> { %v3167_v34 = vpack.c.bf16 %v3159_v16, %v3159_v16  ;;  %6391 = vrcp.f32 %v3144_v10 }
 0x900   : >> { %v3168_v26 = vpack.c.bf16 %v3160_v59, %v3160_v59 }
 0x901   : >> { %5941 = vmatmul.mubr.msk.bf16.vlgmr.msra.gmra.mxu0 %vm767_vm2, %v3167_v34 }
 0x902   : >> { %5951 = vmatpush3.bf16.msra.mxu0 %v3277_v33  ;;  %5952 = vmatprep.mubr.msk.bf16.mxu0 %vm6667_vm1, %v6666_v32  ;;  %v3150_v60 = vpop.xlane.xlu0 %3149 }
 0x903   : >> { %5962 = vmatprep.subr.bf16.mxu0 %v6666_v32  ;;  %6393 = vrcp.f32 %v3150_v60 }
 0x906   : >> { %v3224_v31 = vpop.permute.xlu0 %3223 }
 0x907   : >> { %v3229_v30 = vsel %vm1251_vm3, %v3224_v31, 0 }
 0x908   : >> { %5945 = vmatpush3.bf16.msra.mxu1 %v3229_v30  ;;  %v6390_v55 = vpop.eup %6389 }
 0x909   : >> { %5956 = vmatprep.subr.bf16.mxu1 %v6666_v32  ;;  %v3162_v44 = vmul.f32 %v6390_v55, %v7513_v62 }
 0x90a   : >> { %v3368_v61 = vpop.permute.xlu0 %3367 }
 0x90b   : >> { %5947 = vmatmul.mubr.msk.bf16.vlgmr.msra.gmra.mxu1 %vm767_vm2, %v3168_v26  ;;  %v3170_v2 = vpack.c.bf16 %v3162_v44, %v3162_v44 }
 0x90c   : >> { %5957 = vmatpush3.bf16.msra.mxu1 %v3325_v28  ;;  %5958 = vmatprep.mubr.msk.bf16.mxu1 %vm6667_vm1, %v6666_v32  ;;  %v6392_v35 = vpop.eup %6391 }
 0x90d   : >> { %5968 = vmatprep.subr.bf16.mxu1 %v6666_v32  ;;  %v3164_v11 = vmul.f32 %v6392_v35, %v7517_v45 }
 0x90e   : >> { %v3464_v12 = vpop.permute.xlu0 %3463 }
 0x90f   : >> { %v3172_v58 = vpack.c.bf16 %v3164_v11, %v3164_v11  ;;  %v3469_v35 = vsel %vm1251_vm3, %v3464_v12, 0 }
 0x910   : >> { %v6394_v8 = vpop.eup %6393 }
 0x911   : >> { %v3166_v14 = vmul.f32 %v6394_v8, %v7523_v42  ;;  %v3373_v42 = vsel %vm1251_vm3, %v3368_v61, 0 }
 0x912   : >> { %v3654_v34 = vpop.permute.xlu0 %3653 }
 0x913   : >> { %5959 = vmatmul.mubr.msk.bf16.vlgmr.msra.gmra.mxu1 %vm767_vm2, %v3170_v2  ;;  %v3174_v33 = vpack.c.bf16 %v3166_v14, %v3166_v14  ;;  %v3659_v59 = vsel %vm767_vm2, %v3654_v34, 0 }
 0x914   : >> { %5969 = vmatpush3.bf16.msra.mxu1 %v3421_v37  ;;  %5970 = vmatprep.mubr.msk.bf16.mxu1 %vm6667_vm1, %v6666_v32 }
 0x915   : >> { %5980 = vmatprep.subr.bf16.mxu1 %v6666_v32 }
 0x916   : >> { %v3704_v55 = vpop.permute.xlu0 %3703 }
 0x917   : >> { %v3709_v44 = vsel %vm767_vm2, %v3704_v55, 0 }
 0x91b   : >> { %5971 = vmatmul.mubr.msk.bf16.vlgmr.msra.gmra.mxu1 %vm767_vm2, %v3172_v58 }
 0x91c   : >> { %5982 = vmatprep.mubr.msk.bf16.mxu1 %vm6667_vm1, %v6666_v32 }
 0x923   : >> { %v3135_v62 = vpop.xlane.xlu1 %3134 }
 0x924   : >> { %6395 = vrcp.f32 %v3135_v62 }
 0x927   : >> { %v3141_v13 = vpop.xlane.xlu1 %3140 }
 0x928   : >> { %6397 = vrcp.f32 %v3141_v13 }
 0x92b   : >> { %v3147_v46 = vpop.xlane.xlu1 %3146 }
 0x92c   : >> { %6399 = vrcp.f32 %v3147_v46  ;;  %v608_v46 = vld [vmem:[%s7365_s19 + $0x8] sm:$0xf] }
 0x92d   : >> { %v3576_v14 = vsel %vm1251_vm3, %v608_v46, 0 }
 0x92f   : >> { %v3512_v45 = vpop.permute.xlu1 %3511 }
 0x930   : >> { %v3517_v16 = vsel %vm1251_vm3, %v3512_v45, 0 }
 0x931   : >> { %v6396_v10 = vpop.eup %6395  ;;  %5981 = vmatpush3.bf16.msra.mxu1 %v3517_v16 }
 0x932   : >> { %5996 = vmatprep.subr.bf16.mxu1 %v6666_v32  ;;  %v3161_v5 = vmul.f32 %v6396_v10, %v7531_v52 }
 0x933   : >> { %v3652_v60 = vpop.permute.xlu1 %3651 }
 0x934   : >> { %5983 = vmatmul.mubr.msk.bf16.vlgmr.msra.gmra.mxu1 %vm767_vm2, %v3174_v33  ;;  %v3169_v31 = vpack.c.bf16 %v3161_v5, %v3161_v5 }
 0x935   : >> { %v6398_v30 = vpop.eup %6397  ;;  %5997 = vmatpush3.bf16.xpose.msra.mxu1 %v3659_v59  ;;  %5998 = vmatprep.mubr.msk.bf16.mxu1 %vm6667_vm1, %v6666_v32 }
 0x936   : >> { %5953 = vmatmul.mubr.msk.bf16.vlgmr.msra.gmra.mxu0 %vm767_vm2, %v3169_v31  ;;  %6002 = vmatprep.subr.bf16.mxu1 %v6666_v32  ;;  %v3163_v52 = vmul.f32 %v6398_v30, %v7537_v29 }
 0x937   : >> { %5963 = vmatpush3.bf16.msra.mxu0 %v3373_v42  ;;  %v3702_v26 = vpop.permute.xlu1 %3701  ;;  %5964 = vmatprep.mubr.msk.bf16.mxu0 %vm6667_vm1, %v6666_v32 }
 0x938   : >> { %5974 = vmatprep.subr.bf16.mxu0 %v6666_v32  ;;  %v3171_v36 = vpack.c.bf16 %v3163_v52, %v3163_v52 }
 0x939   : >> { %v6400_v2 = vpop.eup %6399 }
 0x93a   : >> { %v3165_v37 = vmul.f32 %v6400_v2, %v7542_v38 }
 0x93b   : >> { %v3804_v28 = vpop.permute.xlu1 %3803 }
 0x93c   : >> { %5999 = vmatmul.mubr.msk.bf16.vlgmr.msra.gmra.mxu1 %vm767_vm2, %v3652_v60  ;;  %v3809_v11 = vsel %vm767_vm2, %v3804_v28, 0  ;;  %v3173_v58 = vpack.c.bf16 %v3165_v37, %v3165_v37 }
 0x93d   : >> { %6003 = vmatpush3.bf16.xpose.msra.mxu1 %v3709_v44  ;;  %6004 = vmatprep.mubr.msk.bf16.mxu1 %vm6667_vm1, %v6666_v32 }
 0x93e   : >> { %5965 = vmatmul.mubr.msk.bf16.vlgmr.msra.gmra.mxu0 %vm767_vm2, %v3171_v36  ;;  %6014 = vmatprep.subr.bf16.mxu1 %v6666_v32 }
 0x93f   : >> { %5975 = vmatpush3.bf16.msra.mxu0 %v3469_v35  ;;  %v3802_v29 = vpop.permute.xlu1 %3801  ;;  %5976 = vmatprep.mubr.msk.bf16.mxu0 %vm6667_vm1, %v6666_v32  ;;  %v3754_v35 = vpop.permute.xlu0 %3753 }
 0x940   : >> { %6148 = vmatprep.subr.msk.bf16.mxu0 %vm1251_vm3, %v608_v46 }
 0x943   : >> { %v3904_v62 = vpop.permute.xlu1 %3903 }
 0x944   : >> { %6005 = vmatmul.mubr.msk.bf16.vlgmr.msra.gmra.mxu1 %vm767_vm2, %v3702_v26  ;;  %v3909_v13 = vsel %vm767_vm2, %v3904_v62, 0 }
 0x945   : >> { %6015 = vmatpush3.bf16.xpose.msra.mxu1 %v3809_v11  ;;  %6016 = vmatprep.mubr.msk.bf16.mxu1 %vm6667_vm1, %v6666_v32 }
 0x946   : >> { %5977 = vmatmul.mubr.msk.bf16.vlgmr.msra.gmra.mxu0 %vm767_vm2, %v3173_v58  ;;  %6026 = vmatprep.subr.bf16.mxu1 %v6666_v32 }
 0x947   : >> { %v3902_v61 = vpop.permute.xlu1 %3901  ;;  %5987 = vmatpush3.bf16.msra.mxu0 %v3576_v14 }
 0x948   : >> { %6008 = vmatprep.subr.bf16.mxu0 %v6666_v32 }
 0x94b   : >> { %v4004_v38 = vpop.permute.xlu1 %4003 }
 0x94c   : >> { %6017 = vmatmul.mubr.msk.bf16.vlgmr.msra.gmra.mxu1 %vm767_vm2, %v3802_v29  ;;  %v4009_v8 = vsel %vm767_vm2, %v4004_v38, 0 }
 0x94d   : >> { %6027 = vmatpush3.bf16.xpose.msra.mxu1 %v3909_v13  ;;  %6028 = vmatprep.mubr.msk.bf16.mxu1 %vm6667_vm1, %v6666_v32 }
 0x94e   : >> { %6038 = vmatprep.subr.bf16.mxu1 %v6666_v32 }
 0x94f   : >> { %v4002_v12 = vpop.permute.xlu1 %4001 }
 0x954   : >> { %6029 = vmatmul.mubr.msk.bf16.vlgmr.msra.gmra.mxu1 %vm767_vm2, %v3902_v61  ;;  %v3759_v61 = vsel %vm767_vm2, %v3754_v35, 0 }
 0x955   : >> { %6039 = vmatpush3.bf16.xpose.msra.mxu1 %v4009_v8  ;;  %6040 = vmatprep.mubr.msk.bf16.mxu1 %vm6667_vm1, %v6666_v32 }
 0x956   : >> { %6050 = vmatprep.subr.bf16.mxu1 %v6666_v32 }
 0x95c   : >> { %6041 = vmatmul.mubr.msk.bf16.vlgmr.msra.gmra.mxu1 %vm767_vm2, %v4002_v12 }
 0x95d   : >> { %6052 = vmatprep.mubr.msk.bf16.mxu1 %vm6667_vm1, %v6666_v32 }
 0x9c1   : >> { %v3217_v45 = vpop.f32.mrf.mxu0 }
 0x9c3   : >> { %v5942_v16 = vpop.f32.mrf.mxu0 }
 0x9c5   : >> { %v3220_v10 = vpop.f32.mrf.mxu0 }
 0x9c7   : >> { %v5943_v34 = vpop.f32.mrf.mxu0 }
 0x9cb   : >> { %v3265_v33 = vpop.f32.mrf.mxu1 }
 0x9cc   : >> { %v3559_v5 = vpack.c.bf16 %v3265_v33, %v3217_v45 }
 0x9cd   : >> { %v5948_v60 = vpop.f32.mrf.mxu1 }
 0x9ce   : >> { %5988 = vmatprep.mubr.msk.bf16.mxu0 %vm767_vm2, %v3559_v5  ;;  %v3752_v60 = vpop.permute.xlu0 %3751 }
 0x9cf   : >> { %v3268_v59 = vpop.f32.mrf.mxu1 }
 0x9d1   : >> { %v5949_v31 = vpop.f32.mrf.mxu1 }
 0x9d3   : >> { %v3361_v30 = vpop.f32.mrf.mxu1 }
 0x9d5   : >> { %v5960_v42 = vpop.f32.mrf.mxu1 }
 0x9d7   : >> { %v3364_v26 = vpop.f32.mrf.mxu1 }
 0x9d9   : >> { %v5961_v52 = vpop.f32.mrf.mxu1 }
 0x9db   : >> { %v3457_v55 = vpop.f32.mrf.mxu1 }
 0x9dd   : >> { %v5972_v28 = vpop.f32.mrf.mxu1 }
 0x9df   : >> { %v3460_v44 = vpop.f32.mrf.mxu1 }
 0x9e1   : >> { %v5973_v36 = vpop.f32.mrf.mxu1 }
 0x9f4   : >> { %v3553_v2 = vpop.f32.mrf.mxu1 }
 0x9f6   : >> { %v3313_v29 = vpop.f32.mrf.mxu0  ;;  %v5984_v37 = vpop.f32.mrf.mxu1 }
 0x9f7   : >> { %v3560_v11 = vpack.c.bf16 %v3361_v30, %v3313_v29 }
 0x9f8   : >> { %v5954_v58 = vpop.f32.mrf.mxu0  ;;  %v3556_v62 = vpop.f32.mrf.mxu1 }
 0x9f9   : >> { %5989 = vmatmul.mubr.msk.bf16.vlgmr.msra.gmra.mxu0 %vm767_vm2, %v3560_v11 }
 0x9fa   : >> { %6009 = vmatpush3.bf16.xpose.msra.mxu0 %v3759_v61  ;;  %v3316_v13 = vpop.f32.mrf.mxu0  ;;  %v5985_v38 = vpop.f32.mrf.mxu1 }
 0x9fb   : >> { %6020 = vmatprep.subr.bf16.mxu0 %v6666_v32 }
 0x9fc   : >> { %v5955_v8 = vpop.f32.mrf.mxu0  ;;  %v7639_v12 = vpop.f32.mrf.mxu1 }
 0x9fd   : >> { %v4051_v46 = vsel %vm767_vm2, %v7639_v12, -inf }
 0x9fe   : >> { %v3409_v14 = vpop.f32.mrf.mxu0  ;;  %4052 = vmax.xlane.f32.xlu0 %v4051_v46  ;;  %v6000_v45 = vpop.f32.mrf.mxu1 }
 0x9ff   : >> { %v3561_v16 = vpack.c.bf16 %v3457_v55, %v3409_v14  ;;  %v3854_v55 = vpop.permute.xlu0 %3853 }
 0xa00   : >> { %v5966_v10 = vpop.f32.mrf.mxu0  ;;  %v3698_v34 = vpop.f32.mrf.mxu1  ;;  %v3859_v61 = vsel %vm767_vm2, %v3854_v55, 0  ;;  %v2652_v55 = vadd.f32 %v7438_v1, %v7480_v6  ;;  %v2676_v1 = vadd.f32 %v7446_v17, %v7486_v63 }
 0xa01   : >> { %5992 = vmatprep.mubr.msk.bf16.mxu0 %vm767_vm2, %v3561_v16 }
 0xa02   : >> { %v3412_v33 = vpop.f32.mrf.mxu0  ;;  %v6001_v5 = vpop.f32.mrf.mxu1 }
 0xa03   : >> { %v3852_v58 = vpop.permute.xlu0 %3851 }
 0xa04   : >> { %v5967_v59 = vpop.f32.mrf.mxu0  ;;  %v7644_v31 = vpop.f32.mrf.mxu1 }
 0xa05   : >> { %v4054_v30 = vsel %vm767_vm2, %v7644_v31, -inf }
 0xa06   : >> { %v3505_v42 = vpop.f32.mrf.mxu0  ;;  %4055 = vmax.xlane.f32.xlu1 %v4054_v30  ;;  %v6006_v26 = vpop.f32.mrf.mxu1  ;;  %v2649_v30 = vadd.f32 %v7429_v50, %v7476_v40  ;;  %v2673_v50 = vadd.f32 %v7440_v4, %v7482_v7 }
 0xa07   : >> { %v3562_v52 = vpack.c.bf16 %v3553_v2, %v3505_v42  ;;  %v3954_v38 = vpop.permute.xlu0 %3953 }
 0xa08   : >> { %v5978_v28 = vpop.f32.mrf.mxu0  ;;  %v3748_v44 = vpop.f32.mrf.mxu1  ;;  %v3959_v14 = vsel %vm767_vm2, %v3954_v38, 0 }
 0xa09   : >> { %5993 = vmatmul.mubr.msk.bf16.gmra.mxu0 %vm767_vm2, %v3562_v52  ;;  %v2660_v52 = vadd.f32 %v7433_v0, %v7478_v49 }
 0xa0a   : >> { %v3508_v36 = vpop.f32.mrf.mxu0  ;;  %v6007_v35 = vpop.f32.mrf.mxu1  ;;  %6010 = vmatprep.mubr.msk.bf16.mxu0 %vm6667_vm1, %v6666_v32 }
 0xa0b   : >> { %v3952_v34 = vpop.permute.xlu0 %3951 }
 0xa0c   : >> { %v5979_v29 = vpop.f32.mrf.mxu0  ;;  %v7651_v37 = vpop.f32.mrf.mxu1 }
 0xa0d   : >> { %v2665_v29 = vadd.f32 %v7442_v15, %v7484_v9 }
 0xa0e   : >> { %v6018_v11 = vpop.f32.mrf.mxu1 }
 0xa10   : >> { %v3848_v62 = vpop.f32.mrf.mxu1 }
 0xa11   : >> { %6011 = vmatmul.mubr.msk.bf16.vlgmr.msra.gmra.mxu0 %vm767_vm2, %v3752_v60  ;;  %v2657_v60 = vadd.f32 %v7427_v41, %v7474_v3 }
 0xa12   : >> { %6021 = vmatpush3.bf16.xpose.msra.mxu0 %v3859_v61  ;;  %v6019_v2 = vpop.f32.mrf.mxu1  ;;  %6022 = vmatprep.mubr.msk.bf16.mxu0 %vm6667_vm1, %v6666_v32  ;;  %v2668_v61 = vadd.f32 %v7451_v27, %v7488_v48  ;;  %v4060_v27 = vsel %vm767_vm2, %v7651_v37, -inf }
 0xa13   : >> { %6032 = vmatprep.subr.bf16.mxu0 %v6666_v32 }
 0xa14   : >> { %v7658_v13 = vpop.f32.mrf.mxu1 }
 0xa16   : >> { %v6030_v8 = vpop.f32.mrf.mxu1 }
 0xa18   : >> { %v3948_v46 = vpop.f32.mrf.mxu1 }
 0xa19   : >> { %6023 = vmatmul.mubr.msk.bf16.vlgmr.msra.gmra.mxu0 %vm767_vm2, %v3852_v58  ;;  %v4066_v46 = vsel %vm767_vm2, %v7658_v13, -inf }
 0xa1a   : >> { %6033 = vmatpush3.bf16.xpose.msra.mxu0 %v3959_v14  ;;  %v6031_v45 = vpop.f32.mrf.mxu1  ;;  %6034 = vmatprep.mubr.msk.bf16.mxu0 %vm6667_vm1, %v6666_v32 }
 0xa1b   : >> { %6044 = vmatprep.subr.bf16.mxu0 %v6666_v32 }
 0xa1c   : >> { %v7665_v16 = vpop.f32.mrf.mxu1 }
 0xa1e   : >> { %v6042_v10 = vpop.f32.mrf.mxu1 }
 0xa20   : >> { %v4048_v33 = vpop.f32.mrf.mxu1 }
 0xa21   : >> { %6035 = vmatmul.mubr.msk.bf16.vlgmr.msra.gmra.mxu0 %vm767_vm2, %v3952_v34  ;;  %v4072_v34 = vsel %vm767_vm2, %v7665_v16, -inf }
 0xa22   : >> { %v6043_v5 = vpop.f32.mrf.mxu1  ;;  %6046 = vmatprep.mubr.msk.bf16.mxu0 %vm6667_vm1, %v6666_v32 }
 0xa87   : >> { %v4053_v11 = vpop.xlane.xlu0 %4052 }
 0xa88   : >> { %v4075_v4 = vsub.f32 %v7639_v12, %v4053_v11 }
 0xa8a   : >> { %v4083_v38 = vmul.f32 1.442695, %v4075_v4 }
 0xa8f   : >> { %v4056_v3 = vpop.xlane.xlu1 %4055 }
 0xa90   : >> { %v4076_v0 = vsub.f32 %v7644_v31, %v4056_v3 }
 0xa92   : >> { %v4085_v7 = vmul.f32 1.442695, %v4076_v0 }
 0xa94   : >> { %6401 = vpow2.f32 %v4085_v7 }
 0xa95   : >> { %6403 = vpow2.f32 %v4083_v38 }
 0xaa1   : >> { %v7712_v33 = vpop.eup %6401 }
 0xab9   : >> { %v5990_v59 = vpop.f32.mrf.mxu0 }
 0xaba   : >> { %v7674_v42 = vadd.f32 %v5990_v59, %v2657_v60  ;;  %v4102_v59 = vsel %vm767_vm2, %v7712_v33, 0.0 }
 0xabb   : >> { %v3612_v26 = vpop.f32.mrf.mxu0 }
 0xabc   : >> { %v7678_v28 = vadd.f32 %v3612_v26, %v2649_v30  ;;  %v6404_v26 = vpop.eup %6403 }
 0xabd   : >> { %v5991_v44 = vpop.f32.mrf.mxu0 }
 0xabe   : >> { %v7682_v36 = vadd.f32 %v5991_v44, %v2660_v52 }
 0xabf   : >> { %v3615_v35 = vpop.f32.mrf.mxu0 }
 0xac0   : >> { %v7684_v41 = vadd.f32 %v3615_v35, %v2652_v55  ;;  %v4099_v55 = vsel %vm767_vm2, %v6404_v26, 0.0 }
 0xac9   : >> { %v5994_v40 = vpop.f32.mrf.mxu0 }
 0xaca   : >> { %v7691_v49 = vadd.f32 %v5994_v40, %v2673_v50 }
 0xacb   : >> { %v3628_v58 = vpop.f32.mrf.mxu0 }
 0xacc   : >> { %v7695_v6 = vadd.f32 %v3628_v58, %v2665_v29 }
 0xacd   : >> { %v5995_v62 = vpop.f32.mrf.mxu0 }
 0xace   : >> { %v7700_v2 = vadd.f32 %v5995_v62, %v2676_v1 }
 0xacf   : >> { %v3631_v15 = vpop.f32.mrf.mxu0 }
 0xad0   : >> { %v7702_v9 = vadd.f32 %v3631_v15, %v2668_v61 }
 0xad1   : >> { %v3795_v31 = vpop.f32.mrf.mxu0 }
 0xad2   : >> { %v4057_v8 = vsel %vm767_vm2, %v3795_v31, -inf }
 0xad3   : >> { %4058 = vmax.xlane.f32.xlu0 %v4057_v8  ;;  %v6012_v17 = vpop.f32.mrf.mxu0 }
 0xad5   : >> { %v3798_v63 = vpop.f32.mrf.mxu0 }
 0xad7   : >> { %4061 = vmax.xlane.f32.xlu0 %v4060_v27  ;;  %v6013_v48 = vpop.f32.mrf.mxu0 }
 0xad9   : >> { %v3895_v12 = vpop.f32.mrf.mxu0 }
 0xada   : >> { %v4063_v14 = vsel %vm767_vm2, %v3895_v12, -inf }
 0xadb   : >> { %4067 = vmax.xlane.f32.xlu0 %v4066_v46  ;;  %4064 = vmax.xlane.f32.xlu1 %v4063_v14  ;;  %v6024_v45 = vpop.f32.mrf.mxu0 }
 0xadd   : >> { %v3898_v10 = vpop.f32.mrf.mxu0 }
 0xadf   : >> { %4073 = vmax.xlane.f32.xlu0 %v4072_v34  ;;  %v6025_v5 = vpop.f32.mrf.mxu0 }
 0xae1   : >> { %v3995_v60 = vpop.f32.mrf.mxu0 }
 0xae2   : >> { %v4069_v30 = vsel %vm767_vm2, %v3995_v60, -inf }
 0xae3   : >> { %4103 = vadd.xlane.f32.xlu0 %v4102_v59  ;;  %4070 = vmax.xlane.f32.xlu1 %v4069_v30  ;;  %v6036_v52 = vpop.f32.mrf.mxu0 }
 0xae5   : >> { %v3998_v44 = vpop.f32.mrf.mxu0 }
 0xae7   : >> { %v6037_v35 = vpop.f32.mrf.mxu0  ;;  %4100 = vadd.xlane.f32.xlu1 %v4099_v55 }
 0xaf8   : >> { %4147 = vrot.lane.b32.xlu1 %v6980_v43, %s6678_s29 }
 0xafc   : >> { %4243 = vrot.lane.b32.xlu1 %v6978_v39, %s6678_s29 }
 0xb00   : >> { %4291 = vrot.lane.b32.xlu1 %v6983_v47, %s6678_s29 }
 0xb04   : >> { %4387 = vrot.lane.b32.xlu1 %v6988_v53, %s6678_s29 }
 0xb5c   : >> { %v4059_v3 = vpop.xlane.xlu0 %4058 }
 0xb5d   : >> { %v4077_v50 = vsub.f32 %v3795_v31, %v4059_v3 }
 0xb5f   : >> { %v4087_v40 = vmul.f32 1.442695, %v4077_v50 }
 0xb60   : >> { %v4062_v29 = vpop.xlane.xlu0 %4061 }
 0xb61   : >> { %6405 = vpow2.f32 %v4087_v40  ;;  %v4078_v0 = vsub.f32 %v7651_v37, %v4062_v29 }
 0xb63   : >> { %v4089_v11 = vmul.f32 1.442695, %v4078_v0 }
 0xb64   : >> { %v4065_v58 = vpop.xlane.xlu1 %4064  ;;  %v4068_v1 = vpop.xlane.xlu0 %4067 }
 0xb65   : >> { %6407 = vpow2.f32 %v4089_v11  ;;  %v4079_v43 = vsub.f32 %v3895_v12, %v4065_v58  ;;  %v4080_v39 = vsub.f32 %v7658_v13, %v4068_v1 }
 0xb67   : >> { %v4091_v62 = vmul.f32 1.442695, %v4079_v43  ;;  %v4093_v61 = vmul.f32 1.442695, %v4080_v39 }
 0xb68   : >> { %v4074_v47 = vpop.xlane.xlu0 %4073 }
 0xb69   : >> { %6409 = vpow2.f32 %v4091_v62  ;;  %v4082_v53 = vsub.f32 %v7665_v16, %v4074_v47 }
 0xb6a   : >> { %6411 = vpow2.f32 %v4093_v61 }
 0xb6b   : >> { %v4097_v4 = vmul.f32 1.442695, %v4082_v53 }
 0xb6c   : >> { %v4071_v7 = vpop.xlane.xlu1 %4070  ;;  %v4104_v55 = vpop.xlane.xlu0 %4103 }
 0xb6d   : >> { %6413 = vpow2.f32 %v4097_v4  ;;  %v4081_v15 = vsub.f32 %v3995_v60, %v4071_v7 }
 0xb6e   : >> { %v6406_v31 = vpop.eup %6405 }
 0xb6f   : >> { %v4095_v37 = vmul.f32 1.442695, %v4081_v15  ;;  %v4105_v38 = vsel %vm767_vm2, %v6406_v31, 0.0 }
 0xb70   : >> { %v4101_v8 = vpop.xlane.xlu1 %4100  ;;  %4106 = vadd.xlane.f32.xlu1 %v4105_v38 }
 0xb71   : >> { %6415 = vpow2.f32 %v4095_v37 }
 0xb72   : >> { %v7730_v17 = vpop.eup %6407  ;;  %6417 = vrcp.f32 %v4101_v8 }
 0xb73   : >> { %v4108_v13 = vsel %vm767_vm2, %v7730_v17, 0.0  ;;  %6419 = vrcp.f32 %v4104_v55 }
 0xb74   : >> { %v4148_v63 = vpop.permute.xlu1 %4147  ;;  %4109 = vadd.xlane.f32.xlu0 %v4108_v13 }
 0xb75   : >> { %v4153_v16 = vsel %vm1251_vm3, %v4148_v63, 0 }
 0xb76   : >> { %v6410_v27 = vpop.eup %6409  ;;  %6045 = vmatpush3.bf16.msra.mxu0 %v4153_v16 }
 0xb77   : >> { %v7735_v48 = vpop.eup %6411  ;;  %v4111_v12 = vsel %vm767_vm2, %v6410_v27, 0.0  ;;  %6056 = vmatprep.subr.bf16.mxu0 %v6666_v32 }
 0xb78   : >> { %4112 = vadd.xlane.f32.xlu1 %v4111_v12  ;;  %v4114_v46 = vsel %vm767_vm2, %v7735_v48, 0.0  ;;  %v4244_v59 = vpop.permute.xlu1 %4243 }
 0xb79   : >> { %4115 = vadd.xlane.f32.xlu0 %v4114_v46  ;;  %v4249_v52 = vsel %vm1251_vm3, %v4244_v59, 0 }
 0xb7a   : >> { %v7741_v14 = vpop.eup %6413 }
 0xb7b   : >> { %v4120_v45 = vsel %vm767_vm2, %v7741_v14, 0.0 }
 0xb7d   : >> { %4121 = vadd.xlane.f32.xlu0 %v4120_v45 }
 0xb7e   : >> { %v7745_v10 = vpop.eup %6415 }
 0xb7f   : >> { %v6418_v34 = vpop.eup %6417  ;;  %v4117_v5 = vsel %vm767_vm2, %v7745_v10, 0.0 }
 0xb80   : >> { %v4131_v60 = vmul.f32 %v6418_v34, %v6404_v26  ;;  %4118 = vadd.xlane.f32.xlu1 %v4117_v5  ;;  %v4292_v26 = vpop.permute.xlu1 %4291  ;;  %v6420_v40 = vpop.eup %6419 }
 0xb82   : >> { %v4139_v30 = vpack.c.bf16 %v4131_v60, %v4131_v60 }
 0xb84   : >> { %6047 = vmatmul.mubr.msk.bf16.vlgmr.msra.gmra.mxu0 %vm767_vm2, %v4139_v30  ;;  %v4388_v44 = vpop.permute.xlu1 %4387  ;;  %v609_v30 = vld [vmem:[%s7365_s19 + $0xc] sm:$0xf] }
 0xb85   : >> { %6057 = vmatpush3.bf16.msra.mxu0 %v4249_v52  ;;  %6058 = vmatprep.mubr.msk.bf16.mxu0 %vm6667_vm1, %v6666_v32  ;;  %v4548_v52 = vsel %vm1251_vm3, %v609_v30, 0 }
 0xb86   : >> { %6068 = vmatprep.subr.bf16.mxu0 %v6666_v32 }
 0xb91   : >> { %4483 = vrot.lane.b32.xlu1 %v6994_v56, %s6678_s29 }
 0xb93   : >> { %4195 = vrot.lane.b32.xlu0 %v6986_v51, %s6678_s29 }
 0xb97   : >> { %4339 = vrot.lane.b32.xlu0 %v6991_v54, %s6678_s29  ;;  %v4132_v54 = vmul.f32 %v6420_v40, %v7712_v33  ;;  %v4297_v33 = vsel %vm1251_vm3, %v4292_v26, 0 }
 0xb99   : >> { %v4140_v43 = vpack.c.bf16 %v4132_v54, %v4132_v54 }
 0xb9b   : >> { %4435 = vrot.lane.b32.xlu0 %v6998_v57, %s6678_s29  ;;  %s633_s29 = scalar_lea.vmem %s8103_s10, %s6660_s16 }
 0xbf9   : >> { %v4107_v35 = vpop.xlane.xlu1 %4106 }
 0xbfa   : >> { %6421 = vrcp.f32 %v4107_v35 }
 0xbfd   : >> { %v4110_v3 = vpop.xlane.xlu0 %4109 }
 0xbfe   : >> { %6423 = vrcp.f32 %v4110_v3 }
 0xc01   : >> { %v4113_v50 = vpop.xlane.xlu1 %4112 }
 0xc02   : >> { %6425 = vrcp.f32 %v4113_v50  ;;  %v4116_v56 = vpop.xlane.xlu0 %4115 }
 0xc03   : >> { %6427 = vrcp.f32 %v4116_v56 }
 0xc06   : >> { %v4122_v29 = vpop.xlane.xlu0 %4121 }
 0xc07   : >> { %v6422_v51 = vpop.eup %6421 }
 0xc08   : >> { %v4133_v0 = vmul.f32 %v6422_v51, %v6406_v31 }
 0xc09   : >> { %v4119_v11 = vpop.xlane.xlu1 %4118 }
 0xc0a   : >> { %v4141_v57 = vpack.c.bf16 %v4133_v0, %v4133_v0  ;;  %6429 = vrcp.f32 %v4119_v11  ;;  %v4196_v58 = vpop.permute.xlu0 %4195 }
 0xc0b   : >> { %v4201_v1 = vsel %vm1251_vm3, %v4196_v58, 0  ;;  %v6424_v39 = vpop.eup %6423  ;;  %6431 = vrcp.f32 %v4122_v29 }
 0xc0c   : >> { %6051 = vmatpush3.bf16.msra.mxu1 %v4201_v1  ;;  %6059 = vmatmul.mubr.msk.bf16.vlgmr.msra.gmra.mxu0 %vm767_vm2, %v4141_v57  ;;  %v4134_v4 = vmul.f32 %v6424_v39, %v7730_v17  ;;  %v4393_v17 = vsel %vm1251_vm3, %v4388_v44, 0 }
 0xc0d   : >> { %6062 = vmatprep.subr.bf16.mxu1 %v6666_v32  ;;  %6070 = vmatprep.mubr.msk.bf16.mxu0 %vm6667_vm1, %v6666_v32 }
 0xc0e   : >> { %v4340_v62 = vpop.permute.xlu0 %4339  ;;  %v4142_v37 = vpack.c.bf16 %v4134_v4, %v4134_v4 }
 0xc0f   : >> { %v6426_v61 = vpop.eup %6425  ;;  %v4345_v47 = vsel %vm1251_vm3, %v4340_v62, 0  ;;  %6053 = vmatmul.mubr.msk.bf16.vlgmr.msra.gmra.mxu1 %vm767_vm2, %v4140_v43 }
 0xc10   : >> { %v4135_v53 = vmul.f32 %v6426_v61, %v6410_v27  ;;  %6063 = vmatpush3.bf16.msra.mxu1 %v4297_v33  ;;  %6069 = vmatpush3.bf16.msra.mxu0 %v4345_v47  ;;  %v6428_v38 = vpop.eup %6427  ;;  %v4484_v27 = vpop.permute.xlu1 %4483 }
 0xc11   : >> { %6080 = vmatprep.subr.bf16.mxu0 %v6666_v32  ;;  %6064 = vmatprep.mubr.msk.bf16.mxu1 %vm6667_vm1, %v6666_v32  ;;  %v4136_v63 = vmul.f32 %v6428_v38, %v7735_v48  ;;  %v4489_v45 = vsel %vm1251_vm3, %v4484_v27, 0 }
 0xc12   : >> { %v4143_v7 = vpack.c.bf16 %v4135_v53, %v4135_v53  ;;  %v4436_v15 = vpop.permute.xlu0 %4435  ;;  %6074 = vmatprep.subr.bf16.mxu1 %v6666_v32 }
 0xc13   : >> { %v4441_v31 = vsel %vm1251_vm3, %v4436_v15, 0  ;;  %v4144_v12 = vpack.c.bf16 %v4136_v63, %v4136_v63  ;;  %v5455_v63 = vld [vmem:[%s610_s14] ss:$0 sm:$0xff]  ;;  %s635_s14 = scalar_lea.vmem %s8104_s11, %s6660_s16 }
 0xc14   : >> { %6071 = vmatmul.mubr.msk.bf16.vlgmr.msra.gmra.mxu0 %vm767_vm2, %v4143_v7 }
 0xc15   : >> { %6081 = vmatpush3.bf16.msra.mxu0 %v4441_v31  ;;  %6082 = vmatprep.mubr.msk.bf16.mxu0 %vm6667_vm1, %v6666_v32 }
 0xc16   : >> { %6149 = vmatprep.subr.msk.bf16.mxu0 %vm1251_vm3, %v609_v30 }
 0xc17   : >> { %v6430_v8 = vpop.eup %6429  ;;  %6065 = vmatmul.mubr.msk.bf16.vlgmr.msra.gmra.mxu1 %vm767_vm2, %v4142_v37 }
 0xc18   : >> { %v4137_v13 = vmul.f32 %v6430_v8, %v7745_v10  ;;  %6075 = vmatpush3.bf16.msra.mxu1 %v4393_v17  ;;  %6076 = vmatprep.mubr.msk.bf16.mxu1 %vm6667_vm1, %v6666_v32  ;;  %v6432_v46 = vpop.eup %6431 }
 0xc19   : >> { %6086 = vmatprep.subr.bf16.mxu1 %v6666_v32  ;;  %v4138_v10 = vmul.f32 %v6432_v46, %v7741_v14 }
 0xc1a   : >> { %v4145_v16 = vpack.c.bf16 %v4137_v13, %v4137_v13 }
 0xc1b   : >> { %v4146_v48 = vpack.c.bf16 %v4138_v10, %v4138_v10 }
 0xc1c   : >> { %6083 = vmatmul.mubr.msk.bf16.vlgmr.msra.gmra.mxu0 %vm767_vm2, %v4145_v16 }
 0xc1d   : >> { %6093 = vmatpush3.bf16.msra.mxu0 %v4548_v52 }
 0xc1f   : >> { %6077 = vmatmul.mubr.msk.bf16.vlgmr.msra.gmra.mxu1 %vm767_vm2, %v4144_v12 }
 0xc20   : >> { %6087 = vmatpush3.bf16.msra.mxu1 %v4489_v45  ;;  %6088 = vmatprep.mubr.msk.bf16.mxu1 %vm6667_vm1, %v6666_v32 }
 0xc27   : >> { %6089 = vmatmul.mubr.msk.bf16.vlgmr.msra.gmra.mxu1 %vm767_vm2, %v4146_v48 }
 0xc44   : >> { %v4189_v34 = vpop.f32.mrf.mxu0 }
 0xc46   : >> { %v6048_v5 = vpop.f32.mrf.mxu0 }
 0xc48   : >> { %v4192_v60 = vpop.f32.mrf.mxu0 }
 0xc4a   : >> { %v6049_v59 = vpop.f32.mrf.mxu0 }
 0xccc   : >> { %v4285_v26 = vpop.f32.mrf.mxu0 }
 0xcce   : >> { %v6060_v44 = vpop.f32.mrf.mxu0 }
 0xccf   : >> { %v4237_v55 = vpop.f32.mrf.mxu1 }
 0xcd0   : >> { %v4531_v35 = vpack.c.bf16 %v4237_v55, %v4189_v34  ;;  %v4288_v32 = vpop.f32.mrf.mxu0 }
 0xcd1   : >> { %v6054_v3 = vpop.f32.mrf.mxu1 }
 0xcd2   : >> { %6094 = vmatprep.mubr.msk.bf16.mxu0 %vm767_vm2, %v4531_v35  ;;  %v6061_v14 = vpop.f32.mrf.mxu0 }
 0xcd3   : >> { %v4240_v50 = vpop.f32.mrf.mxu1 }
 0xcd4   : >> { %v4381_v56 = vpop.f32.mrf.mxu0 }
 0xcd5   : >> { %v6055_v40 = vpop.f32.mrf.mxu1 }
 0xcd6   : >> { %v6072_v29 = vpop.f32.mrf.mxu0 }
 0xcd7   : >> { %v4333_v51 = vpop.f32.mrf.mxu1 }
 0xcd8   : >> { %v4532_v0 = vpack.c.bf16 %v4333_v51, %v4285_v26  ;;  %v4384_v54 = vpop.f32.mrf.mxu0 }
 0xcd9   : >> { %v6066_v11 = vpop.f32.mrf.mxu1 }
 0xcda   : >> { %6095 = vmatmul.mubr.msk.bf16.vlgmr.msra.gmra.mxu0 %vm767_vm2, %v4532_v0  ;;  %v6073_v57 = vpop.f32.mrf.mxu0 }
 0xcdb   : >> { %v4336_v58 = vpop.f32.mrf.mxu1 }
 0xcdc   : >> { %v4477_v1 = vpop.f32.mrf.mxu0 }
 0xcdd   : >> { %v6067_v43 = vpop.f32.mrf.mxu1 }
 0xcde   : >> { %v6084_v39 = vpop.f32.mrf.mxu0 }
 0xcdf   : >> { %v4429_v62 = vpop.f32.mrf.mxu1 }
 0xce0   : >> { %v4533_v61 = vpack.c.bf16 %v4429_v62, %v4381_v56  ;;  %v4480_v33 = vpop.f32.mrf.mxu0 }
 0xce1   : >> { %v6078_v47 = vpop.f32.mrf.mxu1 }
 0xce2   : >> { %6098 = vmatprep.mubr.msk.bf16.mxu0 %vm767_vm2, %v4533_v61  ;;  %v6085_v53 = vpop.f32.mrf.mxu0 }
 0xce3   : >> { %v4432_v4 = vpop.f32.mrf.mxu1 }
 0xce5   : >> { %v6079_v7 = vpop.f32.mrf.mxu1 }
 0xce7   : >> { %v4525_v15 = vpop.f32.mrf.mxu1 }
 0xce8   : >> { %v4534_v31 = vpack.c.bf16 %v4525_v15, %v4477_v1 }
 0xce9   : >> { %v6090_v37 = vpop.f32.mrf.mxu1 }
 0xcea   : >> { %6099 = vmatmul.mubr.msk.bf16.gmra.mxu0 %vm767_vm2, %v4534_v31 }
 0xceb   : >> { %v4528_v38 = vpop.f32.mrf.mxu1 }
 0xced   : >> { %v6091_v8 = vpop.f32.mrf.mxu1 }
 0xd9a   : >> { %v6096_v17 = vpop.f32.mrf.mxu0 }
 0xd9b   : >> { %v4617_v13 = vadd.f32 %v6096_v17, %v7674_v42 }
 0xd9c   : >> { %v4584_v16 = vpop.f32.mrf.mxu0 }
 0xd9d   : >> { %v4615_v27 = vadd.f32 %v4584_v16, %v7678_v28  ;;  %v4631_v46 = vadd.f32 %v5455_v63, %v4617_v13 }
 0xd9e   : >> { %v6097_v12 = vpop.f32.mrf.mxu0 }
 0xd9f   : >> { %v4629_v45 = vadd.f32 %v5455_v63, %v4615_v27  ;;  %v4618_v10 = vadd.f32 %v6097_v12, %v7682_v36  ;;  %v4639_v42 = vadd.f32 %v6648_v20, %v4631_v46 }
 0xda0   : >> { %v4587_v48 = vpop.f32.mrf.mxu0 }
 0xda1   : >> { %v4616_v34 = vadd.f32 %v4587_v48, %v7684_v41  ;;  %v4637_v5 = vadd.f32 %v6656_v18, %v4629_v45  ;;  %v4632_v60 = vadd.f32 %v5455_v63, %v4618_v10  ;;  %v4651_v28 = vsel %vm663_vm0, %v4639_v42, 0.0 }
 0xda3   : >> { %v4630_v59 = vadd.f32 %v5455_v63, %v4616_v34  ;;  %v4645_v30 = vsel %vm663_vm0, %v4637_v5, 0.0  ;;  %v4640_v36 = vadd.f32 %v6644_v21, %v4632_v60 }
 0xda4   : >> { %4646 = vadd.xlane.f32.xlu0 %v4645_v30 }
 0xda5   : >> { %v4638_v52 = vadd.f32 %v6652_v19, %v4630_v59  ;;  %v4654_v44 = vsel %vm663_vm0, %v4640_v36, 0.0 }
 0xda7   : >> { %v4648_v26 = vsel %vm663_vm0, %v4638_v52, 0.0 }
 0xda8   : >> { %4652 = vadd.xlane.f32.xlu0 %v4651_v28  ;;  %4649 = vadd.xlane.f32.xlu1 %v4648_v26  ;;  %v6299_v28 = vld [vmem:[%s613_s21 + $0x8] sm:$0xff]   ;;  %v6300_v26 = vld [vmem:[%s613_s21] sm:$0xff]   ;;  %s618_s21 = scalar_lea.vmem %s8100_s7, %s6660_s16 }
 0xda9   : >> { %6102 = vmatprep.subr.bf16.mxu1 %v6299_v28 }
 0xdaa   : >> { %v6100_v41 = vpop.f32.mrf.mxu0  ;;  %6103 = vmatpush3.bf16.msra.mxu1 %v6299_v28 }
 0xdab   : >> { %v4621_v18 = vadd.f32 %v6100_v41, %v7691_v49  ;;  %6104 = vmatprep.subr.bf16.mxu1 %v6300_v26 }
 0xdac   : >> { %4655 = vadd.xlane.f32.xlu0 %v4654_v44  ;;  %v4600_v55 = vpop.f32.mrf.mxu0 }
 0xdad   : >> { %v4619_v20 = vadd.f32 %v4600_v55, %v7695_v6  ;;  %v4635_v32 = vadd.f32 %v5455_v63, %v4621_v18 }
 0xdae   : >> { %v6101_v35 = vpop.f32.mrf.mxu0  ;;  %6105 = vmatpush3.bf16.msra.mxu1 %v6300_v26  ;;  %v6302_v26 = vld [vmem:[%s7877_s22 + $0x10] sm:$0xff]  }
 0xdaf   : >> { %v4633_v19 = vadd.f32 %v5455_v63, %v4619_v20  ;;  %v4622_v3 = vadd.f32 %v6101_v35, %v7700_v2  ;;  %v4643_v29 = vadd.f32 %v6632_v24, %v4635_v32 }
 0xdb0   : >> { %v4603_v14 = vpop.f32.mrf.mxu0 }
 0xdb1   : >> { %v4620_v50 = vadd.f32 %v4603_v14, %v7702_v9  ;;  %v4641_v21 = vadd.f32 %v6640_v22, %v4633_v19  ;;  %v4636_v56 = vadd.f32 %v5455_v63, %v4622_v3  ;;  %v4663_v6 = vsel %vm663_vm0, %v4643_v29, 0.0 }
 0xdb3   : >> { %v4634_v40 = vadd.f32 %v5455_v63, %v4620_v50  ;;  %v4657_v49 = vsel %vm663_vm0, %v4641_v21, 0.0  ;;  %v4644_v2 = vadd.f32 %v6628_v25, %v4636_v56 }
 0xdb4   : >> { %4658 = vadd.xlane.f32.xlu1 %v4657_v49 }
 0xdb5   : >> { %v4642_v51 = vadd.f32 %v6636_v23, %v4634_v40  ;;  %v4666_v9 = vsel %vm663_vm0, %v4644_v2, 0.0 }
 0xdb7   : >> { %v4660_v0 = vsel %vm663_vm0, %v4642_v51, 0.0 }
 0xdb8   : >> { %4664 = vadd.xlane.f32.xlu1 %v4663_v6  ;;  %4661 = vadd.xlane.f32.xlu0 %v4660_v0 }
 0xdbc   : >> { %4667 = vadd.xlane.f32.xlu0 %v4666_v9 }
 0xe2d   : >> { %v4647_v22 = vpop.xlane.xlu0 %4646 }
 0xe2e   : >> { %v4670_v54 = vmul.f32 0.03125, %v4647_v22 }
 0xe30   : >> { %v7829_v11 = vsub.f32 %v4637_v5, %v4670_v54 }
 0xe31   : >> { %v4653_v57 = vpop.xlane.xlu0 %4652  ;;  %v4650_v24 = vpop.xlane.xlu1 %4649 }
 0xe32   : >> { %v4672_v58 = vmul.f32 0.03125, %v4653_v57  ;;  %v4671_v1 = vmul.f32 0.03125, %v4650_v24  ;;  %v4686_v23 = vmul.f32 %v7829_v11, %v7829_v11 }
 0xe34   : >> { %v7833_v43 = vsub.f32 %v4639_v42, %v4672_v58  ;;  %v7835_v39 = vsub.f32 %v4638_v52, %v4671_v1  ;;  %v4694_v25 = vsel %vm663_vm0, %v4686_v23, 0.0 }
 0xe35   : >> { %v4656_v62 = vpop.xlane.xlu0 %4655  ;;  %4695 = vadd.xlane.f32.xlu1 %v4694_v25 }
 0xe36   : >> { %v4673_v61 = vmul.f32 0.03125, %v4656_v62  ;;  %v4688_v33 = vmul.f32 %v7833_v43, %v7833_v43  ;;  %v4687_v47 = vmul.f32 %v7835_v39, %v7835_v39 }
 0xe38   : >> { %v7842_v53 = vsub.f32 %v4640_v36, %v4673_v61  ;;  %v4700_v4 = vsel %vm663_vm0, %v4688_v33, 0.0  ;;  %v4697_v7 = vsel %vm663_vm0, %v4687_v47, 0.0  ;;  %v6301_v36 = vld [vmem:[%s7877_s22 + $0x18] sm:$0xff]   ;;  %v5457_v61 = vld [vmem:[%s635_s14] ss:$0 sm:$0xff]  ;;  %s8148_s14 = sld [smem:[#allocation20_spill]] }
 0xe39   : >> { %4701 = vadd.xlane.f32.xlu1 %v4700_v4  ;;  %4698 = vadd.xlane.f32.xlu0 %v4697_v7 }
 0xe3a   : >> { %v4689_v15 = vmul.f32 %v7842_v53, %v7842_v53  ;;  %6114 = vmatprep.subr.bf16.mxu0 %v6301_v36 }
 0xe3b   : >> { %6115 = vmatpush3.bf16.msra.mxu0 %v6301_v36  ;;  %v6303_v36 = vld [vmem:[%s7877_s22 + $0x8] sm:$0xff]  }
 0xe3c   : >> { %v4703_v31 = vsel %vm663_vm0, %v4689_v15, 0.0  ;;  %6116 = vmatprep.subr.bf16.mxu0 %v6302_v26 }
 0xe3d   : >> { %v4659_v37 = vpop.xlane.xlu1 %4658  ;;  %4704 = vadd.xlane.f32.xlu0 %v4703_v31 }
 0xe3e   : >> { %v4674_v38 = vmul.f32 0.03125, %v4659_v37  ;;  %s639_s25 = scalar_lea.vmem %s8148_s14, %s6660_s16 }
 0xe3f   : >> { %6117 = vmatpush3.bf16.msra.mxu0 %v6302_v26 }
 0xe40   : >> { %v7849_v8 = vsub.f32 %v4641_v21, %v4674_v38  ;;  %6118 = vmatprep.subr.bf16.mxu0 %v6303_v36 }
 0xe41   : >> { %v4665_v17 = vpop.xlane.xlu1 %4664  ;;  %v4662_v13 = vpop.xlane.xlu0 %4661 }
 0xe42   : >> { %v4676_v63 = vmul.f32 0.03125, %v4665_v17  ;;  %v4675_v16 = vmul.f32 0.03125, %v4662_v13  ;;  %v4690_v27 = vmul.f32 %v7849_v8, %v7849_v8 }
 0xe43   : >> { %6119 = vmatpush3.bf16.msra.mxu0 %v6303_v36 }
 0xe44   : >> { %v7853_v12 = vsub.f32 %v4643_v29, %v4676_v63  ;;  %v7855_v46 = vsub.f32 %v4642_v51, %v4675_v16  ;;  %v4706_v45 = vsel %vm663_vm0, %v4690_v27, 0.0 }
 0xe45   : >> { %4707 = vadd.xlane.f32.xlu1 %v4706_v45  ;;  %v4668_v10 = vpop.xlane.xlu0 %4667 }
 0xe46   : >> { %v4677_v48 = vmul.f32 0.03125, %v4668_v10  ;;  %v4692_v34 = vmul.f32 %v7853_v12, %v7853_v12  ;;  %v4691_v5 = vmul.f32 %v7855_v46, %v7855_v46 }
 0xe48   : >> { %v7862_v60 = vsub.f32 %v4644_v2, %v4677_v48  ;;  %v4712_v59 = vsel %vm663_vm0, %v4692_v34, 0.0  ;;  %v4709_v30 = vsel %vm663_vm0, %v4691_v5, 0.0  ;;  %v5456_v2 = vld [vmem:[%s633_s29] ss:$0 sm:$0xff]  ;;  %s637_s29 = scalar_lea.vmem %s8147_s17, %s6660_s16  ;;  %s586_s16 = sadd.s32 1, %s6660_s16  }
 0xe49   : >> { %4713 = vadd.xlane.f32.xlu1 %v4712_v59  ;;  %4710 = vadd.xlane.f32.xlu0 %v4709_v30  ;;  %p583_p12 = scmp.ge.s32.totalorder %s586_s16, 2  }
 0xe4a   : >> { %v4693_v42 = vmul.f32 %v7862_v60, %v7862_v60  ;;  %vm6680_vm5 = vmmov (%p583_p12), 0   ;;  %s8159_s20 = sld [smem:[#allocation16_spill]] (%p583_p12)  ;;  %s5477_s19 = sshll.u32 (%p583_p12), %s6792_s15, 4  ;;  %vm5208_vm6 = vcmask (%p583_p12), 516096  }
 0xe4b   : > { %s8160_s17 = sld [smem:[#allocation22_spill]] (%p583_p12)  ;;  %s5211_s15 = scalar_lea.sflag (%p583_p12), [#allocation5], %s6891_s23 }
 0xe4c   : >> { %v4715_v52 = vsel %vm663_vm0, %v4693_v42, 0.0  ;;  %s6682_s27 = smov (%p583_p12), [#allocation8]  }
 0xe4d   : >> { %4716 = vadd.xlane.f32.xlu0 %v4715_v52  ;;  %s6524_s14 = sshll.u32 (%p583_p12), %s6682_s27, 4  ;;  %s6525_s14 = int_to_ptr.vmem [resolvable:$false] %s6524_s14 }
 0xe50   : > { %p8161_p7 = scmp.ne.s32.totalorder (%p583_p12), %s8159_s20, 0 }
 0xebe   : >> { %v4696_v41 = vpop.xlane.xlu1 %4695 }
 0xebf   : >> { %v4718_v18 = vmul.f32 0.03125, %v4696_v41  ;;  %v6304_v41 = vld [vmem:[%s7877_s22] sm:$0xff]  }
 0xec0   : >> { %6120 = vmatprep.subr.bf16.mxu0 %v6304_v41 }
 0xec1   : >> { %v4726_v44 = vadd.f32 1e-05, %v4718_v18  ;;  %6121 = vmatpush3.bf16.msra.mxu0 %v6304_v41 }
 0xec2   : >> { %v4702_v55 = vpop.xlane.xlu1 %4701  ;;  %v4699_v20 = vpop.xlane.xlu0 %4698 }
 0xec3   : >> { %6433 = vrsqrt.f32 %v4726_v44  ;;  %v4720_v35 = vmul.f32 0.03125, %v4702_v55  ;;  %v4719_v32 = vmul.f32 0.03125, %v4699_v20  ;;  %v5458_v55 = vld [vmem:[%s618_s21] ss:$0 sm:$0xff]  ;;  %s8158_s21 = sld [smem:[#allocation21_spill]] (%p583_p12) }
 0xec5   : >> { %v4728_v19 = vadd.f32 1e-05, %v4720_v35  ;;  %v4727_v3 = vadd.f32 1e-05, %v4719_v32 }
 0xec6   : >> { %v4705_v14 = vpop.xlane.xlu0 %4704 }
 0xec7   : >> { %6435 = vrsqrt.f32 %v4728_v19  ;;  %v4721_v50 = vmul.f32 0.03125, %v4705_v14 }
 0xec8   : >> { %6437 = vrsqrt.f32 %v4727_v3 }
 0xec9   : >> { %v4729_v21 = vadd.f32 1e-05, %v4721_v50 }
 0xecb   : >> { %6439 = vrsqrt.f32 %v4729_v21 }
 0xece   : >> { %v4708_v56 = vpop.xlane.xlu1 %4707 }
 0xecf   : >> { %v4722_v40 = vmul.f32 0.03125, %v4708_v56 }
 0xed0   : >> { %v6434_v49 = vpop.eup %6433 }
 0xed1   : >> { %v4730_v29 = vadd.f32 1e-05, %v4722_v40  ;;  %v4742_v0 = vmul.f32 %v6434_v49, %v7829_v11 }
 0xed2   : >> { %v4714_v51 = vpop.xlane.xlu1 %4713  ;;  %v4711_v6 = vpop.xlane.xlu0 %4710 }
 0xed3   : >> { %6441 = vrsqrt.f32 %v4730_v29  ;;  %v4724_v9 = vmul.f32 0.03125, %v4714_v51  ;;  %v4723_v22 = vmul.f32 0.03125, %v4711_v6  ;;  %v4756_v62 = vmul.f32 %v5456_v2, %v4742_v0 }
 0xed4   : >> { %v6436_v54 = vpop.eup %6435 }
 0xed5   : >> { %v6438_v57 = vpop.eup %6437  ;;  %v4744_v24 = vmul.f32 %v6436_v54, %v7833_v43  ;;  %v4732_v58 = vadd.f32 1e-05, %v4724_v9  ;;  %v4731_v1 = vadd.f32 1e-05, %v4723_v22  ;;  %v7892_v31 = vadd.f32 %v5457_v61, %v4756_v62 }
 0xed6   : >> { %v4717_v23 = vpop.xlane.xlu0 %4716  ;;  %v4743_v25 = vmul.f32 %v6438_v57, %v7835_v39 }
 0xed7   : >> { %6443 = vrsqrt.f32 %v4732_v58  ;;  %v4725_v11 = vmul.f32 0.03125, %v4717_v23  ;;  %v4758_v4 = vmul.f32 %v5456_v2, %v4744_v24 }
 0xed8   : >> { %v6440_v33 = vpop.eup %6439  ;;  %6445 = vrsqrt.f32 %v4731_v1  ;;  %v4757_v47 = vmul.f32 %v5456_v2, %v4743_v25 }
 0xed9   : >> { %v4745_v7 = vmul.f32 %v6440_v33, %v7842_v53  ;;  %v4733_v15 = vadd.f32 1e-05, %v4725_v11  ;;  %v7898_v38 = vadd.f32 %v5457_v61, %v4758_v4  ;;  %v5465_v11 = vld [vmem:[%s631_s30] ss:$0 sm:$0xff]  ;;  %s5223_s30 = sshll.u32 (%p583_p12), %s553_s12, 4  ;;  %s8050_s30 = int_to_ptr.vmem [resolvable:$true] %s5223_s30 }
 0xeda   : >> { %v7894_v37 = vadd.f32 %v5457_v61, %v4757_v47  ;;  %s6520_s28 = scalar_lea.vmem (%p583_p12), %s8050_s30, 16  ;;  %p6527_p10 = scmp.lt.s32.totalorder (%p583_p12), %s8050_s30, %s6525_s14 }
 0xedb   : >> { %v4759_v43 = vmul.f32 %v5456_v2, %v4745_v7  ;;  %6447 = vrsqrt.f32 %v4733_v15  ;;  %p6521_p1 = scmp.ne.s32.totalorder (%p583_p12), %s8050_s30, %s6520_s28 }
 0xedc   : >> { %v4778_v39 = vpack.c.bf16 %v7894_v37, %v7892_v31 }
 0xedd   : >> { %v7900_v17 = vadd.f32 %v5457_v61, %v4759_v43  ;;  %p6522_p8 = pnand (%p583_p12), %p6521_p1, %p8161_p7 }
 0xede   : >> { %6106 = vmatprep.mubr.msk.bf16.mxu1 %vm663_vm0, %v4778_v39 }
 0xedf   : >> { %v4779_v13 = vpack.c.bf16 %v7900_v17, %v7898_v38  ;;  %p6523_p9 = pneg (%p583_p12), %p6522_p8 }
 0xee0   : >> { %v6442_v53 = vpop.eup %6441 }
 0xee1   : >> { %6107 = vmatmul.mubr.msk.bf16.vlgmr.msra.gmra.mxu1 %vm663_vm0, %v4779_v13  ;;  %v4746_v63 = vmul.f32 %v6442_v53, %v7849_v8 }
 0xee3   : >> { %v4760_v48 = vmul.f32 %v5456_v2, %v4746_v63 }
 0xee4   : >> { %v6444_v16 = vpop.eup %6443 }
 0xee5   : >> { %v6446_v27 = vpop.eup %6445  ;;  %v4748_v45 = vmul.f32 %v6444_v16, %v7853_v12  ;;  %v7910_v42 = vadd.f32 %v5457_v61, %v4760_v48 }
 0xee6   : >> { %v4747_v10 = vmul.f32 %v6446_v27, %v7855_v46 }
 0xee7   : >> { %v4762_v30 = vmul.f32 %v5456_v2, %v4748_v45 }
 0xee8   : >> { %v6448_v34 = vpop.eup %6447  ;;  %v4761_v5 = vmul.f32 %v5456_v2, %v4747_v10 }
 0xee9   : >> { %v4749_v59 = vmul.f32 %v6448_v34, %v7862_v60  ;;  %v7916_v28 = vadd.f32 %v5457_v61, %v4762_v30 }
 0xeea   : >> { %v7912_v52 = vadd.f32 %v5457_v61, %v4761_v5 }
 0xeeb   : >> { %v4763_v8 = vmul.f32 %v5456_v2, %v4749_v59 }
 0xeec   : >> { %v4780_v12 = vpack.c.bf16 %v7912_v52, %v7910_v42 }
 0xeed   : >> { %v7918_v46 = vadd.f32 %v5457_v61, %v4763_v8 }
 0xeee   : >> { %6110 = vmatprep.mubr.msk.bf16.mxu1 %vm663_vm0, %v4780_v12 }
 0xeef   : >> { %v4781_v60 = vpack.c.bf16 %v7918_v46, %v7916_v28 }
 0xef1   : >> { %6111 = vmatmul.mubr.msk.bf16.gmra.mxu1 %vm663_vm0, %v4781_v60 }
 0xfa1   : >> { %v6108_v18 = vpop.f32.mrf.mxu1 }
 0xfa2   : >> { %v4855_v19 = vadd.f32 %v6108_v18, %v5458_v55 }
 0xfa3   : >> { %v4846_v44 = vpop.f32.mrf.mxu1 }
 0xfa4   : >> { %v4847_v35 = vadd.f32 %v5458_v55, %v4846_v44  ;;  %v4879_v40 = vmax.f32 %v4855_v19, 0.0 }
 0xfa5   : >> { %v6109_v20 = vpop.f32.mrf.mxu1 }
 0xfa6   : >> { %v4858_v32 = vadd.f32 %v6109_v20, %v5458_v55  ;;  %v4877_v21 = vmax.f32 %v4847_v35, 0.0 }
 0xfa7   : >> { %v4849_v3 = vpop.f32.mrf.mxu1 }
 0xfa8   : >> { %v4850_v14 = vadd.f32 %v5458_v55, %v4849_v3  ;;  %v4880_v50 = vmax.f32 %v4858_v32, 0.0 }
 0xfaa   : >> { %v4878_v56 = vmax.f32 %v4850_v14, 0.0  ;;  %v4886_v29 = vpack.c.bf16 %v4880_v50, %v4879_v40 }
 0xfac   : >> { %v4885_v49 = vpack.c.bf16 %v4878_v56, %v4877_v21 }
 0xfae   : >> { %6122 = vmatprep.mubr.msk.bf16.mxu0 %vm4919_vm4, %v4885_v49 }
 0xfaf   : >> { %6123 = vmatmul.mubr.msk.bf16.vlgmr.msra.gmra.mxu0 %vm4919_vm4, %v4886_v29 }
 0xfb1   : >> { %v6112_v51 = vpop.f32.mrf.mxu1 }
 0xfb2   : >> { %v4871_v22 = vadd.f32 %v6112_v51, %v5458_v55 }
 0xfb3   : >> { %v4862_v6 = vpop.f32.mrf.mxu1 }
 0xfb4   : >> { %v4863_v2 = vadd.f32 %v5458_v55, %v4862_v6  ;;  %v4883_v23 = vmax.f32 %v4871_v22, 0.0 }
 0xfb5   : >> { %v6113_v0 = vpop.f32.mrf.mxu1 }
 0xfb6   : >> { %v4874_v9 = vadd.f32 %v6113_v0, %v5458_v55  ;;  %v4881_v58 = vmax.f32 %v4863_v2, 0.0 }
 0xfb7   : >> { %v4865_v54 = vpop.f32.mrf.mxu1 }
 0xfb8   : >> { %v4866_v57 = vadd.f32 %v5458_v55, %v4865_v54  ;;  %v4884_v24 = vmax.f32 %v4874_v9, 0.0 }
 0xfba   : >> { %v4882_v1 = vmax.f32 %v4866_v57, 0.0  ;;  %v4888_v62 = vpack.c.bf16 %v4884_v24, %v4883_v23 }
 0xfbc   : >> { %v4887_v25 = vpack.c.bf16 %v4882_v1, %v4881_v58 }
 0xfbe   : >> { %6126 = vmatprep.mubr.msk.bf16.mxu0 %vm4919_vm4, %v4887_v25 }
 0xfbf   : >> { %6127 = vmatmul.mubr.msk.bf16.gmra.mxu0 %vm4919_vm4, %v4888_v62 }
0x106f   : >> { %v6124_v61 = vpop.f32.mrf.mxu0 }
0x1070   : >> { %v4975_v33 = vadd.f32 %v6124_v61, %v5465_v11 }
0x1071   : >> { %v4966_v47 = vpop.f32.mrf.mxu0 }
0x1072   : >> { %v4999_v4 = vadd.f32 %v4975_v33, %v7898_v38  ;;  %v4967_v7 = vadd.f32 %v5465_v11, %v4966_v47 }
0x1073   : >> { %v6125_v15 = vpop.f32.mrf.mxu0 }
0x1074   : >> { %v4997_v43 = vadd.f32 %v4967_v7, %v7892_v31  ;;  %v4978_v39 = vadd.f32 %v6125_v15, %v5465_v11  ;;  %v5011_v13 = vsel %vm663_vm0, %v4999_v4, 0.0 }
0x1075   : >> { %5012 = vadd.xlane.f32.xlu1 %v5011_v13  ;;  %v4969_v53 = vpop.f32.mrf.mxu0 }
0x1076   : >> { %v5000_v63 = vadd.f32 %v4978_v39, %v7900_v17  ;;  %v4970_v16 = vadd.f32 %v5465_v11, %v4969_v53  ;;  %v5005_v10 = vsel %vm663_vm0, %v4997_v43, 0.0 }
0x1078   : >> { %v4998_v27 = vadd.f32 %v4970_v16, %v7894_v37  ;;  %v5014_v45 = vsel %vm663_vm0, %v5000_v63, 0.0 }
0x1079   : >> { %5015 = vadd.xlane.f32.xlu0 %v5014_v45  ;;  %5006 = vadd.xlane.f32.xlu1 %v5005_v10 }
0x107a   : >> { %v5008_v38 = vsel %vm663_vm0, %v4998_v27, 0.0 }
0x107d   : >> { %5009 = vadd.xlane.f32.xlu0 %v5008_v38 }
0x107f   : >> { %v6128_v31 = vpop.f32.mrf.mxu0 }
0x1080   : >> { %v4991_v34 = vadd.f32 %v6128_v31, %v5465_v11 }
0x1081   : >> { %v4982_v48 = vpop.f32.mrf.mxu0 }
0x1082   : >> { %v4983_v5 = vadd.f32 %v5465_v11, %v4982_v48  ;;  %v5003_v8 = vadd.f32 %v4991_v34, %v7916_v28 }
0x1083   : >> { %v6129_v59 = vpop.f32.mrf.mxu0 }
0x1084   : >> { %v5001_v30 = vadd.f32 %v4983_v5, %v7910_v42  ;;  %v4994_v37 = vadd.f32 %v6129_v59, %v5465_v11  ;;  %v5023_v18 = vsel %vm663_vm0, %v5003_v8, 0.0 }
0x1085   : >> { %v4985_v17 = vpop.f32.mrf.mxu0 }
0x1086   : >> { %v4986_v12 = vadd.f32 %v5465_v11, %v4985_v17  ;;  %v5017_v60 = vsel %vm663_vm0, %v5001_v30, 0.0  ;;  %v5004_v36 = vadd.f32 %v4994_v37, %v7918_v46 }
0x1087   : >> { %5018 = vadd.xlane.f32.xlu1 %v5017_v60 }
0x1088   : >> { %v5002_v26 = vadd.f32 %v4986_v12, %v7912_v52  ;;  %v5026_v42 = vsel %vm663_vm0, %v5004_v36, 0.0  ;;  %v5475_v12 = vld [vmem:[%s639_s25] ss:$0 sm:$0xff]  ;;  %s6526_s25 = scalar_lea.vmem (%p583_p12), %s6525_s14, 32 }
0x1089   : > { %p6528_p2 = scmp.lt.s32.totalorder (%p583_p12), %s6526_s25, %s6520_s28 }
0x108a   : >> { %v5020_v41 = vsel %vm663_vm0, %v5002_v26, 0.0 }
0x108b   : >> { %5021 = vadd.xlane.f32.xlu0 %v5020_v41  ;;  %5024 = vadd.xlane.f32.xlu1 %v5023_v18  ;;  %p6529_p0 = por (%p583_p12), %p6528_p2, %p6527_p10 }
0x108d   : > { %p6530_p4 = pnand (%p583_p12), %p6529_p0, %p6523_p9 }
0x108f   : >> { %5027 = vadd.xlane.f32.xlu0 %v5026_v42 }
0x10fe   : >> { %v5013_v44 = vpop.xlane.xlu1 %5012 }
0x10ff   : >> { %v5031_v28 = vmul.f32 0.03125, %v5013_v44 }
0x1101   : >> { %v7955_v55 = vsub.f32 %v4999_v4, %v5031_v28 }
0x1102   : >> { %v5007_v20 = vpop.xlane.xlu1 %5006  ;;  %v5016_v35 = vpop.xlane.xlu0 %5015 }
0x1103   : >> { %v5029_v32 = vmul.f32 0.03125, %v5007_v20  ;;  %v5032_v19 = vmul.f32 0.03125, %v5016_v35  ;;  %v5047_v52 = vmul.f32 %v7955_v55, %v7955_v55 }
0x1105   : >> { %v7959_v46 = vsub.f32 %v4997_v43, %v5029_v32  ;;  %v7961_v3 = vsub.f32 %v5000_v63, %v5032_v19  ;;  %v5059_v14 = vsel %vm663_vm0, %v5047_v52, 0.0 }
0x1106   : >> { %5060 = vadd.xlane.f32.xlu1 %v5059_v14  ;;  %v5010_v50 = vpop.xlane.xlu0 %5009 }
0x1107   : >> { %v5030_v21 = vmul.f32 0.03125, %v5010_v50  ;;  %v5045_v56 = vmul.f32 %v7959_v46, %v7959_v46  ;;  %v5048_v40 = vmul.f32 %v7961_v3, %v7961_v3 }
0x1109   : >> { %v7968_v49 = vsub.f32 %v4998_v27, %v5030_v21  ;;  %v5053_v29 = vsel %vm663_vm0, %v5045_v56, 0.0  ;;  %v5062_v51 = vsel %vm663_vm0, %v5048_v40, 0.0 }
0x110a   : >> { %5054 = vadd.xlane.f32.xlu1 %v5053_v29  ;;  %5063 = vadd.xlane.f32.xlu0 %v5062_v51 }
0x110b   : >> { %v5046_v6 = vmul.f32 %v7968_v49, %v7968_v49 }
0x110d   : >> { %v5056_v0 = vsel %vm663_vm0, %v5046_v6, 0.0 }
0x110e   : >> { %5057 = vadd.xlane.f32.xlu0 %v5056_v0 }
0x1110   : >> { %v5019_v2 = vpop.xlane.xlu1 %5018 }
0x1111   : >> { %v5033_v9 = vmul.f32 0.03125, %v5019_v2 }
0x1113   : >> { %v7975_v22 = vsub.f32 %v5001_v30, %v5033_v9  ;;  %v5474_v30 = vld [vmem:[%s637_s29] ss:$0 sm:$0xff]  ;;  %s8048_s29 = scalar_lea.hbm (%p583_p12), %s8160_s17, %s5477_s19 }
0x1114   : >> { %v5025_v54 = vpop.xlane.xlu1 %5024  ;;  %v5022_v57 = vpop.xlane.xlu0 %5021 }
0x1115   : >> { %v5035_v24 = vmul.f32 0.03125, %v5025_v54  ;;  %v5034_v58 = vmul.f32 0.03125, %v5022_v57  ;;  %v5049_v1 = vmul.f32 %v7975_v22, %v7975_v22 }
0x1117   : >> { %v7979_v23 = vsub.f32 %v5003_v8, %v5035_v24  ;;  %v7981_v25 = vsub.f32 %v5002_v26, %v5034_v58  ;;  %v5065_v62 = vsel %vm663_vm0, %v5049_v1, 0.0 }
0x1118   : >> { %5066 = vadd.xlane.f32.xlu1 %v5065_v62  ;;  %v5028_v11 = vpop.xlane.xlu0 %5027 }
0x1119   : >> { %v5036_v61 = vmul.f32 0.03125, %v5028_v11  ;;  %v5051_v33 = vmul.f32 %v7979_v23, %v7979_v23  ;;  %v5050_v47 = vmul.f32 %v7981_v25, %v7981_v25 }
0x111b   : >> { %v7988_v4 = vsub.f32 %v5004_v36, %v5036_v61  ;;  %v5071_v7 = vsel %vm663_vm0, %v5051_v33, 0.0  ;;  %v5068_v15 = vsel %vm663_vm0, %v5050_v47, 0.0 }
0x111c   : >> { %5072 = vadd.xlane.f32.xlu1 %v5071_v7  ;;  %5069 = vadd.xlane.f32.xlu0 %v5068_v15 }
0x111d   : >> { %v5052_v43 = vmul.f32 %v7988_v4, %v7988_v4 }
0x111f   : >> { %v5074_v39 = vsel %vm663_vm0, %v5052_v43, 0.0  ;;  %v5142_v43 = vld [vmem:[#allocation2] sm:$0x1] (%p583_p12) }
0x1120   : >> { %5075 = vadd.xlane.f32.xlu0 %v5074_v39  ;;  %v6679_v39 = vmov (%p583_p12), 0.0  }
0x1121   : > { %6130 = vmatprep.subr.bf16.mxu0 (%p583_p12), %v6679_v39  ;;  %6138 = vmatprep.mubr.msk.bf16.mxu0 (%p583_p12), %vm6680_vm5, %v6679_v39 }
0x118f   : >> { %v5061_v13 = vpop.xlane.xlu1 %5060 }
0x1190   : >> { %v5079_v53 = vmul.f32 0.03125, %v5061_v13 }
0x1192   : >> { %v5087_v63 = vadd.f32 1e-05, %v5079_v53  ;;  %v6681_v53 = vmov (%p583_p12), 0  }
0x1193   : >> { %v5055_v16 = vpop.xlane.xlu1 %5054  ;;  %v5064_v27 = vpop.xlane.xlu0 %5063  ;;  %6465 = vset.pattern.permute.xlu0 (%p583_p12), %v6681_v53 }
0x1194   : >> { %6449 = vrsqrt.f32 %v5087_v63  ;;  %v5077_v45 = vmul.f32 0.03125, %v5055_v16  ;;  %v5080_v10 = vmul.f32 0.03125, %v5064_v27  ;;  %5145 = vperm.xlu0 (%p583_p12), %6465, %v5142_v43  }
0x1196   : >> { %v5085_v38 = vadd.f32 1e-05, %v5077_v45  ;;  %v5088_v31 = vadd.f32 1e-05, %v5080_v10  ;;  %v5137_v45 = vld [vmem:[%s8158_s21] sm:$0x1] (%p583_p12)  ;;  %v5148_v10 = vlaneseq (%p583_p12) }
0x1197   : >> { %v5058_v48 = vpop.xlane.xlu0 %5057 }
0x1198   : >> { %6451 = vrsqrt.f32 %v5085_v38  ;;  %v5078_v34 = vmul.f32 0.03125, %v5058_v48  ;;  %v5149_v38 = vshrl.u32 (%p583_p12), %v5148_v10, 7 }
0x1199   : >> { %6453 = vrsqrt.f32 %v5088_v31 }
0x119a   : >> { %v5086_v5 = vadd.f32 1e-05, %v5078_v34  ;;  %v5150_v31 = vsub.s32 (%p583_p12), 0, %v5149_v38 }
0x119c   : >> { %6455 = vrsqrt.f32 %v5086_v5 }
0x11a1   : >> { %v6450_v59 = vpop.eup %6449  ;;  %v5067_v17 = vpop.xlane.xlu1 %5066 }
0x11a2   : >> { %v5103_v8 = vmul.f32 %v6450_v59, %v7955_v55  ;;  %v5081_v37 = vmul.f32 0.03125, %v5067_v17 }
0x11a4   : >> { %v5117_v60 = vmul.f32 %v5474_v30, %v5103_v8  ;;  %v5089_v26 = vadd.f32 1e-05, %v5081_v37 }
0x11a5   : >> { %v6452_v36 = vpop.eup %6451  ;;  %v5073_v41 = vpop.xlane.xlu1 %5072 }
0x11a6   : >> { %v5070_v18 = vpop.xlane.xlu0 %5069  ;;  %v6454_v42 = vpop.eup %6453  ;;  %v8004_v20 = vadd.f32 %v5475_v12, %v5117_v60   ;;  %v5101_v28 = vmul.f32 %v6452_v36, %v7959_v46  ;;  %6457 = vrsqrt.f32 %v5089_v26  ;;  %v5083_v35 = vmul.f32 0.03125, %v5073_v41 }
0x11a7   : >> { %v5104_v32 = vmul.f32 %v6454_v42, %v7961_v3  ;;  %v5082_v19 = vmul.f32 0.03125, %v5070_v18 }
0x11a8   : >> { %v8149_v44 = vmov %v8004_v20  ;;  %v5115_v52 = vmul.f32 %v5474_v30, %v5101_v28  ;;  %v5091_v14 = vadd.f32 1e-05, %v5083_v35 }
0x11a9   : >> { %v6456_v55 = vpop.eup %6455  ;;  %v5118_v50 = vmul.f32 %v5474_v30, %v5104_v32  ;;  %v5090_v21 = vadd.f32 1e-05, %v5082_v19 }
0x11aa   : >> { %v5076_v56 = vpop.xlane.xlu0 %5075  ;;  %v5129_v40 = vadd.f32 %v5475_v12, %v5115_v52   ;;  %v5102_v29 = vmul.f32 %v6456_v55, %v7968_v49  ;;  %6459 = vrsqrt.f32 %v5091_v14 }
0x11ab   : >> { %v5084_v51 = vmul.f32 0.03125, %v5076_v56  ;;  %v5132_v6 = vadd.f32 %v5475_v12, %v5118_v50   ;;  %6461 = vrsqrt.f32 %v5090_v21 }
0x11ac   : >> { %v5116_v20 = vmul.f32 %v5474_v30, %v5102_v29  ;;  %v8157_v18 = vmov %v5129_v40 }
0x11ad   : >> { %v5092_v46 = vadd.f32 1e-05, %v5084_v51  ;;  %v8154_v21 = vmov %v5132_v6 }
0x11ae   : >> { %v5130_v0 = vadd.f32 %v5475_v12, %v5116_v20   ;;  %v8155_v20 = vmov %v8149_v44 }
0x11af   : >> { %6463 = vrsqrt.f32 %v5092_v46 }
0x11b0   : >> { %v8156_v19 = vmov %v5130_v0 }
0x11b3   : >> { %v6458_v2 = vpop.eup %6457 }
0x11b4   : >> { %v5105_v3 = vmul.f32 %v6458_v2, %v7975_v22 }
0x11b6   : >> { %v5119_v9 = vmul.f32 %v5474_v30, %v5105_v3 }
0x11b7   : >> { %v6460_v54 = vpop.eup %6459 }
0x11b8   : >> { %v6462_v57 = vpop.eup %6461  ;;  %v5133_v58 = vadd.f32 %v5475_v12, %v5119_v9   ;;  %v5107_v24 = vmul.f32 %v6460_v54, %v7979_v23 }
0x11b9   : >> { %v5106_v1 = vmul.f32 %v6462_v57, %v7981_v25 }
0x11ba   : >> { %v5121_v49 = vmul.f32 %v5474_v30, %v5107_v24  ;;  %v8153_v22 = vmov %v5133_v58 }
0x11bb   : >> { %v5120_v11 = vmul.f32 %v5474_v30, %v5106_v1  ;;  %v5139_v22 = vpack.c.bf16 (%p583_p12), %v5132_v6, %v8149_v44 }
0x11bc   : >> { %v6464_v62 = vpop.eup %6463  ;;  %v5135_v61 = vadd.f32 %v5475_v12, %v5121_v49  }
0x11bd   : >> { %v5108_v33 = vmul.f32 %v6464_v62, %v7988_v4  ;;  %v5134_v47 = vadd.f32 %v5475_v12, %v5120_v11  }
0x11be   : >> { %v8151_v24 = vmov %v5135_v61 }
0x11bf   : >> { %v5122_v7 = vmul.f32 %v5474_v30, %v5108_v33  ;;  %v8152_v23 = vmov %v5134_v47  ;;  %585 = sbr.rel (!%p583_p12) target bundleno = 94 (0x5e), region = 152  ;;  %v5140_v63 = vpack.c.bf16 (%p583_p12), %v5134_v47, %v5133_v58 }
0x11c0   : > { %v5160_v23 = vsel (%p583_p12), %vm663_vm0, %v5139_v22, 0 }
0x11c1   : >> { %v5136_v15 = vadd.f32 %v5475_v12, %v5122_v7   ;;  %v5163_v16 = vsel (%p583_p12), %vm663_vm0, %v5140_v63, 0 }
0x11c3   : >> { %v8150_v25 = vmov %v5136_v15  ;;  %v5141_v4 = vpack.c.bf16 (%p583_p12), %v5136_v15, %v5135_v61 }
0x11c4   : > { %v5138_v25 = vpack.c.bf16 %v5130_v0, %v5129_v40 }
0x11c5   : > { %v5166_v13 = vsel %vm663_vm0, %v5141_v4, 0 }
0x11c6   : > { %6131 = vmatpush3.bf16.xpose.msra.mxu0 %v5166_v13  ;;  %v5157_v27 = vsel %vm663_vm0, %v5138_v25, 0 }
0x11c7   : > { %6132 = vmatprep.subr.bf16.mxu0 %v6679_v39 }
0x11ce   : > { %6133 = vmatpush3.bf16.xpose.msra.mxu0 %v5163_v16 }
0x11cf   : > { %6134 = vmatprep.subr.bf16.mxu0 %v6679_v39 }
0x11d6   : > { %6135 = vmatpush3.bf16.xpose.msra.mxu0 %v5160_v23 }
0x11d7   : > { %6136 = vmatprep.subr.bf16.mxu0 %v6679_v39 }
0x11de   : > { %6137 = vmatpush3.bf16.xpose.msra.mxu0 %v5157_v27 }
0x11e5   : > { %6139 = vmatmul.mubr.msk.bf16.vlgmr.msra.gmra.mxu0 %vm663_vm0, %v5137_v45 }
0x120f   : > { %v5146_v48 = vpop.permute.xlu0 %5145 }
0x1210   : > { %v5151_v34 = vrot.slane %v5146_v48, %v5150_v31 }
0x12a5   : > { %v5202_v5 = vpop.f32.mrf.mxu0 }
0x12a6   : > { %v5203_v59 = vadd.f32 %v5202_v5, %v5151_v34 }
0x12a7   : > { %v6140_v30 = vpop.f32.mrf.mxu0 }
0x12a8   : > { %5209 = vst.msk [vmem:[%s553_s12] sm:$0x1] %vm5208_vm6, %v5203_v59 }
0x12a9   : > { %v5205_v17 = vpop.f32.mrf.mxu0 }
0x12aa   : > { %6533 = shalt.err (!%p6530_p4)
}
0x12ab   : > { %s6534_s12 = scalar_lea.hbm %s8048_s29, 16  ;;  %s6538_s18 = scalar_lea.hbm %s8160_s17, 32 }
0x12ac   : > { %p6535_p11 = scmp.ne.s32.totalorder %s8048_s29, %s6534_s12  ;;  %p6539_p13 = scmp.lt.s32.totalorder %s8048_s29, %s8160_s17 }
0x12ad   : > { %p6540_p3 = scmp.lt.s32.totalorder %s6538_s18, %s6534_s12 }
0x12ae   : > { %p6536_p5 = pnand %p6535_p11, %p8161_p7 }
0x12af   : > { %p6541_p12 = por %p6540_p3, %p6539_p13 }
0x12b0   : > { %p6537_p6 = pneg %p6536_p5 }
0x12b2   : > { %p6542_p1 = pnand %p6541_p12, %p6537_p6 }
0x12b4   : > { %6545 = shalt.err (!%p6542_p1)
}
0x12b5   : > { %6156 = dma.vmem_to_hbm [thread:$0]  (%p8161_p7), %s8050_s30, 16, %s8048_s29, %s5211_s15   ;;  %v6141_v8 = vpop.f32.mrf.mxu0 }
0x12b6 PF: > { %s8162_s22 = sld [smem:[#allocation12_spill]]  ;;  %p8165_p9 = scmp.ge.s32.totalorder %s6624_s26, 2 }
0x12b7   : > { %s8163_s0 = sld [smem:[#allocation17_spill]] }
0x12bc   : > { %s5235_s28 = sand.u32 1, %s8162_s22  }
0x12bd   : > { %p8164_p8 = scmp.ne.s32.totalorder %s8163_s0, 0  ;;  %s5236_s27 = scalar_lea.sflag [#allocation5], %s5235_s28 }
0x12bf   : > { %p6167_p10 = pnand %p8165_p9, %p8164_p8 }
0x12c1   : > { %p6168_p2 = pneg %p6167_p10 }
0x12c3   : > { %6607 = dma.done.wait (%p6168_p2), %s5236_s27, 16  }
0x12c4   : > { %6609 = vsyncadd (%p6168_p2), %s5236_s27, 4294967280  ;;  %s8166_s26 = sld [smem:[#allocation14_spill]]  ;;  %s8169_s23 = smov %s6616_s24 }
0x12c5   : > { %s8167_s14 = sld [smem:[#allocation13_spill]] }
0x12c6   : > { %s8168_s25 = sld [smem:[#allocation15_spill]] }
0x12ca   : > { %p32_p0 = scmp.ge.s32.totalorder %s8166_s26, 4  }
0x12cb   : > { %s8170_s24 = smov %s8167_s14 }
0x12cc   :  { %34 = sbr.rel (!%p32_p0) target bundleno = 12 (0xc), region = 163 }
0x12d1   :  { %5240 = vsyncpa [#allocation4], 1 }
0x12d2   :  { %5242 = vsyncpa [#allocation4 + $0x1], 1 }
0x12d3   :  { %5243 = vsyncpa [#allocation7], 1 }
0x12d4   :  { %5244 = vsyncpa [#allocation5], 1 }
0x12d5   :  { %5246 = vsyncpa [#allocation5 + $0x1], 1 }

// kernel: tpu_custom_call.1
= control target key start
LH: loop header
LB: loop body
LE: loop exit
PB: predicated region body
PF: predicated region fallthrough
CT: control target
= control target key end

     0   :  { %s8093_s0 = inlined_call_operand.hbm [shape: f32[16,8,32], index: 0, kind: input, shape index: {}]   ;;  %s8094_s1 = inlined_call_operand.hbm [shape: f32[8,32], index: 1, kind: input, shape index: {}]   ;;  %s8095_s2 = inlined_call_operand.vmem [shape: bf16[2,32,96], index: 2, kind: input, shape index: {}]   ;;  %s8096_s3 = inlined_call_operand.vmem [shape: f32[2,1,96], index: 3, kind: input, shape index: {}]   ;;  %s8097_s4 = inlined_call_operand.vmem [shape: bf16[2,32,32], index: 4, kind: input, shape index: {}]   ;;  %s8098_s5 = inlined_call_operand.vmem [shape: f32[2,1,32], index: 5, kind: input, shape index: {}]   ;;  %s8099_s6 = inlined_call_operand.vmem [shape: bf16[2,32,64], index: 6, kind: input, shape index: {}]   ;;  %s8100_s7 = inlined_call_operand.vmem [shape: f32[2,1,64], index: 7, kind: input, shape index: {}]   ;;  %s8101_s8 = inlined_call_operand.vmem [shape: bf16[2,64,32], index: 8, kind: input, shape index: {}]   ;;  %s8102_s9 = inlined_call_operand.vmem [shape: f32[2,1,32], index: 9, kind: input, shape index: {}]   ;;  %s8103_s10 = inlined_call_operand.vmem [shape: f32[2,1,32], index: 10, kind: input, shape index: {}]   ;;  %s8104_s11 = inlined_call_operand.vmem [shape: f32[2,1,32], index: 11, kind: input, shape index: {}]   ;;  %s8105_s12 = inlined_call_operand.vmem [shape: f32[2,1,32], index: 12, kind: input, shape index: {}]   ;;  %s8106_s13 = inlined_call_operand.vmem [shape: f32[2,1,32], index: 13, kind: input, shape index: {}]   ;;  %s8107_s14 = inlined_call_operand.vmem [shape: bf16[1,32], index: 14, kind: input, shape index: {}]   ;;  %s8108_s15 = inlined_call_operand.<no memory space> [shape: f32[1,1], index: 15, kind: input, shape index: {}]   ;;  %s8109_s16 = inlined_call_operand.hbm [shape: f32[2,1,64], index: 16, kind: output, shape index: {}]  }
   0x1   :  { %8123 = sst [smem:[#allocation18_spill]] %s8093_s0  ;;  %v21_v0 = vstv %s8108_s15 }
   0x2   :  { %8124 = sst [smem:[#allocation19_spill]] %s8105_s12  ;;  %22 = vst [vmem:[#allocation2] sm:$0x1] %v21_v0 }
   0x3   :  { %8125 = sst [smem:[#allocation20_spill]] %s8106_s13 }
   0x4   :  { %8126 = sst [smem:[#allocation21_spill]] %s8107_s14 }
   0x5   :  { %8127 = sst [smem:[#allocation22_spill]] %s8109_s16 }
   0x6   :  { %23 = vsyncpa [#allocation4], 0 }
   0x7   :  { %25 = vsyncpa [#allocation4 + $0x1], 0 }
   0x8   :  { %26 = vsyncpa [#allocation7], 0 }
   0x9   :  { %27 = vsyncpa [#allocation5], 0 }
   0xa   :  { %29 = vsyncpa [#allocation5 + $0x1], 0  ;;  %s6771_s23 = smov 0   ;;  %s6773_s24 = smov 0  }
   0xb   :  { %s6775_s25 = smov 0   ;;  %s6777_s26 = smov 0  }
   0xc LB: > { %8128 = sst [smem:[#allocation12_spill]] %s6612_s23  ;;  %s6792_s15 = sadd.s32 4294967295, %s6624_s26   ;;  %s6624_s26 = sphi %s6777_s26, %s8166_s26   ;;  %s6620_s25 = sphi %s6775_s25, %s8168_s25   ;;  %s6616_s24 = sphi %s6773_s24, %s8170_s24   ;;  %s6612_s23 = sphi %s6771_s23, %s8169_s23  }
   0xd   : > { %8129 = sst [smem:[#allocation13_spill]] %s6620_s25  ;;  %s5344_s27 = sadd.s32 4294967294, %s6624_s26  }
   0xe   : > { %s6796_s28 = sadd.s32 1, %s6624_s26   ;;  %s42_s29 = sadd.s32 1, %s6620_s25 }
   0xf   : > { %8130 = sst [smem:[#allocation14_spill]] %s6796_s28  ;;  %s39_s30 = ssub.s32 %s6624_s26, %s6796_s28 }
  0x10   : > { %p49_p0 = scmp.ne.s32.totalorder %s6620_s25, %s6616_s24  ;;  %p40_p1 = scmp.eq.s32.totalorder %s39_s30, 0 }
  0x11   : > { %p50_p2 = scmp.eq.s32.totalorder %s6624_s26, 0  ;;  %p55_p3 = scmp.ne.s32.totalorder %s6616_s24, %s6612_s23 }
  0x12   : > { %p8111_p4 = scmp.eq.s32.totalorder %s6792_s15, 0  ;;  %p394_p7 = scmp.eq.s32.totalorder %s6792_s15, 1 }
  0x13   : > { %s6808_s0 = scalar_select %p40_p1, %s6620_s25, %s42_s29  }
  0x14   : > { %p6810_p5 = por %p50_p2, %p49_p0  ;;  %p6816_p6 = por %p8111_p4, %p55_p3 }
  0x15   : > { %8131 = sst [smem:[#allocation15_spill]] %s6808_s0  ;;  %p400_p8 = scmp.eq.s32.totalorder %s5344_s27, 1 }
  0x16   : > { %s8133_s18 = scalar_select %p6816_p6, 1, 0 }
  0x17   : > { %p5345_p9 = scmp.ge.s32.totalorder %s6624_s26, 1  ;;  %p407_p10 = scmp.lt.s32.totalorder %s6624_s26, 3 }
  0x18   : > { %p6823_p11 = por %p394_p7, %p49_p0  ;;  %p6827_p12 = por %p400_p8, %p55_p3 }
  0x19   : > { %p6831_p13 = pnand %p5345_p9, %p407_p10  ;;  %s6662_s22 = smov [#allocation6]  }
  0x1a   : > { %s8134_s19 = scalar_select %p6823_p11, 1, 0 }
  0x1b   : > { %s8136_s20 = scalar_select %p6827_p12, 1, 0 }
  0x1c   : > { %8135 = sst [smem:[#allocation16_spill]] %s8134_s19  ;;  %p6158_p2 = pneg %p6831_p13 }
  0x1d   : > { %8137 = sst [smem:[#allocation17_spill]] %s8136_s20  ;;  %s420_s27 = sshll.u32 %s6662_s22, 4  ;;  %s421_s27 = int_to_ptr.vmem [resolvable:$true] %s420_s27 }
  0x1e   : > { %s8138_s21 = scalar_select %p6831_p13, 1, 0 }
  0x1f   : > { %p6171_p4 = scmp.lt.s32.totalorder %s6624_s26, 2  ;;  %p8139_p0 = scmp.eq.s32.totalorder %s6792_s15, 0 }
  0x20   : > { %s473_s30 = sand.u32 1, %s6620_s25   ;;  %s6477_s20 = scalar_lea.vmem %s421_s27, 128 }
  0x21   : > { %p6841_p7 = pnand %p6158_p2, %p8139_p0  ;;  %p6848_p3 = pnand %p6171_p4, %p6810_p5 }
  0x22   : > { %s5348_s28 = sshll.u32 %s473_s30, 6  ;;  %p6478_p9 = scmp.ne.s32.totalorder %s421_s27, %s6477_s20 }
  0x23   : > { %p6468_p8 = pneg %p6841_p7  ;;  %p6485_p12 = scmp.lt.s32.totalorder %s421_s27, %s421_s27 }
  0x24   : > { %p6486_p11 = scmp.lt.s32.totalorder %s6477_s20, %s6477_s20 }
  0x25   : > { %p6480_p10 = pnand %p6478_p9, %p6468_p8 }
  0x26   : > { %p6487_p2 = por %p6486_p11, %p6485_p12 }
  0x27   : > { %p6481_p1 = pneg %p6480_p10 }
  0x29   : > { %p6488_p0 = pnand %p6487_p2, %p6481_p1 }
  0x2b   : > { %6491 = shalt.err (!%p6488_p0)
}
  0x2c   : > { %6161 = dma.hbm_to_vmem [thread:$0]  (!%p6841_p7), %s8094_s1, 128, %s421_s27, [#allocation7]  }
  0x2d   : > { %s5480_s25 = sshll.u32 %s6624_s26, 10  ;;  %s477_s23 = scalar_lea.vmem [#allocation3], %s5348_s28 }
  0x2e   : > { %s484_s16 = sshll.u32 %s477_s23, 4  ;;  %s8142_s13 = sld [smem:[#allocation18_spill]]  ;;  %s6865_s16 = int_to_ptr.vmem [resolvable:$true] %s484_s16 }
  0x2f   : > { %s6867_s20 = scalar_lea.sflag [#allocation4], %s473_s30  ;;  %p6494_p5 = pneg %p6848_p3 }
  0x34   : > { %s6863_s12 = scalar_lea.hbm %s8142_s13, %s5480_s25  ;;  %s6497_s27 = scalar_lea.hbm %s8142_s13, 2048 }
  0x35   : > { %s6492_s29 = scalar_lea.hbm %s6863_s12, 1024  ;;  %p6498_p1 = scmp.lt.s32.totalorder %s6863_s12, %s8142_s13 }
  0x36   : > { %p6493_p4 = scmp.ne.s32.totalorder %s6863_s12, %s6492_s29  ;;  %p6499_p7 = scmp.lt.s32.totalorder %s6497_s27, %s6492_s29 }
  0x38   : > { %p6495_p11 = pnand %p6494_p5, %p6493_p4  ;;  %p6500_p8 = por %p6499_p7, %p6498_p1 }
  0x3a   : > { %p6496_p12 = pneg %p6495_p11 }
  0x3c   : > { %p6501_p9 = pnand %p6500_p8, %p6496_p12 }
  0x3e   : > { %6504 = shalt.err (!%p6501_p9)
}
  0x3f   : > { %s6505_s19 = scalar_lea.vmem %s6865_s16, 1024  ;;  %s6663_s30 = smov [#allocation3]  }
  0x40   : > { %p6506_p10 = scmp.ne.s32.totalorder %s6865_s16, %s6505_s19  ;;  %s6510_s22 = sshll.u32 %s6663_s30, 4  ;;  %s6511_s22 = int_to_ptr.vmem [resolvable:$false] %s6510_s22 }
  0x41   : > { %s6512_s17 = scalar_lea.vmem %s6511_s22, 2048  ;;  %p6513_p4 = scmp.lt.s32.totalorder %s6865_s16, %s6511_s22 }
  0x42   : > { %p6508_p2 = pnand %p6506_p10, %p6494_p5  ;;  %p6514_p11 = scmp.lt.s32.totalorder %s6512_s17, %s6505_s19 }
  0x44   : > { %p6509_p0 = pneg %p6508_p2  ;;  %p6515_p6 = por %p6514_p11, %p6513_p4 }
  0x46   : > { %p6516_p13 = pnand %p6515_p6, %p6509_p0 }
  0x48   : > { %6519 = shalt.err (!%p6516_p13)
}
  0x49   : > { %s6664_s29 = smov 128   ;;  %s6665_s28 = smov 8  }
  0x4a   : > { %6165 = dma.hbm_to_vmem [thread:$0]  (!%p6848_p3), %s6863_s12, 1024, %s6865_s16, %s6867_s20, %s6664_s29, %s6664_s29, %s6665_s28  }
  0x4b   : > { %p8143_p5 = scmp.ne.s32.totalorder %s8138_s21, 0 }
  0x4c   : > { %s6891_s23 = sand.u32 (!%p8143_p5), 1, %s6616_s24   ;;  %p8144_p6 = scmp.ne.s32.totalorder (!%p8143_p5), %s8133_s18, 0 }
  0x4d   : > { %496 = sbr.rel (%p8143_p5) target bundleno = 4790 (0x12b6), region = 84  ;;  %s5352_s27 = sshll.u32 (!%p8143_p5), %s6891_s23, 6 }
  0x4e   : > { %s499_s14 = scalar_lea.sflag (!%p8143_p5), [#allocation4], %s6891_s23  ;;  %s502_s25 = scalar_lea.vmem (!%p8143_p5), [#allocation3], %s5352_s27 }
  0x52   : > { %6599 = dma.done.wait (%p8144_p6), %s499_s14, 1024  }
  0x53   : > { %6601 = vsyncadd (%p8144_p6), %s499_s14, 4294966272  ;;  %p8145_p13 = scmp.eq.s32.totalorder %s6792_s15, 0 }
  0x55   : > { %6603 = dma.done.wait (%p8145_p13), [#allocation7], 128   ;;  %p8146_p3 = pmov %p8145_p13 }
  0x56   : > { %v556_v1 = vld [vmem:[%s502_s25] sm:$0xff]  ;;  %v557_v2 = vld [vmem:[%s502_s25 + $0x8] sm:$0xff]  ;;  %v558_v3 = vld [vmem:[%s502_s25 + $0x10] sm:$0xff]  ;;  %s553_s12 = scalar_lea.vmem [#allocation8], %s6891_s23  ;;  %s6920_s16 = smov 0  }
  0x57   : > { %6605 = vsyncadd (%p8146_p3), [#allocation7], 4294967168  ;;  %v559_v4 = vld [vmem:[%s502_s25 + $0x18] sm:$0xff]  ;;  %v560_v5 = vld [vmem:[%s502_s25 + $0x20] sm:$0xff]  ;;  %v564_v7 = vmul.f32 5.656854, %v556_v1 }
  0x58   : > { %v561_v6 = vld [vmem:[%s502_s25 + $0x28] sm:$0xff]  ;;  %v562_v8 = vld [vmem:[%s502_s25 + $0x30] sm:$0xff]  ;;  %v563_v9 = vld [vmem:[%s502_s25 + $0x38] sm:$0xff]  ;;  %v565_v10 = vmul.f32 5.656854, %v557_v2 }
  0x59   : > { %v566_v11 = vmul.f32 5.656854, %v558_v3  ;;  %v567_v12 = vmul.f32 5.656854, %v559_v4  ;;  %v568_v13 = vmul.f32 5.656854, %v560_v5 }
  0x5a   : > { %v569_v14 = vmul.f32 5.656854, %v561_v6  ;;  %v570_v15 = vmul.f32 5.656854, %v562_v8  ;;  %v571_v16 = vmul.f32 5.656854, %v563_v9 }
  0x5b   : > { %v572_v17 = vld [vmem:[#allocation6] sm:$0xff] }
  0x5c   : > { %v573_v18 = vadd.f32 %v572_v17, %v564_v7   ;;  %v574_v19 = vadd.f32 %v572_v17, %v565_v10   ;;  %v575_v20 = vadd.f32 %v572_v17, %v566_v11   ;;  %v576_v21 = vadd.f32 %v572_v17, %v567_v12  }
  0x5d   : > { %v577_v22 = vadd.f32 %v572_v17, %v568_v13   ;;  %v578_v23 = vadd.f32 %v572_v17, %v569_v14   ;;  %v579_v24 = vadd.f32 %v572_v17, %v570_v15   ;;  %v580_v25 = vadd.f32 %v572_v17, %v571_v16  }
  0x5e LB: >> { %vm663_vm0 = vcmask 261120   ;;  %s6950_s0 = sshll.u32 %s6660_s16, 4  ;;  %v641_v26 = vpack.c.bf16 %v6652_v19, %v6656_v18  ;;  %v643_v29 = vpack.c.bf16 %v6636_v23, %v6640_v22  ;;  %v642_v30 = vpack.c.bf16 %v6644_v21, %v6648_v20  ;;  %s602_s22 = scalar_lea.vmem %s8096_s3, %s6660_s16  ;;  %s6660_s16 = sphi %s6920_s16, %s586_s16   ;;  %v6656_v18 = vphi %v573_v18, %v8157_v18   ;;  %v6652_v19 = vphi %v574_v19, %v8156_v19   ;;  %v6648_v20 = vphi %v575_v20, %v8155_v20   ;;  %v6644_v21 = vphi %v576_v21, %v8154_v21   ;;  %v6640_v22 = vphi %v577_v22, %v8153_v22   ;;  %v6636_v23 = vphi %v578_v23, %v8152_v23   ;;  %v6632_v24 = vphi %v579_v24, %v8151_v24   ;;  %v6628_v25 = vphi %v580_v25, %v8150_v25  }
  0x5f   : >> { %s597_s20 = scalar_lea.vmem %s8095_s2, %s6950_s0  ;;  %v644_v31 = vpack.c.bf16 %v6628_v25, %v6632_v24  ;;  %v6666_v32 = vmov 0.0   ;;  %v5360_v33 = vld [vmem:[%s602_s22] ss:$0 sm:$0xff]  ;;  %vm6667_vm1 = vmmov 0   ;;  %s6668_s17 = smov 96   ;;  %vm767_vm2 = vcmask 64512  }
  0x60   : >> { %v6297_v27 = vld [vmem:[%s597_s20 + $0x8] sm:$0xff]   ;;  %5670 = vmatprep.mubr.msk.bf16.mxu0 %vm663_vm0, %v641_v26  ;;  %v6298_v28 = vld [vmem:[%s597_s20] sm:$0xff]   ;;  %5674 = vmatprep.mubr.msk.bf16.mxu1 %vm663_vm0, %v643_v29  ;;  %s6669_s29 = smov 64   ;;  %vm1251_vm3 = vcmask 1043456   ;;  %s6670_s28 = smov 88   ;;  %vm4919_vm4 = vcmask 523264  }
  0x61   : >> { %5666 = vmatprep.subr.bf16.mxu0 %v6297_v27  ;;  %6142 = vmatprep.subr.bf16.mxu1 %v6297_v27  ;;  %s6671_s27 = smov 120   ;;  %s6672_s14 = smov 56  }
  0x62   : >> { %5667 = vmatpush3.bf16.msra.mxu0 %v6297_v27  ;;  %6144 = vmatpush3.bf16.msra.mxu1 %v6297_v27  ;;  %s6673_s25 = smov 80   ;;  %s6674_s18 = smov 112  }
  0x63   : >> { %5668 = vmatprep.subr.bf16.mxu0 %v6298_v28  ;;  %6143 = vmatprep.subr.bf16.mxu1 %v6298_v28  ;;  %s7365_s19 = scalar_lea.vmem %s8097_s4, %s6950_s0  ;;  %s6675_s30 = smov 48  }
  0x64   : >> { %s6676_s22 = smov 72   ;;  %s613_s21 = scalar_lea.vmem %s8099_s6, %s6950_s0 }
  0x65   : >> { %s5484_s20 = sshll.u32 %s6660_s16, 5 }
  0x66   : >> { %5669 = vmatpush3.bf16.msra.mxu0 %v6298_v28  ;;  %6145 = vmatpush3.bf16.msra.mxu1 %v6298_v28 }
  0x67   : >> { %5690 = vmatprep.subr.bf16.mxu0 %v6666_v32  ;;  %5678 = vmatprep.subr.bf16.mxu1 %v6666_v32 }
  0x69   : >> { %5671 = vmatmul.mubr.msk.bf16.vlgmr.msra.gmra.mxu0 %vm663_vm0, %v642_v30  ;;  %5675 = vmatmul.mubr.msk.bf16.vlgmr.msra.gmra.mxu1 %vm663_vm0, %v644_v31 }
  0x6a   : >> { %5692 = vmatprep.mubr.msk.bf16.mxu0 %vm6667_vm1, %v6666_v32  ;;  %5680 = vmatprep.mubr.msk.bf16.mxu1 %vm6667_vm1, %v6666_v32 }
 0x129   : >> { %v5672_v34 = vpop.f32.mrf.mxu0  ;;  %v5676_v35 = vpop.f32.mrf.mxu1 }
 0x12a   : >> { %v719_v36 = vadd.f32 %v5672_v34, %v5360_v33  ;;  %v735_v55 = vadd.f32 %v5676_v35, %v5360_v33 }
 0x12b   : >> { %v710_v37 = vpop.f32.mrf.mxu0  ;;  %v726_v38 = vpop.f32.mrf.mxu1 }
 0x12c   : >> { %v6978_v39 = vpack.c.bf16 %v719_v36, %v719_v36  ;;  %v711_v40 = vadd.f32 %v5360_v33, %v710_v37  ;;  %v727_v48 = vadd.f32 %v5360_v33, %v726_v38  ;;  %v6998_v57 = vpack.c.bf16 %v735_v55, %v735_v55 }
 0x12d   : >> { %v5673_v41 = vpop.f32.mrf.mxu0  ;;  %v5677_v42 = vpop.f32.mrf.mxu1 }
 0x12e   : >> { %v6980_v43 = vpack.c.bf16 %v711_v40, %v711_v40  ;;  %v722_v44 = vadd.f32 %v5673_v41, %v5360_v33  ;;  %862 = vrot.lane.b32.xlu1 %v6978_v39, %s6668_s17  ;;  %v738_v52 = vadd.f32 %v5677_v42, %v5360_v33  ;;  %v6991_v54 = vpack.c.bf16 %v727_v48, %v727_v48 }
 0x12f   : >> { %v713_v45 = vpop.f32.mrf.mxu0  ;;  %v729_v46 = vpop.f32.mrf.mxu1 }
 0x130   : >> { %v6983_v47 = vpack.c.bf16 %v722_v44, %v722_v44  ;;  %v714_v49 = vadd.f32 %v5360_v33, %v713_v45  ;;  %765 = vrot.lane.b32.xlu0 %v6980_v43, %s6668_s17  ;;  %v730_v50 = vadd.f32 %v5360_v33, %v729_v46  ;;  %v6994_v56 = vpack.c.bf16 %v738_v52, %v738_v52 }
 0x132   : >> { %v6986_v51 = vpack.c.bf16 %v714_v49, %v714_v49  ;;  %v6988_v53 = vpack.c.bf16 %v730_v50, %v730_v50  ;;  %910 = vrot.lane.b32.xlu1 %v6983_v47, %s6668_s17 }
 0x134   : >> { %814 = vrot.lane.b32.xlu0 %v6986_v51, %s6668_s17 }
 0x136   : >> { %1006 = vrot.lane.b32.xlu1 %v6988_v53, %s6668_s17 }
 0x138   : >> { %958 = vrot.lane.b32.xlu0 %v6991_v54, %s6668_s17 }
 0x13a   : >> { %1102 = vrot.lane.b32.xlu1 %v6994_v56, %s6668_s17 }
 0x13c   : >> { %1054 = vrot.lane.b32.xlu0 %v6998_v57, %s6668_s17  ;;  %s6677_s17 = smov 104  }
 0x13e   : >> { %1246 = vrot.lane.b32.xlu1 %v6980_v43, %s6669_s29 }
 0x140   : >> { %1295 = vrot.lane.b32.xlu0 %v6986_v51, %s6669_s29 }
 0x142   : >> { %1343 = vrot.lane.b32.xlu1 %v6978_v39, %s6669_s29 }
 0x1a0   : >> { %v863_v58 = vpop.permute.xlu1 %862 }
 0x1a1   : >> { %v868_v59 = vsel %vm767_vm2, %v863_v58, 0 }
 0x1a2   : >> { %5691 = vmatpush3.bf16.xpose.msra.mxu0 %v868_v59  ;;  %v766_v60 = vpop.permute.xlu0 %765 }
 0x1a3   : >> { %v772_v61 = vsel %vm767_vm2, %v766_v60, 0  ;;  %5702 = vmatprep.subr.bf16.mxu0 %v6666_v32 }
 0x1a4   : >> { %5679 = vmatpush3.bf16.xpose.msra.mxu1 %v772_v61  ;;  %v911_v62 = vpop.permute.xlu1 %910 }
 0x1a5   : >> { %5684 = vmatprep.subr.bf16.mxu1 %v6666_v32  ;;  %v916_v6 = vsel %vm767_vm2, %v911_v62, 0 }
 0x1a6   : >> { %v815_v63 = vpop.permute.xlu0 %814 }
 0x1a7   : >> { %v820_v1 = vsel %vm767_vm2, %v815_v63, 0 }
 0x1a8   : >> { %v1007_v3 = vpop.permute.xlu1 %1006 }
 0x1a9   : >> { %5693 = vmatmul.mubr.msk.bf16.vlgmr.msra.gmra.mxu0 %vm767_vm2, %v6978_v39  ;;  %v1012_v9 = vsel %vm767_vm2, %v1007_v3, 0 }
 0x1aa   : >> { %v959_v0 = vpop.permute.xlu0 %958  ;;  %5704 = vmatprep.mubr.msk.bf16.mxu0 %vm6667_vm1, %v6666_v32 }
 0x1ab   : >> { %v964_v2 = vsel %vm767_vm2, %v959_v0, 0  ;;  %5681 = vmatmul.mubr.msk.bf16.vlgmr.msra.gmra.mxu1 %vm767_vm2, %v6980_v43 }
 0x1ac   : >> { %5685 = vmatpush3.bf16.xpose.msra.mxu1 %v820_v1  ;;  %5703 = vmatpush3.bf16.xpose.msra.mxu0 %v964_v2  ;;  %v1103_v5 = vpop.permute.xlu1 %1102 }
 0x1ad   : >> { %5686 = vmatprep.mubr.msk.bf16.mxu1 %vm6667_vm1, %v6666_v32  ;;  %5696 = vmatprep.subr.bf16.mxu1 %v6666_v32  ;;  %v1108_v11 = vsel %vm767_vm2, %v1103_v5, 0 }
 0x1ae   : >> { %5714 = vmatprep.subr.bf16.mxu0 %v6666_v32  ;;  %v1055_v4 = vpop.permute.xlu0 %1054 }
 0x1af   : >> { %v1060_v7 = vsel %vm767_vm2, %v1055_v4, 0 }
 0x1b0   : >> { %v1247_v8 = vpop.permute.xlu1 %1246 }
 0x1b1   : >> { %v1253_v10 = vsel %vm1251_vm3, %v1247_v8, 0 }
 0x1b2   : >> { %v1296_v12 = vpop.permute.xlu0 %1295 }
 0x1b3   : >> { %5687 = vmatmul.mubr.msk.bf16.vlgmr.msra.gmra.mxu1 %vm767_vm2, %v6986_v51  ;;  %5705 = vmatmul.mubr.msk.bf16.vlgmr.msra.gmra.mxu0 %vm767_vm2, %v6991_v54  ;;  %v1301_v13 = vsel %vm1251_vm3, %v1296_v12, 0 }
 0x1b4   : >> { %5697 = vmatpush3.bf16.xpose.msra.mxu1 %v916_v6  ;;  %5715 = vmatpush3.bf16.xpose.msra.mxu0 %v1060_v7  ;;  %v7078_v12 = vpop.permute.xlu1 %1343 }
 0x1b5   : >> { %5698 = vmatprep.mubr.msk.bf16.mxu1 %vm6667_vm1, %v6666_v32  ;;  %5716 = vmatprep.mubr.msk.bf16.mxu0 %vm6667_vm1, %v6666_v32 }
 0x1b6   : >> { %5708 = vmatprep.subr.bf16.mxu1 %v6666_v32  ;;  %5726 = vmatprep.subr.bf16.mxu0 %v6666_v32 }
 0x1bb   : >> { %5699 = vmatmul.mubr.msk.bf16.vlgmr.msra.gmra.mxu1 %vm767_vm2, %v6983_v47  ;;  %5717 = vmatmul.mubr.msk.bf16.vlgmr.msra.gmra.mxu0 %vm767_vm2, %v6998_v57 }
 0x1bc   : >> { %5709 = vmatpush3.bf16.xpose.msra.mxu1 %v1012_v9  ;;  %5727 = vmatpush3.bf16.msra.mxu0 %v1253_v10 }
 0x1bd   : >> { %5710 = vmatprep.mubr.msk.bf16.mxu1 %vm6667_vm1, %v6666_v32  ;;  %5720 = vmatprep.subr.bf16.mxu1 %v6666_v32 }
 0x1be   : >> { %5728 = vmatprep.mubr.msk.bf16.mxu0 %vm6667_vm1, %v6666_v32  ;;  %5738 = vmatprep.subr.bf16.mxu0 %v6666_v32 }
 0x1c3   : >> { %5711 = vmatmul.mubr.msk.bf16.vlgmr.msra.gmra.mxu1 %vm767_vm2, %v6988_v53 }
 0x1c4   : >> { %5721 = vmatpush3.bf16.xpose.msra.mxu1 %v1108_v11  ;;  %5722 = vmatprep.mubr.msk.bf16.mxu1 %vm6667_vm1, %v6666_v32 }
 0x1c5   : >> { %5732 = vmatprep.subr.bf16.mxu1 %v6666_v32 }
 0x1cb   : >> { %5723 = vmatmul.mubr.msk.bf16.vlgmr.msra.gmra.mxu1 %vm767_vm2, %v6994_v56 }
 0x1cc   : >> { %5733 = vmatpush3.bf16.msra.mxu1 %v1301_v13  ;;  %5734 = vmatprep.mubr.msk.bf16.mxu1 %vm6667_vm1, %v6666_v32 }
 0x1cd   : >> { %5744 = vmatprep.subr.bf16.mxu1 %v6666_v32 }
 0x269   : >> { %v904_v14 = vpop.f32.mrf.mxu0 }
 0x26a   : >> { %v1156_v15 = vsel %vm767_vm2, %v904_v14, -inf }
 0x26b   : >> { %v808_v16 = vpop.f32.mrf.mxu1  ;;  %v5694_v17 = vpop.f32.mrf.mxu0  ;;  %1157 = vmax.xlane.f32.xlu0 %v1156_v15 }
 0x26c   : >> { %v1150_v28 = vsel %vm767_vm2, %v808_v16, -inf }
 0x26d   : >> { %v5682_v26 = vpop.f32.mrf.mxu1  ;;  %v907_v27 = vpop.f32.mrf.mxu0 }
 0x26f   : >> { %v811_v29 = vpop.f32.mrf.mxu1  ;;  %v5695_v30 = vpop.f32.mrf.mxu0  ;;  %1151 = vmax.xlane.f32.xlu0 %v1150_v28 }
 0x271   : >> { %v5683_v31 = vpop.f32.mrf.mxu1 }
 0x273   : >> { %v856_v33 = vpop.f32.mrf.mxu1  ;;  %v7062_v34 = vpop.f32.mrf.mxu0 }
 0x274   : >> { %v1162_v35 = vsel %vm767_vm2, %v7062_v34, -inf  ;;  %v1153_v41 = vsel %vm767_vm2, %v856_v33, -inf }
 0x275   : >> { %v5688_v36 = vpop.f32.mrf.mxu1  ;;  %1163 = vmax.xlane.f32.xlu1 %v1162_v35  ;;  %v5706_v37 = vpop.f32.mrf.mxu0 }
 0x277   : >> { %v859_v38 = vpop.f32.mrf.mxu1  ;;  %v1003_v40 = vpop.f32.mrf.mxu0 }
 0x279   : >> { %v5689_v42 = vpop.f32.mrf.mxu1  ;;  %1154 = vmax.xlane.f32.xlu1 %v1153_v41  ;;  %v5707_v44 = vpop.f32.mrf.mxu0 }
 0x27b   : >> { %v952_v45 = vpop.f32.mrf.mxu1  ;;  %v7067_v46 = vpop.f32.mrf.mxu0 }
 0x27c   : >> { %v1159_v48 = vsel %vm767_vm2, %v952_v45, -inf  ;;  %v1168_v49 = vsel %vm767_vm2, %v7067_v46, -inf }
 0x27d   : >> { %v5700_v50 = vpop.f32.mrf.mxu1  ;;  %1160 = vmax.xlane.f32.xlu0 %v1159_v48  ;;  %1169 = vmax.xlane.f32.xlu1 %v1168_v49  ;;  %v5718_v52 = vpop.f32.mrf.mxu0 }
 0x27f   : >> { %v955_v55 = vpop.f32.mrf.mxu1  ;;  %v1099_v58 = vpop.f32.mrf.mxu0 }
 0x281   : >> { %v5701_v59 = vpop.f32.mrf.mxu1  ;;  %v5719_v60 = vpop.f32.mrf.mxu0 }
 0x283   : >> { %v1048_v61 = vpop.f32.mrf.mxu1 }
 0x284   : >> { %v1165_v62 = vsel %vm767_vm2, %v1048_v61, -inf }
 0x285   : >> { %v5712_v63 = vpop.f32.mrf.mxu1  ;;  %1166 = vmax.xlane.f32.xlu0 %v1165_v62 }
 0x287   : >> { %v1051_v0 = vpop.f32.mrf.mxu1 }
 0x289   : >> { %v5713_v1 = vpop.f32.mrf.mxu1 }
 0x28b   : >> { %v1144_v2 = vpop.f32.mrf.mxu1 }
 0x28c   : >> { %v1171_v3 = vsel %vm767_vm2, %v1144_v2, -inf }
 0x28d   : >> { %v5724_v4 = vpop.f32.mrf.mxu1  ;;  %1172 = vmax.xlane.f32.xlu0 %v1171_v3 }
 0x28e   : >> { %1391 = vrot.lane.b32.xlu1 %v6983_v47, %s6669_s29 }
 0x28f   : >> { %v1147_v5 = vpop.f32.mrf.mxu1 }
 0x291   : >> { %v5725_v6 = vpop.f32.mrf.mxu1 }
 0x2a3   : >> { %1439 = vrot.lane.b32.xlu0 %v6991_v54, %s6669_s29 }
 0x2f4   : >> { %v1158_v7 = vpop.xlane.xlu0 %1157 }
 0x2f5   : >> { %v1176_v8 = vsub.f32 %v904_v14, %v1158_v7 }
 0x2f7   : >> { %v1186_v9 = vmul.f32 1.442695, %v1176_v8 }
 0x2f8   : >> { %v1152_v10 = vpop.xlane.xlu0 %1151 }
 0x2f9   : >> { %6305 = vpow2.f32 %v1186_v9  ;;  %v1174_v11 = vsub.f32 %v808_v16, %v1152_v10 }
 0x2fb   : >> { %v1182_v13 = vmul.f32 1.442695, %v1174_v11  ;;  %v1349_v11 = vsel %vm1251_vm3, %v7078_v12, 0 }
 0x2fd   : >> { %6307 = vpow2.f32 %v1182_v13 }
 0x2fe   : >> { %v1164_v15 = vpop.xlane.xlu1 %1163 }
 0x2ff   : >> { %v1178_v48 = vsub.f32 %v7062_v34, %v1164_v15 }
 0x301   : >> { %v1190_v50 = vmul.f32 1.442695, %v1178_v48 }
 0x302   : >> { %v1155_v17 = vpop.xlane.xlu1 %1154 }
 0x303   : >> { %v1175_v26 = vsub.f32 %v856_v33, %v1155_v17 }
 0x305   : >> { %v1184_v27 = vmul.f32 1.442695, %v1175_v26 }
 0x306   : >> { %v7080_v28 = vpop.eup %6305  ;;  %v1161_v29 = vpop.xlane.xlu0 %1160 }
 0x307   : >> { %6309 = vpow2.f32 %v1184_v27  ;;  %v1177_v30 = vsub.f32 %v952_v45, %v1161_v29  ;;  %v1204_v14 = vsel %vm767_vm2, %v7080_v28, 0.0  ;;  %v1170_v49 = vpop.xlane.xlu1 %1169 }
 0x308   : >> { %1205 = vadd.xlane.f32.xlu1 %v1204_v14  ;;  %v1180_v52 = vsub.f32 %v7067_v46, %v1170_v49 }
 0x309   : >> { %v1188_v31 = vmul.f32 1.442695, %v1177_v30 }
 0x30a   : >> { %v7084_v35 = vpop.eup %6307  ;;  %v1194_v55 = vmul.f32 1.442695, %v1180_v52 }
 0x30b   : >> { %v1198_v16 = vsel %vm767_vm2, %v7084_v35, 0.0  ;;  %6311 = vpow2.f32 %v1188_v31  ;;  %v1392_v1 = vpop.permute.xlu1 %1391 }
 0x30c   : >> { %1199 = vadd.xlane.f32.xlu1 %v1198_v16  ;;  %v1397_v14 = vsel %vm1251_vm3, %v1392_v1, 0 }
 0x30e   : >> { %v1167_v36 = vpop.xlane.xlu0 %1166 }
 0x30f   : >> { %v1179_v33 = vsub.f32 %v1048_v61, %v1167_v36 }
 0x311   : >> { %v1192_v37 = vmul.f32 1.442695, %v1179_v33 }
 0x313   : >> { %6313 = vpow2.f32 %v1192_v37 }
 0x314   : >> { %v7088_v38 = vpop.eup %6309  ;;  %6315 = vpow2.f32 %v1190_v50 }
 0x315   : >> { %v1201_v40 = vsel %vm767_vm2, %v7088_v38, 0.0  ;;  %6317 = vpow2.f32 %v1194_v55 }
 0x316   : >> { %1202 = vadd.xlane.f32.xlu0 %v1201_v40  ;;  %v1173_v58 = vpop.xlane.xlu0 %1172 }
 0x317   : >> { %v1181_v60 = vsub.f32 %v1144_v2, %v1173_v58 }
 0x318   : >> { %v7092_v41 = vpop.eup %6311 }
 0x319   : >> { %v1207_v42 = vsel %vm767_vm2, %v7092_v41, 0.0  ;;  %v1196_v34 = vmul.f32 1.442695, %v1181_v60 }
 0x31a   : >> { %1208 = vadd.xlane.f32.xlu0 %v1207_v42  ;;  %v1440_v4 = vpop.permute.xlu0 %1439 }
 0x31b   : >> { %6319 = vpow2.f32 %v1196_v34  ;;  %v1445_v29 = vsel %vm1251_vm3, %v1440_v4, 0 }
 0x31d   : >> { %1487 = vrot.lane.b32.xlu1 %v6988_v53, %s6669_s29 }
 0x320   : >> { %v7098_v44 = vpop.eup %6313 }
 0x321   : >> { %v1213_v45 = vsel %vm767_vm2, %v7098_v44, 0.0  ;;  %v7106_v59 = vpop.eup %6315 }
 0x322   : >> { %1214 = vadd.xlane.f32.xlu0 %v1213_v45  ;;  %v1210_v61 = vsel %vm767_vm2, %v7106_v59, 0.0  ;;  %v7110_v62 = vpop.eup %6317 }
 0x323   : >> { %v1216_v46 = vsel %vm767_vm2, %v7110_v62, 0.0 }
 0x328   : >> { %v7114_v63 = vpop.eup %6319 }
 0x329   : >> { %v1219_v0 = vsel %vm767_vm2, %v7114_v63, 0.0 }
 0x338   : >> { %1535 = vrot.lane.b32.xlu0 %v6998_v57, %s6669_s29 }
 0x341   : >> { %1211 = vadd.xlane.f32.xlu1 %v1210_v61 }
 0x345   : >> { %1217 = vadd.xlane.f32.xlu1 %v1216_v46 }
 0x356   : >> { %1583 = vrot.lane.b32.xlu1 %v6994_v56, %s6669_s29  ;;  %s6678_s29 = smov 40  }
 0x357   : >> { %1220 = vadd.xlane.f32.xlu0 %v1219_v0 }
 0x35a   : >> { %1687 = vrot.lane.b32.xlu1 %v6986_v51, %s6670_s28 }
 0x35e   : >> { %1685 = vrot.lane.b32.xlu1 %v6986_v51, %s6671_s27 }
 0x362   : >> { %1787 = vrot.lane.b32.xlu1 %v6983_v47, %s6670_s28 }
 0x366   : >> { %1785 = vrot.lane.b32.xlu1 %v6983_v47, %s6671_s27 }
 0x36a   : >> { %1887 = vrot.lane.b32.xlu1 %v6988_v53, %s6670_s28 }
 0x36d   : >> { %1637 = vrot.lane.b32.xlu0 %v6980_v43, %s6670_s28 }
 0x36e   : >> { %1885 = vrot.lane.b32.xlu1 %v6988_v53, %s6671_s27 }
 0x371   : >> { %1635 = vrot.lane.b32.xlu0 %v6980_v43, %s6671_s27 }
 0x372   : >> { %1987 = vrot.lane.b32.xlu1 %v6994_v56, %s6670_s28 }
 0x375   : >> { %1737 = vrot.lane.b32.xlu0 %v6978_v39, %s6670_s28 }
 0x376   : >> { %1985 = vrot.lane.b32.xlu1 %v6994_v56, %s6671_s27 }
 0x379   : >> { %1735 = vrot.lane.b32.xlu0 %v6978_v39, %s6671_s27 }
 0x37a   : >> { %2131 = vrot.lane.b32.xlu1 %v6980_v43, %s6672_s14 }
 0x37d   : >> { %1837 = vrot.lane.b32.xlu0 %v6991_v54, %s6670_s28 }
 0x381   : >> { %1835 = vrot.lane.b32.xlu0 %v6991_v54, %s6671_s27 }
 0x385   : >> { %1937 = vrot.lane.b32.xlu0 %v6998_v57, %s6670_s28 }
 0x389   : >> { %1935 = vrot.lane.b32.xlu0 %v6998_v57, %s6671_s27 }
 0x391   : >> { %v1206_v2 = vpop.xlane.xlu1 %1205 }
 0x395   : >> { %v1200_v3 = vpop.xlane.xlu1 %1199 }
 0x396   : >> { %6321 = vrcp.f32 %v1200_v3 }
 0x397   : >> { %6323 = vrcp.f32 %v1206_v2 }
 0x399   : >> { %v1488_v31 = vpop.permute.xlu1 %1487 }
 0x39a   : >> { %v1493_v36 = vsel %vm1251_vm3, %v1488_v31, 0 }
 0x39f   : >> { %v1203_v5 = vpop.xlane.xlu0 %1202 }
 0x3a0   : >> { %6325 = vrcp.f32 %v1203_v5 }
 0x3a3   : >> { %v6322_v6 = vpop.eup %6321  ;;  %v1209_v7 = vpop.xlane.xlu0 %1208 }
 0x3a4   : >> { %v1230_v8 = vmul.f32 %v6322_v6, %v7084_v35  ;;  %6327 = vrcp.f32 %v1209_v7  ;;  %v6324_v10 = vpop.eup %6323 }
 0x3a5   : >> { %v1232_v13 = vmul.f32 %v6324_v10, %v7080_v28 }
 0x3a6   : >> { %v1238_v9 = vpack.c.bf16 %v1230_v8, %v1230_v8 }
 0x3a7   : >> { %v1240_v26 = vpack.c.bf16 %v1232_v13, %v1232_v13 }
 0x3a8   : >> { %5729 = vmatmul.mubr.msk.bf16.vlgmr.msra.gmra.mxu0 %vm767_vm2, %v1238_v9 }
 0x3a9   : >> { %5739 = vmatpush3.bf16.msra.mxu0 %v1349_v11  ;;  %5740 = vmatprep.mubr.msk.bf16.mxu0 %vm6667_vm1, %v6666_v32 }
 0x3aa   : >> { %5750 = vmatprep.subr.bf16.mxu0 %v6666_v32 }
 0x3ab   : >> { %v1215_v15 = vpop.xlane.xlu0 %1214 }
 0x3ac   : >> { %6329 = vrcp.f32 %v1215_v15 }
 0x3ad   : >> { %v6326_v17 = vpop.eup %6325 }
 0x3ae   : >> { %v1231_v27 = vmul.f32 %v6326_v17, %v7088_v38 }
 0x3af   : >> { %v1536_v49 = vpop.permute.xlu0 %1535 }
 0x3b0   : >> { %5741 = vmatmul.mubr.msk.bf16.vlgmr.msra.gmra.mxu0 %vm767_vm2, %v1240_v26  ;;  %v1239_v12 = vpack.c.bf16 %v1231_v27, %v1231_v27  ;;  %v1541_v58 = vsel %vm1251_vm3, %v1536_v49, 0 }
 0x3b1   : >> { %5751 = vmatpush3.bf16.msra.mxu0 %v1445_v29  ;;  %5752 = vmatprep.mubr.msk.bf16.mxu0 %vm6667_vm1, %v6666_v32  ;;  %v6328_v30 = vpop.eup %6327 }
 0x3b2   : >> { %5735 = vmatmul.mubr.msk.bf16.vlgmr.msra.gmra.mxu1 %vm767_vm2, %v1239_v12  ;;  %5762 = vmatprep.subr.bf16.mxu0 %v6666_v32  ;;  %v1233_v28 = vmul.f32 %v6328_v30, %v7092_v41 }
 0x3b3   : >> { %5745 = vmatpush3.bf16.msra.mxu1 %v1397_v14  ;;  %5746 = vmatprep.mubr.msk.bf16.mxu1 %vm6667_vm1, %v6666_v32 }
 0x3b4   : >> { %5756 = vmatprep.subr.bf16.mxu1 %v6666_v32  ;;  %v1241_v35 = vpack.c.bf16 %v1233_v28, %v1233_v28 }
 0x3b9   : >> { %v6330_v16 = vpop.eup %6329 }
 0x3ba   : >> { %5747 = vmatmul.mubr.msk.bf16.vlgmr.msra.gmra.mxu1 %vm767_vm2, %v1241_v35  ;;  %v1235_v33 = vmul.f32 %v6330_v16, %v7098_v44 }
 0x3bb   : >> { %5757 = vmatpush3.bf16.msra.mxu1 %v1493_v36  ;;  %5758 = vmatprep.mubr.msk.bf16.mxu1 %vm6667_vm1, %v6666_v32 }
 0x3bc   : >> { %5768 = vmatprep.subr.bf16.mxu1 %v6666_v32  ;;  %v1243_v37 = vpack.c.bf16 %v1235_v33, %v1235_v33 }
 0x3c2   : >> { %5759 = vmatmul.mubr.msk.bf16.vlgmr.msra.gmra.mxu1 %vm767_vm2, %v1243_v37 }
 0x3c3   : >> { %5770 = vmatprep.mubr.msk.bf16.mxu1 %vm6667_vm1, %v6666_v32 }
 0x3ca   : >> { %v1212_v38 = vpop.xlane.xlu1 %1211 }
 0x3cb   : >> { %6331 = vrcp.f32 %v1212_v38 }
 0x3ce   : >> { %v1218_v40 = vpop.xlane.xlu1 %1217 }
 0x3cf   : >> { %6333 = vrcp.f32 %v1218_v40 }
 0x3d2   : >> { %v1584_v41 = vpop.permute.xlu1 %1583 }
 0x3d3   : >> { %v1589_v42 = vsel %vm1251_vm3, %v1584_v41, 0 }
 0x3d4   : >> { %5769 = vmatpush3.bf16.msra.mxu1 %v1589_v42 }
 0x3d5   : >> { %5780 = vmatprep.subr.bf16.mxu1 %v6666_v32 }
 0x3d6   : >> { %v1688_v45 = vpop.permute.xlu1 %1687 }
 0x3d7   : >> { %v1693_v10 = vsel %vm767_vm2, %v1688_v45, 0 }
 0x3d8   : >> { %v6332_v44 = vpop.eup %6331 }
 0x3d9   : >> { %v1234_v48 = vmul.f32 %v6332_v44, %v7106_v59 }
 0x3da   : >> { %v1686_v50 = vpop.permute.xlu1 %1685 }
 0x3db   : >> { %v1242_v52 = vpack.c.bf16 %v1234_v48, %v1234_v48 }
 0x3dc   : >> { %v6334_v55 = vpop.eup %6333 }
 0x3dd   : >> { %5753 = vmatmul.mubr.msk.bf16.vlgmr.msra.gmra.mxu0 %vm767_vm2, %v1242_v52  ;;  %v1236_v61 = vmul.f32 %v6334_v55, %v7110_v62 }
 0x3de   : >> { %5763 = vmatpush3.bf16.msra.mxu0 %v1541_v58  ;;  %v1788_v60 = vpop.permute.xlu1 %1787  ;;  %5764 = vmatprep.mubr.msk.bf16.mxu0 %vm6667_vm1, %v6666_v32 }
 0x3df   : >> { %5774 = vmatprep.subr.bf16.mxu0 %v6666_v32  ;;  %v1244_v59 = vpack.c.bf16 %v1236_v61, %v1236_v61  ;;  %v1793_v17 = vsel %vm767_vm2, %v1788_v60, 0 }
 0x3e0   : >> { %v1221_v34 = vpop.xlane.xlu0 %1220 }
 0x3e1   : >> { %6335 = vrcp.f32 %v1221_v34 }
 0x3e2   : >> { %v1786_v46 = vpop.permute.xlu1 %1785 }
 0x3e4   : >> { %v1638_v0 = vpop.permute.xlu0 %1637 }
 0x3e5   : >> { %v1643_v1 = vsel %vm767_vm2, %v1638_v0, 0  ;;  %5765 = vmatmul.mubr.msk.bf16.vlgmr.msra.gmra.mxu0 %vm767_vm2, %v1244_v59 }
 0x3e6   : >> { %5775 = vmatpush3.bf16.xpose.msra.mxu0 %v1643_v1  ;;  %5776 = vmatprep.mubr.msk.bf16.mxu0 %vm6667_vm1, %v6666_v32  ;;  %v1888_v3 = vpop.permute.xlu1 %1887 }
 0x3e7   : >> { %5786 = vmatprep.subr.bf16.mxu0 %v6666_v32  ;;  %v1893_v30 = vsel %vm767_vm2, %v1888_v3, 0 }
 0x3e8   : >> { %v1636_v2 = vpop.permute.xlu0 %1635 }
 0x3ea   : >> { %v1886_v7 = vpop.permute.xlu1 %1885 }
 0x3ec   : >> { %v1738_v62 = vpop.permute.xlu0 %1737 }
 0x3ed   : >> { %v1743_v4 = vsel %vm767_vm2, %v1738_v62, 0  ;;  %5777 = vmatmul.mubr.msk.bf16.vlgmr.msra.gmra.mxu0 %vm767_vm2, %v1636_v2 }
 0x3ee   : >> { %v6336_v5 = vpop.eup %6335  ;;  %5787 = vmatpush3.bf16.xpose.msra.mxu0 %v1743_v4  ;;  %5788 = vmatprep.mubr.msk.bf16.mxu0 %vm6667_vm1, %v6666_v32 }
 0x3ef   : >> { %v1237_v6 = vmul.f32 %v6336_v5, %v7114_v63  ;;  %5798 = vmatprep.subr.bf16.mxu0 %v6666_v32  ;;  %v1988_v63 = vpop.permute.xlu1 %1987 }
 0x3f0   : >> { %v1736_v8 = vpop.permute.xlu0 %1735  ;;  %v1993_v31 = vsel %vm767_vm2, %v1988_v63, 0 }
 0x3f1   : >> { %v1245_v9 = vpack.c.bf16 %v1237_v6, %v1237_v6 }
 0x3f3   : >> { %5771 = vmatmul.mubr.msk.bf16.vlgmr.msra.gmra.mxu1 %vm767_vm2, %v1245_v9  ;;  %v1986_v26 = vpop.permute.xlu1 %1985 }
 0x3f4   : >> { %5781 = vmatpush3.bf16.xpose.msra.mxu1 %v1693_v10  ;;  %v1838_v11 = vpop.permute.xlu0 %1837  ;;  %5782 = vmatprep.mubr.msk.bf16.mxu1 %vm6667_vm1, %v6666_v32 }
 0x3f5   : >> { %v1843_v13 = vsel %vm767_vm2, %v1838_v11, 0  ;;  %5789 = vmatmul.mubr.msk.bf16.vlgmr.msra.gmra.mxu0 %vm767_vm2, %v1736_v8  ;;  %5792 = vmatprep.subr.bf16.mxu1 %v6666_v32 }
 0x3f6   : >> { %5799 = vmatpush3.bf16.xpose.msra.mxu0 %v1843_v13  ;;  %5800 = vmatprep.mubr.msk.bf16.mxu0 %vm6667_vm1, %v6666_v32 }
 0x3f7   : >> { %5810 = vmatprep.subr.bf16.mxu0 %v6666_v32  ;;  %v2132_v12 = vpop.permute.xlu1 %2131 }
 0x3f8   : >> { %v1836_v15 = vpop.permute.xlu0 %1835  ;;  %v2137_v28 = vsel %vm1251_vm3, %v2132_v12, 0 }
 0x3fb   : >> { %5783 = vmatmul.mubr.msk.bf16.vlgmr.msra.gmra.mxu1 %vm767_vm2, %v1686_v50 }
 0x3fc   : >> { %5793 = vmatpush3.bf16.xpose.msra.mxu1 %v1793_v17  ;;  %v1938_v27 = vpop.permute.xlu0 %1937  ;;  %5794 = vmatprep.mubr.msk.bf16.mxu1 %vm6667_vm1, %v6666_v32 }
 0x3fd   : >> { %v1943_v29 = vsel %vm767_vm2, %v1938_v27, 0  ;;  %5801 = vmatmul.mubr.msk.bf16.vlgmr.msra.gmra.mxu0 %vm767_vm2, %v1836_v15  ;;  %5804 = vmatprep.subr.bf16.mxu1 %v6666_v32 }
 0x3fe   : >> { %5811 = vmatpush3.bf16.xpose.msra.mxu0 %v1943_v29  ;;  %5812 = vmatprep.mubr.msk.bf16.mxu0 %vm6667_vm1, %v6666_v32 }
 0x3ff   : >> { %5822 = vmatprep.subr.bf16.mxu0 %v6666_v32 }
 0x400   : >> { %v1936_v14 = vpop.permute.xlu0 %1935 }
 0x403   : >> { %5795 = vmatmul.mubr.msk.bf16.vlgmr.msra.gmra.mxu1 %vm767_vm2, %v1786_v46 }
 0x404   : >> { %5805 = vmatpush3.bf16.xpose.msra.mxu1 %v1893_v30  ;;  %5806 = vmatprep.mubr.msk.bf16.mxu1 %vm6667_vm1, %v6666_v32 }
 0x405   : >> { %5813 = vmatmul.mubr.msk.bf16.vlgmr.msra.gmra.mxu0 %vm767_vm2, %v1936_v14  ;;  %5816 = vmatprep.subr.bf16.mxu1 %v6666_v32 }
 0x406   : >> { %5823 = vmatpush3.bf16.msra.mxu0 %v2137_v28  ;;  %5824 = vmatprep.mubr.msk.bf16.mxu0 %vm6667_vm1, %v6666_v32 }
 0x407   : >> { %5834 = vmatprep.subr.bf16.mxu0 %v6666_v32 }
 0x40b   : >> { %5807 = vmatmul.mubr.msk.bf16.vlgmr.msra.gmra.mxu1 %vm767_vm2, %v1886_v7 }
 0x40c   : >> { %5817 = vmatpush3.bf16.xpose.msra.mxu1 %v1993_v31  ;;  %5818 = vmatprep.mubr.msk.bf16.mxu1 %vm6667_vm1, %v6666_v32 }
 0x40d   : >> { %5828 = vmatprep.subr.bf16.mxu1 %v6666_v32 }
 0x413   : >> { %5819 = vmatmul.mubr.msk.bf16.vlgmr.msra.gmra.mxu1 %vm767_vm2, %v1986_v26 }
 0x414   : >> { %5830 = vmatprep.mubr.msk.bf16.mxu1 %vm6667_vm1, %v6666_v32 }
 0x468   : >> { %v7225_v35 = vpop.f32.mrf.mxu0 }
 0x46a   : >> { %v5730_v16 = vpop.f32.mrf.mxu0 }
 0x46c   : >> { %v1292_v36 = vpop.f32.mrf.mxu0 }
 0x46e   : >> { %v5731_v33 = vpop.f32.mrf.mxu0 }
 0x470   : >> { %v7227_v37 = vpop.f32.mrf.mxu0 }
 0x472   : >> { %v7229_v38 = vpop.f32.mrf.mxu1  ;;  %v5742_v40 = vpop.f32.mrf.mxu0 }
 0x473   : >> { %v1631_v41 = vpack.c.bf16 %v7229_v38, %v7225_v35 }
 0x474   : >> { %v5736_v42 = vpop.f32.mrf.mxu1  ;;  %v1388_v45 = vpop.f32.mrf.mxu0 }
 0x476   : >> { %v1340_v44 = vpop.f32.mrf.mxu1  ;;  %v5743_v48 = vpop.f32.mrf.mxu0 }
 0x478   : >> { %v5737_v49 = vpop.f32.mrf.mxu1 }
 0x47a   : >> { %v7233_v50 = vpop.f32.mrf.mxu1 }
 0x47b   : >> { %v1632_v52 = vpack.c.bf16 %v7233_v50, %v7227_v37 }
 0x47c   : >> { %v5748_v55 = vpop.f32.mrf.mxu1 }
 0x47e   : >> { %v1436_v58 = vpop.f32.mrf.mxu1 }
 0x480   : >> { %v5749_v60 = vpop.f32.mrf.mxu1 }
 0x482   : >> { %v7237_v61 = vpop.f32.mrf.mxu1 }
 0x484   : >> { %v5760_v34 = vpop.f32.mrf.mxu1 }
 0x486   : >> { %v1532_v59 = vpop.f32.mrf.mxu1 }
 0x488   : >> { %v5761_v46 = vpop.f32.mrf.mxu1 }
 0x49d   : >> { %v7239_v0 = vpop.f32.mrf.mxu0 }
 0x49e   : >> { %v1633_v1 = vpack.c.bf16 %v7237_v61, %v7239_v0 }
 0x49f   : >> { %v5754_v2 = vpop.f32.mrf.mxu0 }
 0x4a1   : >> { %v1484_v3 = vpop.f32.mrf.mxu0 }
 0x4a3   : >> { %v5755_v62 = vpop.f32.mrf.mxu0 }
 0x4a5   : >> { %v7243_v4 = vpop.f32.mrf.mxu0 }
 0x4a7   : >> { %v5766_v5 = vpop.f32.mrf.mxu0 }
 0x4a9   : >> { %v1580_v6 = vpop.f32.mrf.mxu0 }
 0x4ab   : >> { %v5767_v7 = vpop.f32.mrf.mxu0 }
 0x4ad   : >> { %v1679_v8 = vpop.f32.mrf.mxu0 }
 0x4ae   : >> { %v2035_v9 = vsel %vm767_vm2, %v1679_v8, -inf }
 0x4af   : >> { %2036 = vmax.xlane.f32.xlu0 %v2035_v9  ;;  %v5778_v10 = vpop.f32.mrf.mxu0 }
 0x4b1   : >> { %v1682_v11 = vpop.f32.mrf.mxu0 }
 0x4b3   : >> { %v7246_v13 = vpop.f32.mrf.mxu1  ;;  %v5779_v63 = vpop.f32.mrf.mxu0 }
 0x4b4   : >> { %v1634_v15 = vpack.c.bf16 %v7246_v13, %v7243_v4 }
 0x4b5   : >> { %v5772_v17 = vpop.f32.mrf.mxu1  ;;  %v1779_v26 = vpop.f32.mrf.mxu0 }
 0x4b6   : >> { %v2041_v27 = vsel %vm767_vm2, %v1779_v26, -inf }
 0x4b7   : >> { %v1628_v29 = vpop.f32.mrf.mxu1  ;;  %2042 = vmax.xlane.f32.xlu0 %v2041_v27  ;;  %v5790_v12 = vpop.f32.mrf.mxu0 }
 0x4b9   : >> { %v5773_v30 = vpop.f32.mrf.mxu1  ;;  %v1782_v14 = vpop.f32.mrf.mxu0 }
 0x4bb   : >> { %v1729_v28 = vpop.f32.mrf.mxu1  ;;  %v5791_v31 = vpop.f32.mrf.mxu0 }
 0x4bc   : >> { %v2038_v16 = vsel %vm767_vm2, %v1729_v28, -inf }
 0x4bd   : >> { %2039 = vmax.xlane.f32.xlu1 %v2038_v16  ;;  %v5784_v36 = vpop.f32.mrf.mxu1  ;;  %v7252_v33 = vpop.f32.mrf.mxu0 }
 0x4be   : >> { %v2047_v45 = vsel %vm767_vm2, %v7252_v33, -inf }
 0x4bf   : >> { %v1732_v40 = vpop.f32.mrf.mxu1  ;;  %v5802_v42 = vpop.f32.mrf.mxu0 }
 0x4c1   : >> { %v5785_v44 = vpop.f32.mrf.mxu1  ;;  %2048 = vmax.xlane.f32.xlu1 %v2047_v45  ;;  %v1882_v48 = vpop.f32.mrf.mxu0 }
 0x4c3   : >> { %v1829_v49 = vpop.f32.mrf.mxu1  ;;  %v5803_v55 = vpop.f32.mrf.mxu0 }
 0x4c4   : >> { %v2044_v58 = vsel %vm767_vm2, %v1829_v49, -inf }
 0x4c5   : >> { %v5796_v60 = vpop.f32.mrf.mxu1  ;;  %2045 = vmax.xlane.f32.xlu0 %v2044_v58  ;;  %v7257_v34 = vpop.f32.mrf.mxu0 }
 0x4c6   : >> { %v2053_v59 = vsel %vm767_vm2, %v7257_v34, -inf }
 0x4c7   : >> { %v1832_v46 = vpop.f32.mrf.mxu1  ;;  %2054 = vmax.xlane.f32.xlu1 %v2053_v59  ;;  %v5814_v2 = vpop.f32.mrf.mxu0 }
 0x4c9   : >> { %v5797_v3 = vpop.f32.mrf.mxu1  ;;  %v1982_v62 = vpop.f32.mrf.mxu0 }
 0x4cb   : >> { %v1929_v5 = vpop.f32.mrf.mxu1  ;;  %v5815_v6 = vpop.f32.mrf.mxu0 }
 0x4cc   : >> { %v2050_v7 = vsel %vm767_vm2, %v1929_v5, -inf }
 0x4cd   : >> { %v5808_v9 = vpop.f32.mrf.mxu1  ;;  %2051 = vmax.xlane.f32.xlu0 %v2050_v7 }
 0x4cf   : >> { %v1932_v10 = vpop.f32.mrf.mxu1 }
 0x4d1   : >> { %v5809_v11 = vpop.f32.mrf.mxu1 }
 0x4d3   : >> { %v2029_v63 = vpop.f32.mrf.mxu1 }
 0x4d4   : >> { %v2056_v17 = vsel %vm767_vm2, %v2029_v63, -inf }
 0x4d5   : >> { %v5820_v27 = vpop.f32.mrf.mxu1  ;;  %2057 = vmax.xlane.f32.xlu0 %v2056_v17 }
 0x4d7   : >> { %v2032_v29 = vpop.f32.mrf.mxu1 }
 0x4d8   : >> { %2227 = vrot.lane.b32.xlu1 %v6978_v39, %s6672_s14 }
 0x4d9   : >> { %v5821_v12 = vpop.f32.mrf.mxu1 }
 0x4dc   : >> { %2275 = vrot.lane.b32.xlu1 %v6983_v47, %s6672_s14 }
 0x4eb   : >> { %2179 = vrot.lane.b32.xlu0 %v6986_v51, %s6672_s14 }
 0x538   : >> { %v2037_v30 = vpop.xlane.xlu0 %2036 }
 0x539   : >> { %v2059_v14 = vsub.f32 %v1679_v8, %v2037_v30 }
 0x53b   : >> { %v2067_v31 = vmul.f32 1.442695, %v2059_v14 }
 0x53d   : >> { %6337 = vpow2.f32 %v2067_v31 }
 0x540   : >> { %v2043_v16 = vpop.xlane.xlu0 %2042 }
 0x541   : >> { %v2061_v36 = vsub.f32 %v1779_v26, %v2043_v16 }
 0x543   : >> { %v2071_v40 = vmul.f32 1.442695, %v2061_v36 }
 0x545   : >> { %6339 = vpow2.f32 %v2071_v40 }
 0x546   : >> { %v2040_v42 = vpop.xlane.xlu1 %2039 }
 0x547   : >> { %v2060_v45 = vsub.f32 %v1729_v28, %v2040_v42 }
 0x549   : >> { %v2069_v44 = vmul.f32 1.442695, %v2060_v45 }
 0x54a   : >> { %v7269_v48 = vpop.eup %6337  ;;  %v2049_v9 = vpop.xlane.xlu1 %2048 }
 0x54b   : >> { %6341 = vpow2.f32 %v2069_v44  ;;  %v2083_v55 = vsel %vm767_vm2, %v7269_v48, 0.0  ;;  %v2063_v10 = vsub.f32 %v7252_v33, %v2049_v9 }
 0x54c   : >> { %2084 = vadd.xlane.f32.xlu1 %v2083_v55 }
 0x54d   : >> { %v2075_v17 = vmul.f32 1.442695, %v2063_v10 }
 0x54e   : >> { %v2046_v58 = vpop.xlane.xlu0 %2045 }
 0x54f   : >> { %v2062_v60 = vsub.f32 %v1829_v49, %v2046_v58 }
 0x550   : >> { %v2055_v11 = vpop.xlane.xlu1 %2054 }
 0x551   : >> { %v2073_v59 = vmul.f32 1.442695, %v2062_v60  ;;  %v2065_v27 = vsub.f32 %v7257_v34, %v2055_v11 }
 0x552   : >> { %v7273_v8 = vpop.eup %6339 }
 0x553   : >> { %6343 = vpow2.f32 %v2073_v59  ;;  %v2089_v26 = vsel %vm767_vm2, %v7273_v8, 0.0  ;;  %v2079_v29 = vmul.f32 1.442695, %v2065_v27 }
 0x554   : >> { %2090 = vadd.xlane.f32.xlu1 %v2089_v26  ;;  %6345 = vpow2.f32 %v2075_v17  ;;  %v2228_v45 = vpop.permute.xlu1 %2227 }
 0x555   : >> { %6347 = vpow2.f32 %v2079_v29 }
 0x556   : >> { %v2052_v2 = vpop.xlane.xlu0 %2051 }
 0x557   : >> { %v2064_v12 = vsub.f32 %v1929_v5, %v2052_v2  ;;  %v2233_v2 = vsel %vm1251_vm3, %v2228_v45, 0 }
 0x558   : >> { %v7277_v46 = vpop.eup %6341  ;;  %v2276_v44 = vpop.permute.xlu1 %2275 }
 0x559   : >> { %v2086_v28 = vsel %vm767_vm2, %v7277_v46, 0.0  ;;  %v2077_v30 = vmul.f32 1.442695, %v2064_v12  ;;  %v2281_v27 = vsel %vm1251_vm3, %v2276_v44, 0 }
 0x55a   : >> { %2087 = vadd.xlane.f32.xlu0 %v2086_v28 }
 0x55b   : >> { %6349 = vpow2.f32 %v2077_v30 }
 0x55e   : >> { %v2058_v3 = vpop.xlane.xlu0 %2057 }
 0x55f   : >> { %v2066_v14 = vsub.f32 %v2029_v63, %v2058_v3 }
 0x560   : >> { %v7281_v62 = vpop.eup %6343 }
 0x561   : >> { %v2092_v49 = vsel %vm767_vm2, %v7281_v62, 0.0  ;;  %v7293_v31 = vpop.eup %6345  ;;  %v2081_v16 = vmul.f32 1.442695, %v2066_v14 }
 0x562   : >> { %2093 = vadd.xlane.f32.xlu0 %v2092_v49  ;;  %v2180_v6 = vpop.permute.xlu0 %2179  ;;  %v2095_v33 = vsel %vm767_vm2, %v7293_v31, 0.0  ;;  %v7297_v36 = vpop.eup %6347 }
 0x563   : >> { %v2185_v7 = vsel %vm1251_vm3, %v2180_v6, 0  ;;  %6351 = vpow2.f32 %v2081_v16  ;;  %v2101_v34 = vsel %vm767_vm2, %v7297_v36, 0.0 }
 0x564   : >> { %5829 = vmatpush3.bf16.msra.mxu1 %v2185_v7 }
 0x565   : >> { %2371 = vrot.lane.b32.xlu1 %v6988_v53, %s6672_s14  ;;  %5840 = vmatprep.subr.bf16.mxu1 %v6666_v32 }
 0x568   : >> { %v7301_v40 = vpop.eup %6349 }
 0x569   : >> { %v2098_v5 = vsel %vm767_vm2, %v7301_v40, 0.0 }
 0x570   : >> { %v7305_v63 = vpop.eup %6351 }
 0x571   : >> { %v2104_v42 = vsel %vm767_vm2, %v7305_v63, 0.0 }
 0x578   : >> { %2323 = vrot.lane.b32.xlu0 %v6991_v54, %s6672_s14 }
 0x589   : >> { %2096 = vadd.xlane.f32.xlu1 %v2095_v33 }
 0x58d   : >> { %2102 = vadd.xlane.f32.xlu1 %v2101_v34 }
 0x597   : >> { %2099 = vadd.xlane.f32.xlu0 %v2098_v5 }
 0x59b   : >> { %2105 = vadd.xlane.f32.xlu0 %v2104_v42 }
 0x59e   : >> { %2467 = vrot.lane.b32.xlu1 %v6994_v56, %s6672_s14 }
 0x5a2   : >> { %2731 = vrot.lane.b32.xlu1 %v6986_v51, %s6673_s25 }
 0x5a6   : >> { %2729 = vrot.lane.b32.xlu1 %v6986_v51, %s6674_s18 }
 0x5aa   : >> { %2831 = vrot.lane.b32.xlu1 %v6983_v47, %s6673_s25 }
 0x5ae   : >> { %2829 = vrot.lane.b32.xlu1 %v6983_v47, %s6674_s18 }
 0x5b1   : >> { %2419 = vrot.lane.b32.xlu0 %v6998_v57, %s6672_s14  ;;  %s610_s14 = scalar_lea.vmem %s8098_s5, %s6660_s16 }
 0x5b2   : >> { %2931 = vrot.lane.b32.xlu1 %v6988_v53, %s6673_s25 }
 0x5b5   : >> { %2681 = vrot.lane.b32.xlu0 %v6980_v43, %s6673_s25 }
 0x5b6   : >> { %2929 = vrot.lane.b32.xlu1 %v6988_v53, %s6674_s18 }
 0x5b9   : >> { %2679 = vrot.lane.b32.xlu0 %v6980_v43, %s6674_s18 }
 0x5ba   : >> { %3031 = vrot.lane.b32.xlu1 %v6994_v56, %s6673_s25 }
 0x5bd   : >> { %2781 = vrot.lane.b32.xlu0 %v6978_v39, %s6673_s25 }
 0x5be   : >> { %3029 = vrot.lane.b32.xlu1 %v6994_v56, %s6674_s18 }
 0x5c1   : >> { %2779 = vrot.lane.b32.xlu0 %v6978_v39, %s6674_s18 }
 0x5c5   : >> { %2881 = vrot.lane.b32.xlu0 %v6991_v54, %s6673_s25 }
 0x5c9   : >> { %2879 = vrot.lane.b32.xlu0 %v6991_v54, %s6674_s18 }
 0x5cd   : >> { %2981 = vrot.lane.b32.xlu0 %v6998_v57, %s6673_s25 }
 0x5d1   : >> { %2979 = vrot.lane.b32.xlu0 %v6998_v57, %s6674_s18 }
 0x5d5   : >> { %v2085_v55 = vpop.xlane.xlu1 %2084 }
 0x5d6   : >> { %6353 = vrcp.f32 %v2085_v55 }
 0x5dd   : >> { %v2091_v58 = vpop.xlane.xlu1 %2090 }
 0x5de   : >> { %6355 = vrcp.f32 %v2091_v58 }
 0x5e1   : >> { %v2372_v12 = vpop.permute.xlu1 %2371 }
 0x5e3   : >> { %v6354_v60 = vpop.eup %6353  ;;  %v2088_v59 = vpop.xlane.xlu0 %2087 }
 0x5e4   : >> { %6357 = vrcp.f32 %v2088_v59  ;;  %v2115_v26 = vmul.f32 %v6354_v60, %v7269_v48 }
 0x5e6   : >> { %v2123_v28 = vpack.c.bf16 %v2115_v26, %v2115_v26 }
 0x5e8   : >> { %5825 = vmatmul.mubr.msk.bf16.vlgmr.msra.gmra.mxu0 %vm767_vm2, %v2123_v28 }
 0x5e9   : >> { %5835 = vmatpush3.bf16.msra.mxu0 %v2233_v2  ;;  %5836 = vmatprep.mubr.msk.bf16.mxu0 %vm6667_vm1, %v6666_v32  ;;  %v606_v2 = vld [vmem:[%s7365_s19] sm:$0xf] }
 0x5ea   : >> { %5846 = vmatprep.subr.bf16.mxu0 %v6666_v32 }
 0x5eb   : >> { %v6356_v3 = vpop.eup %6355  ;;  %v2094_v49 = vpop.xlane.xlu0 %2093 }
 0x5ec   : >> { %6359 = vrcp.f32 %v2094_v49  ;;  %v2117_v6 = vmul.f32 %v6356_v3, %v7273_v8 }
 0x5ee   : >> { %v2125_v7 = vpack.c.bf16 %v2117_v6, %v2117_v6  ;;  %v2612_v6 = vsel %vm1251_vm3, %v606_v2, 0 }
 0x5ef   : >> { %v2324_v9 = vpop.permute.xlu0 %2323 }
 0x5f0   : >> { %v2329_v48 = vsel %vm1251_vm3, %v2324_v9, 0  ;;  %5837 = vmatmul.mubr.msk.bf16.vlgmr.msra.gmra.mxu0 %vm767_vm2, %v2125_v7  ;;  %v607_v9 = vld [vmem:[%s7365_s19 + $0x4] sm:$0xf] }
 0x5f1   : >> { %v6358_v10 = vpop.eup %6357  ;;  %5847 = vmatpush3.bf16.msra.mxu0 %v2329_v48  ;;  %5848 = vmatprep.mubr.msk.bf16.mxu0 %vm6667_vm1, %v6666_v32 }
 0x5f2   : >> { %v2116_v11 = vmul.f32 %v6358_v10, %v7277_v46  ;;  %5858 = vmatprep.subr.bf16.mxu0 %v6666_v32  ;;  %v2377_v46 = vsel %vm1251_vm3, %v2372_v12, 0 }
 0x5f4   : >> { %v2124_v17 = vpack.c.bf16 %v2116_v11, %v2116_v11 }
 0x5f6   : >> { %5831 = vmatmul.mubr.msk.bf16.vlgmr.msra.gmra.mxu1 %vm767_vm2, %v2124_v17 }
 0x5f7   : >> { %5841 = vmatpush3.bf16.msra.mxu1 %v2281_v27  ;;  %5842 = vmatprep.mubr.msk.bf16.mxu1 %vm6667_vm1, %v6666_v32 }
 0x5f8   : >> { %5852 = vmatprep.subr.bf16.mxu1 %v6666_v32 }
 0x5f9   : >> { %v6360_v8 = vpop.eup %6359 }
 0x5fa   : >> { %v2118_v29 = vmul.f32 %v6360_v8, %v7281_v62 }
 0x5fc   : >> { %v2126_v30 = vpack.c.bf16 %v2118_v29, %v2118_v29 }
 0x5fe   : >> { %5843 = vmatmul.mubr.msk.bf16.vlgmr.msra.gmra.mxu1 %vm767_vm2, %v2126_v30 }
 0x5ff   : >> { %5853 = vmatpush3.bf16.msra.mxu1 %v2377_v46  ;;  %5854 = vmatprep.mubr.msk.bf16.mxu1 %vm6667_vm1, %v6666_v32 }
 0x600   : >> { %5864 = vmatprep.subr.bf16.mxu1 %v6666_v32 }
 0x612   : >> { %v2097_v14 = vpop.xlane.xlu1 %2096 }
 0x613   : >> { %6361 = vrcp.f32 %v2097_v14 }
 0x616   : >> { %v2103_v16 = vpop.xlane.xlu1 %2102 }
 0x617   : >> { %6363 = vrcp.f32 %v2103_v16 }
 0x61a   : >> { %v2468_v26 = vpop.permute.xlu1 %2467 }
 0x61b   : >> { %v2473_v3 = vsel %vm1251_vm3, %v2468_v26, 0 }
 0x61e   : >> { %v2732_v7 = vpop.permute.xlu1 %2731 }
 0x61f   : >> { %v2737_v10 = vsel %vm767_vm2, %v2732_v7, 0 }
 0x620   : >> { %v6362_v33 = vpop.eup %6361  ;;  %v2100_v34 = vpop.xlane.xlu0 %2099 }
 0x621   : >> { %6365 = vrcp.f32 %v2100_v34  ;;  %v2119_v62 = vmul.f32 %v6362_v33, %v7293_v31 }
 0x622   : >> { %v2730_v48 = vpop.permute.xlu1 %2729 }
 0x623   : >> { %v2127_v5 = vpack.c.bf16 %v2119_v62, %v2119_v62 }
 0x624   : >> { %v6364_v42 = vpop.eup %6363  ;;  %v2106_v45 = vpop.xlane.xlu0 %2105 }
 0x625   : >> { %6367 = vrcp.f32 %v2106_v45  ;;  %5849 = vmatmul.mubr.msk.bf16.vlgmr.msra.gmra.mxu0 %vm767_vm2, %v2127_v5  ;;  %v2121_v44 = vmul.f32 %v6364_v42, %v7297_v36 }
 0x626   : >> { %5860 = vmatprep.mubr.msk.bf16.mxu0 %vm6667_vm1, %v6666_v32  ;;  %v2832_v35 = vpop.permute.xlu1 %2831 }
 0x627   : >> { %v2129_v60 = vpack.c.bf16 %v2121_v44, %v2121_v44  ;;  %v2837_v38 = vsel %vm767_vm2, %v2832_v35, 0 }
 0x628   : >> { %v2420_v55 = vpop.permute.xlu0 %2419 }
 0x629   : >> { %v2425_v58 = vsel %vm1251_vm3, %v2420_v55, 0 }
 0x62a   : >> { %5859 = vmatpush3.bf16.msra.mxu0 %v2425_v58  ;;  %v2830_v37 = vpop.permute.xlu1 %2829 }
 0x62b   : >> { %6146 = vmatprep.subr.msk.bf16.mxu0 %vm1251_vm3, %v607_v9 }
 0x62c   : >> { %v2682_v33 = vpop.permute.xlu0 %2681 }
 0x62d   : >> { %5861 = vmatmul.mubr.msk.bf16.vlgmr.msra.gmra.mxu0 %vm767_vm2, %v2129_v60  ;;  %v2687_v42 = vsel %vm767_vm2, %v2682_v33, 0 }
 0x62e   : >> { %v6366_v59 = vpop.eup %6365 }
 0x62f   : >> { %v2120_v31 = vmul.f32 %v6366_v59, %v7301_v40 }
 0x631   : >> { %v2128_v28 = vpack.c.bf16 %v2120_v31, %v2120_v31 }
 0x632   : >> { %v6368_v36 = vpop.eup %6367 }
 0x633   : >> { %5855 = vmatmul.mubr.msk.bf16.vlgmr.msra.gmra.mxu1 %vm767_vm2, %v2128_v28  ;;  %v2122_v40 = vmul.f32 %v6368_v36, %v7305_v63  ;;  %v2532_v63 = vsel %vm1251_vm3, %v607_v9, 0 }
 0x634   : >> { %5865 = vmatpush3.bf16.msra.mxu1 %v2473_v3  ;;  %5866 = vmatprep.mubr.msk.bf16.mxu1 %vm6667_vm1, %v6666_v32 }
 0x635   : >> { %6147 = vmatprep.subr.msk.bf16.mxu1 %vm1251_vm3, %v606_v2  ;;  %v2130_v49 = vpack.c.bf16 %v2122_v40, %v2122_v40  ;;  %5871 = vmatpush3.bf16.msra.mxu0 %v2532_v63  ;;  %v2680_v40 = vpop.permute.xlu0 %2679 }
 0x636   : >> { %5890 = vmatprep.subr.bf16.mxu0 %v6666_v32 }
 0x639   : >> { %v2782_v9 = vpop.permute.xlu0 %2781 }
 0x63b   : >> { %5867 = vmatmul.mubr.msk.bf16.vlgmr.msra.gmra.mxu1 %vm767_vm2, %v2130_v49 }
 0x63c   : >> { %5882 = vmatprep.mubr.msk.bf16.mxu1 %vm767_vm2, %v1631_v41  ;;  %5881 = vmatpush3.bf16.msra.mxu1 %v2612_v6  ;;  %v2932_v41 = vpop.permute.xlu1 %2931 }
 0x63d   : >> { %5896 = vmatprep.subr.bf16.mxu1 %v6666_v32 }
 0x640   : >> { %v2930_v50 = vpop.permute.xlu1 %2929 }
 0x643   : >> { %5883 = vmatmul.mubr.msk.bf16.vlgmr.msra.gmra.mxu1 %vm767_vm2, %v1632_v52  ;;  %v2937_v52 = vsel %vm767_vm2, %v2932_v41, 0 }
 0x644   : >> { %5897 = vmatpush3.bf16.xpose.msra.mxu1 %v2737_v10  ;;  %5886 = vmatprep.mubr.msk.bf16.mxu1 %vm767_vm2, %v1633_v1  ;;  %v3032_v61 = vpop.permute.xlu1 %3031 }
 0x645   : >> { %5908 = vmatprep.subr.bf16.mxu1 %v6666_v32  ;;  %v3037_v0 = vsel %vm767_vm2, %v3032_v61, 0 }
 0x648   : >> { %v3030_v1 = vpop.permute.xlu1 %3029 }
 0x64b   : >> { %5887 = vmatmul.mubr.msk.bf16.gmra.mxu1 %vm767_vm2, %v1634_v15 }
 0x64c   : >> { %5898 = vmatprep.mubr.msk.bf16.mxu1 %vm6667_vm1, %v6666_v32 }
 0x653   : >> { %5899 = vmatmul.mubr.msk.bf16.vlgmr.msra.gmra.mxu1 %vm767_vm2, %v2730_v48 }
 0x654   : >> { %5909 = vmatpush3.bf16.xpose.msra.mxu1 %v2837_v38  ;;  %5910 = vmatprep.mubr.msk.bf16.mxu1 %vm6667_vm1, %v6666_v32 }
 0x655   : >> { %5920 = vmatprep.subr.bf16.mxu1 %v6666_v32 }
 0x65b   : >> { %5911 = vmatmul.mubr.msk.bf16.vlgmr.msra.gmra.mxu1 %vm767_vm2, %v2830_v37  ;;  %v2780_v37 = vpop.permute.xlu0 %2779 }
 0x65c   : >> { %5921 = vmatpush3.bf16.xpose.msra.mxu1 %v2937_v52  ;;  %5922 = vmatprep.mubr.msk.bf16.mxu1 %vm6667_vm1, %v6666_v32  ;;  %v2787_v52 = vsel %vm767_vm2, %v2782_v9, 0 }
 0x65d   : >> { %5932 = vmatprep.subr.bf16.mxu1 %v6666_v32 }
 0x65f   : >> { %v2882_v61 = vpop.permute.xlu0 %2881 }
 0x663   : >> { %5923 = vmatmul.mubr.msk.bf16.vlgmr.msra.gmra.mxu1 %vm767_vm2, %v2930_v50 }
 0x664   : >> { %5933 = vmatpush3.bf16.xpose.msra.mxu1 %v3037_v0  ;;  %5934 = vmatprep.mubr.msk.bf16.mxu1 %vm6667_vm1, %v6666_v32 }
 0x665   : >> { %5944 = vmatprep.subr.bf16.mxu1 %v6666_v32 }
 0x66b   : >> { %5935 = vmatmul.mubr.msk.bf16.vlgmr.msra.gmra.mxu1 %vm767_vm2, %v3030_v1 }
 0x66c   : >> { %5946 = vmatprep.mubr.msk.bf16.mxu1 %vm6667_vm1, %v6666_v32 }
 0x6a8   : >> { %v2173_v4 = vpop.f32.mrf.mxu0 }
 0x6aa   : >> { %v5826_v13 = vpop.f32.mrf.mxu0 }
 0x6ab   : >> { %v2880_v13 = vpop.permute.xlu0 %2879 }
 0x6ac   : >> { %v2176_v15 = vpop.f32.mrf.mxu0 }
 0x6ae   : >> { %v5827_v11 = vpop.f32.mrf.mxu0 }
 0x6af   : >> { %v2887_v11 = vsel %vm767_vm2, %v2882_v61, 0 }
 0x6b0   : >> { %v2269_v17 = vpop.f32.mrf.mxu0 }
 0x6b2   : >> { %v5838_v27 = vpop.f32.mrf.mxu0 }
 0x6b4   : >> { %v2272_v8 = vpop.f32.mrf.mxu0 }
 0x6b5   : >> { %v2982_v8 = vpop.permute.xlu0 %2981 }
 0x6b6   : >> { %v2221_v29 = vpop.f32.mrf.mxu1  ;;  %v5839_v12 = vpop.f32.mrf.mxu0 }
 0x6b7   : >> { %v2515_v30 = vpack.c.bf16 %v2221_v29, %v2173_v4 }
 0x6b8   : >> { %v5832_v46 = vpop.f32.mrf.mxu1 }
 0x6b9   : >> { %5872 = vmatprep.mubr.msk.bf16.mxu0 %vm767_vm2, %v2515_v30  ;;  %v2987_v46 = vsel %vm767_vm2, %v2982_v8, 0 }
 0x6ba   : >> { %v2224_v14 = vpop.f32.mrf.mxu1 }
 0x6bc   : >> { %v5833_v16 = vpop.f32.mrf.mxu1 }
 0x6be   : >> { %v2317_v34 = vpop.f32.mrf.mxu1 }
 0x6bf   : >> { %v2516_v62 = vpack.c.bf16 %v2317_v34, %v2269_v17  ;;  %v2980_v34 = vpop.permute.xlu0 %2979 }
 0x6c0   : >> { %v5844_v5 = vpop.f32.mrf.mxu1 }
 0x6c1   : >> { %5873 = vmatmul.mubr.msk.bf16.vlgmr.msra.gmra.mxu0 %vm767_vm2, %v2516_v62 }
 0x6c2   : >> { %5891 = vmatpush3.bf16.xpose.msra.mxu0 %v2687_v42  ;;  %v2320_v45 = vpop.f32.mrf.mxu1 }
 0x6c3   : >> { %5902 = vmatprep.subr.bf16.mxu0 %v6666_v32 }
 0x6c4   : >> { %v5845_v44 = vpop.f32.mrf.mxu1 }
 0x6e5   : >> { %v2365_v55 = vpop.f32.mrf.mxu0 }
 0x6e7   : >> { %v5850_v58 = vpop.f32.mrf.mxu0 }
 0x6e9   : >> { %v2368_v60 = vpop.f32.mrf.mxu0 }
 0x6eb   : >> { %v5851_v59 = vpop.f32.mrf.mxu0 }
 0x6ed   : >> { %v2461_v31 = vpop.f32.mrf.mxu0 }
 0x6ef   : >> { %v5862_v26 = vpop.f32.mrf.mxu0 }
 0x6f1   : >> { %v2464_v28 = vpop.f32.mrf.mxu0 }
 0x6f3   : >> { %v2413_v36 = vpop.f32.mrf.mxu1  ;;  %v5863_v2 = vpop.f32.mrf.mxu0 }
 0x6f4   : >> { %v2517_v3 = vpack.c.bf16 %v2413_v36, %v2365_v55 }
 0x6f5   : >> { %v5856_v49 = vpop.f32.mrf.mxu1 }
 0x6f6   : >> { %5876 = vmatprep.mubr.msk.bf16.mxu0 %vm767_vm2, %v2517_v3 }
 0x6f7   : >> { %v2416_v6 = vpop.f32.mrf.mxu1 }
 0x6f9   : >> { %v5857_v7 = vpop.f32.mrf.mxu1 }
 0x6fb   : >> { %v2509_v63 = vpop.f32.mrf.mxu1 }
 0x6fc   : >> { %v2518_v48 = vpack.c.bf16 %v2509_v63, %v2461_v31 }
 0x6fd   : >> { %v5868_v10 = vpop.f32.mrf.mxu1 }
 0x6fe   : >> { %5877 = vmatmul.mubr.msk.bf16.gmra.mxu0 %vm767_vm2, %v2518_v48 }
 0x6ff   : >> { %v2512_v35 = vpop.f32.mrf.mxu1  ;;  %5892 = vmatprep.mubr.msk.bf16.mxu0 %vm6667_vm1, %v6666_v32 }
 0x701   : >> { %v5869_v38 = vpop.f32.mrf.mxu1 }
 0x703   : >> { %v7427_v41 = vpop.f32.mrf.mxu1 }
 0x705   : >> { %v7429_v50 = vpop.f32.mrf.mxu1 }
 0x706   : >> { %5893 = vmatmul.mubr.msk.bf16.vlgmr.msra.gmra.mxu0 %vm767_vm2, %v2680_v40 }
 0x707   : >> { %5903 = vmatpush3.bf16.xpose.msra.mxu0 %v2787_v52  ;;  %v7433_v0 = vpop.f32.mrf.mxu1  ;;  %5904 = vmatprep.mubr.msk.bf16.mxu0 %vm6667_vm1, %v6666_v32 }
 0x708   : >> { %5914 = vmatprep.subr.bf16.mxu0 %v6666_v32 }
 0x709   : >> { %v7438_v1 = vpop.f32.mrf.mxu1 }
 0x70b   : >> { %v7440_v4 = vpop.f32.mrf.mxu1 }
 0x70d   : >> { %v7442_v15 = vpop.f32.mrf.mxu1 }
 0x70e   : >> { %5905 = vmatmul.mubr.msk.bf16.vlgmr.msra.gmra.mxu0 %vm767_vm2, %v2780_v37 }
 0x70f   : >> { %5915 = vmatpush3.bf16.xpose.msra.mxu0 %v2887_v11  ;;  %v7446_v17 = vpop.f32.mrf.mxu1  ;;  %5916 = vmatprep.mubr.msk.bf16.mxu0 %vm6667_vm1, %v6666_v32 }
 0x710   : >> { %5926 = vmatprep.subr.bf16.mxu0 %v6666_v32 }
 0x711   : >> { %v7451_v27 = vpop.f32.mrf.mxu1 }
 0x713   : >> { %v2773_v29 = vpop.f32.mrf.mxu1 }
 0x714   : >> { %v3082_v12 = vsel %vm767_vm2, %v2773_v29, -inf }
 0x715   : >> { %3083 = vmax.xlane.f32.xlu1 %v3082_v12  ;;  %v5900_v30 = vpop.f32.mrf.mxu1 }
 0x716   : >> { %5917 = vmatmul.mubr.msk.bf16.vlgmr.msra.gmra.mxu0 %vm767_vm2, %v2880_v13 }
 0x717   : >> { %5927 = vmatpush3.bf16.xpose.msra.mxu0 %v2987_v46  ;;  %v2776_v14 = vpop.f32.mrf.mxu1  ;;  %5928 = vmatprep.mubr.msk.bf16.mxu0 %vm6667_vm1, %v6666_v32 }
 0x718   : >> { %5938 = vmatprep.subr.bf16.mxu0 %v6666_v32 }
 0x719   : >> { %v5901_v16 = vpop.f32.mrf.mxu1 }
 0x71b   : >> { %v7459_v33 = vpop.f32.mrf.mxu1 }
 0x71c   : >> { %v3088_v46 = vsel %vm767_vm2, %v7459_v33, -inf }
 0x71d   : >> { %v5912_v62 = vpop.f32.mrf.mxu1 }
 0x71e   : >> { %5929 = vmatmul.mubr.msk.bf16.vlgmr.msra.gmra.mxu0 %vm767_vm2, %v2980_v34 }
 0x71f   : >> { %v2876_v5 = vpop.f32.mrf.mxu1  ;;  %5940 = vmatprep.mubr.msk.bf16.mxu0 %vm6667_vm1, %v6666_v32 }
 0x721   : >> { %v5913_v42 = vpop.f32.mrf.mxu1 }
 0x723   : >> { %v7464_v45 = vpop.f32.mrf.mxu1 }
 0x724   : >> { %v3094_v16 = vsel %vm767_vm2, %v7464_v45, -inf }
 0x725   : >> { %v5924_v44 = vpop.f32.mrf.mxu1 }
 0x726   : >> { %3175 = vrot.lane.b32.xlu1 %v6980_v43, %s6675_s30 }
 0x727   : >> { %v2976_v55 = vpop.f32.mrf.mxu1 }
 0x729   : >> { %v5925_v58 = vpop.f32.mrf.mxu1 }
 0x72a   : >> { %3271 = vrot.lane.b32.xlu1 %v6978_v39, %s6675_s30 }
 0x72b   : >> { %v7470_v60 = vpop.f32.mrf.mxu1 }
 0x72c   : >> { %v3100_v42 = vsel %vm767_vm2, %v7470_v60, -inf }
 0x72d   : >> { %v5936_v59 = vpop.f32.mrf.mxu1 }
 0x72f   : >> { %v3076_v31 = vpop.f32.mrf.mxu1 }
 0x731   : >> { %v5937_v26 = vpop.f32.mrf.mxu1 }
 0x781   : >> { %v7474_v3 = vpop.f32.mrf.mxu0 }
 0x783   : >> { %v7476_v40 = vpop.f32.mrf.mxu0 }
 0x785   : >> { %v7478_v49 = vpop.f32.mrf.mxu0 }
 0x787   : >> { %v7480_v6 = vpop.f32.mrf.mxu0 }
 0x79e   : >> { %v3084_v28 = vpop.xlane.xlu1 %3083 }
 0x79f   : >> { %v3104_v35 = vsub.f32 %v2773_v29, %v3084_v28 }
 0x7a1   : >> { %v3113_v61 = vmul.f32 1.442695, %v3104_v35 }
 0x7a2   : >> { %v3176_v36 = vpop.permute.xlu1 %3175 }
 0x7a3   : >> { %v3181_v2 = vsel %vm1251_vm3, %v3176_v36, 0  ;;  %6369 = vpow2.f32 %v3113_v61 }
 0x7a4   : >> { %5939 = vmatpush3.bf16.msra.mxu0 %v3181_v2 }
 0x7a5   : >> { %5950 = vmatprep.subr.bf16.mxu0 %v6666_v32 }
 0x7b0   : >> { %v7499_v44 = vpop.eup %6369 }
 0x7b1   : >> { %v3130_v59 = vsel %vm767_vm2, %v7499_v44, 0.0 }
 0x7be   : >> { %v7482_v7 = vpop.f32.mrf.mxu0 }
 0x7c0   : >> { %v7484_v9 = vpop.f32.mrf.mxu0 }
 0x7c2   : >> { %v7486_v63 = vpop.f32.mrf.mxu0 }
 0x7c4   : >> { %v7488_v48 = vpop.f32.mrf.mxu0 }
 0x7c6   : >> { %v2723_v10 = vpop.f32.mrf.mxu0 }
 0x7c7   : >> { %v3079_v37 = vsel %vm767_vm2, %v2723_v10, -inf }
 0x7c8   : >> { %3080 = vmax.xlane.f32.xlu0 %v3079_v37  ;;  %v5894_v38 = vpop.f32.mrf.mxu0 }
 0x7ca   : >> { %v2726_v52 = vpop.f32.mrf.mxu0 }
 0x7cc   : >> { %v5895_v13 = vpop.f32.mrf.mxu0 }
 0x7ce   : >> { %v2823_v11 = vpop.f32.mrf.mxu0 }
 0x7cf   : >> { %v3085_v8 = vsel %vm767_vm2, %v2823_v11, -inf }
 0x7d0   : >> { %3086 = vmax.xlane.f32.xlu0 %v3085_v8  ;;  %v5906_v12 = vpop.f32.mrf.mxu0 }
 0x7d2   : >> { %v2826_v30 = vpop.f32.mrf.mxu0 }
 0x7d4   : >> { %3089 = vmax.xlane.f32.xlu0 %v3088_v46  ;;  %v5907_v14 = vpop.f32.mrf.mxu0 }
 0x7d6   : >> { %v2923_v29 = vpop.f32.mrf.mxu0 }
 0x7d7   : >> { %v3091_v34 = vsel %vm767_vm2, %v2923_v29, -inf }
 0x7d8   : >> { %3095 = vmax.xlane.f32.xlu0 %v3094_v16  ;;  %3092 = vmax.xlane.f32.xlu1 %v3091_v34  ;;  %v5918_v62 = vpop.f32.mrf.mxu0 }
 0x7da   : >> { %v2926_v5 = vpop.f32.mrf.mxu0 }
 0x7dc   : >> { %3101 = vmax.xlane.f32.xlu0 %v3100_v42  ;;  %v5919_v55 = vpop.f32.mrf.mxu0 }
 0x7dd   : >> { %v3272_v55 = vpop.permute.xlu1 %3271 }
 0x7de   : >> { %v3023_v58 = vpop.f32.mrf.mxu0 }
 0x7df   : >> { %v3097_v31 = vsel %vm767_vm2, %v3023_v58, -inf }
 0x7e0   : >> { %3131 = vadd.xlane.f32.xlu0 %v3130_v59  ;;  %3098 = vmax.xlane.f32.xlu1 %v3097_v31  ;;  %v5930_v26 = vpop.f32.mrf.mxu0 }
 0x7e2   : >> { %v3026_v28 = vpop.f32.mrf.mxu0 }
 0x7e4   : >> { %v5931_v36 = vpop.f32.mrf.mxu0 }
 0x7f1   : >> { %3319 = vrot.lane.b32.xlu1 %v6983_v47, %s6675_s30 }
 0x851   : >> { %v3081_v2 = vpop.xlane.xlu0 %3080 }
 0x852   : >> { %v3103_v35 = vsub.f32 %v2723_v10, %v3081_v2 }
 0x854   : >> { %v3111_v37 = vmul.f32 1.442695, %v3103_v35 }
 0x856   : >> { %6371 = vpow2.f32 %v3111_v37 }
 0x859   : >> { %v3087_v38 = vpop.xlane.xlu0 %3086 }
 0x85a   : >> { %v3105_v59 = vsub.f32 %v2823_v11, %v3087_v38 }
 0x85c   : >> { %v3115_v26 = vmul.f32 1.442695, %v3105_v59 }
 0x85d   : >> { %v3090_v52 = vpop.xlane.xlu0 %3089 }
 0x85e   : >> { %v3106_v61 = vsub.f32 %v7459_v33, %v3090_v52 }
 0x860   : >> { %v3117_v13 = vmul.f32 1.442695, %v3106_v61 }
 0x861   : >> { %v3096_v8 = vpop.xlane.xlu0 %3095  ;;  %v3093_v31 = vpop.xlane.xlu1 %3092 }
 0x862   : >> { %6373 = vpow2.f32 %v3117_v13  ;;  %v3108_v12 = vsub.f32 %v7464_v45, %v3096_v8  ;;  %v3107_v28 = vsub.f32 %v2923_v29, %v3093_v31 }
 0x863   : >> { %v7508_v30 = vpop.eup %6371 }
 0x864   : >> { %v3121_v46 = vmul.f32 1.442695, %v3108_v12  ;;  %v3127_v14 = vsel %vm767_vm2, %v7508_v30, 0.0  ;;  %v3119_v2 = vmul.f32 1.442695, %v3107_v28 }
 0x865   : >> { %3128 = vadd.xlane.f32.xlu1 %v3127_v14  ;;  %v3102_v16 = vpop.xlane.xlu0 %3101 }
 0x866   : >> { %v3110_v10 = vsub.f32 %v7470_v60, %v3102_v16  ;;  %6375 = vpow2.f32 %v3121_v46 }
 0x868   : >> { %v3125_v34 = vmul.f32 1.442695, %v3110_v10 }
 0x869   : >> { %v3099_v36 = vpop.xlane.xlu1 %3098  ;;  %v3132_v12 = vpop.xlane.xlu0 %3131 }
 0x86a   : >> { %6377 = vpow2.f32 %v3125_v34  ;;  %v3109_v35 = vsub.f32 %v3023_v58, %v3099_v36 }
 0x86b   : >> { %6379 = vpow2.f32 %v3115_v26 }
 0x86c   : >> { %6381 = vpow2.f32 %v3119_v2  ;;  %v3123_v37 = vmul.f32 1.442695, %v3109_v35 }
 0x86d   : >> { %v3320_v13 = vpop.permute.xlu1 %3319 }
 0x86e   : >> { %6383 = vpow2.f32 %v3123_v37  ;;  %v3325_v28 = vsel %vm1251_vm3, %v3320_v13, 0 }
 0x86f   : >> { %v7513_v62 = vpop.eup %6373 }
 0x870   : >> { %v3136_v33 = vsel %vm767_vm2, %v7513_v62, 0.0 }
 0x871   : >> { %3137 = vadd.xlane.f32.xlu0 %v3136_v33  ;;  %v3277_v33 = vsel %vm1251_vm3, %v3272_v55, 0 }
 0x873   : >> { %v7517_v45 = vpop.eup %6375 }
 0x874   : >> { %v3142_v5 = vsel %vm767_vm2, %v7517_v45, 0.0 }
 0x875   : >> { %3143 = vadd.xlane.f32.xlu0 %v3142_v5 }
 0x876   : >> { %3415 = vrot.lane.b32.xlu1 %v6988_v53, %s6675_s30 }
 0x877   : >> { %v7523_v42 = vpop.eup %6377 }
 0x878   : >> { %v3148_v60 = vsel %vm767_vm2, %v7523_v42, 0.0  ;;  %v7531_v52 = vpop.eup %6379 }
 0x879   : >> { %3149 = vadd.xlane.f32.xlu0 %v3148_v60  ;;  %v3133_v11 = vsel %vm767_vm2, %v7531_v52, 0.0  ;;  %v7537_v29 = vpop.eup %6381 }
 0x87a   : >> { %v3139_v58 = vsel %vm767_vm2, %v7537_v29, 0.0 }
 0x87b   : >> { %v7542_v38 = vpop.eup %6383 }
 0x87c   : >> { %v3145_v61 = vsel %vm767_vm2, %v7542_v38, 0.0 }
 0x88f   : >> { %3223 = vrot.lane.b32.xlu0 %v6986_v51, %s6675_s30 }
 0x893   : >> { %3367 = vrot.lane.b32.xlu0 %v6991_v54, %s6675_s30 }
 0x897   : >> { %3463 = vrot.lane.b32.xlu0 %v6998_v57, %s6675_s30 }
 0x89a   : >> { %3134 = vadd.xlane.f32.xlu1 %v3133_v11 }
 0x89b   : >> { %3653 = vrot.lane.b32.xlu0 %v6980_v43, %s6676_s22 }
 0x89e   : >> { %3140 = vadd.xlane.f32.xlu1 %v3139_v58 }
 0x89f   : >> { %3703 = vrot.lane.b32.xlu0 %v6986_v51, %s6676_s22 }
 0x8a2   : >> { %3146 = vadd.xlane.f32.xlu1 %v3145_v61 }
 0x8a3   : >> { %3753 = vrot.lane.b32.xlu0 %v6978_v39, %s6676_s22 }
 0x8a7   : >> { %3751 = vrot.lane.b32.xlu0 %v6978_v39, %s6677_s17 }
 0x8ab   : >> { %3853 = vrot.lane.b32.xlu0 %v6991_v54, %s6676_s22 }
 0x8af   : >> { %3851 = vrot.lane.b32.xlu0 %v6991_v54, %s6677_s17 }
 0x8b3   : >> { %3511 = vrot.lane.b32.xlu1 %v6994_v56, %s6675_s30  ;;  %3953 = vrot.lane.b32.xlu0 %v6998_v57, %s6676_s22  ;;  %s631_s30 = scalar_lea.vmem %s8102_s9, %s6660_s16 }
 0x8b7   : >> { %3651 = vrot.lane.b32.xlu1 %v6980_v43, %s6677_s17  ;;  %3951 = vrot.lane.b32.xlu0 %v6998_v57, %s6677_s17 }
 0x8bb   : >> { %3701 = vrot.lane.b32.xlu1 %v6986_v51, %s6677_s17 }
 0x8bf   : >> { %3803 = vrot.lane.b32.xlu1 %v6983_v47, %s6676_s22 }
 0x8c3   : >> { %3801 = vrot.lane.b32.xlu1 %v6983_v47, %s6677_s17 }
 0x8c7   : >> { %3903 = vrot.lane.b32.xlu1 %v6988_v53, %s6676_s22 }
 0x8cb   : >> { %3901 = vrot.lane.b32.xlu1 %v6988_v53, %s6677_s17 }
 0x8cf   : >> { %4003 = vrot.lane.b32.xlu1 %v6994_v56, %s6676_s22  ;;  %s7877_s22 = scalar_lea.vmem %s8101_s8, %s5484_s20 }
 0x8d3   : >> { %4001 = vrot.lane.b32.xlu1 %v6994_v56, %s6677_s17  ;;  %s8147_s17 = sld [smem:[#allocation19_spill]] }
 0x8ee   : >> { %v3129_v8 = vpop.xlane.xlu1 %3128 }
 0x8ef   : >> { %6385 = vrcp.f32 %v3129_v8 }
 0x8f0   : >> { %6387 = vrcp.f32 %v3132_v12 }
 0x8f2   : >> { %v3416_v36 = vpop.permute.xlu1 %3415 }
 0x8f3   : >> { %v3421_v37 = vsel %vm1251_vm3, %v3416_v36, 0 }
 0x8fa   : >> { %v3138_v46 = vpop.xlane.xlu0 %3137 }
 0x8fb   : >> { %6389 = vrcp.f32 %v3138_v46 }
 0x8fc   : >> { %v6386_v14 = vpop.eup %6385 }
 0x8fd   : >> { %v3159_v16 = vmul.f32 %v6386_v14, %v7508_v30  ;;  %v6388_v5 = vpop.eup %6387 }
 0x8fe   : >> { %v3144_v10 = vpop.xlane.xlu0 %3143  ;;  %v3160_v59 = vmul.f32 %v6388_v5, %v7499_v44 }
 0x8ff   : >> { %v3167_v34 = vpack.c.bf16 %v3159_v16, %v3159_v16  ;;  %6391 = vrcp.f32 %v3144_v10 }
 0x900   : >> { %v3168_v26 = vpack.c.bf16 %v3160_v59, %v3160_v59 }
 0x901   : >> { %5941 = vmatmul.mubr.msk.bf16.vlgmr.msra.gmra.mxu0 %vm767_vm2, %v3167_v34 }
 0x902   : >> { %5951 = vmatpush3.bf16.msra.mxu0 %v3277_v33  ;;  %5952 = vmatprep.mubr.msk.bf16.mxu0 %vm6667_vm1, %v6666_v32  ;;  %v3150_v60 = vpop.xlane.xlu0 %3149 }
 0x903   : >> { %5962 = vmatprep.subr.bf16.mxu0 %v6666_v32  ;;  %6393 = vrcp.f32 %v3150_v60 }
 0x906   : >> { %v3224_v31 = vpop.permute.xlu0 %3223 }
 0x907   : >> { %v3229_v30 = vsel %vm1251_vm3, %v3224_v31, 0 }
 0x908   : >> { %5945 = vmatpush3.bf16.msra.mxu1 %v3229_v30  ;;  %v6390_v55 = vpop.eup %6389 }
 0x909   : >> { %5956 = vmatprep.subr.bf16.mxu1 %v6666_v32  ;;  %v3162_v44 = vmul.f32 %v6390_v55, %v7513_v62 }
 0x90a   : >> { %v3368_v61 = vpop.permute.xlu0 %3367 }
 0x90b   : >> { %5947 = vmatmul.mubr.msk.bf16.vlgmr.msra.gmra.mxu1 %vm767_vm2, %v3168_v26  ;;  %v3170_v2 = vpack.c.bf16 %v3162_v44, %v3162_v44 }
 0x90c   : >> { %5957 = vmatpush3.bf16.msra.mxu1 %v3325_v28  ;;  %5958 = vmatprep.mubr.msk.bf16.mxu1 %vm6667_vm1, %v6666_v32  ;;  %v6392_v35 = vpop.eup %6391 }
 0x90d   : >> { %5968 = vmatprep.subr.bf16.mxu1 %v6666_v32  ;;  %v3164_v11 = vmul.f32 %v6392_v35, %v7517_v45 }
 0x90e   : >> { %v3464_v12 = vpop.permute.xlu0 %3463 }
 0x90f   : >> { %v3172_v58 = vpack.c.bf16 %v3164_v11, %v3164_v11  ;;  %v3469_v35 = vsel %vm1251_vm3, %v3464_v12, 0 }
 0x910   : >> { %v6394_v8 = vpop.eup %6393 }
 0x911   : >> { %v3166_v14 = vmul.f32 %v6394_v8, %v7523_v42  ;;  %v3373_v42 = vsel %vm1251_vm3, %v3368_v61, 0 }
 0x912   : >> { %v3654_v34 = vpop.permute.xlu0 %3653 }
 0x913   : >> { %5959 = vmatmul.mubr.msk.bf16.vlgmr.msra.gmra.mxu1 %vm767_vm2, %v3170_v2  ;;  %v3174_v33 = vpack.c.bf16 %v3166_v14, %v3166_v14  ;;  %v3659_v59 = vsel %vm767_vm2, %v3654_v34, 0 }
 0x914   : >> { %5969 = vmatpush3.bf16.msra.mxu1 %v3421_v37  ;;  %5970 = vmatprep.mubr.msk.bf16.mxu1 %vm6667_vm1, %v6666_v32 }
 0x915   : >> { %5980 = vmatprep.subr.bf16.mxu1 %v6666_v32 }
 0x916   : >> { %v3704_v55 = vpop.permute.xlu0 %3703 }
 0x917   : >> { %v3709_v44 = vsel %vm767_vm2, %v3704_v55, 0 }
 0x91b   : >> { %5971 = vmatmul.mubr.msk.bf16.vlgmr.msra.gmra.mxu1 %vm767_vm2, %v3172_v58 }
 0x91c   : >> { %5982 = vmatprep.mubr.msk.bf16.mxu1 %vm6667_vm1, %v6666_v32 }
 0x923   : >> { %v3135_v62 = vpop.xlane.xlu1 %3134 }
 0x924   : >> { %6395 = vrcp.f32 %v3135_v62 }
 0x927   : >> { %v3141_v13 = vpop.xlane.xlu1 %3140 }
 0x928   : >> { %6397 = vrcp.f32 %v3141_v13 }
 0x92b   : >> { %v3147_v46 = vpop.xlane.xlu1 %3146 }
 0x92c   : >> { %6399 = vrcp.f32 %v3147_v46  ;;  %v608_v46 = vld [vmem:[%s7365_s19 + $0x8] sm:$0xf] }
 0x92d   : >> { %v3576_v14 = vsel %vm1251_vm3, %v608_v46, 0 }
 0x92f   : >> { %v3512_v45 = vpop.permute.xlu1 %3511 }
 0x930   : >> { %v3517_v16 = vsel %vm1251_vm3, %v3512_v45, 0 }
 0x931   : >> { %v6396_v10 = vpop.eup %6395  ;;  %5981 = vmatpush3.bf16.msra.mxu1 %v3517_v16 }
 0x932   : >> { %5996 = vmatprep.subr.bf16.mxu1 %v6666_v32  ;;  %v3161_v5 = vmul.f32 %v6396_v10, %v7531_v52 }
 0x933   : >> { %v3652_v60 = vpop.permute.xlu1 %3651 }
 0x934   : >> { %5983 = vmatmul.mubr.msk.bf16.vlgmr.msra.gmra.mxu1 %vm767_vm2, %v3174_v33  ;;  %v3169_v31 = vpack.c.bf16 %v3161_v5, %v3161_v5 }
 0x935   : >> { %v6398_v30 = vpop.eup %6397  ;;  %5997 = vmatpush3.bf16.xpose.msra.mxu1 %v3659_v59  ;;  %5998 = vmatprep.mubr.msk.bf16.mxu1 %vm6667_vm1, %v6666_v32 }
 0x936   : >> { %5953 = vmatmul.mubr.msk.bf16.vlgmr.msra.gmra.mxu0 %vm767_vm2, %v3169_v31  ;;  %6002 = vmatprep.subr.bf16.mxu1 %v6666_v32  ;;  %v3163_v52 = vmul.f32 %v6398_v30, %v7537_v29 }
 0x937   : >> { %5963 = vmatpush3.bf16.msra.mxu0 %v3373_v42  ;;  %v3702_v26 = vpop.permute.xlu1 %3701  ;;  %5964 = vmatprep.mubr.msk.bf16.mxu0 %vm6667_vm1, %v6666_v32 }
 0x938   : >> { %5974 = vmatprep.subr.bf16.mxu0 %v6666_v32  ;;  %v3171_v36 = vpack.c.bf16 %v3163_v52, %v3163_v52 }
 0x939   : >> { %v6400_v2 = vpop.eup %6399 }
 0x93a   : >> { %v3165_v37 = vmul.f32 %v6400_v2, %v7542_v38 }
 0x93b   : >> { %v3804_v28 = vpop.permute.xlu1 %3803 }
 0x93c   : >> { %5999 = vmatmul.mubr.msk.bf16.vlgmr.msra.gmra.mxu1 %vm767_vm2, %v3652_v60  ;;  %v3809_v11 = vsel %vm767_vm2, %v3804_v28, 0  ;;  %v3173_v58 = vpack.c.bf16 %v3165_v37, %v3165_v37 }
 0x93d   : >> { %6003 = vmatpush3.bf16.xpose.msra.mxu1 %v3709_v44  ;;  %6004 = vmatprep.mubr.msk.bf16.mxu1 %vm6667_vm1, %v6666_v32 }
 0x93e   : >> { %5965 = vmatmul.mubr.msk.bf16.vlgmr.msra.gmra.mxu0 %vm767_vm2, %v3171_v36  ;;  %6014 = vmatprep.subr.bf16.mxu1 %v6666_v32 }
 0x93f   : >> { %5975 = vmatpush3.bf16.msra.mxu0 %v3469_v35  ;;  %v3802_v29 = vpop.permute.xlu1 %3801  ;;  %5976 = vmatprep.mubr.msk.bf16.mxu0 %vm6667_vm1, %v6666_v32  ;;  %v3754_v35 = vpop.permute.xlu0 %3753 }
 0x940   : >> { %6148 = vmatprep.subr.msk.bf16.mxu0 %vm1251_vm3, %v608_v46 }
 0x943   : >> { %v3904_v62 = vpop.permute.xlu1 %3903 }
 0x944   : >> { %6005 = vmatmul.mubr.msk.bf16.vlgmr.msra.gmra.mxu1 %vm767_vm2, %v3702_v26  ;;  %v3909_v13 = vsel %vm767_vm2, %v3904_v62, 0 }
 0x945   : >> { %6015 = vmatpush3.bf16.xpose.msra.mxu1 %v3809_v11  ;;  %6016 = vmatprep.mubr.msk.bf16.mxu1 %vm6667_vm1, %v6666_v32 }
 0x946   : >> { %5977 = vmatmul.mubr.msk.bf16.vlgmr.msra.gmra.mxu0 %vm767_vm2, %v3173_v58  ;;  %6026 = vmatprep.subr.bf16.mxu1 %v6666_v32 }
 0x947   : >> { %v3902_v61 = vpop.permute.xlu1 %3901  ;;  %5987 = vmatpush3.bf16.msra.mxu0 %v3576_v14 }
 0x948   : >> { %6008 = vmatprep.subr.bf16.mxu0 %v6666_v32 }
 0x94b   : >> { %v4004_v38 = vpop.permute.xlu1 %4003 }
 0x94c   : >> { %6017 = vmatmul.mubr.msk.bf16.vlgmr.msra.gmra.mxu1 %vm767_vm2, %v3802_v29  ;;  %v4009_v8 = vsel %vm767_vm2, %v4004_v38, 0 }
 0x94d   : >> { %6027 = vmatpush3.bf16.xpose.msra.mxu1 %v3909_v13  ;;  %6028 = vmatprep.mubr.msk.bf16.mxu1 %vm6667_vm1, %v6666_v32 }
 0x94e   : >> { %6038 = vmatprep.subr.bf16.mxu1 %v6666_v32 }
 0x94f   : >> { %v4002_v12 = vpop.permute.xlu1 %4001 }
 0x954   : >> { %6029 = vmatmul.mubr.msk.bf16.vlgmr.msra.gmra.mxu1 %vm767_vm2, %v3902_v61  ;;  %v3759_v61 = vsel %vm767_vm2, %v3754_v35, 0 }
 0x955   : >> { %6039 = vmatpush3.bf16.xpose.msra.mxu1 %v4009_v8  ;;  %6040 = vmatprep.mubr.msk.bf16.mxu1 %vm6667_vm1, %v6666_v32 }
 0x956   : >> { %6050 = vmatprep.subr.bf16.mxu1 %v6666_v32 }
 0x95c   : >> { %6041 = vmatmul.mubr.msk.bf16.vlgmr.msra.gmra.mxu1 %vm767_vm2, %v4002_v12 }
 0x95d   : >> { %6052 = vmatprep.mubr.msk.bf16.mxu1 %vm6667_vm1, %v6666_v32 }
 0x9c1   : >> { %v3217_v45 = vpop.f32.mrf.mxu0 }
 0x9c3   : >> { %v5942_v16 = vpop.f32.mrf.mxu0 }
 0x9c5   : >> { %v3220_v10 = vpop.f32.mrf.mxu0 }
 0x9c7   : >> { %v5943_v34 = vpop.f32.mrf.mxu0 }
 0x9cb   : >> { %v3265_v33 = vpop.f32.mrf.mxu1 }
 0x9cc   : >> { %v3559_v5 = vpack.c.bf16 %v3265_v33, %v3217_v45 }
 0x9cd   : >> { %v5948_v60 = vpop.f32.mrf.mxu1 }
 0x9ce   : >> { %5988 = vmatprep.mubr.msk.bf16.mxu0 %vm767_vm2, %v3559_v5  ;;  %v3752_v60 = vpop.permute.xlu0 %3751 }
 0x9cf   : >> { %v3268_v59 = vpop.f32.mrf.mxu1 }
 0x9d1   : >> { %v5949_v31 = vpop.f32.mrf.mxu1 }
 0x9d3   : >> { %v3361_v30 = vpop.f32.mrf.mxu1 }
 0x9d5   : >> { %v5960_v42 = vpop.f32.mrf.mxu1 }
 0x9d7   : >> { %v3364_v26 = vpop.f32.mrf.mxu1 }
 0x9d9   : >> { %v5961_v52 = vpop.f32.mrf.mxu1 }
 0x9db   : >> { %v3457_v55 = vpop.f32.mrf.mxu1 }
 0x9dd   : >> { %v5972_v28 = vpop.f32.mrf.mxu1 }
 0x9df   : >> { %v3460_v44 = vpop.f32.mrf.mxu1 }
 0x9e1   : >> { %v5973_v36 = vpop.f32.mrf.mxu1 }
 0x9f4   : >> { %v3553_v2 = vpop.f32.mrf.mxu1 }
 0x9f6   : >> { %v3313_v29 = vpop.f32.mrf.mxu0  ;;  %v5984_v37 = vpop.f32.mrf.mxu1 }
 0x9f7   : >> { %v3560_v11 = vpack.c.bf16 %v3361_v30, %v3313_v29 }
 0x9f8   : >> { %v5954_v58 = vpop.f32.mrf.mxu0  ;;  %v3556_v62 = vpop.f32.mrf.mxu1 }
 0x9f9   : >> { %5989 = vmatmul.mubr.msk.bf16.vlgmr.msra.gmra.mxu0 %vm767_vm2, %v3560_v11 }
 0x9fa   : >> { %6009 = vmatpush3.bf16.xpose.msra.mxu0 %v3759_v61  ;;  %v3316_v13 = vpop.f32.mrf.mxu0  ;;  %v5985_v38 = vpop.f32.mrf.mxu1 }
 0x9fb   : >> { %6020 = vmatprep.subr.bf16.mxu0 %v6666_v32 }
 0x9fc   : >> { %v5955_v8 = vpop.f32.mrf.mxu0  ;;  %v7639_v12 = vpop.f32.mrf.mxu1 }
 0x9fd   : >> { %v4051_v46 = vsel %vm767_vm2, %v7639_v12, -inf }
 0x9fe   : >> { %v3409_v14 = vpop.f32.mrf.mxu0  ;;  %4052 = vmax.xlane.f32.xlu0 %v4051_v46  ;;  %v6000_v45 = vpop.f32.mrf.mxu1 }
 0x9ff   : >> { %v3561_v16 = vpack.c.bf16 %v3457_v55, %v3409_v14  ;;  %v3854_v55 = vpop.permute.xlu0 %3853 }
 0xa00   : >> { %v5966_v10 = vpop.f32.mrf.mxu0  ;;  %v3698_v34 = vpop.f32.mrf.mxu1  ;;  %v3859_v61 = vsel %vm767_vm2, %v3854_v55, 0  ;;  %v2652_v55 = vadd.f32 %v7438_v1, %v7480_v6  ;;  %v2676_v1 = vadd.f32 %v7446_v17, %v7486_v63 }
 0xa01   : >> { %5992 = vmatprep.mubr.msk.bf16.mxu0 %vm767_vm2, %v3561_v16 }
 0xa02   : >> { %v3412_v33 = vpop.f32.mrf.mxu0  ;;  %v6001_v5 = vpop.f32.mrf.mxu1 }
 0xa03   : >> { %v3852_v58 = vpop.permute.xlu0 %3851 }
 0xa04   : >> { %v5967_v59 = vpop.f32.mrf.mxu0  ;;  %v7644_v31 = vpop.f32.mrf.mxu1 }
 0xa05   : >> { %v4054_v30 = vsel %vm767_vm2, %v7644_v31, -inf }
 0xa06   : >> { %v3505_v42 = vpop.f32.mrf.mxu0  ;;  %4055 = vmax.xlane.f32.xlu1 %v4054_v30  ;;  %v6006_v26 = vpop.f32.mrf.mxu1  ;;  %v2649_v30 = vadd.f32 %v7429_v50, %v7476_v40  ;;  %v2673_v50 = vadd.f32 %v7440_v4, %v7482_v7 }
 0xa07   : >> { %v3562_v52 = vpack.c.bf16 %v3553_v2, %v3505_v42  ;;  %v3954_v38 = vpop.permute.xlu0 %3953 }
 0xa08   : >> { %v5978_v28 = vpop.f32.mrf.mxu0  ;;  %v3748_v44 = vpop.f32.mrf.mxu1  ;;  %v3959_v14 = vsel %vm767_vm2, %v3954_v38, 0 }
 0xa09   : >> { %5993 = vmatmul.mubr.msk.bf16.gmra.mxu0 %vm767_vm2, %v3562_v52  ;;  %v2660_v52 = vadd.f32 %v7433_v0, %v7478_v49 }
 0xa0a   : >> { %v3508_v36 = vpop.f32.mrf.mxu0  ;;  %v6007_v35 = vpop.f32.mrf.mxu1  ;;  %6010 = vmatprep.mubr.msk.bf16.mxu0 %vm6667_vm1, %v6666_v32 }
 0xa0b   : >> { %v3952_v34 = vpop.permute.xlu0 %3951 }
 0xa0c   : >> { %v5979_v29 = vpop.f32.mrf.mxu0  ;;  %v7651_v37 = vpop.f32.mrf.mxu1 }
 0xa0d   : >> { %v2665_v29 = vadd.f32 %v7442_v15, %v7484_v9 }
 0xa0e   : >> { %v6018_v11 = vpop.f32.mrf.mxu1 }
 0xa10   : >> { %v3848_v62 = vpop.f32.mrf.mxu1 }
 0xa11   : >> { %6011 = vmatmul.mubr.msk.bf16.vlgmr.msra.gmra.mxu0 %vm767_vm2, %v3752_v60  ;;  %v2657_v60 = vadd.f32 %v7427_v41, %v7474_v3 }
 0xa12   : >> { %6021 = vmatpush3.bf16.xpose.msra.mxu0 %v3859_v61  ;;  %v6019_v2 = vpop.f32.mrf.mxu1  ;;  %6022 = vmatprep.mubr.msk.bf16.mxu0 %vm6667_vm1, %v6666_v32  ;;  %v2668_v61 = vadd.f32 %v7451_v27, %v7488_v48  ;;  %v4060_v27 = vsel %vm767_vm2, %v7651_v37, -inf }
 0xa13   : >> { %6032 = vmatprep.subr.bf16.mxu0 %v6666_v32 }
 0xa14   : >> { %v7658_v13 = vpop.f32.mrf.mxu1 }
 0xa16   : >> { %v6030_v8 = vpop.f32.mrf.mxu1 }
 0xa18   : >> { %v3948_v46 = vpop.f32.mrf.mxu1 }
 0xa19   : >> { %6023 = vmatmul.mubr.msk.bf16.vlgmr.msra.gmra.mxu0 %vm767_vm2, %v3852_v58  ;;  %v4066_v46 = vsel %vm767_vm2, %v7658_v13, -inf }
 0xa1a   : >> { %6033 = vmatpush3.bf16.xpose.msra.mxu0 %v3959_v14  ;;  %v6031_v45 = vpop.f32.mrf.mxu1  ;;  %6034 = vmatprep.mubr.msk.bf16.mxu0 %vm6667_vm1, %v6666_v32 }
 0xa1b   : >> { %6044 = vmatprep.subr.bf16.mxu0 %v6666_v32 }
 0xa1c   : >> { %v7665_v16 = vpop.f32.mrf.mxu1 }
 0xa1e   : >> { %v6042_v10 = vpop.f32.mrf.mxu1 }
 0xa20   : >> { %v4048_v33 = vpop.f32.mrf.mxu1 }
 0xa21   : >> { %6035 = vmatmul.mubr.msk.bf16.vlgmr.msra.gmra.mxu0 %vm767_vm2, %v3952_v34  ;;  %v4072_v34 = vsel %vm767_vm2, %v7665_v16, -inf }
 0xa22   : >> { %v6043_v5 = vpop.f32.mrf.mxu1  ;;  %6046 = vmatprep.mubr.msk.bf16.mxu0 %vm6667_vm1, %v6666_v32 }
 0xa87   : >> { %v4053_v11 = vpop.xlane.xlu0 %4052 }
 0xa88   : >> { %v4075_v4 = vsub.f32 %v7639_v12, %v4053_v11 }
 0xa8a   : >> { %v4083_v38 = vmul.f32 1.442695, %v4075_v4 }
 0xa8f   : >> { %v4056_v3 = vpop.xlane.xlu1 %4055 }
 0xa90   : >> { %v4076_v0 = vsub.f32 %v7644_v31, %v4056_v3 }
 0xa92   : >> { %v4085_v7 = vmul.f32 1.442695, %v4076_v0 }
 0xa94   : >> { %6401 = vpow2.f32 %v4085_v7 }
 0xa95   : >> { %6403 = vpow2.f32 %v4083_v38 }
 0xaa1   : >> { %v7712_v33 = vpop.eup %6401 }
 0xab9   : >> { %v5990_v59 = vpop.f32.mrf.mxu0 }
 0xaba   : >> { %v7674_v42 = vadd.f32 %v5990_v59, %v2657_v60  ;;  %v4102_v59 = vsel %vm767_vm2, %v7712_v33, 0.0 }
 0xabb   : >> { %v3612_v26 = vpop.f32.mrf.mxu0 }
 0xabc   : >> { %v7678_v28 = vadd.f32 %v3612_v26, %v2649_v30  ;;  %v6404_v26 = vpop.eup %6403 }
 0xabd   : >> { %v5991_v44 = vpop.f32.mrf.mxu0 }
 0xabe   : >> { %v7682_v36 = vadd.f32 %v5991_v44, %v2660_v52 }
 0xabf   : >> { %v3615_v35 = vpop.f32.mrf.mxu0 }
 0xac0   : >> { %v7684_v41 = vadd.f32 %v3615_v35, %v2652_v55  ;;  %v4099_v55 = vsel %vm767_vm2, %v6404_v26, 0.0 }
 0xac9   : >> { %v5994_v40 = vpop.f32.mrf.mxu0 }
 0xaca   : >> { %v7691_v49 = vadd.f32 %v5994_v40, %v2673_v50 }
 0xacb   : >> { %v3628_v58 = vpop.f32.mrf.mxu0 }
 0xacc   : >> { %v7695_v6 = vadd.f32 %v3628_v58, %v2665_v29 }
 0xacd   : >> { %v5995_v62 = vpop.f32.mrf.mxu0 }
 0xace   : >> { %v7700_v2 = vadd.f32 %v5995_v62, %v2676_v1 }
 0xacf   : >> { %v3631_v15 = vpop.f32.mrf.mxu0 }
 0xad0   : >> { %v7702_v9 = vadd.f32 %v3631_v15, %v2668_v61 }
 0xad1   : >> { %v3795_v31 = vpop.f32.mrf.mxu0 }
 0xad2   : >> { %v4057_v8 = vsel %vm767_vm2, %v3795_v31, -inf }
 0xad3   : >> { %4058 = vmax.xlane.f32.xlu0 %v4057_v8  ;;  %v6012_v17 = vpop.f32.mrf.mxu0 }
 0xad5   : >> { %v3798_v63 = vpop.f32.mrf.mxu0 }
 0xad7   : >> { %4061 = vmax.xlane.f32.xlu0 %v4060_v27  ;;  %v6013_v48 = vpop.f32.mrf.mxu0 }
 0xad9   : >> { %v3895_v12 = vpop.f32.mrf.mxu0 }
 0xada   : >> { %v4063_v14 = vsel %vm767_vm2, %v3895_v12, -inf }
 0xadb   : >> { %4067 = vmax.xlane.f32.xlu0 %v4066_v46  ;;  %4064 = vmax.xlane.f32.xlu1 %v4063_v14  ;;  %v6024_v45 = vpop.f32.mrf.mxu0 }
 0xadd   : >> { %v3898_v10 = vpop.f32.mrf.mxu0 }
 0xadf   : >> { %4073 = vmax.xlane.f32.xlu0 %v4072_v34  ;;  %v6025_v5 = vpop.f32.mrf.mxu0 }
 0xae1   : >> { %v3995_v60 = vpop.f32.mrf.mxu0 }
 0xae2   : >> { %v4069_v30 = vsel %vm767_vm2, %v3995_v60, -inf }
 0xae3   : >> { %4103 = vadd.xlane.f32.xlu0 %v4102_v59  ;;  %4070 = vmax.xlane.f32.xlu1 %v4069_v30  ;;  %v6036_v52 = vpop.f32.mrf.mxu0 }
 0xae5   : >> { %v3998_v44 = vpop.f32.mrf.mxu0 }
 0xae7   : >> { %v6037_v35 = vpop.f32.mrf.mxu0  ;;  %4100 = vadd.xlane.f32.xlu1 %v4099_v55 }
 0xaf8   : >> { %4147 = vrot.lane.b32.xlu1 %v6980_v43, %s6678_s29 }
 0xafc   : >> { %4243 = vrot.lane.b32.xlu1 %v6978_v39, %s6678_s29 }
 0xb00   : >> { %4291 = vrot.lane.b32.xlu1 %v6983_v47, %s6678_s29 }
 0xb04   : >> { %4387 = vrot.lane.b32.xlu1 %v6988_v53, %s6678_s29 }
 0xb5c   : >> { %v4059_v3 = vpop.xlane.xlu0 %4058 }
 0xb5d   : >> { %v4077_v50 = vsub.f32 %v3795_v31, %v4059_v3 }
 0xb5f   : >> { %v4087_v40 = vmul.f32 1.442695, %v4077_v50 }
 0xb60   : >> { %v4062_v29 = vpop.xlane.xlu0 %4061 }
 0xb61   : >> { %6405 = vpow2.f32 %v4087_v40  ;;  %v4078_v0 = vsub.f32 %v7651_v37, %v4062_v29 }
 0xb63   : >> { %v4089_v11 = vmul.f32 1.442695, %v4078_v0 }
 0xb64   : >> { %v4065_v58 = vpop.xlane.xlu1 %4064  ;;  %v4068_v1 = vpop.xlane.xlu0 %4067 }
 0xb65   : >> { %6407 = vpow2.f32 %v4089_v11  ;;  %v4079_v43 = vsub.f32 %v3895_v12, %v4065_v58  ;;  %v4080_v39 = vsub.f32 %v7658_v13, %v4068_v1 }
 0xb67   : >> { %v4091_v62 = vmul.f32 1.442695, %v4079_v43  ;;  %v4093_v61 = vmul.f32 1.442695, %v4080_v39 }
 0xb68   : >> { %v4074_v47 = vpop.xlane.xlu0 %4073 }
 0xb69   : >> { %6409 = vpow2.f32 %v4091_v62  ;;  %v4082_v53 = vsub.f32 %v7665_v16, %v4074_v47 }
 0xb6a   : >> { %6411 = vpow2.f32 %v4093_v61 }
 0xb6b   : >> { %v4097_v4 = vmul.f32 1.442695, %v4082_v53 }
 0xb6c   : >> { %v4071_v7 = vpop.xlane.xlu1 %4070  ;;  %v4104_v55 = vpop.xlane.xlu0 %4103 }
 0xb6d   : >> { %6413 = vpow2.f32 %v4097_v4  ;;  %v4081_v15 = vsub.f32 %v3995_v60, %v4071_v7 }
 0xb6e   : >> { %v6406_v31 = vpop.eup %6405 }
 0xb6f   : >> { %v4095_v37 = vmul.f32 1.442695, %v4081_v15  ;;  %v4105_v38 = vsel %vm767_vm2, %v6406_v31, 0.0 }
 0xb70   : >> { %v4101_v8 = vpop.xlane.xlu1 %4100  ;;  %4106 = vadd.xlane.f32.xlu1 %v4105_v38 }
 0xb71   : >> { %6415 = vpow2.f32 %v4095_v37 }
 0xb72   : >> { %v7730_v17 = vpop.eup %6407  ;;  %6417 = vrcp.f32 %v4101_v8 }
 0xb73   : >> { %v4108_v13 = vsel %vm767_vm2, %v7730_v17, 0.0  ;;  %6419 = vrcp.f32 %v4104_v55 }
 0xb74   : >> { %v4148_v63 = vpop.permute.xlu1 %4147  ;;  %4109 = vadd.xlane.f32.xlu0 %v4108_v13 }
 0xb75   : >> { %v4153_v16 = vsel %vm1251_vm3, %v4148_v63, 0 }
 0xb76   : >> { %v6410_v27 = vpop.eup %6409  ;;  %6045 = vmatpush3.bf16.msra.mxu0 %v4153_v16 }
 0xb77   : >> { %v7735_v48 = vpop.eup %6411  ;;  %v4111_v12 = vsel %vm767_vm2, %v6410_v27, 0.0  ;;  %6056 = vmatprep.subr.bf16.mxu0 %v6666_v32 }
 0xb78   : >> { %4112 = vadd.xlane.f32.xlu1 %v4111_v12  ;;  %v4114_v46 = vsel %vm767_vm2, %v7735_v48, 0.0  ;;  %v4244_v59 = vpop.permute.xlu1 %4243 }
 0xb79   : >> { %4115 = vadd.xlane.f32.xlu0 %v4114_v46  ;;  %v4249_v52 = vsel %vm1251_vm3, %v4244_v59, 0 }
 0xb7a   : >> { %v7741_v14 = vpop.eup %6413 }
 0xb7b   : >> { %v4120_v45 = vsel %vm767_vm2, %v7741_v14, 0.0 }
 0xb7d   : >> { %4121 = vadd.xlane.f32.xlu0 %v4120_v45 }
 0xb7e   : >> { %v7745_v10 = vpop.eup %6415 }
 0xb7f   : >> { %v6418_v34 = vpop.eup %6417  ;;  %v4117_v5 = vsel %vm767_vm2, %v7745_v10, 0.0 }
 0xb80   : >> { %v4131_v60 = vmul.f32 %v6418_v34, %v6404_v26  ;;  %4118 = vadd.xlane.f32.xlu1 %v4117_v5  ;;  %v4292_v26 = vpop.permute.xlu1 %4291  ;;  %v6420_v40 = vpop.eup %6419 }
 0xb82   : >> { %v4139_v30 = vpack.c.bf16 %v4131_v60, %v4131_v60 }
 0xb84   : >> { %6047 = vmatmul.mubr.msk.bf16.vlgmr.msra.gmra.mxu0 %vm767_vm2, %v4139_v30  ;;  %v4388_v44 = vpop.permute.xlu1 %4387  ;;  %v609_v30 = vld [vmem:[%s7365_s19 + $0xc] sm:$0xf] }
 0xb85   : >> { %6057 = vmatpush3.bf16.msra.mxu0 %v4249_v52  ;;  %6058 = vmatprep.mubr.msk.bf16.mxu0 %vm6667_vm1, %v6666_v32  ;;  %v4548_v52 = vsel %vm1251_vm3, %v609_v30, 0 }
 0xb86   : >> { %6068 = vmatprep.subr.bf16.mxu0 %v6666_v32 }
 0xb91   : >> { %4483 = vrot.lane.b32.xlu1 %v6994_v56, %s6678_s29 }
 0xb93   : >> { %4195 = vrot.lane.b32.xlu0 %v6986_v51, %s6678_s29 }
 0xb97   : >> { %4339 = vrot.lane.b32.xlu0 %v6991_v54, %s6678_s29  ;;  %v4132_v54 = vmul.f32 %v6420_v40, %v7712_v33  ;;  %v4297_v33 = vsel %vm1251_vm3, %v4292_v26, 0 }
 0xb99   : >> { %v4140_v43 = vpack.c.bf16 %v4132_v54, %v4132_v54 }
 0xb9b   : >> { %4435 = vrot.lane.b32.xlu0 %v6998_v57, %s6678_s29  ;;  %s633_s29 = scalar_lea.vmem %s8103_s10, %s6660_s16 }
 0xbf9   : >> { %v4107_v35 = vpop.xlane.xlu1 %4106 }
 0xbfa   : >> { %6421 = vrcp.f32 %v4107_v35 }
 0xbfd   : >> { %v4110_v3 = vpop.xlane.xlu0 %4109 }
 0xbfe   : >> { %6423 = vrcp.f32 %v4110_v3 }
 0xc01   : >> { %v4113_v50 = vpop.xlane.xlu1 %4112 }
 0xc02   : >> { %6425 = vrcp.f32 %v4113_v50  ;;  %v4116_v56 = vpop.xlane.xlu0 %4115 }
 0xc03   : >> { %6427 = vrcp.f32 %v4116_v56 }
 0xc06   : >> { %v4122_v29 = vpop.xlane.xlu0 %4121 }
 0xc07   : >> { %v6422_v51 = vpop.eup %6421 }
 0xc08   : >> { %v4133_v0 = vmul.f32 %v6422_v51, %v6406_v31 }
 0xc09   : >> { %v4119_v11 = vpop.xlane.xlu1 %4118 }
 0xc0a   : >> { %v4141_v57 = vpack.c.bf16 %v4133_v0, %v4133_v0  ;;  %6429 = vrcp.f32 %v4119_v11  ;;  %v4196_v58 = vpop.permute.xlu0 %4195 }
 0xc0b   : >> { %v4201_v1 = vsel %vm1251_vm3, %v4196_v58, 0  ;;  %v6424_v39 = vpop.eup %6423  ;;  %6431 = vrcp.f32 %v4122_v29 }
 0xc0c   : >> { %6051 = vmatpush3.bf16.msra.mxu1 %v4201_v1  ;;  %6059 = vmatmul.mubr.msk.bf16.vlgmr.msra.gmra.mxu0 %vm767_vm2, %v4141_v57  ;;  %v4134_v4 = vmul.f32 %v6424_v39, %v7730_v17  ;;  %v4393_v17 = vsel %vm1251_vm3, %v4388_v44, 0 }
 0xc0d   : >> { %6062 = vmatprep.subr.bf16.mxu1 %v6666_v32  ;;  %6070 = vmatprep.mubr.msk.bf16.mxu0 %vm6667_vm1, %v6666_v32 }
 0xc0e   : >> { %v4340_v62 = vpop.permute.xlu0 %4339  ;;  %v4142_v37 = vpack.c.bf16 %v4134_v4, %v4134_v4 }
 0xc0f   : >> { %v6426_v61 = vpop.eup %6425  ;;  %v4345_v47 = vsel %vm1251_vm3, %v4340_v62, 0  ;;  %6053 = vmatmul.mubr.msk.bf16.vlgmr.msra.gmra.mxu1 %vm767_vm2, %v4140_v43 }
 0xc10   : >> { %v4135_v53 = vmul.f32 %v6426_v61, %v6410_v27  ;;  %6063 = vmatpush3.bf16.msra.mxu1 %v4297_v33  ;;  %6069 = vmatpush3.bf16.msra.mxu0 %v4345_v47  ;;  %v6428_v38 = vpop.eup %6427  ;;  %v4484_v27 = vpop.permute.xlu1 %4483 }
 0xc11   : >> { %6080 = vmatprep.subr.bf16.mxu0 %v6666_v32  ;;  %6064 = vmatprep.mubr.msk.bf16.mxu1 %vm6667_vm1, %v6666_v32  ;;  %v4136_v63 = vmul.f32 %v6428_v38, %v7735_v48  ;;  %v4489_v45 = vsel %vm1251_vm3, %v4484_v27, 0 }
 0xc12   : >> { %v4143_v7 = vpack.c.bf16 %v4135_v53, %v4135_v53  ;;  %v4436_v15 = vpop.permute.xlu0 %4435  ;;  %6074 = vmatprep.subr.bf16.mxu1 %v6666_v32 }
 0xc13   : >> { %v4441_v31 = vsel %vm1251_vm3, %v4436_v15, 0  ;;  %v4144_v12 = vpack.c.bf16 %v4136_v63, %v4136_v63  ;;  %v5455_v63 = vld [vmem:[%s610_s14] ss:$0 sm:$0xff]  ;;  %s635_s14 = scalar_lea.vmem %s8104_s11, %s6660_s16 }
 0xc14   : >> { %6071 = vmatmul.mubr.msk.bf16.vlgmr.msra.gmra.mxu0 %vm767_vm2, %v4143_v7 }
 0xc15   : >> { %6081 = vmatpush3.bf16.msra.mxu0 %v4441_v31  ;;  %6082 = vmatprep.mubr.msk.bf16.mxu0 %vm6667_vm1, %v6666_v32 }
 0xc16   : >> { %6149 = vmatprep.subr.msk.bf16.mxu0 %vm1251_vm3, %v609_v30 }
 0xc17   : >> { %v6430_v8 = vpop.eup %6429  ;;  %6065 = vmatmul.mubr.msk.bf16.vlgmr.msra.gmra.mxu1 %vm767_vm2, %v4142_v37 }
 0xc18   : >> { %v4137_v13 = vmul.f32 %v6430_v8, %v7745_v10  ;;  %6075 = vmatpush3.bf16.msra.mxu1 %v4393_v17  ;;  %6076 = vmatprep.mubr.msk.bf16.mxu1 %vm6667_vm1, %v6666_v32  ;;  %v6432_v46 = vpop.eup %6431 }
 0xc19   : >> { %6086 = vmatprep.subr.bf16.mxu1 %v6666_v32  ;;  %v4138_v10 = vmul.f32 %v6432_v46, %v7741_v14 }
 0xc1a   : >> { %v4145_v16 = vpack.c.bf16 %v4137_v13, %v4137_v13 }
 0xc1b   : >> { %v4146_v48 = vpack.c.bf16 %v4138_v10, %v4138_v10 }
 0xc1c   : >> { %6083 = vmatmul.mubr.msk.bf16.vlgmr.msra.gmra.mxu0 %vm767_vm2, %v4145_v16 }
 0xc1d   : >> { %6093 = vmatpush3.bf16.msra.mxu0 %v4548_v52 }
 0xc1f   : >> { %6077 = vmatmul.mubr.msk.bf16.vlgmr.msra.gmra.mxu1 %vm767_vm2, %v4144_v12 }
 0xc20   : >> { %6087 = vmatpush3.bf16.msra.mxu1 %v4489_v45  ;;  %6088 = vmatprep.mubr.msk.bf16.mxu1 %vm6667_vm1, %v6666_v32 }
 0xc27   : >> { %6089 = vmatmul.mubr.msk.bf16.vlgmr.msra.gmra.mxu1 %vm767_vm2, %v4146_v48 }
 0xc44   : >> { %v4189_v34 = vpop.f32.mrf.mxu0 }
 0xc46   : >> { %v6048_v5 = vpop.f32.mrf.mxu0 }
 0xc48   : >> { %v4192_v60 = vpop.f32.mrf.mxu0 }
 0xc4a   : >> { %v6049_v59 = vpop.f32.mrf.mxu0 }
 0xccc   : >> { %v4285_v26 = vpop.f32.mrf.mxu0 }
 0xcce   : >> { %v6060_v44 = vpop.f32.mrf.mxu0 }
 0xccf   : >> { %v4237_v55 = vpop.f32.mrf.mxu1 }
 0xcd0   : >> { %v4531_v35 = vpack.c.bf16 %v4237_v55, %v4189_v34  ;;  %v4288_v32 = vpop.f32.mrf.mxu0 }
 0xcd1   : >> { %v6054_v3 = vpop.f32.mrf.mxu1 }
 0xcd2   : >> { %6094 = vmatprep.mubr.msk.bf16.mxu0 %vm767_vm2, %v4531_v35  ;;  %v6061_v14 = vpop.f32.mrf.mxu0 }
 0xcd3   : >> { %v4240_v50 = vpop.f32.mrf.mxu1 }
 0xcd4   : >> { %v4381_v56 = vpop.f32.mrf.mxu0 }
 0xcd5   : >> { %v6055_v40 = vpop.f32.mrf.mxu1 }
 0xcd6   : >> { %v6072_v29 = vpop.f32.mrf.mxu0 }
 0xcd7   : >> { %v4333_v51 = vpop.f32.mrf.mxu1 }
 0xcd8   : >> { %v4532_v0 = vpack.c.bf16 %v4333_v51, %v4285_v26  ;;  %v4384_v54 = vpop.f32.mrf.mxu0 }
 0xcd9   : >> { %v6066_v11 = vpop.f32.mrf.mxu1 }
 0xcda   : >> { %6095 = vmatmul.mubr.msk.bf16.vlgmr.msra.gmra.mxu0 %vm767_vm2, %v4532_v0  ;;  %v6073_v57 = vpop.f32.mrf.mxu0 }
 0xcdb   : >> { %v4336_v58 = vpop.f32.mrf.mxu1 }
 0xcdc   : >> { %v4477_v1 = vpop.f32.mrf.mxu0 }
 0xcdd   : >> { %v6067_v43 = vpop.f32.mrf.mxu1 }
 0xcde   : >> { %v6084_v39 = vpop.f32.mrf.mxu0 }
 0xcdf   : >> { %v4429_v62 = vpop.f32.mrf.mxu1 }
 0xce0   : >> { %v4533_v61 = vpack.c.bf16 %v4429_v62, %v4381_v56  ;;  %v4480_v33 = vpop.f32.mrf.mxu0 }
 0xce1   : >> { %v6078_v47 = vpop.f32.mrf.mxu1 }
 0xce2   : >> { %6098 = vmatprep.mubr.msk.bf16.mxu0 %vm767_vm2, %v4533_v61  ;;  %v6085_v53 = vpop.f32.mrf.mxu0 }
 0xce3   : >> { %v4432_v4 = vpop.f32.mrf.mxu1 }
 0xce5   : >> { %v6079_v7 = vpop.f32.mrf.mxu1 }
 0xce7   : >> { %v4525_v15 = vpop.f32.mrf.mxu1 }
 0xce8   : >> { %v4534_v31 = vpack.c.bf16 %v4525_v15, %v4477_v1 }
 0xce9   : >> { %v6090_v37 = vpop.f32.mrf.mxu1 }
 0xcea   : >> { %6099 = vmatmul.mubr.msk.bf16.gmra.mxu0 %vm767_vm2, %v4534_v31 }
 0xceb   : >> { %v4528_v38 = vpop.f32.mrf.mxu1 }
 0xced   : >> { %v6091_v8 = vpop.f32.mrf.mxu1 }
 0xd9a   : >> { %v6096_v17 = vpop.f32.mrf.mxu0 }
 0xd9b   : >> { %v4617_v13 = vadd.f32 %v6096_v17, %v7674_v42 }
 0xd9c   : >> { %v4584_v16 = vpop.f32.mrf.mxu0 }
 0xd9d   : >> { %v4615_v27 = vadd.f32 %v4584_v16, %v7678_v28  ;;  %v4631_v46 = vadd.f32 %v5455_v63, %v4617_v13 }
 0xd9e   : >> { %v6097_v12 = vpop.f32.mrf.mxu0 }
 0xd9f   : >> { %v4629_v45 = vadd.f32 %v5455_v63, %v4615_v27  ;;  %v4618_v10 = vadd.f32 %v6097_v12, %v7682_v36  ;;  %v4639_v42 = vadd.f32 %v6648_v20, %v4631_v46 }
 0xda0   : >> { %v4587_v48 = vpop.f32.mrf.mxu0 }
 0xda1   : >> { %v4616_v34 = vadd.f32 %v4587_v48, %v7684_v41  ;;  %v4637_v5 = vadd.f32 %v6656_v18, %v4629_v45  ;;  %v4632_v60 = vadd.f32 %v5455_v63, %v4618_v10  ;;  %v4651_v28 = vsel %vm663_vm0, %v4639_v42, 0.0 }
 0xda3   : >> { %v4630_v59 = vadd.f32 %v5455_v63, %v4616_v34  ;;  %v4645_v30 = vsel %vm663_vm0, %v4637_v5, 0.0  ;;  %v4640_v36 = vadd.f32 %v6644_v21, %v4632_v60 }
 0xda4   : >> { %4646 = vadd.xlane.f32.xlu0 %v4645_v30 }
 0xda5   : >> { %v4638_v52 = vadd.f32 %v6652_v19, %v4630_v59  ;;  %v4654_v44 = vsel %vm663_vm0, %v4640_v36, 0.0 }
 0xda7   : >> { %v4648_v26 = vsel %vm663_vm0, %v4638_v52, 0.0 }
 0xda8   : >> { %4652 = vadd.xlane.f32.xlu0 %v4651_v28  ;;  %4649 = vadd.xlane.f32.xlu1 %v4648_v26  ;;  %v6299_v28 = vld [vmem:[%s613_s21 + $0x8] sm:$0xff]   ;;  %v6300_v26 = vld [vmem:[%s613_s21] sm:$0xff]   ;;  %s618_s21 = scalar_lea.vmem %s8100_s7, %s6660_s16 }
 0xda9   : >> { %6102 = vmatprep.subr.bf16.mxu1 %v6299_v28 }
 0xdaa   : >> { %v6100_v41 = vpop.f32.mrf.mxu0  ;;  %6103 = vmatpush3.bf16.msra.mxu1 %v6299_v28 }
 0xdab   : >> { %v4621_v18 = vadd.f32 %v6100_v41, %v7691_v49  ;;  %6104 = vmatprep.subr.bf16.mxu1 %v6300_v26 }
 0xdac   : >> { %4655 = vadd.xlane.f32.xlu0 %v4654_v44  ;;  %v4600_v55 = vpop.f32.mrf.mxu0 }
 0xdad   : >> { %v4619_v20 = vadd.f32 %v4600_v55, %v7695_v6  ;;  %v4635_v32 = vadd.f32 %v5455_v63, %v4621_v18 }
 0xdae   : >> { %v6101_v35 = vpop.f32.mrf.mxu0  ;;  %6105 = vmatpush3.bf16.msra.mxu1 %v6300_v26  ;;  %v6302_v26 = vld [vmem:[%s7877_s22 + $0x10] sm:$0xff]  }
 0xdaf   : >> { %v4633_v19 = vadd.f32 %v5455_v63, %v4619_v20  ;;  %v4622_v3 = vadd.f32 %v6101_v35, %v7700_v2  ;;  %v4643_v29 = vadd.f32 %v6632_v24, %v4635_v32 }
 0xdb0   : >> { %v4603_v14 = vpop.f32.mrf.mxu0 }
 0xdb1   : >> { %v4620_v50 = vadd.f32 %v4603_v14, %v7702_v9  ;;  %v4641_v21 = vadd.f32 %v6640_v22, %v4633_v19  ;;  %v4636_v56 = vadd.f32 %v5455_v63, %v4622_v3  ;;  %v4663_v6 = vsel %vm663_vm0, %v4643_v29, 0.0 }
 0xdb3   : >> { %v4634_v40 = vadd.f32 %v5455_v63, %v4620_v50  ;;  %v4657_v49 = vsel %vm663_vm0, %v4641_v21, 0.0  ;;  %v4644_v2 = vadd.f32 %v6628_v25, %v4636_v56 }
 0xdb4   : >> { %4658 = vadd.xlane.f32.xlu1 %v4657_v49 }
 0xdb5   : >> { %v4642_v51 = vadd.f32 %v6636_v23, %v4634_v40  ;;  %v4666_v9 = vsel %vm663_vm0, %v4644_v2, 0.0 }
 0xdb7   : >> { %v4660_v0 = vsel %vm663_vm0, %v4642_v51, 0.0 }
 0xdb8   : >> { %4664 = vadd.xlane.f32.xlu1 %v4663_v6  ;;  %4661 = vadd.xlane.f32.xlu0 %v4660_v0 }
 0xdbc   : >> { %4667 = vadd.xlane.f32.xlu0 %v4666_v9 }
 0xe2d   : >> { %v4647_v22 = vpop.xlane.xlu0 %4646 }
 0xe2e   : >> { %v4670_v54 = vmul.f32 0.03125, %v4647_v22 }
 0xe30   : >> { %v7829_v11 = vsub.f32 %v4637_v5, %v4670_v54 }
 0xe31   : >> { %v4653_v57 = vpop.xlane.xlu0 %4652  ;;  %v4650_v24 = vpop.xlane.xlu1 %4649 }
 0xe32   : >> { %v4672_v58 = vmul.f32 0.03125, %v4653_v57  ;;  %v4671_v1 = vmul.f32 0.03125, %v4650_v24  ;;  %v4686_v23 = vmul.f32 %v7829_v11, %v7829_v11 }
 0xe34   : >> { %v7833_v43 = vsub.f32 %v4639_v42, %v4672_v58  ;;  %v7835_v39 = vsub.f32 %v4638_v52, %v4671_v1  ;;  %v4694_v25 = vsel %vm663_vm0, %v4686_v23, 0.0 }
 0xe35   : >> { %v4656_v62 = vpop.xlane.xlu0 %4655  ;;  %4695 = vadd.xlane.f32.xlu1 %v4694_v25 }
 0xe36   : >> { %v4673_v61 = vmul.f32 0.03125, %v4656_v62  ;;  %v4688_v33 = vmul.f32 %v7833_v43, %v7833_v43  ;;  %v4687_v47 = vmul.f32 %v7835_v39, %v7835_v39 }
 0xe38   : >> { %v7842_v53 = vsub.f32 %v4640_v36, %v4673_v61  ;;  %v4700_v4 = vsel %vm663_vm0, %v4688_v33, 0.0  ;;  %v4697_v7 = vsel %vm663_vm0, %v4687_v47, 0.0  ;;  %v6301_v36 = vld [vmem:[%s7877_s22 + $0x18] sm:$0xff]   ;;  %v5457_v61 = vld [vmem:[%s635_s14] ss:$0 sm:$0xff]  ;;  %s8148_s14 = sld [smem:[#allocation20_spill]] }
 0xe39   : >> { %4701 = vadd.xlane.f32.xlu1 %v4700_v4  ;;  %4698 = vadd.xlane.f32.xlu0 %v4697_v7 }
 0xe3a   : >> { %v4689_v15 = vmul.f32 %v7842_v53, %v7842_v53  ;;  %6114 = vmatprep.subr.bf16.mxu0 %v6301_v36 }
 0xe3b   : >> { %6115 = vmatpush3.bf16.msra.mxu0 %v6301_v36  ;;  %v6303_v36 = vld [vmem:[%s7877_s22 + $0x8] sm:$0xff]  }
 0xe3c   : >> { %v4703_v31 = vsel %vm663_vm0, %v4689_v15, 0.0  ;;  %6116 = vmatprep.subr.bf16.mxu0 %v6302_v26 }
 0xe3d   : >> { %v4659_v37 = vpop.xlane.xlu1 %4658  ;;  %4704 = vadd.xlane.f32.xlu0 %v4703_v31 }
 0xe3e   : >> { %v4674_v38 = vmul.f32 0.03125, %v4659_v37  ;;  %s639_s25 = scalar_lea.vmem %s8148_s14, %s6660_s16 }
 0xe3f   : >> { %6117 = vmatpush3.bf16.msra.mxu0 %v6302_v26 }
 0xe40   : >> { %v7849_v8 = vsub.f32 %v4641_v21, %v4674_v38  ;;  %6118 = vmatprep.subr.bf16.mxu0 %v6303_v36 }
 0xe41   : >> { %v4665_v17 = vpop.xlane.xlu1 %4664  ;;  %v4662_v13 = vpop.xlane.xlu0 %4661 }
 0xe42   : >> { %v4676_v63 = vmul.f32 0.03125, %v4665_v17  ;;  %v4675_v16 = vmul.f32 0.03125, %v4662_v13  ;;  %v4690_v27 = vmul.f32 %v7849_v8, %v7849_v8 }
 0xe43   : >> { %6119 = vmatpush3.bf16.msra.mxu0 %v6303_v36 }
 0xe44   : >> { %v7853_v12 = vsub.f32 %v4643_v29, %v4676_v63  ;;  %v7855_v46 = vsub.f32 %v4642_v51, %v4675_v16  ;;  %v4706_v45 = vsel %vm663_vm0, %v4690_v27, 0.0 }
 0xe45   : >> { %4707 = vadd.xlane.f32.xlu1 %v4706_v45  ;;  %v4668_v10 = vpop.xlane.xlu0 %4667 }
 0xe46   : >> { %v4677_v48 = vmul.f32 0.03125, %v4668_v10  ;;  %v4692_v34 = vmul.f32 %v7853_v12, %v7853_v12  ;;  %v4691_v5 = vmul.f32 %v7855_v46, %v7855_v46 }
 0xe48   : >> { %v7862_v60 = vsub.f32 %v4644_v2, %v4677_v48  ;;  %v4712_v59 = vsel %vm663_vm0, %v4692_v34, 0.0  ;;  %v4709_v30 = vsel %vm663_vm0, %v4691_v5, 0.0  ;;  %v5456_v2 = vld [vmem:[%s633_s29] ss:$0 sm:$0xff]  ;;  %s637_s29 = scalar_lea.vmem %s8147_s17, %s6660_s16  ;;  %s586_s16 = sadd.s32 1, %s6660_s16  }
 0xe49   : >> { %4713 = vadd.xlane.f32.xlu1 %v4712_v59  ;;  %4710 = vadd.xlane.f32.xlu0 %v4709_v30  ;;  %p583_p12 = scmp.ge.s32.totalorder %s586_s16, 2  }
 0xe4a   : >> { %v4693_v42 = vmul.f32 %v7862_v60, %v7862_v60  ;;  %vm6680_vm5 = vmmov (%p583_p12), 0   ;;  %s8159_s20 = sld [smem:[#allocation16_spill]] (%p583_p12)  ;;  %s5477_s19 = sshll.u32 (%p583_p12), %s6792_s15, 4  ;;  %vm5208_vm6 = vcmask (%p583_p12), 516096  }
 0xe4b   : > { %s8160_s17 = sld [smem:[#allocation22_spill]] (%p583_p12)  ;;  %s5211_s15 = scalar_lea.sflag (%p583_p12), [#allocation5], %s6891_s23 }
 0xe4c   : >> { %v4715_v52 = vsel %vm663_vm0, %v4693_v42, 0.0  ;;  %s6682_s27 = smov (%p583_p12), [#allocation8]  }
 0xe4d   : >> { %4716 = vadd.xlane.f32.xlu0 %v4715_v52  ;;  %s6524_s14 = sshll.u32 (%p583_p12), %s6682_s27, 4  ;;  %s6525_s14 = int_to_ptr.vmem [resolvable:$false] %s6524_s14 }
 0xe50   : > { %p8161_p7 = scmp.ne.s32.totalorder (%p583_p12), %s8159_s20, 0 }
 0xebe   : >> { %v4696_v41 = vpop.xlane.xlu1 %4695 }
 0xebf   : >> { %v4718_v18 = vmul.f32 0.03125, %v4696_v41  ;;  %v6304_v41 = vld [vmem:[%s7877_s22] sm:$0xff]  }
 0xec0   : >> { %6120 = vmatprep.subr.bf16.mxu0 %v6304_v41 }
 0xec1   : >> { %v4726_v44 = vadd.f32 1e-05, %v4718_v18  ;;  %6121 = vmatpush3.bf16.msra.mxu0 %v6304_v41 }
 0xec2   : >> { %v4702_v55 = vpop.xlane.xlu1 %4701  ;;  %v4699_v20 = vpop.xlane.xlu0 %4698 }
 0xec3   : >> { %6433 = vrsqrt.f32 %v4726_v44  ;;  %v4720_v35 = vmul.f32 0.03125, %v4702_v55  ;;  %v4719_v32 = vmul.f32 0.03125, %v4699_v20  ;;  %v5458_v55 = vld [vmem:[%s618_s21] ss:$0 sm:$0xff]  ;;  %s8158_s21 = sld [smem:[#allocation21_spill]] (%p583_p12) }
 0xec5   : >> { %v4728_v19 = vadd.f32 1e-05, %v4720_v35  ;;  %v4727_v3 = vadd.f32 1e-05, %v4719_v32 }
 0xec6   : >> { %v4705_v14 = vpop.xlane.xlu0 %4704 }
 0xec7   : >> { %6435 = vrsqrt.f32 %v4728_v19  ;;  %v4721_v50 = vmul.f32 0.03125, %v4705_v14 }
 0xec8   : >> { %6437 = vrsqrt.f32 %v4727_v3 }
 0xec9   : >> { %v4729_v21 = vadd.f32 1e-05, %v4721_v50 }
 0xecb   : >> { %6439 = vrsqrt.f32 %v4729_v21 }
 0xece   : >> { %v4708_v56 = vpop.xlane.xlu1 %4707 }
 0xecf   : >> { %v4722_v40 = vmul.f32 0.03125, %v4708_v56 }
 0xed0   : >> { %v6434_v49 = vpop.eup %6433 }
 0xed1   : >> { %v4730_v29 = vadd.f32 1e-05, %v4722_v40  ;;  %v4742_v0 = vmul.f32 %v6434_v49, %v7829_v11 }
 0xed2   : >> { %v4714_v51 = vpop.xlane.xlu1 %4713  ;;  %v4711_v6 = vpop.xlane.xlu0 %4710 }
 0xed3   : >> { %6441 = vrsqrt.f32 %v4730_v29  ;;  %v4724_v9 = vmul.f32 0.03125, %v4714_v51  ;;  %v4723_v22 = vmul.f32 0.03125, %v4711_v6  ;;  %v4756_v62 = vmul.f32 %v5456_v2, %v4742_v0 }
 0xed4   : >> { %v6436_v54 = vpop.eup %6435 }
 0xed5   : >> { %v6438_v57 = vpop.eup %6437  ;;  %v4744_v24 = vmul.f32 %v6436_v54, %v7833_v43  ;;  %v4732_v58 = vadd.f32 1e-05, %v4724_v9  ;;  %v4731_v1 = vadd.f32 1e-05, %v4723_v22  ;;  %v7892_v31 = vadd.f32 %v5457_v61, %v4756_v62 }
 0xed6   : >> { %v4717_v23 = vpop.xlane.xlu0 %4716  ;;  %v4743_v25 = vmul.f32 %v6438_v57, %v7835_v39 }
 0xed7   : >> { %6443 = vrsqrt.f32 %v4732_v58  ;;  %v4725_v11 = vmul.f32 0.03125, %v4717_v23  ;;  %v4758_v4 = vmul.f32 %v5456_v2, %v4744_v24 }
 0xed8   : >> { %v6440_v33 = vpop.eup %6439  ;;  %6445 = vrsqrt.f32 %v4731_v1  ;;  %v4757_v47 = vmul.f32 %v5456_v2, %v4743_v25 }
 0xed9   : >> { %v4745_v7 = vmul.f32 %v6440_v33, %v7842_v53  ;;  %v4733_v15 = vadd.f32 1e-05, %v4725_v11  ;;  %v7898_v38 = vadd.f32 %v5457_v61, %v4758_v4  ;;  %v5465_v11 = vld [vmem:[%s631_s30] ss:$0 sm:$0xff]  ;;  %s5223_s30 = sshll.u32 (%p583_p12), %s553_s12, 4  ;;  %s8050_s30 = int_to_ptr.vmem [resolvable:$true] %s5223_s30 }
 0xeda   : >> { %v7894_v37 = vadd.f32 %v5457_v61, %v4757_v47  ;;  %s6520_s28 = scalar_lea.vmem (%p583_p12), %s8050_s30, 16  ;;  %p6527_p10 = scmp.lt.s32.totalorder (%p583_p12), %s8050_s30, %s6525_s14 }
 0xedb   : >> { %v4759_v43 = vmul.f32 %v5456_v2, %v4745_v7  ;;  %6447 = vrsqrt.f32 %v4733_v15  ;;  %p6521_p1 = scmp.ne.s32.totalorder (%p583_p12), %s8050_s30, %s6520_s28 }
 0xedc   : >> { %v4778_v39 = vpack.c.bf16 %v7894_v37, %v7892_v31 }
 0xedd   : >> { %v7900_v17 = vadd.f32 %v5457_v61, %v4759_v43  ;;  %p6522_p8 = pnand (%p583_p12), %p6521_p1, %p8161_p7 }
 0xede   : >> { %6106 = vmatprep.mubr.msk.bf16.mxu1 %vm663_vm0, %v4778_v39 }
 0xedf   : >> { %v4779_v13 = vpack.c.bf16 %v7900_v17, %v7898_v38  ;;  %p6523_p9 = pneg (%p583_p12), %p6522_p8 }
 0xee0   : >> { %v6442_v53 = vpop.eup %6441 }
 0xee1   : >> { %6107 = vmatmul.mubr.msk.bf16.vlgmr.msra.gmra.mxu1 %vm663_vm0, %v4779_v13  ;;  %v4746_v63 = vmul.f32 %v6442_v53, %v7849_v8 }
 0xee3   : >> { %v4760_v48 = vmul.f32 %v5456_v2, %v4746_v63 }
 0xee4   : >> { %v6444_v16 = vpop.eup %6443 }
 0xee5   : >> { %v6446_v27 = vpop.eup %6445  ;;  %v4748_v45 = vmul.f32 %v6444_v16, %v7853_v12  ;;  %v7910_v42 = vadd.f32 %v5457_v61, %v4760_v48 }
 0xee6   : >> { %v4747_v10 = vmul.f32 %v6446_v27, %v7855_v46 }
 0xee7   : >> { %v4762_v30 = vmul.f32 %v5456_v2, %v4748_v45 }
 0xee8   : >> { %v6448_v34 = vpop.eup %6447  ;;  %v4761_v5 = vmul.f32 %v5456_v2, %v4747_v10 }
 0xee9   : >> { %v4749_v59 = vmul.f32 %v6448_v34, %v7862_v60  ;;  %v7916_v28 = vadd.f32 %v5457_v61, %v4762_v30 }
 0xeea   : >> { %v7912_v52 = vadd.f32 %v5457_v61, %v4761_v5 }
 0xeeb   : >> { %v4763_v8 = vmul.f32 %v5456_v2, %v4749_v59 }
 0xeec   : >> { %v4780_v12 = vpack.c.bf16 %v7912_v52, %v7910_v42 }
 0xeed   : >> { %v7918_v46 = vadd.f32 %v5457_v61, %v4763_v8 }
 0xeee   : >> { %6110 = vmatprep.mubr.msk.bf16.mxu1 %vm663_vm0, %v4780_v12 }
 0xeef   : >> { %v4781_v60 = vpack.c.bf16 %v7918_v46, %v7916_v28 }
 0xef1   : >> { %6111 = vmatmul.mubr.msk.bf16.gmra.mxu1 %vm663_vm0, %v4781_v60 }
 0xfa1   : >> { %v6108_v18 = vpop.f32.mrf.mxu1 }
 0xfa2   : >> { %v4855_v19 = vadd.f32 %v6108_v18, %v5458_v55 }
 0xfa3   : >> { %v4846_v44 = vpop.f32.mrf.mxu1 }
 0xfa4   : >> { %v4847_v35 = vadd.f32 %v5458_v55, %v4846_v44  ;;  %v4879_v40 = vmax.f32 %v4855_v19, 0.0 }
 0xfa5   : >> { %v6109_v20 = vpop.f32.mrf.mxu1 }
 0xfa6   : >> { %v4858_v32 = vadd.f32 %v6109_v20, %v5458_v55  ;;  %v4877_v21 = vmax.f32 %v4847_v35, 0.0 }
 0xfa7   : >> { %v4849_v3 = vpop.f32.mrf.mxu1 }
 0xfa8   : >> { %v4850_v14 = vadd.f32 %v5458_v55, %v4849_v3  ;;  %v4880_v50 = vmax.f32 %v4858_v32, 0.0 }
 0xfaa   : >> { %v4878_v56 = vmax.f32 %v4850_v14, 0.0  ;;  %v4886_v29 = vpack.c.bf16 %v4880_v50, %v4879_v40 }
 0xfac   : >> { %v4885_v49 = vpack.c.bf16 %v4878_v56, %v4877_v21 }
 0xfae   : >> { %6122 = vmatprep.mubr.msk.bf16.mxu0 %vm4919_vm4, %v4885_v49 }
 0xfaf   : >> { %6123 = vmatmul.mubr.msk.bf16.vlgmr.msra.gmra.mxu0 %vm4919_vm4, %v4886_v29 }
 0xfb1   : >> { %v6112_v51 = vpop.f32.mrf.mxu1 }
 0xfb2   : >> { %v4871_v22 = vadd.f32 %v6112_v51, %v5458_v55 }
 0xfb3   : >> { %v4862_v6 = vpop.f32.mrf.mxu1 }
 0xfb4   : >> { %v4863_v2 = vadd.f32 %v5458_v55, %v4862_v6  ;;  %v4883_v23 = vmax.f32 %v4871_v22, 0.0 }
 0xfb5   : >> { %v6113_v0 = vpop.f32.mrf.mxu1 }
 0xfb6   : >> { %v4874_v9 = vadd.f32 %v6113_v0, %v5458_v55  ;;  %v4881_v58 = vmax.f32 %v4863_v2, 0.0 }
 0xfb7   : >> { %v4865_v54 = vpop.f32.mrf.mxu1 }
 0xfb8   : >> { %v4866_v57 = vadd.f32 %v5458_v55, %v4865_v54  ;;  %v4884_v24 = vmax.f32 %v4874_v9, 0.0 }
 0xfba   : >> { %v4882_v1 = vmax.f32 %v4866_v57, 0.0  ;;  %v4888_v62 = vpack.c.bf16 %v4884_v24, %v4883_v23 }
 0xfbc   : >> { %v4887_v25 = vpack.c.bf16 %v4882_v1, %v4881_v58 }
 0xfbe   : >> { %6126 = vmatprep.mubr.msk.bf16.mxu0 %vm4919_vm4, %v4887_v25 }
 0xfbf   : >> { %6127 = vmatmul.mubr.msk.bf16.gmra.mxu0 %vm4919_vm4, %v4888_v62 }
0x106f   : >> { %v6124_v61 = vpop.f32.mrf.mxu0 }
0x1070   : >> { %v4975_v33 = vadd.f32 %v6124_v61, %v5465_v11 }
0x1071   : >> { %v4966_v47 = vpop.f32.mrf.mxu0 }
0x1072   : >> { %v4999_v4 = vadd.f32 %v4975_v33, %v7898_v38  ;;  %v4967_v7 = vadd.f32 %v5465_v11, %v4966_v47 }
0x1073   : >> { %v6125_v15 = vpop.f32.mrf.mxu0 }
0x1074   : >> { %v4997_v43 = vadd.f32 %v4967_v7, %v7892_v31  ;;  %v4978_v39 = vadd.f32 %v6125_v15, %v5465_v11  ;;  %v5011_v13 = vsel %vm663_vm0, %v4999_v4, 0.0 }
0x1075   : >> { %5012 = vadd.xlane.f32.xlu1 %v5011_v13  ;;  %v4969_v53 = vpop.f32.mrf.mxu0 }
0x1076   : >> { %v5000_v63 = vadd.f32 %v4978_v39, %v7900_v17  ;;  %v4970_v16 = vadd.f32 %v5465_v11, %v4969_v53  ;;  %v5005_v10 = vsel %vm663_vm0, %v4997_v43, 0.0 }
0x1078   : >> { %v4998_v27 = vadd.f32 %v4970_v16, %v7894_v37  ;;  %v5014_v45 = vsel %vm663_vm0, %v5000_v63, 0.0 }
0x1079   : >> { %5015 = vadd.xlane.f32.xlu0 %v5014_v45  ;;  %5006 = vadd.xlane.f32.xlu1 %v5005_v10 }
0x107a   : >> { %v5008_v38 = vsel %vm663_vm0, %v4998_v27, 0.0 }
0x107d   : >> { %5009 = vadd.xlane.f32.xlu0 %v5008_v38 }
0x107f   : >> { %v6128_v31 = vpop.f32.mrf.mxu0 }
0x1080   : >> { %v4991_v34 = vadd.f32 %v6128_v31, %v5465_v11 }
0x1081   : >> { %v4982_v48 = vpop.f32.mrf.mxu0 }
0x1082   : >> { %v4983_v5 = vadd.f32 %v5465_v11, %v4982_v48  ;;  %v5003_v8 = vadd.f32 %v4991_v34, %v7916_v28 }
0x1083   : >> { %v6129_v59 = vpop.f32.mrf.mxu0 }
0x1084   : >> { %v5001_v30 = vadd.f32 %v4983_v5, %v7910_v42  ;;  %v4994_v37 = vadd.f32 %v6129_v59, %v5465_v11  ;;  %v5023_v18 = vsel %vm663_vm0, %v5003_v8, 0.0 }
0x1085   : >> { %v4985_v17 = vpop.f32.mrf.mxu0 }
0x1086   : >> { %v4986_v12 = vadd.f32 %v5465_v11, %v4985_v17  ;;  %v5017_v60 = vsel %vm663_vm0, %v5001_v30, 0.0  ;;  %v5004_v36 = vadd.f32 %v4994_v37, %v7918_v46 }
0x1087   : >> { %5018 = vadd.xlane.f32.xlu1 %v5017_v60 }
0x1088   : >> { %v5002_v26 = vadd.f32 %v4986_v12, %v7912_v52  ;;  %v5026_v42 = vsel %vm663_vm0, %v5004_v36, 0.0  ;;  %v5475_v12 = vld [vmem:[%s639_s25] ss:$0 sm:$0xff]  ;;  %s6526_s25 = scalar_lea.vmem (%p583_p12), %s6525_s14, 32 }
0x1089   : > { %p6528_p2 = scmp.lt.s32.totalorder (%p583_p12), %s6526_s25, %s6520_s28 }
0x108a   : >> { %v5020_v41 = vsel %vm663_vm0, %v5002_v26, 0.0 }
0x108b   : >> { %5021 = vadd.xlane.f32.xlu0 %v5020_v41  ;;  %5024 = vadd.xlane.f32.xlu1 %v5023_v18  ;;  %p6529_p0 = por (%p583_p12), %p6528_p2, %p6527_p10 }
0x108d   : > { %p6530_p4 = pnand (%p583_p12), %p6529_p0, %p6523_p9 }
0x108f   : >> { %5027 = vadd.xlane.f32.xlu0 %v5026_v42 }
0x10fe   : >> { %v5013_v44 = vpop.xlane.xlu1 %5012 }
0x10ff   : >> { %v5031_v28 = vmul.f32 0.03125, %v5013_v44 }
0x1101   : >> { %v7955_v55 = vsub.f32 %v4999_v4, %v5031_v28 }
0x1102   : >> { %v5007_v20 = vpop.xlane.xlu1 %5006  ;;  %v5016_v35 = vpop.xlane.xlu0 %5015 }
0x1103   : >> { %v5029_v32 = vmul.f32 0.03125, %v5007_v20  ;;  %v5032_v19 = vmul.f32 0.03125, %v5016_v35  ;;  %v5047_v52 = vmul.f32 %v7955_v55, %v7955_v55 }
0x1105   : >> { %v7959_v46 = vsub.f32 %v4997_v43, %v5029_v32  ;;  %v7961_v3 = vsub.f32 %v5000_v63, %v5032_v19  ;;  %v5059_v14 = vsel %vm663_vm0, %v5047_v52, 0.0 }
0x1106   : >> { %5060 = vadd.xlane.f32.xlu1 %v5059_v14  ;;  %v5010_v50 = vpop.xlane.xlu0 %5009 }
0x1107   : >> { %v5030_v21 = vmul.f32 0.03125, %v5010_v50  ;;  %v5045_v56 = vmul.f32 %v7959_v46, %v7959_v46  ;;  %v5048_v40 = vmul.f32 %v7961_v3, %v7961_v3 }
0x1109   : >> { %v7968_v49 = vsub.f32 %v4998_v27, %v5030_v21  ;;  %v5053_v29 = vsel %vm663_vm0, %v5045_v56, 0.0  ;;  %v5062_v51 = vsel %vm663_vm0, %v5048_v40, 0.0 }
0x110a   : >> { %5054 = vadd.xlane.f32.xlu1 %v5053_v29  ;;  %5063 = vadd.xlane.f32.xlu0 %v5062_v51 }
0x110b   : >> { %v5046_v6 = vmul.f32 %v7968_v49, %v7968_v49 }
0x110d   : >> { %v5056_v0 = vsel %vm663_vm0, %v5046_v6, 0.0 }
0x110e   : >> { %5057 = vadd.xlane.f32.xlu0 %v5056_v0 }
0x1110   : >> { %v5019_v2 = vpop.xlane.xlu1 %5018 }
0x1111   : >> { %v5033_v9 = vmul.f32 0.03125, %v5019_v2 }
0x1113   : >> { %v7975_v22 = vsub.f32 %v5001_v30, %v5033_v9  ;;  %v5474_v30 = vld [vmem:[%s637_s29] ss:$0 sm:$0xff]  ;;  %s8048_s29 = scalar_lea.hbm (%p583_p12), %s8160_s17, %s5477_s19 }
0x1114   : >> { %v5025_v54 = vpop.xlane.xlu1 %5024  ;;  %v5022_v57 = vpop.xlane.xlu0 %5021 }
0x1115   : >> { %v5035_v24 = vmul.f32 0.03125, %v5025_v54  ;;  %v5034_v58 = vmul.f32 0.03125, %v5022_v57  ;;  %v5049_v1 = vmul.f32 %v7975_v22, %v7975_v22 }
0x1117   : >> { %v7979_v23 = vsub.f32 %v5003_v8, %v5035_v24  ;;  %v7981_v25 = vsub.f32 %v5002_v26, %v5034_v58  ;;  %v5065_v62 = vsel %vm663_vm0, %v5049_v1, 0.0 }
0x1118   : >> { %5066 = vadd.xlane.f32.xlu1 %v5065_v62  ;;  %v5028_v11 = vpop.xlane.xlu0 %5027 }
0x1119   : >> { %v5036_v61 = vmul.f32 0.03125, %v5028_v11  ;;  %v5051_v33 = vmul.f32 %v7979_v23, %v7979_v23  ;;  %v5050_v47 = vmul.f32 %v7981_v25, %v7981_v25 }
0x111b   : >> { %v7988_v4 = vsub.f32 %v5004_v36, %v5036_v61  ;;  %v5071_v7 = vsel %vm663_vm0, %v5051_v33, 0.0  ;;  %v5068_v15 = vsel %vm663_vm0, %v5050_v47, 0.0 }
0x111c   : >> { %5072 = vadd.xlane.f32.xlu1 %v5071_v7  ;;  %5069 = vadd.xlane.f32.xlu0 %v5068_v15 }
0x111d   : >> { %v5052_v43 = vmul.f32 %v7988_v4, %v7988_v4 }
0x111f   : >> { %v5074_v39 = vsel %vm663_vm0, %v5052_v43, 0.0  ;;  %v5142_v43 = vld [vmem:[#allocation2] sm:$0x1] (%p583_p12) }
0x1120   : >> { %5075 = vadd.xlane.f32.xlu0 %v5074_v39  ;;  %v6679_v39 = vmov (%p583_p12), 0.0  }
0x1121   : > { %6130 = vmatprep.subr.bf16.mxu0 (%p583_p12), %v6679_v39  ;;  %6138 = vmatprep.mubr.msk.bf16.mxu0 (%p583_p12), %vm6680_vm5, %v6679_v39 }
0x118f   : >> { %v5061_v13 = vpop.xlane.xlu1 %5060 }
0x1190   : >> { %v5079_v53 = vmul.f32 0.03125, %v5061_v13 }
0x1192   : >> { %v5087_v63 = vadd.f32 1e-05, %v5079_v53  ;;  %v6681_v53 = vmov (%p583_p12), 0  }
0x1193   : >> { %v5055_v16 = vpop.xlane.xlu1 %5054  ;;  %v5064_v27 = vpop.xlane.xlu0 %5063  ;;  %6465 = vset.pattern.permute.xlu0 (%p583_p12), %v6681_v53 }
0x1194   : >> { %6449 = vrsqrt.f32 %v5087_v63  ;;  %v5077_v45 = vmul.f32 0.03125, %v5055_v16  ;;  %v5080_v10 = vmul.f32 0.03125, %v5064_v27  ;;  %5145 = vperm.xlu0 (%p583_p12), %6465, %v5142_v43  }
0x1196   : >> { %v5085_v38 = vadd.f32 1e-05, %v5077_v45  ;;  %v5088_v31 = vadd.f32 1e-05, %v5080_v10  ;;  %v5137_v45 = vld [vmem:[%s8158_s21] sm:$0x1] (%p583_p12)  ;;  %v5148_v10 = vlaneseq (%p583_p12) }
0x1197   : >> { %v5058_v48 = vpop.xlane.xlu0 %5057 }
0x1198   : >> { %6451 = vrsqrt.f32 %v5085_v38  ;;  %v5078_v34 = vmul.f32 0.03125, %v5058_v48  ;;  %v5149_v38 = vshrl.u32 (%p583_p12), %v5148_v10, 7 }
0x1199   : >> { %6453 = vrsqrt.f32 %v5088_v31 }
0x119a   : >> { %v5086_v5 = vadd.f32 1e-05, %v5078_v34  ;;  %v5150_v31 = vsub.s32 (%p583_p12), 0, %v5149_v38 }
0x119c   : >> { %6455 = vrsqrt.f32 %v5086_v5 }
0x11a1   : >> { %v6450_v59 = vpop.eup %6449  ;;  %v5067_v17 = vpop.xlane.xlu1 %5066 }
0x11a2   : >> { %v5103_v8 = vmul.f32 %v6450_v59, %v7955_v55  ;;  %v5081_v37 = vmul.f32 0.03125, %v5067_v17 }
0x11a4   : >> { %v5117_v60 = vmul.f32 %v5474_v30, %v5103_v8  ;;  %v5089_v26 = vadd.f32 1e-05, %v5081_v37 }
0x11a5   : >> { %v6452_v36 = vpop.eup %6451  ;;  %v5073_v41 = vpop.xlane.xlu1 %5072 }
0x11a6   : >> { %v5070_v18 = vpop.xlane.xlu0 %5069  ;;  %v6454_v42 = vpop.eup %6453  ;;  %v8004_v20 = vadd.f32 %v5475_v12, %v5117_v60   ;;  %v5101_v28 = vmul.f32 %v6452_v36, %v7959_v46  ;;  %6457 = vrsqrt.f32 %v5089_v26  ;;  %v5083_v35 = vmul.f32 0.03125, %v5073_v41 }
0x11a7   : >> { %v5104_v32 = vmul.f32 %v6454_v42, %v7961_v3  ;;  %v5082_v19 = vmul.f32 0.03125, %v5070_v18 }
0x11a8   : >> { %v8149_v44 = vmov %v8004_v20  ;;  %v5115_v52 = vmul.f32 %v5474_v30, %v5101_v28  ;;  %v5091_v14 = vadd.f32 1e-05, %v5083_v35 }
0x11a9   : >> { %v6456_v55 = vpop.eup %6455  ;;  %v5118_v50 = vmul.f32 %v5474_v30, %v5104_v32  ;;  %v5090_v21 = vadd.f32 1e-05, %v5082_v19 }
0x11aa   : >> { %v5076_v56 = vpop.xlane.xlu0 %5075  ;;  %v5129_v40 = vadd.f32 %v5475_v12, %v5115_v52   ;;  %v5102_v29 = vmul.f32 %v6456_v55, %v7968_v49  ;;  %6459 = vrsqrt.f32 %v5091_v14 }
0x11ab   : >> { %v5084_v51 = vmul.f32 0.03125, %v5076_v56  ;;  %v5132_v6 = vadd.f32 %v5475_v12, %v5118_v50   ;;  %6461 = vrsqrt.f32 %v5090_v21 }
0x11ac   : >> { %v5116_v20 = vmul.f32 %v5474_v30, %v5102_v29  ;;  %v8157_v18 = vmov %v5129_v40 }
0x11ad   : >> { %v5092_v46 = vadd.f32 1e-05, %v5084_v51  ;;  %v8154_v21 = vmov %v5132_v6 }
0x11ae   : >> { %v5130_v0 = vadd.f32 %v5475_v12, %v5116_v20   ;;  %v8155_v20 = vmov %v8149_v44 }
0x11af   : >> { %6463 = vrsqrt.f32 %v5092_v46 }
0x11b0   : >> { %v8156_v19 = vmov %v5130_v0 }
0x11b3   : >> { %v6458_v2 = vpop.eup %6457 }
0x11b4   : >> { %v5105_v3 = vmul.f32 %v6458_v2, %v7975_v22 }
0x11b6   : >> { %v5119_v9 = vmul.f32 %v5474_v30, %v5105_v3 }
0x11b7   : >> { %v6460_v54 = vpop.eup %6459 }
0x11b8   : >> { %v6462_v57 = vpop.eup %6461  ;;  %v5133_v58 = vadd.f32 %v5475_v12, %v5119_v9   ;;  %v5107_v24 = vmul.f32 %v6460_v54, %v7979_v23 }
0x11b9   : >> { %v5106_v1 = vmul.f32 %v6462_v57, %v7981_v25 }
0x11ba   : >> { %v5121_v49 = vmul.f32 %v5474_v30, %v5107_v24  ;;  %v8153_v22 = vmov %v5133_v58 }
0x11bb   : >> { %v5120_v11 = vmul.f32 %v5474_v30, %v5106_v1  ;;  %v5139_v22 = vpack.c.bf16 (%p583_p12), %v5132_v6, %v8149_v44 }
0x11bc   : >> { %v6464_v62 = vpop.eup %6463  ;;  %v5135_v61 = vadd.f32 %v5475_v12, %v5121_v49  }
0x11bd   : >> { %v5108_v33 = vmul.f32 %v6464_v62, %v7988_v4  ;;  %v5134_v47 = vadd.f32 %v5475_v12, %v5120_v11  }
0x11be   : >> { %v8151_v24 = vmov %v5135_v61 }
0x11bf   : >> { %v5122_v7 = vmul.f32 %v5474_v30, %v5108_v33  ;;  %v8152_v23 = vmov %v5134_v47  ;;  %585 = sbr.rel (!%p583_p12) target bundleno = 94 (0x5e), region = 152  ;;  %v5140_v63 = vpack.c.bf16 (%p583_p12), %v5134_v47, %v5133_v58 }
0x11c0   : > { %v5160_v23 = vsel (%p583_p12), %vm663_vm0, %v5139_v22, 0 }
0x11c1   : >> { %v5136_v15 = vadd.f32 %v5475_v12, %v5122_v7   ;;  %v5163_v16 = vsel (%p583_p12), %vm663_vm0, %v5140_v63, 0 }
0x11c3   : >> { %v8150_v25 = vmov %v5136_v15  ;;  %v5141_v4 = vpack.c.bf16 (%p583_p12), %v5136_v15, %v5135_v61 }
0x11c4   : > { %v5138_v25 = vpack.c.bf16 %v5130_v0, %v5129_v40 }
0x11c5   : > { %v5166_v13 = vsel %vm663_vm0, %v5141_v4, 0 }
0x11c6   : > { %6131 = vmatpush3.bf16.xpose.msra.mxu0 %v5166_v13  ;;  %v5157_v27 = vsel %vm663_vm0, %v5138_v25, 0 }
0x11c7   : > { %6132 = vmatprep.subr.bf16.mxu0 %v6679_v39 }
0x11ce   : > { %6133 = vmatpush3.bf16.xpose.msra.mxu0 %v5163_v16 }
0x11cf   : > { %6134 = vmatprep.subr.bf16.mxu0 %v6679_v39 }
0x11d6   : > { %6135 = vmatpush3.bf16.xpose.msra.mxu0 %v5160_v23 }
0x11d7   : > { %6136 = vmatprep.subr.bf16.mxu0 %v6679_v39 }
0x11de   : > { %6137 = vmatpush3.bf16.xpose.msra.mxu0 %v5157_v27 }
0x11e5   : > { %6139 = vmatmul.mubr.msk.bf16.vlgmr.msra.gmra.mxu0 %vm663_vm0, %v5137_v45 }
0x120f   : > { %v5146_v48 = vpop.permute.xlu0 %5145 }
0x1210   : > { %v5151_v34 = vrot.slane %v5146_v48, %v5150_v31 }
0x12a5   : > { %v5202_v5 = vpop.f32.mrf.mxu0 }
0x12a6   : > { %v5203_v59 = vadd.f32 %v5202_v5, %v5151_v34 }
0x12a7   : > { %v6140_v30 = vpop.f32.mrf.mxu0 }
0x12a8   : > { %5209 = vst.msk [vmem:[%s553_s12] sm:$0x1] %vm5208_vm6, %v5203_v59 }
0x12a9   : > { %v5205_v17 = vpop.f32.mrf.mxu0 }
0x12aa   : > { %6533 = shalt.err (!%p6530_p4)
}
0x12ab   : > { %s6534_s12 = scalar_lea.hbm %s8048_s29, 16  ;;  %s6538_s18 = scalar_lea.hbm %s8160_s17, 32 }
0x12ac   : > { %p6535_p11 = scmp.ne.s32.totalorder %s8048_s29, %s6534_s12  ;;  %p6539_p13 = scmp.lt.s32.totalorder %s8048_s29, %s8160_s17 }
0x12ad   : > { %p6540_p3 = scmp.lt.s32.totalorder %s6538_s18, %s6534_s12 }
0x12ae   : > { %p6536_p5 = pnand %p6535_p11, %p8161_p7 }
0x12af   : > { %p6541_p12 = por %p6540_p3, %p6539_p13 }
0x12b0   : > { %p6537_p6 = pneg %p6536_p5 }
0x12b2   : > { %p6542_p1 = pnand %p6541_p12, %p6537_p6 }
0x12b4   : > { %6545 = shalt.err (!%p6542_p1)
}
0x12b5   : > { %6156 = dma.vmem_to_hbm [thread:$0]  (%p8161_p7), %s8050_s30, 16, %s8048_s29, %s5211_s15   ;;  %v6141_v8 = vpop.f32.mrf.mxu0 }
0x12b6 PF: > { %s8162_s22 = sld [smem:[#allocation12_spill]]  ;;  %p8165_p9 = scmp.ge.s32.totalorder %s6624_s26, 2 }
0x12b7   : > { %s8163_s0 = sld [smem:[#allocation17_spill]] }
0x12bc   : > { %s5235_s28 = sand.u32 1, %s8162_s22  }
0x12bd   : > { %p8164_p8 = scmp.ne.s32.totalorder %s8163_s0, 0  ;;  %s5236_s27 = scalar_lea.sflag [#allocation5], %s5235_s28 }
0x12bf   : > { %p6167_p10 = pnand %p8165_p9, %p8164_p8 }
0x12c1   : > { %p6168_p2 = pneg %p6167_p10 }
0x12c3   : > { %6607 = dma.done.wait (%p6168_p2), %s5236_s27, 16  }
0x12c4   : > { %6609 = vsyncadd (%p6168_p2), %s5236_s27, 4294967280  ;;  %s8166_s26 = sld [smem:[#allocation14_spill]]  ;;  %s8169_s23 = smov %s6616_s24 }
0x12c5   : > { %s8167_s14 = sld [smem:[#allocation13_spill]] }
0x12c6   : > { %s8168_s25 = sld [smem:[#allocation15_spill]] }
0x12ca   : > { %p32_p0 = scmp.ge.s32.totalorder %s8166_s26, 4  }
0x12cb   : > { %s8170_s24 = smov %s8167_s14 }
0x12cc   :  { %34 = sbr.rel (!%p32_p0) target bundleno = 12 (0xc), region = 163 }
0x12d1   :  { %5240 = vsyncpa [#allocation4], 1 }
0x12d2   :  { %5242 = vsyncpa [#allocation4 + $0x1], 1 }
0x12d3   :  { %5243 = vsyncpa [#allocation7], 1 }
0x12d4   :  { %5244 = vsyncpa [#allocation5], 1 }
0x12d5   :  { %5246 = vsyncpa [#allocation5 + $0x1], 1 }

</bundles_post_ra>
